<compile_context>
chip_gen: v6e
topology: v6e:2x2x1
jax: 0.10.0
libtpu: 0.0.40
codegen_flags: <defaults>
</compile_context>

<pallas_src>
import functools

import jax
import jax.numpy as jnp
from jax import lax
from jax.experimental import pallas as pl
from jax.experimental.pallas import tpu as pltpu


def _msmha_kernel(q_ref, k_ref, v_ref, cost_ref,
                  w1s_ref, w1c_ref, b1_ref, w2_ref, b2_ref,
                  o_ref, *, head_num, qkv_dim, ms_hidden_dim, batch_block):
    """One grid step = `batch_block` batch elements, all heads.

    q_ref:    (batch_block, H, R, D)   VMEM
    k_ref:    (batch_block, H, C, D)   VMEM
    v_ref:    (batch_block, H, C, D)   VMEM
    cost_ref: (batch_block, R, C)      VMEM  (fetched once per batch element)
    w1s_ref:  (H, M) SMEM   mix1_weight[:,0,:] * 1/sqrt(qkv_dim)  (scale folded)
    w1c_ref:  (H, M) SMEM   mix1_weight[:,1,:]
    b1_ref:   (H, M) SMEM
    w2_ref:   (H, M) SMEM   mix2_weight[:,:,0]
    b2_ref:   (H,)   SMEM
    o_ref:    (batch_block, R, H*D)    VMEM  (final concat layout, lane-dense store)
    """
    H, D, M = head_num, qkv_dim, ms_hidden_dim
    del D  # (only used for documentation; head slices come out of the concat)

    for bb in range(batch_block):
        cost = cost_ref[bb]                      # (R, C) f32, shared by all heads
        head_outs = []
        for h in range(H):
            qh = q_ref[bb, h]                    # (R, D)
            kh = k_ref[bb, h]                    # (C, D)
            vh = v_ref[bb, h]                    # (C, D)

            # dot-product score on the MXU; 1/sqrt(qkv_dim) is folded into w1s.
            s = lax.dot_general(qh, kh, (((1,), (1,)), ((), ())),
                                preferred_element_type=jnp.float32)  # (R, C)

            # mixed-score MLP (2 -> M -> 1), fused per hidden unit with SMEM
            # scalar weights so every op is a scalar-operand VPU op.
            acc = jnp.zeros_like(s) + b2_ref[h]
            for m in range(M):
                hid = s * w1s_ref[h, m] + cost * w1c_ref[h, m] + b1_ref[h, m]
                acc = acc + jnp.maximum(hid, 0.0) * w2_ref[h, m]
            # TODO(synk): for large R*C (real ATSP node counts) map this MLP onto
            # the MXU with row-tiling of the (R*C, M) intermediate instead of the
            # per-m VPU loop.

            # softmax over columns; normalize *after* the PV matmul so the divide
            # touches an (R, D) tensor instead of (R, C).
            mx = jnp.max(acc, axis=-1, keepdims=True)
            e = jnp.exp(acc - mx)
            l = jnp.sum(e, axis=-1, keepdims=True)               # (R, 1)
            pv = jnp.dot(e, vh, preferred_element_type=jnp.float32)  # (R, D)
            head_outs.append(pv * (1.0 / l))

        # single store of the final (R, H*D) slab in concat-head order.
        o_ref[bb] = jnp.concatenate(head_outs, axis=-1).astype(o_ref.dtype)


def mixed_score_mha(q, k, v, cost_mat, params, model_params, *, batch_block=1):
    B, H, R, D = q.shape
    C = k.shape[2]
    M = model_params['ms_hidden_dim']
    sqrt_qkv_dim = model_params['sqrt_qkv_dim']

    assert B % batch_block == 0, "batch must be divisible by batch_block"

    # Flatten the per-head mixing parameters to SMEM-friendly 2-D/1-D f32 arrays
    # and fold the 1/sqrt(qkv_dim) score scale into the first-layer weight.
    w1 = params['mix1_weight'].astype(jnp.float32)                 # (H, 2, M)
    w1s = w1[:, 0, :] * jnp.float32(1.0 / sqrt_qkv_dim)            # (H, M)
    w1c = w1[:, 1, :]                                              # (H, M)
    b1 = params['mix1_bias'].reshape(H, M).astype(jnp.float32)     # (H, M)
    w2 = params['mix2_weight'].reshape(H, M).astype(jnp.float32)   # (H, M)
    b2 = params['mix2_bias'].reshape(H).astype(jnp.float32)        # (H,)

    kernel = functools.partial(_msmha_kernel,
                               head_num=H, qkv_dim=D,
                               ms_hidden_dim=M, batch_block=batch_block)

    smem_spec = pl.BlockSpec(memory_space=pltpu.MemorySpace.SMEM)

    out = pl.pallas_call(
        kernel,
        out_shape=jax.ShapeDtypeStruct((B, R, H * D), q.dtype),
        grid=(B // batch_block,),
        in_specs=[
            pl.BlockSpec((batch_block, H, R, D), lambda b: (b, 0, 0, 0)),   # q
            pl.BlockSpec((batch_block, H, C, D), lambda b: (b, 0, 0, 0)),   # k
            pl.BlockSpec((batch_block, H, C, D), lambda b: (b, 0, 0, 0)),   # v
            pl.BlockSpec((batch_block, R, C),    lambda b: (b, 0, 0)),      # cost_mat
            smem_spec,   # w1s  (scaled mix1_weight[:,0,:])
            smem_spec,   # w1c  (mix1_weight[:,1,:])
            smem_spec,   # b1
            smem_spec,   # w2
            smem_spec,   # b2
        ],
        out_specs=pl.BlockSpec((batch_block, R, H * D), lambda b: (b, 0, 0)),
        compiler_params=pltpu.CompilerParams(
            dimension_semantics=("parallel",)),
    )(q, k, v, cost_mat, w1s, w1c, b1, w2, b2)

    return out   # already (B, R, H*D); no wrapper transpose/reshape needed


def mixed_score_mha_ref(q, k, v, cost_mat, params, model_params):
    """Pure-JAX reference matching the PyTorch forward exactly."""
    B, H, R, D = q.shape
    C = k.shape[2]
    sqrt_qkv_dim = model_params['sqrt_qkv_dim']
    dot_product = jnp.einsum('bhrd,bhcd->bhrc', q, k)
    dot_product_score = dot_product / sqrt_qkv_dim
    cost_mat_score = jnp.broadcast_to(cost_mat[:, None, :, :], (B, H, R, C))
    two_scores = jnp.stack((dot_product_score, cost_mat_score), axis=4)   # (B,H,R,C,2)
    two_scores_t = jnp.swapaxes(two_scores, 1, 2)                         # (B,R,H,C,2)
    ms1 = jnp.einsum('brhcd,hdm->brhcm', two_scores_t, params['mix1_weight'])
    ms1 = ms1 + params['mix1_bias'][None, None, :, None, :]
    ms1_act = jnp.maximum(ms1, 0.0)
    ms2 = jnp.einsum('brhcm,hmo->brhco', ms1_act, params['mix2_weight'])
    ms2 = ms2 + params['mix2_bias'][None, None, :, None, :]
    mixed = jnp.swapaxes(ms2, 1, 2)[..., 0]                               # (B,H,R,C)
    weights = jax.nn.softmax(mixed, axis=3)
    out = jnp.einsum('bhrc,bhcd->bhrd', weights, v)
    return jnp.transpose(out, (0, 2, 1, 3)).reshape(B, R, H * D)


if __name__ == "__main__":
    # model params
    head_num = 4
    qkv_dim = 8
    ms_hidden_dim = 16
    model_params = dict(
        head_num=head_num,
        qkv_dim=qkv_dim,
        sqrt_qkv_dim=float(qkv_dim) ** 0.5,
        ms_hidden_dim=ms_hidden_dim,
        ms_layer1_init=(1.0 / 2.0) ** 0.5,
        ms_layer2_init=(1.0 / ms_hidden_dim) ** 0.5,
    )

    batch, row_cnt, col_cnt = 4, 8, 16

    key = jax.random.PRNGKey(0)
    kq, kk, kv, kc, k1w, k1b, k2w, k2b = jax.random.split(key, 8)

    q = jax.random.normal(kq, (batch, head_num, row_cnt, qkv_dim), dtype=jnp.float32)
    k = jax.random.normal(kk, (batch, head_num, col_cnt, qkv_dim), dtype=jnp.float32)
    v = jax.random.normal(kv, (batch, head_num, col_cnt, qkv_dim), dtype=jnp.float32)
    cost_mat = jax.random.uniform(kc, (batch, row_cnt, col_cnt), dtype=jnp.float32)

    m1, m2 = model_params['ms_layer1_init'], model_params['ms_layer2_init']
    params = dict(
        mix1_weight=jax.random.uniform(k1w, (head_num, 2, ms_hidden_dim),
                                       minval=-m1, maxval=m1, dtype=jnp.float32),
        mix1_bias=jax.random.uniform(k1b, (head_num, ms_hidden_dim),
                                     minval=-m1, maxval=m1, dtype=jnp.float32),
        mix2_weight=jax.random.uniform(k2w, (head_num, ms_hidden_dim, 1),
                                       minval=-m2, maxval=m2, dtype=jnp.float32),
        mix2_bias=jax.random.uniform(k2b, (head_num, 1),
                                     minval=-m2, maxval=m2, dtype=jnp.float32),
    )

    # batch_block=2 exercises intra-block batching while keeping a parallel grid
    # axis of extent >= 2 (megacore-friendly on v7x).
    out = mixed_score_mha(q, k, v, cost_mat, params, model_params, batch_block=2)
    out = jax.block_until_ready(out)

    ref = mixed_score_mha_ref(q, k, v, cost_mat, params, model_params)
    assert out.shape == (batch, row_cnt, head_num * qkv_dim)
    assert jnp.allclose(out, ref, atol=1e-5, rtol=1e-5), \
        f"max abs err {jnp.max(jnp.abs(out - ref))}"

    print("KERNEL_OK")
</pallas_src>

<mosaic_0001>
module attributes {stable_mosaic.version = 11 : i64} {
  func.func @_msmha_kernel(%arg0: i32, %arg1: memref<2x4x8x8xf32, #tpu.memory_space<vmem>>, %arg2: memref<2x4x16x8xf32, #tpu.memory_space<vmem>>, %arg3: memref<2x4x16x8xf32, #tpu.memory_space<vmem>>, %arg4: memref<2x8x16xf32, #tpu.memory_space<vmem>>, %arg5: memref<4x16xf32, #tpu.memory_space<smem>>, %arg6: memref<4x16xf32, #tpu.memory_space<smem>>, %arg7: memref<4x16xf32, #tpu.memory_space<smem>>, %arg8: memref<4x16xf32, #tpu.memory_space<smem>>, %arg9: memref<4xf32, #tpu.memory_space<smem>>, %arg10: memref<2x8x32xf32, #tpu.memory_space<vmem>>) attributes {dimension_semantics = [#tpu.dimension_semantics<parallel>], iteration_bounds = array<i64: 2>, scalar_prefetch = 0 : i64, scratch_operands = 0 : i64, tpu.core_type = #tpu.core_type<tc>, window_params = [{transform_indices = @transform_0, window_bounds = array<i64: 2, 4, 8, 8>}, {transform_indices = @transform_1, window_bounds = array<i64: 2, 4, 16, 8>}, {transform_indices = @transform_2, window_bounds = array<i64: 2, 4, 16, 8>}, {transform_indices = @transform_3, window_bounds = array<i64: 2, 8, 16>}, {transform_indices = @transform_4, window_bounds = array<i64: 4, 16>}, {transform_indices = @transform_5, window_bounds = array<i64: 4, 16>}, {transform_indices = @transform_6, window_bounds = array<i64: 4, 16>}, {transform_indices = @transform_7, window_bounds = array<i64: 4, 16>}, {transform_indices = @transform_8, window_bounds = array<i64: 4>}, {transform_indices = @transform_9, window_bounds = array<i64: 2, 8, 32>}]} {
    %c0 = arith.constant 0 : index
    %c0_0 = arith.constant 0 : index
    %c0_1 = arith.constant 0 : index
    %0 = vector.load %arg4[%c0, %c0_0, %c0_1] : memref<2x8x16xf32, #tpu.memory_space<vmem>>, vector<1x8x16xf32>
    %1 = vector.shape_cast %0 : vector<1x8x16xf32> to vector<8x16xf32>
    %c0_2 = arith.constant 0 : index
    %c0_3 = arith.constant 0 : index
    %c0_4 = arith.constant 0 : index
    %c0_5 = arith.constant 0 : index
    %2 = vector.load %arg1[%c0_2, %c0_3, %c0_4, %c0_5] : memref<2x4x8x8xf32, #tpu.memory_space<vmem>>, vector<1x1x8x8xf32>
    %3 = vector.shape_cast %2 : vector<1x1x8x8xf32> to vector<8x8xf32>
    %c0_6 = arith.constant 0 : index
    %c0_7 = arith.constant 0 : index
    %c0_8 = arith.constant 0 : index
    %c0_9 = arith.constant 0 : index
    %4 = vector.load %arg2[%c0_6, %c0_7, %c0_8, %c0_9] : memref<2x4x16x8xf32, #tpu.memory_space<vmem>>, vector<1x1x16x8xf32>
    %5 = vector.shape_cast %4 : vector<1x1x16x8xf32> to vector<16x8xf32>
    %c0_10 = arith.constant 0 : index
    %c0_11 = arith.constant 0 : index
    %c0_12 = arith.constant 0 : index
    %c0_13 = arith.constant 0 : index
    %6 = vector.load %arg3[%c0_10, %c0_11, %c0_12, %c0_13] : memref<2x4x16x8xf32, #tpu.memory_space<vmem>>, vector<1x1x16x8xf32>
    %7 = vector.shape_cast %6 : vector<1x1x16x8xf32> to vector<16x8xf32>
    %cst = arith.constant dense<0.000000e+00> : vector<8x16xf32>
    %8 = tpu.matmul %3, %5, %cst {dimension_numbers = #tpu.dot_dimension_numbers<[1], [1], [0], [0], [0, 0, 1, 0], [], []>} : vector<8x8xf32>, vector<16x8xf32>, vector<8x16xf32> -> vector<8x16xf32>
    %cst_14 = arith.constant 0.000000e+00 : f32
    %9 = vector.broadcast %cst_14 : f32 to vector<8x16xf32>
    %c0_15 = arith.constant 0 : index
    %10 = memref.load %arg9[%c0_15] : memref<4xf32, #tpu.memory_space<smem>>
    %11 = vector.broadcast %10 : f32 to vector<8x16xf32>
    %12 = arith.addf %9, %11 : vector<8x16xf32>
    %c0_16 = arith.constant 0 : index
    %c0_17 = arith.constant 0 : index
    %13 = memref.load %arg5[%c0_16, %c0_17] : memref<4x16xf32, #tpu.memory_space<smem>>
    %14 = vector.broadcast %13 : f32 to vector<8x16xf32>
    %15 = arith.mulf %8, %14 : vector<8x16xf32>
    %c0_18 = arith.constant 0 : index
    %c0_19 = arith.constant 0 : index
    %16 = memref.load %arg6[%c0_18, %c0_19] : memref<4x16xf32, #tpu.memory_space<smem>>
    %17 = vector.broadcast %16 : f32 to vector<8x16xf32>
    %18 = arith.mulf %1, %17 : vector<8x16xf32>
    %19 = arith.addf %15, %18 : vector<8x16xf32>
    %c0_20 = arith.constant 0 : index
    %c0_21 = arith.constant 0 : index
    %20 = memref.load %arg7[%c0_20, %c0_21] : memref<4x16xf32, #tpu.memory_space<smem>>
    %21 = vector.broadcast %20 : f32 to vector<8x16xf32>
    %22 = arith.addf %19, %21 : vector<8x16xf32>
    %cst_22 = arith.constant 0.000000e+00 : f32
    %23 = vector.broadcast %cst_22 : f32 to vector<8x16xf32>
    %24 = arith.maximumf %22, %23 : vector<8x16xf32>
    %c0_23 = arith.constant 0 : index
    %c0_24 = arith.constant 0 : index
    %25 = memref.load %arg8[%c0_23, %c0_24] : memref<4x16xf32, #tpu.memory_space<smem>>
    %26 = vector.broadcast %25 : f32 to vector<8x16xf32>
    %27 = arith.mulf %24, %26 : vector<8x16xf32>
    %28 = arith.addf %12, %27 : vector<8x16xf32>
    %c0_25 = arith.constant 0 : index
    %c1 = arith.constant 1 : index
    %29 = memref.load %arg5[%c0_25, %c1] : memref<4x16xf32, #tpu.memory_space<smem>>
    %30 = vector.broadcast %29 : f32 to vector<8x16xf32>
    %31 = arith.mulf %8, %30 : vector<8x16xf32>
    %c0_26 = arith.constant 0 : index
    %c1_27 = arith.constant 1 : index
    %32 = memref.load %arg6[%c0_26, %c1_27] : memref<4x16xf32, #tpu.memory_space<smem>>
    %33 = vector.broadcast %32 : f32 to vector<8x16xf32>
    %34 = arith.mulf %1, %33 : vector<8x16xf32>
    %35 = arith.addf %31, %34 : vector<8x16xf32>
    %c0_28 = arith.constant 0 : index
    %c1_29 = arith.constant 1 : index
    %36 = memref.load %arg7[%c0_28, %c1_29] : memref<4x16xf32, #tpu.memory_space<smem>>
    %37 = vector.broadcast %36 : f32 to vector<8x16xf32>
    %38 = arith.addf %35, %37 : vector<8x16xf32>
    %cst_30 = arith.constant 0.000000e+00 : f32
    %39 = vector.broadcast %cst_30 : f32 to vector<8x16xf32>
    %40 = arith.maximumf %38, %39 : vector<8x16xf32>
    %c0_31 = arith.constant 0 : index
    %c1_32 = arith.constant 1 : index
    %41 = memref.load %arg8[%c0_31, %c1_32] : memref<4x16xf32, #tpu.memory_space<smem>>
    %42 = vector.broadcast %41 : f32 to vector<8x16xf32>
    %43 = arith.mulf %40, %42 : vector<8x16xf32>
    %44 = arith.addf %28, %43 : vector<8x16xf32>
    %c0_33 = arith.constant 0 : index
    %c2 = arith.constant 2 : index
    %45 = memref.load %arg5[%c0_33, %c2] : memref<4x16xf32, #tpu.memory_space<smem>>
    %46 = vector.broadcast %45 : f32 to vector<8x16xf32>
    %47 = arith.mulf %8, %46 : vector<8x16xf32>
    %c0_34 = arith.constant 0 : index
    %c2_35 = arith.constant 2 : index
    %48 = memref.load %arg6[%c0_34, %c2_35] : memref<4x16xf32, #tpu.memory_space<smem>>
    %49 = vector.broadcast %48 : f32 to vector<8x16xf32>
    %50 = arith.mulf %1, %49 : vector<8x16xf32>
    %51 = arith.addf %47, %50 : vector<8x16xf32>
    %c0_36 = arith.constant 0 : index
    %c2_37 = arith.constant 2 : index
    %52 = memref.load %arg7[%c0_36, %c2_37] : memref<4x16xf32, #tpu.memory_space<smem>>
    %53 = vector.broadcast %52 : f32 to vector<8x16xf32>
    %54 = arith.addf %51, %53 : vector<8x16xf32>
    %cst_38 = arith.constant 0.000000e+00 : f32
    %55 = vector.broadcast %cst_38 : f32 to vector<8x16xf32>
    %56 = arith.maximumf %54, %55 : vector<8x16xf32>
    %c0_39 = arith.constant 0 : index
    %c2_40 = arith.constant 2 : index
    %57 = memref.load %arg8[%c0_39, %c2_40] : memref<4x16xf32, #tpu.memory_space<smem>>
    %58 = vector.broadcast %57 : f32 to vector<8x16xf32>
    %59 = arith.mulf %56, %58 : vector<8x16xf32>
    %60 = arith.addf %44, %59 : vector<8x16xf32>
    %c0_41 = arith.constant 0 : index
    %c3 = arith.constant 3 : index
    %61 = memref.load %arg5[%c0_41, %c3] : memref<4x16xf32, #tpu.memory_space<smem>>
    %62 = vector.broadcast %61 : f32 to vector<8x16xf32>
    %63 = arith.mulf %8, %62 : vector<8x16xf32>
    %c0_42 = arith.constant 0 : index
    %c3_43 = arith.constant 3 : index
    %64 = memref.load %arg6[%c0_42, %c3_43] : memref<4x16xf32, #tpu.memory_space<smem>>
    %65 = vector.broadcast %64 : f32 to vector<8x16xf32>
    %66 = arith.mulf %1, %65 : vector<8x16xf32>
    %67 = arith.addf %63, %66 : vector<8x16xf32>
    %c0_44 = arith.constant 0 : index
    %c3_45 = arith.constant 3 : index
    %68 = memref.load %arg7[%c0_44, %c3_45] : memref<4x16xf32, #tpu.memory_space<smem>>
    %69 = vector.broadcast %68 : f32 to vector<8x16xf32>
    %70 = arith.addf %67, %69 : vector<8x16xf32>
    %cst_46 = arith.constant 0.000000e+00 : f32
    %71 = vector.broadcast %cst_46 : f32 to vector<8x16xf32>
    %72 = arith.maximumf %70, %71 : vector<8x16xf32>
    %c0_47 = arith.constant 0 : index
    %c3_48 = arith.constant 3 : index
    %73 = memref.load %arg8[%c0_47, %c3_48] : memref<4x16xf32, #tpu.memory_space<smem>>
    %74 = vector.broadcast %73 : f32 to vector<8x16xf32>
    %75 = arith.mulf %72, %74 : vector<8x16xf32>
    %76 = arith.addf %60, %75 : vector<8x16xf32>
    %c0_49 = arith.constant 0 : index
    %c4 = arith.constant 4 : index
    %77 = memref.load %arg5[%c0_49, %c4] : memref<4x16xf32, #tpu.memory_space<smem>>
    %78 = vector.broadcast %77 : f32 to vector<8x16xf32>
    %79 = arith.mulf %8, %78 : vector<8x16xf32>
    %c0_50 = arith.constant 0 : index
    %c4_51 = arith.constant 4 : index
    %80 = memref.load %arg6[%c0_50, %c4_51] : memref<4x16xf32, #tpu.memory_space<smem>>
    %81 = vector.broadcast %80 : f32 to vector<8x16xf32>
    %82 = arith.mulf %1, %81 : vector<8x16xf32>
    %83 = arith.addf %79, %82 : vector<8x16xf32>
    %c0_52 = arith.constant 0 : index
    %c4_53 = arith.constant 4 : index
    %84 = memref.load %arg7[%c0_52, %c4_53] : memref<4x16xf32, #tpu.memory_space<smem>>
    %85 = vector.broadcast %84 : f32 to vector<8x16xf32>
    %86 = arith.addf %83, %85 : vector<8x16xf32>
    %cst_54 = arith.constant 0.000000e+00 : f32
    %87 = vector.broadcast %cst_54 : f32 to vector<8x16xf32>
    %88 = arith.maximumf %86, %87 : vector<8x16xf32>
    %c0_55 = arith.constant 0 : index
    %c4_56 = arith.constant 4 : index
    %89 = memref.load %arg8[%c0_55, %c4_56] : memref<4x16xf32, #tpu.memory_space<smem>>
    %90 = vector.broadcast %89 : f32 to vector<8x16xf32>
    %91 = arith.mulf %88, %90 : vector<8x16xf32>
    %92 = arith.addf %76, %91 : vector<8x16xf32>
    %c0_57 = arith.constant 0 : index
    %c5 = arith.constant 5 : index
    %93 = memref.load %arg5[%c0_57, %c5] : memref<4x16xf32, #tpu.memory_space<smem>>
    %94 = vector.broadcast %93 : f32 to vector<8x16xf32>
    %95 = arith.mulf %8, %94 : vector<8x16xf32>
    %c0_58 = arith.constant 0 : index
    %c5_59 = arith.constant 5 : index
    %96 = memref.load %arg6[%c0_58, %c5_59] : memref<4x16xf32, #tpu.memory_space<smem>>
    %97 = vector.broadcast %96 : f32 to vector<8x16xf32>
    %98 = arith.mulf %1, %97 : vector<8x16xf32>
    %99 = arith.addf %95, %98 : vector<8x16xf32>
    %c0_60 = arith.constant 0 : index
    %c5_61 = arith.constant 5 : index
    %100 = memref.load %arg7[%c0_60, %c5_61] : memref<4x16xf32, #tpu.memory_space<smem>>
    %101 = vector.broadcast %100 : f32 to vector<8x16xf32>
    %102 = arith.addf %99, %101 : vector<8x16xf32>
    %cst_62 = arith.constant 0.000000e+00 : f32
    %103 = vector.broadcast %cst_62 : f32 to vector<8x16xf32>
    %104 = arith.maximumf %102, %103 : vector<8x16xf32>
    %c0_63 = arith.constant 0 : index
    %c5_64 = arith.constant 5 : index
    %105 = memref.load %arg8[%c0_63, %c5_64] : memref<4x16xf32, #tpu.memory_space<smem>>
    %106 = vector.broadcast %105 : f32 to vector<8x16xf32>
    %107 = arith.mulf %104, %106 : vector<8x16xf32>
    %108 = arith.addf %92, %107 : vector<8x16xf32>
    %c0_65 = arith.constant 0 : index
    %c6 = arith.constant 6 : index
    %109 = memref.load %arg5[%c0_65, %c6] : memref<4x16xf32, #tpu.memory_space<smem>>
    %110 = vector.broadcast %109 : f32 to vector<8x16xf32>
    %111 = arith.mulf %8, %110 : vector<8x16xf32>
    %c0_66 = arith.constant 0 : index
    %c6_67 = arith.constant 6 : index
    %112 = memref.load %arg6[%c0_66, %c6_67] : memref<4x16xf32, #tpu.memory_space<smem>>
    %113 = vector.broadcast %112 : f32 to vector<8x16xf32>
    %114 = arith.mulf %1, %113 : vector<8x16xf32>
    %115 = arith.addf %111, %114 : vector<8x16xf32>
    %c0_68 = arith.constant 0 : index
    %c6_69 = arith.constant 6 : index
    %116 = memref.load %arg7[%c0_68, %c6_69] : memref<4x16xf32, #tpu.memory_space<smem>>
    %117 = vector.broadcast %116 : f32 to vector<8x16xf32>
    %118 = arith.addf %115, %117 : vector<8x16xf32>
    %cst_70 = arith.constant 0.000000e+00 : f32
    %119 = vector.broadcast %cst_70 : f32 to vector<8x16xf32>
    %120 = arith.maximumf %118, %119 : vector<8x16xf32>
    %c0_71 = arith.constant 0 : index
    %c6_72 = arith.constant 6 : index
    %121 = memref.load %arg8[%c0_71, %c6_72] : memref<4x16xf32, #tpu.memory_space<smem>>
    %122 = vector.broadcast %121 : f32 to vector<8x16xf32>
    %123 = arith.mulf %120, %122 : vector<8x16xf32>
    %124 = arith.addf %108, %123 : vector<8x16xf32>
    %c0_73 = arith.constant 0 : index
    %c7 = arith.constant 7 : index
    %125 = memref.load %arg5[%c0_73, %c7] : memref<4x16xf32, #tpu.memory_space<smem>>
    %126 = vector.broadcast %125 : f32 to vector<8x16xf32>
    %127 = arith.mulf %8, %126 : vector<8x16xf32>
    %c0_74 = arith.constant 0 : index
    %c7_75 = arith.constant 7 : index
    %128 = memref.load %arg6[%c0_74, %c7_75] : memref<4x16xf32, #tpu.memory_space<smem>>
    %129 = vector.broadcast %128 : f32 to vector<8x16xf32>
    %130 = arith.mulf %1, %129 : vector<8x16xf32>
    %131 = arith.addf %127, %130 : vector<8x16xf32>
    %c0_76 = arith.constant 0 : index
    %c7_77 = arith.constant 7 : index
    %132 = memref.load %arg7[%c0_76, %c7_77] : memref<4x16xf32, #tpu.memory_space<smem>>
    %133 = vector.broadcast %132 : f32 to vector<8x16xf32>
    %134 = arith.addf %131, %133 : vector<8x16xf32>
    %cst_78 = arith.constant 0.000000e+00 : f32
    %135 = vector.broadcast %cst_78 : f32 to vector<8x16xf32>
    %136 = arith.maximumf %134, %135 : vector<8x16xf32>
    %c0_79 = arith.constant 0 : index
    %c7_80 = arith.constant 7 : index
    %137 = memref.load %arg8[%c0_79, %c7_80] : memref<4x16xf32, #tpu.memory_space<smem>>
    %138 = vector.broadcast %137 : f32 to vector<8x16xf32>
    %139 = arith.mulf %136, %138 : vector<8x16xf32>
    %140 = arith.addf %124, %139 : vector<8x16xf32>
    %c0_81 = arith.constant 0 : index
    %c8 = arith.constant 8 : index
    %141 = memref.load %arg5[%c0_81, %c8] : memref<4x16xf32, #tpu.memory_space<smem>>
    %142 = vector.broadcast %141 : f32 to vector<8x16xf32>
    %143 = arith.mulf %8, %142 : vector<8x16xf32>
    %c0_82 = arith.constant 0 : index
    %c8_83 = arith.constant 8 : index
    %144 = memref.load %arg6[%c0_82, %c8_83] : memref<4x16xf32, #tpu.memory_space<smem>>
    %145 = vector.broadcast %144 : f32 to vector<8x16xf32>
    %146 = arith.mulf %1, %145 : vector<8x16xf32>
    %147 = arith.addf %143, %146 : vector<8x16xf32>
    %c0_84 = arith.constant 0 : index
    %c8_85 = arith.constant 8 : index
    %148 = memref.load %arg7[%c0_84, %c8_85] : memref<4x16xf32, #tpu.memory_space<smem>>
    %149 = vector.broadcast %148 : f32 to vector<8x16xf32>
    %150 = arith.addf %147, %149 : vector<8x16xf32>
    %cst_86 = arith.constant 0.000000e+00 : f32
    %151 = vector.broadcast %cst_86 : f32 to vector<8x16xf32>
    %152 = arith.maximumf %150, %151 : vector<8x16xf32>
    %c0_87 = arith.constant 0 : index
    %c8_88 = arith.constant 8 : index
    %153 = memref.load %arg8[%c0_87, %c8_88] : memref<4x16xf32, #tpu.memory_space<smem>>
    %154 = vector.broadcast %153 : f32 to vector<8x16xf32>
    %155 = arith.mulf %152, %154 : vector<8x16xf32>
    %156 = arith.addf %140, %155 : vector<8x16xf32>
    %c0_89 = arith.constant 0 : index
    %c9 = arith.constant 9 : index
    %157 = memref.load %arg5[%c0_89, %c9] : memref<4x16xf32, #tpu.memory_space<smem>>
    %158 = vector.broadcast %157 : f32 to vector<8x16xf32>
    %159 = arith.mulf %8, %158 : vector<8x16xf32>
    %c0_90 = arith.constant 0 : index
    %c9_91 = arith.constant 9 : index
    %160 = memref.load %arg6[%c0_90, %c9_91] : memref<4x16xf32, #tpu.memory_space<smem>>
    %161 = vector.broadcast %160 : f32 to vector<8x16xf32>
    %162 = arith.mulf %1, %161 : vector<8x16xf32>
    %163 = arith.addf %159, %162 : vector<8x16xf32>
    %c0_92 = arith.constant 0 : index
    %c9_93 = arith.constant 9 : index
    %164 = memref.load %arg7[%c0_92, %c9_93] : memref<4x16xf32, #tpu.memory_space<smem>>
    %165 = vector.broadcast %164 : f32 to vector<8x16xf32>
    %166 = arith.addf %163, %165 : vector<8x16xf32>
    %cst_94 = arith.constant 0.000000e+00 : f32
    %167 = vector.broadcast %cst_94 : f32 to vector<8x16xf32>
    %168 = arith.maximumf %166, %167 : vector<8x16xf32>
    %c0_95 = arith.constant 0 : index
    %c9_96 = arith.constant 9 : index
    %169 = memref.load %arg8[%c0_95, %c9_96] : memref<4x16xf32, #tpu.memory_space<smem>>
    %170 = vector.broadcast %169 : f32 to vector<8x16xf32>
    %171 = arith.mulf %168, %170 : vector<8x16xf32>
    %172 = arith.addf %156, %171 : vector<8x16xf32>
    %c0_97 = arith.constant 0 : index
    %c10 = arith.constant 10 : index
    %173 = memref.load %arg5[%c0_97, %c10] : memref<4x16xf32, #tpu.memory_space<smem>>
    %174 = vector.broadcast %173 : f32 to vector<8x16xf32>
    %175 = arith.mulf %8, %174 : vector<8x16xf32>
    %c0_98 = arith.constant 0 : index
    %c10_99 = arith.constant 10 : index
    %176 = memref.load %arg6[%c0_98, %c10_99] : memref<4x16xf32, #tpu.memory_space<smem>>
    %177 = vector.broadcast %176 : f32 to vector<8x16xf32>
    %178 = arith.mulf %1, %177 : vector<8x16xf32>
    %179 = arith.addf %175, %178 : vector<8x16xf32>
    %c0_100 = arith.constant 0 : index
    %c10_101 = arith.constant 10 : index
    %180 = memref.load %arg7[%c0_100, %c10_101] : memref<4x16xf32, #tpu.memory_space<smem>>
    %181 = vector.broadcast %180 : f32 to vector<8x16xf32>
    %182 = arith.addf %179, %181 : vector<8x16xf32>
    %cst_102 = arith.constant 0.000000e+00 : f32
    %183 = vector.broadcast %cst_102 : f32 to vector<8x16xf32>
    %184 = arith.maximumf %182, %183 : vector<8x16xf32>
    %c0_103 = arith.constant 0 : index
    %c10_104 = arith.constant 10 : index
    %185 = memref.load %arg8[%c0_103, %c10_104] : memref<4x16xf32, #tpu.memory_space<smem>>
    %186 = vector.broadcast %185 : f32 to vector<8x16xf32>
    %187 = arith.mulf %184, %186 : vector<8x16xf32>
    %188 = arith.addf %172, %187 : vector<8x16xf32>
    %c0_105 = arith.constant 0 : index
    %c11 = arith.constant 11 : index
    %189 = memref.load %arg5[%c0_105, %c11] : memref<4x16xf32, #tpu.memory_space<smem>>
    %190 = vector.broadcast %189 : f32 to vector<8x16xf32>
    %191 = arith.mulf %8, %190 : vector<8x16xf32>
    %c0_106 = arith.constant 0 : index
    %c11_107 = arith.constant 11 : index
    %192 = memref.load %arg6[%c0_106, %c11_107] : memref<4x16xf32, #tpu.memory_space<smem>>
    %193 = vector.broadcast %192 : f32 to vector<8x16xf32>
    %194 = arith.mulf %1, %193 : vector<8x16xf32>
    %195 = arith.addf %191, %194 : vector<8x16xf32>
    %c0_108 = arith.constant 0 : index
    %c11_109 = arith.constant 11 : index
    %196 = memref.load %arg7[%c0_108, %c11_109] : memref<4x16xf32, #tpu.memory_space<smem>>
    %197 = vector.broadcast %196 : f32 to vector<8x16xf32>
    %198 = arith.addf %195, %197 : vector<8x16xf32>
    %cst_110 = arith.constant 0.000000e+00 : f32
    %199 = vector.broadcast %cst_110 : f32 to vector<8x16xf32>
    %200 = arith.maximumf %198, %199 : vector<8x16xf32>
    %c0_111 = arith.constant 0 : index
    %c11_112 = arith.constant 11 : index
    %201 = memref.load %arg8[%c0_111, %c11_112] : memref<4x16xf32, #tpu.memory_space<smem>>
    %202 = vector.broadcast %201 : f32 to vector<8x16xf32>
    %203 = arith.mulf %200, %202 : vector<8x16xf32>
    %204 = arith.addf %188, %203 : vector<8x16xf32>
    %c0_113 = arith.constant 0 : index
    %c12 = arith.constant 12 : index
    %205 = memref.load %arg5[%c0_113, %c12] : memref<4x16xf32, #tpu.memory_space<smem>>
    %206 = vector.broadcast %205 : f32 to vector<8x16xf32>
    %207 = arith.mulf %8, %206 : vector<8x16xf32>
    %c0_114 = arith.constant 0 : index
    %c12_115 = arith.constant 12 : index
    %208 = memref.load %arg6[%c0_114, %c12_115] : memref<4x16xf32, #tpu.memory_space<smem>>
    %209 = vector.broadcast %208 : f32 to vector<8x16xf32>
    %210 = arith.mulf %1, %209 : vector<8x16xf32>
    %211 = arith.addf %207, %210 : vector<8x16xf32>
    %c0_116 = arith.constant 0 : index
    %c12_117 = arith.constant 12 : index
    %212 = memref.load %arg7[%c0_116, %c12_117] : memref<4x16xf32, #tpu.memory_space<smem>>
    %213 = vector.broadcast %212 : f32 to vector<8x16xf32>
    %214 = arith.addf %211, %213 : vector<8x16xf32>
    %cst_118 = arith.constant 0.000000e+00 : f32
    %215 = vector.broadcast %cst_118 : f32 to vector<8x16xf32>
    %216 = arith.maximumf %214, %215 : vector<8x16xf32>
    %c0_119 = arith.constant 0 : index
    %c12_120 = arith.constant 12 : index
    %217 = memref.load %arg8[%c0_119, %c12_120] : memref<4x16xf32, #tpu.memory_space<smem>>
    %218 = vector.broadcast %217 : f32 to vector<8x16xf32>
    %219 = arith.mulf %216, %218 : vector<8x16xf32>
    %220 = arith.addf %204, %219 : vector<8x16xf32>
    %c0_121 = arith.constant 0 : index
    %c13 = arith.constant 13 : index
    %221 = memref.load %arg5[%c0_121, %c13] : memref<4x16xf32, #tpu.memory_space<smem>>
    %222 = vector.broadcast %221 : f32 to vector<8x16xf32>
    %223 = arith.mulf %8, %222 : vector<8x16xf32>
    %c0_122 = arith.constant 0 : index
    %c13_123 = arith.constant 13 : index
    %224 = memref.load %arg6[%c0_122, %c13_123] : memref<4x16xf32, #tpu.memory_space<smem>>
    %225 = vector.broadcast %224 : f32 to vector<8x16xf32>
    %226 = arith.mulf %1, %225 : vector<8x16xf32>
    %227 = arith.addf %223, %226 : vector<8x16xf32>
    %c0_124 = arith.constant 0 : index
    %c13_125 = arith.constant 13 : index
    %228 = memref.load %arg7[%c0_124, %c13_125] : memref<4x16xf32, #tpu.memory_space<smem>>
    %229 = vector.broadcast %228 : f32 to vector<8x16xf32>
    %230 = arith.addf %227, %229 : vector<8x16xf32>
    %cst_126 = arith.constant 0.000000e+00 : f32
    %231 = vector.broadcast %cst_126 : f32 to vector<8x16xf32>
    %232 = arith.maximumf %230, %231 : vector<8x16xf32>
    %c0_127 = arith.constant 0 : index
    %c13_128 = arith.constant 13 : index
    %233 = memref.load %arg8[%c0_127, %c13_128] : memref<4x16xf32, #tpu.memory_space<smem>>
    %234 = vector.broadcast %233 : f32 to vector<8x16xf32>
    %235 = arith.mulf %232, %234 : vector<8x16xf32>
    %236 = arith.addf %220, %235 : vector<8x16xf32>
    %c0_129 = arith.constant 0 : index
    %c14 = arith.constant 14 : index
    %237 = memref.load %arg5[%c0_129, %c14] : memref<4x16xf32, #tpu.memory_space<smem>>
    %238 = vector.broadcast %237 : f32 to vector<8x16xf32>
    %239 = arith.mulf %8, %238 : vector<8x16xf32>
    %c0_130 = arith.constant 0 : index
    %c14_131 = arith.constant 14 : index
    %240 = memref.load %arg6[%c0_130, %c14_131] : memref<4x16xf32, #tpu.memory_space<smem>>
    %241 = vector.broadcast %240 : f32 to vector<8x16xf32>
    %242 = arith.mulf %1, %241 : vector<8x16xf32>
    %243 = arith.addf %239, %242 : vector<8x16xf32>
    %c0_132 = arith.constant 0 : index
    %c14_133 = arith.constant 14 : index
    %244 = memref.load %arg7[%c0_132, %c14_133] : memref<4x16xf32, #tpu.memory_space<smem>>
    %245 = vector.broadcast %244 : f32 to vector<8x16xf32>
    %246 = arith.addf %243, %245 : vector<8x16xf32>
    %cst_134 = arith.constant 0.000000e+00 : f32
    %247 = vector.broadcast %cst_134 : f32 to vector<8x16xf32>
    %248 = arith.maximumf %246, %247 : vector<8x16xf32>
    %c0_135 = arith.constant 0 : index
    %c14_136 = arith.constant 14 : index
    %249 = memref.load %arg8[%c0_135, %c14_136] : memref<4x16xf32, #tpu.memory_space<smem>>
    %250 = vector.broadcast %249 : f32 to vector<8x16xf32>
    %251 = arith.mulf %248, %250 : vector<8x16xf32>
    %252 = arith.addf %236, %251 : vector<8x16xf32>
    %c0_137 = arith.constant 0 : index
    %c15 = arith.constant 15 : index
    %253 = memref.load %arg5[%c0_137, %c15] : memref<4x16xf32, #tpu.memory_space<smem>>
    %254 = vector.broadcast %253 : f32 to vector<8x16xf32>
    %255 = arith.mulf %8, %254 : vector<8x16xf32>
    %c0_138 = arith.constant 0 : index
    %c15_139 = arith.constant 15 : index
    %256 = memref.load %arg6[%c0_138, %c15_139] : memref<4x16xf32, #tpu.memory_space<smem>>
    %257 = vector.broadcast %256 : f32 to vector<8x16xf32>
    %258 = arith.mulf %1, %257 : vector<8x16xf32>
    %259 = arith.addf %255, %258 : vector<8x16xf32>
    %c0_140 = arith.constant 0 : index
    %c15_141 = arith.constant 15 : index
    %260 = memref.load %arg7[%c0_140, %c15_141] : memref<4x16xf32, #tpu.memory_space<smem>>
    %261 = vector.broadcast %260 : f32 to vector<8x16xf32>
    %262 = arith.addf %259, %261 : vector<8x16xf32>
    %cst_142 = arith.constant 0.000000e+00 : f32
    %263 = vector.broadcast %cst_142 : f32 to vector<8x16xf32>
    %264 = arith.maximumf %262, %263 : vector<8x16xf32>
    %c0_143 = arith.constant 0 : index
    %c15_144 = arith.constant 15 : index
    %265 = memref.load %arg8[%c0_143, %c15_144] : memref<4x16xf32, #tpu.memory_space<smem>>
    %266 = vector.broadcast %265 : f32 to vector<8x16xf32>
    %267 = arith.mulf %264, %266 : vector<8x16xf32>
    %268 = arith.addf %252, %267 : vector<8x16xf32>
    %cst_145 = arith.constant dense<0xFF800000> : vector<8xf32>
    %269 = vector.multi_reduction <maximumf>, %268, %cst_145 [1] : vector<8x16xf32> to vector<8xf32>
    %270 = vector.shape_cast %269 : vector<8xf32> to vector<8x1xf32>
    %271 = vector.broadcast %270 : vector<8x1xf32> to vector<8x16xf32>
    %272 = arith.subf %268, %271 : vector<8x16xf32>
    %273 = math.exp %272 : vector<8x16xf32>
    %cst_146 = arith.constant dense<0.000000e+00> : vector<8xf32>
    %274 = vector.multi_reduction <add>, %273, %cst_146 [1] : vector<8x16xf32> to vector<8xf32>
    %275 = vector.shape_cast %274 : vector<8xf32> to vector<8x1xf32>
    %cst_147 = arith.constant dense<0.000000e+00> : vector<8x8xf32>
    %276 = tpu.matmul %273, %7, %cst_147 {dimension_numbers = #tpu.dot_dimension_numbers<[1], [0], [0], [1], [0, 0, 1, 1], [], []>} : vector<8x16xf32>, vector<16x8xf32>, vector<8x8xf32> -> vector<8x8xf32>
    %cst_148 = arith.constant 1.000000e+00 : f32
    %277 = vector.broadcast %cst_148 : f32 to vector<8x1xf32>
    %278 = arith.divf %277, %275 : vector<8x1xf32>
    %279 = vector.broadcast %278 : vector<8x1xf32> to vector<8x8xf32>
    %280 = arith.mulf %276, %279 : vector<8x8xf32>
    %c0_149 = arith.constant 0 : index
    %c1_150 = arith.constant 1 : index
    %c0_151 = arith.constant 0 : index
    %c0_152 = arith.constant 0 : index
    %281 = vector.load %arg1[%c0_149, %c1_150, %c0_151, %c0_152] : memref<2x4x8x8xf32, #tpu.memory_space<vmem>>, vector<1x1x8x8xf32>
    %282 = vector.shape_cast %281 : vector<1x1x8x8xf32> to vector<8x8xf32>
    %c0_153 = arith.constant 0 : index
    %c1_154 = arith.constant 1 : index
    %c0_155 = arith.constant 0 : index
    %c0_156 = arith.constant 0 : index
    %283 = vector.load %arg2[%c0_153, %c1_154, %c0_155, %c0_156] : memref<2x4x16x8xf32, #tpu.memory_space<vmem>>, vector<1x1x16x8xf32>
    %284 = vector.shape_cast %283 : vector<1x1x16x8xf32> to vector<16x8xf32>
    %c0_157 = arith.constant 0 : index
    %c1_158 = arith.constant 1 : index
    %c0_159 = arith.constant 0 : index
    %c0_160 = arith.constant 0 : index
    %285 = vector.load %arg3[%c0_157, %c1_158, %c0_159, %c0_160] : memref<2x4x16x8xf32, #tpu.memory_space<vmem>>, vector<1x1x16x8xf32>
    %286 = vector.shape_cast %285 : vector<1x1x16x8xf32> to vector<16x8xf32>
    %cst_161 = arith.constant dense<0.000000e+00> : vector<8x16xf32>
    %287 = tpu.matmul %282, %284, %cst_161 {dimension_numbers = #tpu.dot_dimension_numbers<[1], [1], [0], [0], [0, 0, 1, 0], [], []>} : vector<8x8xf32>, vector<16x8xf32>, vector<8x16xf32> -> vector<8x16xf32>
    %cst_162 = arith.constant 0.000000e+00 : f32
    %288 = vector.broadcast %cst_162 : f32 to vector<8x16xf32>
    %c1_163 = arith.constant 1 : index
    %289 = memref.load %arg9[%c1_163] : memref<4xf32, #tpu.memory_space<smem>>
    %290 = vector.broadcast %289 : f32 to vector<8x16xf32>
    %291 = arith.addf %288, %290 : vector<8x16xf32>
    %c1_164 = arith.constant 1 : index
    %c0_165 = arith.constant 0 : index
    %292 = memref.load %arg5[%c1_164, %c0_165] : memref<4x16xf32, #tpu.memory_space<smem>>
    %293 = vector.broadcast %292 : f32 to vector<8x16xf32>
    %294 = arith.mulf %287, %293 : vector<8x16xf32>
    %c1_166 = arith.constant 1 : index
    %c0_167 = arith.constant 0 : index
    %295 = memref.load %arg6[%c1_166, %c0_167] : memref<4x16xf32, #tpu.memory_space<smem>>
    %296 = vector.broadcast %295 : f32 to vector<8x16xf32>
    %297 = arith.mulf %1, %296 : vector<8x16xf32>
    %298 = arith.addf %294, %297 : vector<8x16xf32>
    %c1_168 = arith.constant 1 : index
    %c0_169 = arith.constant 0 : index
    %299 = memref.load %arg7[%c1_168, %c0_169] : memref<4x16xf32, #tpu.memory_space<smem>>
    %300 = vector.broadcast %299 : f32 to vector<8x16xf32>
    %301 = arith.addf %298, %300 : vector<8x16xf32>
    %cst_170 = arith.constant 0.000000e+00 : f32
    %302 = vector.broadcast %cst_170 : f32 to vector<8x16xf32>
    %303 = arith.maximumf %301, %302 : vector<8x16xf32>
    %c1_171 = arith.constant 1 : index
    %c0_172 = arith.constant 0 : index
    %304 = memref.load %arg8[%c1_171, %c0_172] : memref<4x16xf32, #tpu.memory_space<smem>>
    %305 = vector.broadcast %304 : f32 to vector<8x16xf32>
    %306 = arith.mulf %303, %305 : vector<8x16xf32>
    %307 = arith.addf %291, %306 : vector<8x16xf32>
    %c1_173 = arith.constant 1 : index
    %c1_174 = arith.constant 1 : index
    %308 = memref.load %arg5[%c1_173, %c1_174] : memref<4x16xf32, #tpu.memory_space<smem>>
    %309 = vector.broadcast %308 : f32 to vector<8x16xf32>
    %310 = arith.mulf %287, %309 : vector<8x16xf32>
    %c1_175 = arith.constant 1 : index
    %c1_176 = arith.constant 1 : index
    %311 = memref.load %arg6[%c1_175, %c1_176] : memref<4x16xf32, #tpu.memory_space<smem>>
    %312 = vector.broadcast %311 : f32 to vector<8x16xf32>
    %313 = arith.mulf %1, %312 : vector<8x16xf32>
    %314 = arith.addf %310, %313 : vector<8x16xf32>
    %c1_177 = arith.constant 1 : index
    %c1_178 = arith.constant 1 : index
    %315 = memref.load %arg7[%c1_177, %c1_178] : memref<4x16xf32, #tpu.memory_space<smem>>
    %316 = vector.broadcast %315 : f32 to vector<8x16xf32>
    %317 = arith.addf %314, %316 : vector<8x16xf32>
    %cst_179 = arith.constant 0.000000e+00 : f32
    %318 = vector.broadcast %cst_179 : f32 to vector<8x16xf32>
    %319 = arith.maximumf %317, %318 : vector<8x16xf32>
    %c1_180 = arith.constant 1 : index
    %c1_181 = arith.constant 1 : index
    %320 = memref.load %arg8[%c1_180, %c1_181] : memref<4x16xf32, #tpu.memory_space<smem>>
    %321 = vector.broadcast %320 : f32 to vector<8x16xf32>
    %322 = arith.mulf %319, %321 : vector<8x16xf32>
    %323 = arith.addf %307, %322 : vector<8x16xf32>
    %c1_182 = arith.constant 1 : index
    %c2_183 = arith.constant 2 : index
    %324 = memref.load %arg5[%c1_182, %c2_183] : memref<4x16xf32, #tpu.memory_space<smem>>
    %325 = vector.broadcast %324 : f32 to vector<8x16xf32>
    %326 = arith.mulf %287, %325 : vector<8x16xf32>
    %c1_184 = arith.constant 1 : index
    %c2_185 = arith.constant 2 : index
    %327 = memref.load %arg6[%c1_184, %c2_185] : memref<4x16xf32, #tpu.memory_space<smem>>
    %328 = vector.broadcast %327 : f32 to vector<8x16xf32>
    %329 = arith.mulf %1, %328 : vector<8x16xf32>
    %330 = arith.addf %326, %329 : vector<8x16xf32>
    %c1_186 = arith.constant 1 : index
    %c2_187 = arith.constant 2 : index
    %331 = memref.load %arg7[%c1_186, %c2_187] : memref<4x16xf32, #tpu.memory_space<smem>>
    %332 = vector.broadcast %331 : f32 to vector<8x16xf32>
    %333 = arith.addf %330, %332 : vector<8x16xf32>
    %cst_188 = arith.constant 0.000000e+00 : f32
    %334 = vector.broadcast %cst_188 : f32 to vector<8x16xf32>
    %335 = arith.maximumf %333, %334 : vector<8x16xf32>
    %c1_189 = arith.constant 1 : index
    %c2_190 = arith.constant 2 : index
    %336 = memref.load %arg8[%c1_189, %c2_190] : memref<4x16xf32, #tpu.memory_space<smem>>
    %337 = vector.broadcast %336 : f32 to vector<8x16xf32>
    %338 = arith.mulf %335, %337 : vector<8x16xf32>
    %339 = arith.addf %323, %338 : vector<8x16xf32>
    %c1_191 = arith.constant 1 : index
    %c3_192 = arith.constant 3 : index
    %340 = memref.load %arg5[%c1_191, %c3_192] : memref<4x16xf32, #tpu.memory_space<smem>>
    %341 = vector.broadcast %340 : f32 to vector<8x16xf32>
    %342 = arith.mulf %287, %341 : vector<8x16xf32>
    %c1_193 = arith.constant 1 : index
    %c3_194 = arith.constant 3 : index
    %343 = memref.load %arg6[%c1_193, %c3_194] : memref<4x16xf32, #tpu.memory_space<smem>>
    %344 = vector.broadcast %343 : f32 to vector<8x16xf32>
    %345 = arith.mulf %1, %344 : vector<8x16xf32>
    %346 = arith.addf %342, %345 : vector<8x16xf32>
    %c1_195 = arith.constant 1 : index
    %c3_196 = arith.constant 3 : index
    %347 = memref.load %arg7[%c1_195, %c3_196] : memref<4x16xf32, #tpu.memory_space<smem>>
    %348 = vector.broadcast %347 : f32 to vector<8x16xf32>
    %349 = arith.addf %346, %348 : vector<8x16xf32>
    %cst_197 = arith.constant 0.000000e+00 : f32
    %350 = vector.broadcast %cst_197 : f32 to vector<8x16xf32>
    %351 = arith.maximumf %349, %350 : vector<8x16xf32>
    %c1_198 = arith.constant 1 : index
    %c3_199 = arith.constant 3 : index
    %352 = memref.load %arg8[%c1_198, %c3_199] : memref<4x16xf32, #tpu.memory_space<smem>>
    %353 = vector.broadcast %352 : f32 to vector<8x16xf32>
    %354 = arith.mulf %351, %353 : vector<8x16xf32>
    %355 = arith.addf %339, %354 : vector<8x16xf32>
    %c1_200 = arith.constant 1 : index
    %c4_201 = arith.constant 4 : index
    %356 = memref.load %arg5[%c1_200, %c4_201] : memref<4x16xf32, #tpu.memory_space<smem>>
    %357 = vector.broadcast %356 : f32 to vector<8x16xf32>
    %358 = arith.mulf %287, %357 : vector<8x16xf32>
    %c1_202 = arith.constant 1 : index
    %c4_203 = arith.constant 4 : index
    %359 = memref.load %arg6[%c1_202, %c4_203] : memref<4x16xf32, #tpu.memory_space<smem>>
    %360 = vector.broadcast %359 : f32 to vector<8x16xf32>
    %361 = arith.mulf %1, %360 : vector<8x16xf32>
    %362 = arith.addf %358, %361 : vector<8x16xf32>
    %c1_204 = arith.constant 1 : index
    %c4_205 = arith.constant 4 : index
    %363 = memref.load %arg7[%c1_204, %c4_205] : memref<4x16xf32, #tpu.memory_space<smem>>
    %364 = vector.broadcast %363 : f32 to vector<8x16xf32>
    %365 = arith.addf %362, %364 : vector<8x16xf32>
    %cst_206 = arith.constant 0.000000e+00 : f32
    %366 = vector.broadcast %cst_206 : f32 to vector<8x16xf32>
    %367 = arith.maximumf %365, %366 : vector<8x16xf32>
    %c1_207 = arith.constant 1 : index
    %c4_208 = arith.constant 4 : index
    %368 = memref.load %arg8[%c1_207, %c4_208] : memref<4x16xf32, #tpu.memory_space<smem>>
    %369 = vector.broadcast %368 : f32 to vector<8x16xf32>
    %370 = arith.mulf %367, %369 : vector<8x16xf32>
    %371 = arith.addf %355, %370 : vector<8x16xf32>
    %c1_209 = arith.constant 1 : index
    %c5_210 = arith.constant 5 : index
    %372 = memref.load %arg5[%c1_209, %c5_210] : memref<4x16xf32, #tpu.memory_space<smem>>
    %373 = vector.broadcast %372 : f32 to vector<8x16xf32>
    %374 = arith.mulf %287, %373 : vector<8x16xf32>
    %c1_211 = arith.constant 1 : index
    %c5_212 = arith.constant 5 : index
    %375 = memref.load %arg6[%c1_211, %c5_212] : memref<4x16xf32, #tpu.memory_space<smem>>
    %376 = vector.broadcast %375 : f32 to vector<8x16xf32>
    %377 = arith.mulf %1, %376 : vector<8x16xf32>
    %378 = arith.addf %374, %377 : vector<8x16xf32>
    %c1_213 = arith.constant 1 : index
    %c5_214 = arith.constant 5 : index
    %379 = memref.load %arg7[%c1_213, %c5_214] : memref<4x16xf32, #tpu.memory_space<smem>>
    %380 = vector.broadcast %379 : f32 to vector<8x16xf32>
    %381 = arith.addf %378, %380 : vector<8x16xf32>
    %cst_215 = arith.constant 0.000000e+00 : f32
    %382 = vector.broadcast %cst_215 : f32 to vector<8x16xf32>
    %383 = arith.maximumf %381, %382 : vector<8x16xf32>
    %c1_216 = arith.constant 1 : index
    %c5_217 = arith.constant 5 : index
    %384 = memref.load %arg8[%c1_216, %c5_217] : memref<4x16xf32, #tpu.memory_space<smem>>
    %385 = vector.broadcast %384 : f32 to vector<8x16xf32>
    %386 = arith.mulf %383, %385 : vector<8x16xf32>
    %387 = arith.addf %371, %386 : vector<8x16xf32>
    %c1_218 = arith.constant 1 : index
    %c6_219 = arith.constant 6 : index
    %388 = memref.load %arg5[%c1_218, %c6_219] : memref<4x16xf32, #tpu.memory_space<smem>>
    %389 = vector.broadcast %388 : f32 to vector<8x16xf32>
    %390 = arith.mulf %287, %389 : vector<8x16xf32>
    %c1_220 = arith.constant 1 : index
    %c6_221 = arith.constant 6 : index
    %391 = memref.load %arg6[%c1_220, %c6_221] : memref<4x16xf32, #tpu.memory_space<smem>>
    %392 = vector.broadcast %391 : f32 to vector<8x16xf32>
    %393 = arith.mulf %1, %392 : vector<8x16xf32>
    %394 = arith.addf %390, %393 : vector<8x16xf32>
    %c1_222 = arith.constant 1 : index
    %c6_223 = arith.constant 6 : index
    %395 = memref.load %arg7[%c1_222, %c6_223] : memref<4x16xf32, #tpu.memory_space<smem>>
    %396 = vector.broadcast %395 : f32 to vector<8x16xf32>
    %397 = arith.addf %394, %396 : vector<8x16xf32>
    %cst_224 = arith.constant 0.000000e+00 : f32
    %398 = vector.broadcast %cst_224 : f32 to vector<8x16xf32>
    %399 = arith.maximumf %397, %398 : vector<8x16xf32>
    %c1_225 = arith.constant 1 : index
    %c6_226 = arith.constant 6 : index
    %400 = memref.load %arg8[%c1_225, %c6_226] : memref<4x16xf32, #tpu.memory_space<smem>>
    %401 = vector.broadcast %400 : f32 to vector<8x16xf32>
    %402 = arith.mulf %399, %401 : vector<8x16xf32>
    %403 = arith.addf %387, %402 : vector<8x16xf32>
    %c1_227 = arith.constant 1 : index
    %c7_228 = arith.constant 7 : index
    %404 = memref.load %arg5[%c1_227, %c7_228] : memref<4x16xf32, #tpu.memory_space<smem>>
    %405 = vector.broadcast %404 : f32 to vector<8x16xf32>
    %406 = arith.mulf %287, %405 : vector<8x16xf32>
    %c1_229 = arith.constant 1 : index
    %c7_230 = arith.constant 7 : index
    %407 = memref.load %arg6[%c1_229, %c7_230] : memref<4x16xf32, #tpu.memory_space<smem>>
    %408 = vector.broadcast %407 : f32 to vector<8x16xf32>
    %409 = arith.mulf %1, %408 : vector<8x16xf32>
    %410 = arith.addf %406, %409 : vector<8x16xf32>
    %c1_231 = arith.constant 1 : index
    %c7_232 = arith.constant 7 : index
    %411 = memref.load %arg7[%c1_231, %c7_232] : memref<4x16xf32, #tpu.memory_space<smem>>
    %412 = vector.broadcast %411 : f32 to vector<8x16xf32>
    %413 = arith.addf %410, %412 : vector<8x16xf32>
    %cst_233 = arith.constant 0.000000e+00 : f32
    %414 = vector.broadcast %cst_233 : f32 to vector<8x16xf32>
    %415 = arith.maximumf %413, %414 : vector<8x16xf32>
    %c1_234 = arith.constant 1 : index
    %c7_235 = arith.constant 7 : index
    %416 = memref.load %arg8[%c1_234, %c7_235] : memref<4x16xf32, #tpu.memory_space<smem>>
    %417 = vector.broadcast %416 : f32 to vector<8x16xf32>
    %418 = arith.mulf %415, %417 : vector<8x16xf32>
    %419 = arith.addf %403, %418 : vector<8x16xf32>
    %c1_236 = arith.constant 1 : index
    %c8_237 = arith.constant 8 : index
    %420 = memref.load %arg5[%c1_236, %c8_237] : memref<4x16xf32, #tpu.memory_space<smem>>
    %421 = vector.broadcast %420 : f32 to vector<8x16xf32>
    %422 = arith.mulf %287, %421 : vector<8x16xf32>
    %c1_238 = arith.constant 1 : index
    %c8_239 = arith.constant 8 : index
    %423 = memref.load %arg6[%c1_238, %c8_239] : memref<4x16xf32, #tpu.memory_space<smem>>
    %424 = vector.broadcast %423 : f32 to vector<8x16xf32>
    %425 = arith.mulf %1, %424 : vector<8x16xf32>
    %426 = arith.addf %422, %425 : vector<8x16xf32>
    %c1_240 = arith.constant 1 : index
    %c8_241 = arith.constant 8 : index
    %427 = memref.load %arg7[%c1_240, %c8_241] : memref<4x16xf32, #tpu.memory_space<smem>>
    %428 = vector.broadcast %427 : f32 to vector<8x16xf32>
    %429 = arith.addf %426, %428 : vector<8x16xf32>
    %cst_242 = arith.constant 0.000000e+00 : f32
    %430 = vector.broadcast %cst_242 : f32 to vector<8x16xf32>
    %431 = arith.maximumf %429, %430 : vector<8x16xf32>
    %c1_243 = arith.constant 1 : index
    %c8_244 = arith.constant 8 : index
    %432 = memref.load %arg8[%c1_243, %c8_244] : memref<4x16xf32, #tpu.memory_space<smem>>
    %433 = vector.broadcast %432 : f32 to vector<8x16xf32>
    %434 = arith.mulf %431, %433 : vector<8x16xf32>
    %435 = arith.addf %419, %434 : vector<8x16xf32>
    %c1_245 = arith.constant 1 : index
    %c9_246 = arith.constant 9 : index
    %436 = memref.load %arg5[%c1_245, %c9_246] : memref<4x16xf32, #tpu.memory_space<smem>>
    %437 = vector.broadcast %436 : f32 to vector<8x16xf32>
    %438 = arith.mulf %287, %437 : vector<8x16xf32>
    %c1_247 = arith.constant 1 : index
    %c9_248 = arith.constant 9 : index
    %439 = memref.load %arg6[%c1_247, %c9_248] : memref<4x16xf32, #tpu.memory_space<smem>>
    %440 = vector.broadcast %439 : f32 to vector<8x16xf32>
    %441 = arith.mulf %1, %440 : vector<8x16xf32>
    %442 = arith.addf %438, %441 : vector<8x16xf32>
    %c1_249 = arith.constant 1 : index
    %c9_250 = arith.constant 9 : index
    %443 = memref.load %arg7[%c1_249, %c9_250] : memref<4x16xf32, #tpu.memory_space<smem>>
    %444 = vector.broadcast %443 : f32 to vector<8x16xf32>
    %445 = arith.addf %442, %444 : vector<8x16xf32>
    %cst_251 = arith.constant 0.000000e+00 : f32
    %446 = vector.broadcast %cst_251 : f32 to vector<8x16xf32>
    %447 = arith.maximumf %445, %446 : vector<8x16xf32>
    %c1_252 = arith.constant 1 : index
    %c9_253 = arith.constant 9 : index
    %448 = memref.load %arg8[%c1_252, %c9_253] : memref<4x16xf32, #tpu.memory_space<smem>>
    %449 = vector.broadcast %448 : f32 to vector<8x16xf32>
    %450 = arith.mulf %447, %449 : vector<8x16xf32>
    %451 = arith.addf %435, %450 : vector<8x16xf32>
    %c1_254 = arith.constant 1 : index
    %c10_255 = arith.constant 10 : index
    %452 = memref.load %arg5[%c1_254, %c10_255] : memref<4x16xf32, #tpu.memory_space<smem>>
    %453 = vector.broadcast %452 : f32 to vector<8x16xf32>
    %454 = arith.mulf %287, %453 : vector<8x16xf32>
    %c1_256 = arith.constant 1 : index
    %c10_257 = arith.constant 10 : index
    %455 = memref.load %arg6[%c1_256, %c10_257] : memref<4x16xf32, #tpu.memory_space<smem>>
    %456 = vector.broadcast %455 : f32 to vector<8x16xf32>
    %457 = arith.mulf %1, %456 : vector<8x16xf32>
    %458 = arith.addf %454, %457 : vector<8x16xf32>
    %c1_258 = arith.constant 1 : index
    %c10_259 = arith.constant 10 : index
    %459 = memref.load %arg7[%c1_258, %c10_259] : memref<4x16xf32, #tpu.memory_space<smem>>
    %460 = vector.broadcast %459 : f32 to vector<8x16xf32>
    %461 = arith.addf %458, %460 : vector<8x16xf32>
    %cst_260 = arith.constant 0.000000e+00 : f32
    %462 = vector.broadcast %cst_260 : f32 to vector<8x16xf32>
    %463 = arith.maximumf %461, %462 : vector<8x16xf32>
    %c1_261 = arith.constant 1 : index
    %c10_262 = arith.constant 10 : index
    %464 = memref.load %arg8[%c1_261, %c10_262] : memref<4x16xf32, #tpu.memory_space<smem>>
    %465 = vector.broadcast %464 : f32 to vector<8x16xf32>
    %466 = arith.mulf %463, %465 : vector<8x16xf32>
    %467 = arith.addf %451, %466 : vector<8x16xf32>
    %c1_263 = arith.constant 1 : index
    %c11_264 = arith.constant 11 : index
    %468 = memref.load %arg5[%c1_263, %c11_264] : memref<4x16xf32, #tpu.memory_space<smem>>
    %469 = vector.broadcast %468 : f32 to vector<8x16xf32>
    %470 = arith.mulf %287, %469 : vector<8x16xf32>
    %c1_265 = arith.constant 1 : index
    %c11_266 = arith.constant 11 : index
    %471 = memref.load %arg6[%c1_265, %c11_266] : memref<4x16xf32, #tpu.memory_space<smem>>
    %472 = vector.broadcast %471 : f32 to vector<8x16xf32>
    %473 = arith.mulf %1, %472 : vector<8x16xf32>
    %474 = arith.addf %470, %473 : vector<8x16xf32>
    %c1_267 = arith.constant 1 : index
    %c11_268 = arith.constant 11 : index
    %475 = memref.load %arg7[%c1_267, %c11_268] : memref<4x16xf32, #tpu.memory_space<smem>>
    %476 = vector.broadcast %475 : f32 to vector<8x16xf32>
    %477 = arith.addf %474, %476 : vector<8x16xf32>
    %cst_269 = arith.constant 0.000000e+00 : f32
    %478 = vector.broadcast %cst_269 : f32 to vector<8x16xf32>
    %479 = arith.maximumf %477, %478 : vector<8x16xf32>
    %c1_270 = arith.constant 1 : index
    %c11_271 = arith.constant 11 : index
    %480 = memref.load %arg8[%c1_270, %c11_271] : memref<4x16xf32, #tpu.memory_space<smem>>
    %481 = vector.broadcast %480 : f32 to vector<8x16xf32>
    %482 = arith.mulf %479, %481 : vector<8x16xf32>
    %483 = arith.addf %467, %482 : vector<8x16xf32>
    %c1_272 = arith.constant 1 : index
    %c12_273 = arith.constant 12 : index
    %484 = memref.load %arg5[%c1_272, %c12_273] : memref<4x16xf32, #tpu.memory_space<smem>>
    %485 = vector.broadcast %484 : f32 to vector<8x16xf32>
    %486 = arith.mulf %287, %485 : vector<8x16xf32>
    %c1_274 = arith.constant 1 : index
    %c12_275 = arith.constant 12 : index
    %487 = memref.load %arg6[%c1_274, %c12_275] : memref<4x16xf32, #tpu.memory_space<smem>>
    %488 = vector.broadcast %487 : f32 to vector<8x16xf32>
    %489 = arith.mulf %1, %488 : vector<8x16xf32>
    %490 = arith.addf %486, %489 : vector<8x16xf32>
    %c1_276 = arith.constant 1 : index
    %c12_277 = arith.constant 12 : index
    %491 = memref.load %arg7[%c1_276, %c12_277] : memref<4x16xf32, #tpu.memory_space<smem>>
    %492 = vector.broadcast %491 : f32 to vector<8x16xf32>
    %493 = arith.addf %490, %492 : vector<8x16xf32>
    %cst_278 = arith.constant 0.000000e+00 : f32
    %494 = vector.broadcast %cst_278 : f32 to vector<8x16xf32>
    %495 = arith.maximumf %493, %494 : vector<8x16xf32>
    %c1_279 = arith.constant 1 : index
    %c12_280 = arith.constant 12 : index
    %496 = memref.load %arg8[%c1_279, %c12_280] : memref<4x16xf32, #tpu.memory_space<smem>>
    %497 = vector.broadcast %496 : f32 to vector<8x16xf32>
    %498 = arith.mulf %495, %497 : vector<8x16xf32>
    %499 = arith.addf %483, %498 : vector<8x16xf32>
    %c1_281 = arith.constant 1 : index
    %c13_282 = arith.constant 13 : index
    %500 = memref.load %arg5[%c1_281, %c13_282] : memref<4x16xf32, #tpu.memory_space<smem>>
    %501 = vector.broadcast %500 : f32 to vector<8x16xf32>
    %502 = arith.mulf %287, %501 : vector<8x16xf32>
    %c1_283 = arith.constant 1 : index
    %c13_284 = arith.constant 13 : index
    %503 = memref.load %arg6[%c1_283, %c13_284] : memref<4x16xf32, #tpu.memory_space<smem>>
    %504 = vector.broadcast %503 : f32 to vector<8x16xf32>
    %505 = arith.mulf %1, %504 : vector<8x16xf32>
    %506 = arith.addf %502, %505 : vector<8x16xf32>
    %c1_285 = arith.constant 1 : index
    %c13_286 = arith.constant 13 : index
    %507 = memref.load %arg7[%c1_285, %c13_286] : memref<4x16xf32, #tpu.memory_space<smem>>
    %508 = vector.broadcast %507 : f32 to vector<8x16xf32>
    %509 = arith.addf %506, %508 : vector<8x16xf32>
    %cst_287 = arith.constant 0.000000e+00 : f32
    %510 = vector.broadcast %cst_287 : f32 to vector<8x16xf32>
    %511 = arith.maximumf %509, %510 : vector<8x16xf32>
    %c1_288 = arith.constant 1 : index
    %c13_289 = arith.constant 13 : index
    %512 = memref.load %arg8[%c1_288, %c13_289] : memref<4x16xf32, #tpu.memory_space<smem>>
    %513 = vector.broadcast %512 : f32 to vector<8x16xf32>
    %514 = arith.mulf %511, %513 : vector<8x16xf32>
    %515 = arith.addf %499, %514 : vector<8x16xf32>
    %c1_290 = arith.constant 1 : index
    %c14_291 = arith.constant 14 : index
    %516 = memref.load %arg5[%c1_290, %c14_291] : memref<4x16xf32, #tpu.memory_space<smem>>
    %517 = vector.broadcast %516 : f32 to vector<8x16xf32>
    %518 = arith.mulf %287, %517 : vector<8x16xf32>
    %c1_292 = arith.constant 1 : index
    %c14_293 = arith.constant 14 : index
    %519 = memref.load %arg6[%c1_292, %c14_293] : memref<4x16xf32, #tpu.memory_space<smem>>
    %520 = vector.broadcast %519 : f32 to vector<8x16xf32>
    %521 = arith.mulf %1, %520 : vector<8x16xf32>
    %522 = arith.addf %518, %521 : vector<8x16xf32>
    %c1_294 = arith.constant 1 : index
    %c14_295 = arith.constant 14 : index
    %523 = memref.load %arg7[%c1_294, %c14_295] : memref<4x16xf32, #tpu.memory_space<smem>>
    %524 = vector.broadcast %523 : f32 to vector<8x16xf32>
    %525 = arith.addf %522, %524 : vector<8x16xf32>
    %cst_296 = arith.constant 0.000000e+00 : f32
    %526 = vector.broadcast %cst_296 : f32 to vector<8x16xf32>
    %527 = arith.maximumf %525, %526 : vector<8x16xf32>
    %c1_297 = arith.constant 1 : index
    %c14_298 = arith.constant 14 : index
    %528 = memref.load %arg8[%c1_297, %c14_298] : memref<4x16xf32, #tpu.memory_space<smem>>
    %529 = vector.broadcast %528 : f32 to vector<8x16xf32>
    %530 = arith.mulf %527, %529 : vector<8x16xf32>
    %531 = arith.addf %515, %530 : vector<8x16xf32>
    %c1_299 = arith.constant 1 : index
    %c15_300 = arith.constant 15 : index
    %532 = memref.load %arg5[%c1_299, %c15_300] : memref<4x16xf32, #tpu.memory_space<smem>>
    %533 = vector.broadcast %532 : f32 to vector<8x16xf32>
    %534 = arith.mulf %287, %533 : vector<8x16xf32>
    %c1_301 = arith.constant 1 : index
    %c15_302 = arith.constant 15 : index
    %535 = memref.load %arg6[%c1_301, %c15_302] : memref<4x16xf32, #tpu.memory_space<smem>>
    %536 = vector.broadcast %535 : f32 to vector<8x16xf32>
    %537 = arith.mulf %1, %536 : vector<8x16xf32>
    %538 = arith.addf %534, %537 : vector<8x16xf32>
    %c1_303 = arith.constant 1 : index
    %c15_304 = arith.constant 15 : index
    %539 = memref.load %arg7[%c1_303, %c15_304] : memref<4x16xf32, #tpu.memory_space<smem>>
    %540 = vector.broadcast %539 : f32 to vector<8x16xf32>
    %541 = arith.addf %538, %540 : vector<8x16xf32>
    %cst_305 = arith.constant 0.000000e+00 : f32
    %542 = vector.broadcast %cst_305 : f32 to vector<8x16xf32>
    %543 = arith.maximumf %541, %542 : vector<8x16xf32>
    %c1_306 = arith.constant 1 : index
    %c15_307 = arith.constant 15 : index
    %544 = memref.load %arg8[%c1_306, %c15_307] : memref<4x16xf32, #tpu.memory_space<smem>>
    %545 = vector.broadcast %544 : f32 to vector<8x16xf32>
    %546 = arith.mulf %543, %545 : vector<8x16xf32>
    %547 = arith.addf %531, %546 : vector<8x16xf32>
    %cst_308 = arith.constant dense<0xFF800000> : vector<8xf32>
    %548 = vector.multi_reduction <maximumf>, %547, %cst_308 [1] : vector<8x16xf32> to vector<8xf32>
    %549 = vector.shape_cast %548 : vector<8xf32> to vector<8x1xf32>
    %550 = vector.broadcast %549 : vector<8x1xf32> to vector<8x16xf32>
    %551 = arith.subf %547, %550 : vector<8x16xf32>
    %552 = math.exp %551 : vector<8x16xf32>
    %cst_309 = arith.constant dense<0.000000e+00> : vector<8xf32>
    %553 = vector.multi_reduction <add>, %552, %cst_309 [1] : vector<8x16xf32> to vector<8xf32>
    %554 = vector.shape_cast %553 : vector<8xf32> to vector<8x1xf32>
    %cst_310 = arith.constant dense<0.000000e+00> : vector<8x8xf32>
    %555 = tpu.matmul %552, %286, %cst_310 {dimension_numbers = #tpu.dot_dimension_numbers<[1], [0], [0], [1], [0, 0, 1, 1], [], []>} : vector<8x16xf32>, vector<16x8xf32>, vector<8x8xf32> -> vector<8x8xf32>
    %cst_311 = arith.constant 1.000000e+00 : f32
    %556 = vector.broadcast %cst_311 : f32 to vector<8x1xf32>
    %557 = arith.divf %556, %554 : vector<8x1xf32>
    %558 = vector.broadcast %557 : vector<8x1xf32> to vector<8x8xf32>
    %559 = arith.mulf %555, %558 : vector<8x8xf32>
    %c0_312 = arith.constant 0 : index
    %c2_313 = arith.constant 2 : index
    %c0_314 = arith.constant 0 : index
    %c0_315 = arith.constant 0 : index
    %560 = vector.load %arg1[%c0_312, %c2_313, %c0_314, %c0_315] : memref<2x4x8x8xf32, #tpu.memory_space<vmem>>, vector<1x1x8x8xf32>
    %561 = vector.shape_cast %560 : vector<1x1x8x8xf32> to vector<8x8xf32>
    %c0_316 = arith.constant 0 : index
    %c2_317 = arith.constant 2 : index
    %c0_318 = arith.constant 0 : index
    %c0_319 = arith.constant 0 : index
    %562 = vector.load %arg2[%c0_316, %c2_317, %c0_318, %c0_319] : memref<2x4x16x8xf32, #tpu.memory_space<vmem>>, vector<1x1x16x8xf32>
    %563 = vector.shape_cast %562 : vector<1x1x16x8xf32> to vector<16x8xf32>
    %c0_320 = arith.constant 0 : index
    %c2_321 = arith.constant 2 : index
    %c0_322 = arith.constant 0 : index
    %c0_323 = arith.constant 0 : index
    %564 = vector.load %arg3[%c0_320, %c2_321, %c0_322, %c0_323] : memref<2x4x16x8xf32, #tpu.memory_space<vmem>>, vector<1x1x16x8xf32>
    %565 = vector.shape_cast %564 : vector<1x1x16x8xf32> to vector<16x8xf32>
    %cst_324 = arith.constant dense<0.000000e+00> : vector<8x16xf32>
    %566 = tpu.matmul %561, %563, %cst_324 {dimension_numbers = #tpu.dot_dimension_numbers<[1], [1], [0], [0], [0, 0, 1, 0], [], []>} : vector<8x8xf32>, vector<16x8xf32>, vector<8x16xf32> -> vector<8x16xf32>
    %cst_325 = arith.constant 0.000000e+00 : f32
    %567 = vector.broadcast %cst_325 : f32 to vector<8x16xf32>
    %c2_326 = arith.constant 2 : index
    %568 = memref.load %arg9[%c2_326] : memref<4xf32, #tpu.memory_space<smem>>
    %569 = vector.broadcast %568 : f32 to vector<8x16xf32>
    %570 = arith.addf %567, %569 : vector<8x16xf32>
    %c2_327 = arith.constant 2 : index
    %c0_328 = arith.constant 0 : index
    %571 = memref.load %arg5[%c2_327, %c0_328] : memref<4x16xf32, #tpu.memory_space<smem>>
    %572 = vector.broadcast %571 : f32 to vector<8x16xf32>
    %573 = arith.mulf %566, %572 : vector<8x16xf32>
    %c2_329 = arith.constant 2 : index
    %c0_330 = arith.constant 0 : index
    %574 = memref.load %arg6[%c2_329, %c0_330] : memref<4x16xf32, #tpu.memory_space<smem>>
    %575 = vector.broadcast %574 : f32 to vector<8x16xf32>
    %576 = arith.mulf %1, %575 : vector<8x16xf32>
    %577 = arith.addf %573, %576 : vector<8x16xf32>
    %c2_331 = arith.constant 2 : index
    %c0_332 = arith.constant 0 : index
    %578 = memref.load %arg7[%c2_331, %c0_332] : memref<4x16xf32, #tpu.memory_space<smem>>
    %579 = vector.broadcast %578 : f32 to vector<8x16xf32>
    %580 = arith.addf %577, %579 : vector<8x16xf32>
    %cst_333 = arith.constant 0.000000e+00 : f32
    %581 = vector.broadcast %cst_333 : f32 to vector<8x16xf32>
    %582 = arith.maximumf %580, %581 : vector<8x16xf32>
    %c2_334 = arith.constant 2 : index
    %c0_335 = arith.constant 0 : index
    %583 = memref.load %arg8[%c2_334, %c0_335] : memref<4x16xf32, #tpu.memory_space<smem>>
    %584 = vector.broadcast %583 : f32 to vector<8x16xf32>
    %585 = arith.mulf %582, %584 : vector<8x16xf32>
    %586 = arith.addf %570, %585 : vector<8x16xf32>
    %c2_336 = arith.constant 2 : index
    %c1_337 = arith.constant 1 : index
    %587 = memref.load %arg5[%c2_336, %c1_337] : memref<4x16xf32, #tpu.memory_space<smem>>
    %588 = vector.broadcast %587 : f32 to vector<8x16xf32>
    %589 = arith.mulf %566, %588 : vector<8x16xf32>
    %c2_338 = arith.constant 2 : index
    %c1_339 = arith.constant 1 : index
    %590 = memref.load %arg6[%c2_338, %c1_339] : memref<4x16xf32, #tpu.memory_space<smem>>
    %591 = vector.broadcast %590 : f32 to vector<8x16xf32>
    %592 = arith.mulf %1, %591 : vector<8x16xf32>
    %593 = arith.addf %589, %592 : vector<8x16xf32>
    %c2_340 = arith.constant 2 : index
    %c1_341 = arith.constant 1 : index
    %594 = memref.load %arg7[%c2_340, %c1_341] : memref<4x16xf32, #tpu.memory_space<smem>>
    %595 = vector.broadcast %594 : f32 to vector<8x16xf32>
    %596 = arith.addf %593, %595 : vector<8x16xf32>
    %cst_342 = arith.constant 0.000000e+00 : f32
    %597 = vector.broadcast %cst_342 : f32 to vector<8x16xf32>
    %598 = arith.maximumf %596, %597 : vector<8x16xf32>
    %c2_343 = arith.constant 2 : index
    %c1_344 = arith.constant 1 : index
    %599 = memref.load %arg8[%c2_343, %c1_344] : memref<4x16xf32, #tpu.memory_space<smem>>
    %600 = vector.broadcast %599 : f32 to vector<8x16xf32>
    %601 = arith.mulf %598, %600 : vector<8x16xf32>
    %602 = arith.addf %586, %601 : vector<8x16xf32>
    %c2_345 = arith.constant 2 : index
    %c2_346 = arith.constant 2 : index
    %603 = memref.load %arg5[%c2_345, %c2_346] : memref<4x16xf32, #tpu.memory_space<smem>>
    %604 = vector.broadcast %603 : f32 to vector<8x16xf32>
    %605 = arith.mulf %566, %604 : vector<8x16xf32>
    %c2_347 = arith.constant 2 : index
    %c2_348 = arith.constant 2 : index
    %606 = memref.load %arg6[%c2_347, %c2_348] : memref<4x16xf32, #tpu.memory_space<smem>>
    %607 = vector.broadcast %606 : f32 to vector<8x16xf32>
    %608 = arith.mulf %1, %607 : vector<8x16xf32>
    %609 = arith.addf %605, %608 : vector<8x16xf32>
    %c2_349 = arith.constant 2 : index
    %c2_350 = arith.constant 2 : index
    %610 = memref.load %arg7[%c2_349, %c2_350] : memref<4x16xf32, #tpu.memory_space<smem>>
    %611 = vector.broadcast %610 : f32 to vector<8x16xf32>
    %612 = arith.addf %609, %611 : vector<8x16xf32>
    %cst_351 = arith.constant 0.000000e+00 : f32
    %613 = vector.broadcast %cst_351 : f32 to vector<8x16xf32>
    %614 = arith.maximumf %612, %613 : vector<8x16xf32>
    %c2_352 = arith.constant 2 : index
    %c2_353 = arith.constant 2 : index
    %615 = memref.load %arg8[%c2_352, %c2_353] : memref<4x16xf32, #tpu.memory_space<smem>>
    %616 = vector.broadcast %615 : f32 to vector<8x16xf32>
    %617 = arith.mulf %614, %616 : vector<8x16xf32>
    %618 = arith.addf %602, %617 : vector<8x16xf32>
    %c2_354 = arith.constant 2 : index
    %c3_355 = arith.constant 3 : index
    %619 = memref.load %arg5[%c2_354, %c3_355] : memref<4x16xf32, #tpu.memory_space<smem>>
    %620 = vector.broadcast %619 : f32 to vector<8x16xf32>
    %621 = arith.mulf %566, %620 : vector<8x16xf32>
    %c2_356 = arith.constant 2 : index
    %c3_357 = arith.constant 3 : index
    %622 = memref.load %arg6[%c2_356, %c3_357] : memref<4x16xf32, #tpu.memory_space<smem>>
    %623 = vector.broadcast %622 : f32 to vector<8x16xf32>
    %624 = arith.mulf %1, %623 : vector<8x16xf32>
    %625 = arith.addf %621, %624 : vector<8x16xf32>
    %c2_358 = arith.constant 2 : index
    %c3_359 = arith.constant 3 : index
    %626 = memref.load %arg7[%c2_358, %c3_359] : memref<4x16xf32, #tpu.memory_space<smem>>
    %627 = vector.broadcast %626 : f32 to vector<8x16xf32>
    %628 = arith.addf %625, %627 : vector<8x16xf32>
    %cst_360 = arith.constant 0.000000e+00 : f32
    %629 = vector.broadcast %cst_360 : f32 to vector<8x16xf32>
    %630 = arith.maximumf %628, %629 : vector<8x16xf32>
    %c2_361 = arith.constant 2 : index
    %c3_362 = arith.constant 3 : index
    %631 = memref.load %arg8[%c2_361, %c3_362] : memref<4x16xf32, #tpu.memory_space<smem>>
    %632 = vector.broadcast %631 : f32 to vector<8x16xf32>
    %633 = arith.mulf %630, %632 : vector<8x16xf32>
    %634 = arith.addf %618, %633 : vector<8x16xf32>
    %c2_363 = arith.constant 2 : index
    %c4_364 = arith.constant 4 : index
    %635 = memref.load %arg5[%c2_363, %c4_364] : memref<4x16xf32, #tpu.memory_space<smem>>
    %636 = vector.broadcast %635 : f32 to vector<8x16xf32>
    %637 = arith.mulf %566, %636 : vector<8x16xf32>
    %c2_365 = arith.constant 2 : index
    %c4_366 = arith.constant 4 : index
    %638 = memref.load %arg6[%c2_365, %c4_366] : memref<4x16xf32, #tpu.memory_space<smem>>
    %639 = vector.broadcast %638 : f32 to vector<8x16xf32>
    %640 = arith.mulf %1, %639 : vector<8x16xf32>
    %641 = arith.addf %637, %640 : vector<8x16xf32>
    %c2_367 = arith.constant 2 : index
    %c4_368 = arith.constant 4 : index
    %642 = memref.load %arg7[%c2_367, %c4_368] : memref<4x16xf32, #tpu.memory_space<smem>>
    %643 = vector.broadcast %642 : f32 to vector<8x16xf32>
    %644 = arith.addf %641, %643 : vector<8x16xf32>
    %cst_369 = arith.constant 0.000000e+00 : f32
    %645 = vector.broadcast %cst_369 : f32 to vector<8x16xf32>
    %646 = arith.maximumf %644, %645 : vector<8x16xf32>
    %c2_370 = arith.constant 2 : index
    %c4_371 = arith.constant 4 : index
    %647 = memref.load %arg8[%c2_370, %c4_371] : memref<4x16xf32, #tpu.memory_space<smem>>
    %648 = vector.broadcast %647 : f32 to vector<8x16xf32>
    %649 = arith.mulf %646, %648 : vector<8x16xf32>
    %650 = arith.addf %634, %649 : vector<8x16xf32>
    %c2_372 = arith.constant 2 : index
    %c5_373 = arith.constant 5 : index
    %651 = memref.load %arg5[%c2_372, %c5_373] : memref<4x16xf32, #tpu.memory_space<smem>>
    %652 = vector.broadcast %651 : f32 to vector<8x16xf32>
    %653 = arith.mulf %566, %652 : vector<8x16xf32>
    %c2_374 = arith.constant 2 : index
    %c5_375 = arith.constant 5 : index
    %654 = memref.load %arg6[%c2_374, %c5_375] : memref<4x16xf32, #tpu.memory_space<smem>>
    %655 = vector.broadcast %654 : f32 to vector<8x16xf32>
    %656 = arith.mulf %1, %655 : vector<8x16xf32>
    %657 = arith.addf %653, %656 : vector<8x16xf32>
    %c2_376 = arith.constant 2 : index
    %c5_377 = arith.constant 5 : index
    %658 = memref.load %arg7[%c2_376, %c5_377] : memref<4x16xf32, #tpu.memory_space<smem>>
    %659 = vector.broadcast %658 : f32 to vector<8x16xf32>
    %660 = arith.addf %657, %659 : vector<8x16xf32>
    %cst_378 = arith.constant 0.000000e+00 : f32
    %661 = vector.broadcast %cst_378 : f32 to vector<8x16xf32>
    %662 = arith.maximumf %660, %661 : vector<8x16xf32>
    %c2_379 = arith.constant 2 : index
    %c5_380 = arith.constant 5 : index
    %663 = memref.load %arg8[%c2_379, %c5_380] : memref<4x16xf32, #tpu.memory_space<smem>>
    %664 = vector.broadcast %663 : f32 to vector<8x16xf32>
    %665 = arith.mulf %662, %664 : vector<8x16xf32>
    %666 = arith.addf %650, %665 : vector<8x16xf32>
    %c2_381 = arith.constant 2 : index
    %c6_382 = arith.constant 6 : index
    %667 = memref.load %arg5[%c2_381, %c6_382] : memref<4x16xf32, #tpu.memory_space<smem>>
    %668 = vector.broadcast %667 : f32 to vector<8x16xf32>
    %669 = arith.mulf %566, %668 : vector<8x16xf32>
    %c2_383 = arith.constant 2 : index
    %c6_384 = arith.constant 6 : index
    %670 = memref.load %arg6[%c2_383, %c6_384] : memref<4x16xf32, #tpu.memory_space<smem>>
    %671 = vector.broadcast %670 : f32 to vector<8x16xf32>
    %672 = arith.mulf %1, %671 : vector<8x16xf32>
    %673 = arith.addf %669, %672 : vector<8x16xf32>
    %c2_385 = arith.constant 2 : index
    %c6_386 = arith.constant 6 : index
    %674 = memref.load %arg7[%c2_385, %c6_386] : memref<4x16xf32, #tpu.memory_space<smem>>
    %675 = vector.broadcast %674 : f32 to vector<8x16xf32>
    %676 = arith.addf %673, %675 : vector<8x16xf32>
    %cst_387 = arith.constant 0.000000e+00 : f32
    %677 = vector.broadcast %cst_387 : f32 to vector<8x16xf32>
    %678 = arith.maximumf %676, %677 : vector<8x16xf32>
    %c2_388 = arith.constant 2 : index
    %c6_389 = arith.constant 6 : index
    %679 = memref.load %arg8[%c2_388, %c6_389] : memref<4x16xf32, #tpu.memory_space<smem>>
    %680 = vector.broadcast %679 : f32 to vector<8x16xf32>
    %681 = arith.mulf %678, %680 : vector<8x16xf32>
    %682 = arith.addf %666, %681 : vector<8x16xf32>
    %c2_390 = arith.constant 2 : index
    %c7_391 = arith.constant 7 : index
    %683 = memref.load %arg5[%c2_390, %c7_391] : memref<4x16xf32, #tpu.memory_space<smem>>
    %684 = vector.broadcast %683 : f32 to vector<8x16xf32>
    %685 = arith.mulf %566, %684 : vector<8x16xf32>
    %c2_392 = arith.constant 2 : index
    %c7_393 = arith.constant 7 : index
    %686 = memref.load %arg6[%c2_392, %c7_393] : memref<4x16xf32, #tpu.memory_space<smem>>
    %687 = vector.broadcast %686 : f32 to vector<8x16xf32>
    %688 = arith.mulf %1, %687 : vector<8x16xf32>
    %689 = arith.addf %685, %688 : vector<8x16xf32>
    %c2_394 = arith.constant 2 : index
    %c7_395 = arith.constant 7 : index
    %690 = memref.load %arg7[%c2_394, %c7_395] : memref<4x16xf32, #tpu.memory_space<smem>>
    %691 = vector.broadcast %690 : f32 to vector<8x16xf32>
    %692 = arith.addf %689, %691 : vector<8x16xf32>
    %cst_396 = arith.constant 0.000000e+00 : f32
    %693 = vector.broadcast %cst_396 : f32 to vector<8x16xf32>
    %694 = arith.maximumf %692, %693 : vector<8x16xf32>
    %c2_397 = arith.constant 2 : index
    %c7_398 = arith.constant 7 : index
    %695 = memref.load %arg8[%c2_397, %c7_398] : memref<4x16xf32, #tpu.memory_space<smem>>
    %696 = vector.broadcast %695 : f32 to vector<8x16xf32>
    %697 = arith.mulf %694, %696 : vector<8x16xf32>
    %698 = arith.addf %682, %697 : vector<8x16xf32>
    %c2_399 = arith.constant 2 : index
    %c8_400 = arith.constant 8 : index
    %699 = memref.load %arg5[%c2_399, %c8_400] : memref<4x16xf32, #tpu.memory_space<smem>>
    %700 = vector.broadcast %699 : f32 to vector<8x16xf32>
    %701 = arith.mulf %566, %700 : vector<8x16xf32>
    %c2_401 = arith.constant 2 : index
    %c8_402 = arith.constant 8 : index
    %702 = memref.load %arg6[%c2_401, %c8_402] : memref<4x16xf32, #tpu.memory_space<smem>>
    %703 = vector.broadcast %702 : f32 to vector<8x16xf32>
    %704 = arith.mulf %1, %703 : vector<8x16xf32>
    %705 = arith.addf %701, %704 : vector<8x16xf32>
    %c2_403 = arith.constant 2 : index
    %c8_404 = arith.constant 8 : index
    %706 = memref.load %arg7[%c2_403, %c8_404] : memref<4x16xf32, #tpu.memory_space<smem>>
    %707 = vector.broadcast %706 : f32 to vector<8x16xf32>
    %708 = arith.addf %705, %707 : vector<8x16xf32>
    %cst_405 = arith.constant 0.000000e+00 : f32
    %709 = vector.broadcast %cst_405 : f32 to vector<8x16xf32>
    %710 = arith.maximumf %708, %709 : vector<8x16xf32>
    %c2_406 = arith.constant 2 : index
    %c8_407 = arith.constant 8 : index
    %711 = memref.load %arg8[%c2_406, %c8_407] : memref<4x16xf32, #tpu.memory_space<smem>>
    %712 = vector.broadcast %711 : f32 to vector<8x16xf32>
    %713 = arith.mulf %710, %712 : vector<8x16xf32>
    %714 = arith.addf %698, %713 : vector<8x16xf32>
    %c2_408 = arith.constant 2 : index
    %c9_409 = arith.constant 9 : index
    %715 = memref.load %arg5[%c2_408, %c9_409] : memref<4x16xf32, #tpu.memory_space<smem>>
    %716 = vector.broadcast %715 : f32 to vector<8x16xf32>
    %717 = arith.mulf %566, %716 : vector<8x16xf32>
    %c2_410 = arith.constant 2 : index
    %c9_411 = arith.constant 9 : index
    %718 = memref.load %arg6[%c2_410, %c9_411] : memref<4x16xf32, #tpu.memory_space<smem>>
    %719 = vector.broadcast %718 : f32 to vector<8x16xf32>
    %720 = arith.mulf %1, %719 : vector<8x16xf32>
    %721 = arith.addf %717, %720 : vector<8x16xf32>
    %c2_412 = arith.constant 2 : index
    %c9_413 = arith.constant 9 : index
    %722 = memref.load %arg7[%c2_412, %c9_413] : memref<4x16xf32, #tpu.memory_space<smem>>
    %723 = vector.broadcast %722 : f32 to vector<8x16xf32>
    %724 = arith.addf %721, %723 : vector<8x16xf32>
    %cst_414 = arith.constant 0.000000e+00 : f32
    %725 = vector.broadcast %cst_414 : f32 to vector<8x16xf32>
    %726 = arith.maximumf %724, %725 : vector<8x16xf32>
    %c2_415 = arith.constant 2 : index
    %c9_416 = arith.constant 9 : index
    %727 = memref.load %arg8[%c2_415, %c9_416] : memref<4x16xf32, #tpu.memory_space<smem>>
    %728 = vector.broadcast %727 : f32 to vector<8x16xf32>
    %729 = arith.mulf %726, %728 : vector<8x16xf32>
    %730 = arith.addf %714, %729 : vector<8x16xf32>
    %c2_417 = arith.constant 2 : index
    %c10_418 = arith.constant 10 : index
    %731 = memref.load %arg5[%c2_417, %c10_418] : memref<4x16xf32, #tpu.memory_space<smem>>
    %732 = vector.broadcast %731 : f32 to vector<8x16xf32>
    %733 = arith.mulf %566, %732 : vector<8x16xf32>
    %c2_419 = arith.constant 2 : index
    %c10_420 = arith.constant 10 : index
    %734 = memref.load %arg6[%c2_419, %c10_420] : memref<4x16xf32, #tpu.memory_space<smem>>
    %735 = vector.broadcast %734 : f32 to vector<8x16xf32>
    %736 = arith.mulf %1, %735 : vector<8x16xf32>
    %737 = arith.addf %733, %736 : vector<8x16xf32>
    %c2_421 = arith.constant 2 : index
    %c10_422 = arith.constant 10 : index
    %738 = memref.load %arg7[%c2_421, %c10_422] : memref<4x16xf32, #tpu.memory_space<smem>>
    %739 = vector.broadcast %738 : f32 to vector<8x16xf32>
    %740 = arith.addf %737, %739 : vector<8x16xf32>
    %cst_423 = arith.constant 0.000000e+00 : f32
    %741 = vector.broadcast %cst_423 : f32 to vector<8x16xf32>
    %742 = arith.maximumf %740, %741 : vector<8x16xf32>
    %c2_424 = arith.constant 2 : index
    %c10_425 = arith.constant 10 : index
    %743 = memref.load %arg8[%c2_424, %c10_425] : memref<4x16xf32, #tpu.memory_space<smem>>
    %744 = vector.broadcast %743 : f32 to vector<8x16xf32>
    %745 = arith.mulf %742, %744 : vector<8x16xf32>
    %746 = arith.addf %730, %745 : vector<8x16xf32>
    %c2_426 = arith.constant 2 : index
    %c11_427 = arith.constant 11 : index
    %747 = memref.load %arg5[%c2_426, %c11_427] : memref<4x16xf32, #tpu.memory_space<smem>>
    %748 = vector.broadcast %747 : f32 to vector<8x16xf32>
    %749 = arith.mulf %566, %748 : vector<8x16xf32>
    %c2_428 = arith.constant 2 : index
    %c11_429 = arith.constant 11 : index
    %750 = memref.load %arg6[%c2_428, %c11_429] : memref<4x16xf32, #tpu.memory_space<smem>>
    %751 = vector.broadcast %750 : f32 to vector<8x16xf32>
    %752 = arith.mulf %1, %751 : vector<8x16xf32>
    %753 = arith.addf %749, %752 : vector<8x16xf32>
    %c2_430 = arith.constant 2 : index
    %c11_431 = arith.constant 11 : index
    %754 = memref.load %arg7[%c2_430, %c11_431] : memref<4x16xf32, #tpu.memory_space<smem>>
    %755 = vector.broadcast %754 : f32 to vector<8x16xf32>
    %756 = arith.addf %753, %755 : vector<8x16xf32>
    %cst_432 = arith.constant 0.000000e+00 : f32
    %757 = vector.broadcast %cst_432 : f32 to vector<8x16xf32>
    %758 = arith.maximumf %756, %757 : vector<8x16xf32>
    %c2_433 = arith.constant 2 : index
    %c11_434 = arith.constant 11 : index
    %759 = memref.load %arg8[%c2_433, %c11_434] : memref<4x16xf32, #tpu.memory_space<smem>>
    %760 = vector.broadcast %759 : f32 to vector<8x16xf32>
    %761 = arith.mulf %758, %760 : vector<8x16xf32>
    %762 = arith.addf %746, %761 : vector<8x16xf32>
    %c2_435 = arith.constant 2 : index
    %c12_436 = arith.constant 12 : index
    %763 = memref.load %arg5[%c2_435, %c12_436] : memref<4x16xf32, #tpu.memory_space<smem>>
    %764 = vector.broadcast %763 : f32 to vector<8x16xf32>
    %765 = arith.mulf %566, %764 : vector<8x16xf32>
    %c2_437 = arith.constant 2 : index
    %c12_438 = arith.constant 12 : index
    %766 = memref.load %arg6[%c2_437, %c12_438] : memref<4x16xf32, #tpu.memory_space<smem>>
    %767 = vector.broadcast %766 : f32 to vector<8x16xf32>
    %768 = arith.mulf %1, %767 : vector<8x16xf32>
    %769 = arith.addf %765, %768 : vector<8x16xf32>
    %c2_439 = arith.constant 2 : index
    %c12_440 = arith.constant 12 : index
    %770 = memref.load %arg7[%c2_439, %c12_440] : memref<4x16xf32, #tpu.memory_space<smem>>
    %771 = vector.broadcast %770 : f32 to vector<8x16xf32>
    %772 = arith.addf %769, %771 : vector<8x16xf32>
    %cst_441 = arith.constant 0.000000e+00 : f32
    %773 = vector.broadcast %cst_441 : f32 to vector<8x16xf32>
    %774 = arith.maximumf %772, %773 : vector<8x16xf32>
    %c2_442 = arith.constant 2 : index
    %c12_443 = arith.constant 12 : index
    %775 = memref.load %arg8[%c2_442, %c12_443] : memref<4x16xf32, #tpu.memory_space<smem>>
    %776 = vector.broadcast %775 : f32 to vector<8x16xf32>
    %777 = arith.mulf %774, %776 : vector<8x16xf32>
    %778 = arith.addf %762, %777 : vector<8x16xf32>
    %c2_444 = arith.constant 2 : index
    %c13_445 = arith.constant 13 : index
    %779 = memref.load %arg5[%c2_444, %c13_445] : memref<4x16xf32, #tpu.memory_space<smem>>
    %780 = vector.broadcast %779 : f32 to vector<8x16xf32>
    %781 = arith.mulf %566, %780 : vector<8x16xf32>
    %c2_446 = arith.constant 2 : index
    %c13_447 = arith.constant 13 : index
    %782 = memref.load %arg6[%c2_446, %c13_447] : memref<4x16xf32, #tpu.memory_space<smem>>
    %783 = vector.broadcast %782 : f32 to vector<8x16xf32>
    %784 = arith.mulf %1, %783 : vector<8x16xf32>
    %785 = arith.addf %781, %784 : vector<8x16xf32>
    %c2_448 = arith.constant 2 : index
    %c13_449 = arith.constant 13 : index
    %786 = memref.load %arg7[%c2_448, %c13_449] : memref<4x16xf32, #tpu.memory_space<smem>>
    %787 = vector.broadcast %786 : f32 to vector<8x16xf32>
    %788 = arith.addf %785, %787 : vector<8x16xf32>
    %cst_450 = arith.constant 0.000000e+00 : f32
    %789 = vector.broadcast %cst_450 : f32 to vector<8x16xf32>
    %790 = arith.maximumf %788, %789 : vector<8x16xf32>
    %c2_451 = arith.constant 2 : index
    %c13_452 = arith.constant 13 : index
    %791 = memref.load %arg8[%c2_451, %c13_452] : memref<4x16xf32, #tpu.memory_space<smem>>
    %792 = vector.broadcast %791 : f32 to vector<8x16xf32>
    %793 = arith.mulf %790, %792 : vector<8x16xf32>
    %794 = arith.addf %778, %793 : vector<8x16xf32>
    %c2_453 = arith.constant 2 : index
    %c14_454 = arith.constant 14 : index
    %795 = memref.load %arg5[%c2_453, %c14_454] : memref<4x16xf32, #tpu.memory_space<smem>>
    %796 = vector.broadcast %795 : f32 to vector<8x16xf32>
    %797 = arith.mulf %566, %796 : vector<8x16xf32>
    %c2_455 = arith.constant 2 : index
    %c14_456 = arith.constant 14 : index
    %798 = memref.load %arg6[%c2_455, %c14_456] : memref<4x16xf32, #tpu.memory_space<smem>>
    %799 = vector.broadcast %798 : f32 to vector<8x16xf32>
    %800 = arith.mulf %1, %799 : vector<8x16xf32>
    %801 = arith.addf %797, %800 : vector<8x16xf32>
    %c2_457 = arith.constant 2 : index
    %c14_458 = arith.constant 14 : index
    %802 = memref.load %arg7[%c2_457, %c14_458] : memref<4x16xf32, #tpu.memory_space<smem>>
    %803 = vector.broadcast %802 : f32 to vector<8x16xf32>
    %804 = arith.addf %801, %803 : vector<8x16xf32>
    %cst_459 = arith.constant 0.000000e+00 : f32
    %805 = vector.broadcast %cst_459 : f32 to vector<8x16xf32>
    %806 = arith.maximumf %804, %805 : vector<8x16xf32>
    %c2_460 = arith.constant 2 : index
    %c14_461 = arith.constant 14 : index
    %807 = memref.load %arg8[%c2_460, %c14_461] : memref<4x16xf32, #tpu.memory_space<smem>>
    %808 = vector.broadcast %807 : f32 to vector<8x16xf32>
    %809 = arith.mulf %806, %808 : vector<8x16xf32>
    %810 = arith.addf %794, %809 : vector<8x16xf32>
    %c2_462 = arith.constant 2 : index
    %c15_463 = arith.constant 15 : index
    %811 = memref.load %arg5[%c2_462, %c15_463] : memref<4x16xf32, #tpu.memory_space<smem>>
    %812 = vector.broadcast %811 : f32 to vector<8x16xf32>
    %813 = arith.mulf %566, %812 : vector<8x16xf32>
    %c2_464 = arith.constant 2 : index
    %c15_465 = arith.constant 15 : index
    %814 = memref.load %arg6[%c2_464, %c15_465] : memref<4x16xf32, #tpu.memory_space<smem>>
    %815 = vector.broadcast %814 : f32 to vector<8x16xf32>
    %816 = arith.mulf %1, %815 : vector<8x16xf32>
    %817 = arith.addf %813, %816 : vector<8x16xf32>
    %c2_466 = arith.constant 2 : index
    %c15_467 = arith.constant 15 : index
    %818 = memref.load %arg7[%c2_466, %c15_467] : memref<4x16xf32, #tpu.memory_space<smem>>
    %819 = vector.broadcast %818 : f32 to vector<8x16xf32>
    %820 = arith.addf %817, %819 : vector<8x16xf32>
    %cst_468 = arith.constant 0.000000e+00 : f32
    %821 = vector.broadcast %cst_468 : f32 to vector<8x16xf32>
    %822 = arith.maximumf %820, %821 : vector<8x16xf32>
    %c2_469 = arith.constant 2 : index
    %c15_470 = arith.constant 15 : index
    %823 = memref.load %arg8[%c2_469, %c15_470] : memref<4x16xf32, #tpu.memory_space<smem>>
    %824 = vector.broadcast %823 : f32 to vector<8x16xf32>
    %825 = arith.mulf %822, %824 : vector<8x16xf32>
    %826 = arith.addf %810, %825 : vector<8x16xf32>
    %cst_471 = arith.constant dense<0xFF800000> : vector<8xf32>
    %827 = vector.multi_reduction <maximumf>, %826, %cst_471 [1] : vector<8x16xf32> to vector<8xf32>
    %828 = vector.shape_cast %827 : vector<8xf32> to vector<8x1xf32>
    %829 = vector.broadcast %828 : vector<8x1xf32> to vector<8x16xf32>
    %830 = arith.subf %826, %829 : vector<8x16xf32>
    %831 = math.exp %830 : vector<8x16xf32>
    %cst_472 = arith.constant dense<0.000000e+00> : vector<8xf32>
    %832 = vector.multi_reduction <add>, %831, %cst_472 [1] : vector<8x16xf32> to vector<8xf32>
    %833 = vector.shape_cast %832 : vector<8xf32> to vector<8x1xf32>
    %cst_473 = arith.constant dense<0.000000e+00> : vector<8x8xf32>
    %834 = tpu.matmul %831, %565, %cst_473 {dimension_numbers = #tpu.dot_dimension_numbers<[1], [0], [0], [1], [0, 0, 1, 1], [], []>} : vector<8x16xf32>, vector<16x8xf32>, vector<8x8xf32> -> vector<8x8xf32>
    %cst_474 = arith.constant 1.000000e+00 : f32
    %835 = vector.broadcast %cst_474 : f32 to vector<8x1xf32>
    %836 = arith.divf %835, %833 : vector<8x1xf32>
    %837 = vector.broadcast %836 : vector<8x1xf32> to vector<8x8xf32>
    %838 = arith.mulf %834, %837 : vector<8x8xf32>
    %c0_475 = arith.constant 0 : index
    %c3_476 = arith.constant 3 : index
    %c0_477 = arith.constant 0 : index
    %c0_478 = arith.constant 0 : index
    %839 = vector.load %arg1[%c0_475, %c3_476, %c0_477, %c0_478] : memref<2x4x8x8xf32, #tpu.memory_space<vmem>>, vector<1x1x8x8xf32>
    %840 = vector.shape_cast %839 : vector<1x1x8x8xf32> to vector<8x8xf32>
    %c0_479 = arith.constant 0 : index
    %c3_480 = arith.constant 3 : index
    %c0_481 = arith.constant 0 : index
    %c0_482 = arith.constant 0 : index
    %841 = vector.load %arg2[%c0_479, %c3_480, %c0_481, %c0_482] : memref<2x4x16x8xf32, #tpu.memory_space<vmem>>, vector<1x1x16x8xf32>
    %842 = vector.shape_cast %841 : vector<1x1x16x8xf32> to vector<16x8xf32>
    %c0_483 = arith.constant 0 : index
    %c3_484 = arith.constant 3 : index
    %c0_485 = arith.constant 0 : index
    %c0_486 = arith.constant 0 : index
    %843 = vector.load %arg3[%c0_483, %c3_484, %c0_485, %c0_486] : memref<2x4x16x8xf32, #tpu.memory_space<vmem>>, vector<1x1x16x8xf32>
    %844 = vector.shape_cast %843 : vector<1x1x16x8xf32> to vector<16x8xf32>
    %cst_487 = arith.constant dense<0.000000e+00> : vector<8x16xf32>
    %845 = tpu.matmul %840, %842, %cst_487 {dimension_numbers = #tpu.dot_dimension_numbers<[1], [1], [0], [0], [0, 0, 1, 0], [], []>} : vector<8x8xf32>, vector<16x8xf32>, vector<8x16xf32> -> vector<8x16xf32>
    %cst_488 = arith.constant 0.000000e+00 : f32
    %846 = vector.broadcast %cst_488 : f32 to vector<8x16xf32>
    %c3_489 = arith.constant 3 : index
    %847 = memref.load %arg9[%c3_489] : memref<4xf32, #tpu.memory_space<smem>>
    %848 = vector.broadcast %847 : f32 to vector<8x16xf32>
    %849 = arith.addf %846, %848 : vector<8x16xf32>
    %c3_490 = arith.constant 3 : index
    %c0_491 = arith.constant 0 : index
    %850 = memref.load %arg5[%c3_490, %c0_491] : memref<4x16xf32, #tpu.memory_space<smem>>
    %851 = vector.broadcast %850 : f32 to vector<8x16xf32>
    %852 = arith.mulf %845, %851 : vector<8x16xf32>
    %c3_492 = arith.constant 3 : index
    %c0_493 = arith.constant 0 : index
    %853 = memref.load %arg6[%c3_492, %c0_493] : memref<4x16xf32, #tpu.memory_space<smem>>
    %854 = vector.broadcast %853 : f32 to vector<8x16xf32>
    %855 = arith.mulf %1, %854 : vector<8x16xf32>
    %856 = arith.addf %852, %855 : vector<8x16xf32>
    %c3_494 = arith.constant 3 : index
    %c0_495 = arith.constant 0 : index
    %857 = memref.load %arg7[%c3_494, %c0_495] : memref<4x16xf32, #tpu.memory_space<smem>>
    %858 = vector.broadcast %857 : f32 to vector<8x16xf32>
    %859 = arith.addf %856, %858 : vector<8x16xf32>
    %cst_496 = arith.constant 0.000000e+00 : f32
    %860 = vector.broadcast %cst_496 : f32 to vector<8x16xf32>
    %861 = arith.maximumf %859, %860 : vector<8x16xf32>
    %c3_497 = arith.constant 3 : index
    %c0_498 = arith.constant 0 : index
    %862 = memref.load %arg8[%c3_497, %c0_498] : memref<4x16xf32, #tpu.memory_space<smem>>
    %863 = vector.broadcast %862 : f32 to vector<8x16xf32>
    %864 = arith.mulf %861, %863 : vector<8x16xf32>
    %865 = arith.addf %849, %864 : vector<8x16xf32>
    %c3_499 = arith.constant 3 : index
    %c1_500 = arith.constant 1 : index
    %866 = memref.load %arg5[%c3_499, %c1_500] : memref<4x16xf32, #tpu.memory_space<smem>>
    %867 = vector.broadcast %866 : f32 to vector<8x16xf32>
    %868 = arith.mulf %845, %867 : vector<8x16xf32>
    %c3_501 = arith.constant 3 : index
    %c1_502 = arith.constant 1 : index
    %869 = memref.load %arg6[%c3_501, %c1_502] : memref<4x16xf32, #tpu.memory_space<smem>>
    %870 = vector.broadcast %869 : f32 to vector<8x16xf32>
    %871 = arith.mulf %1, %870 : vector<8x16xf32>
    %872 = arith.addf %868, %871 : vector<8x16xf32>
    %c3_503 = arith.constant 3 : index
    %c1_504 = arith.constant 1 : index
    %873 = memref.load %arg7[%c3_503, %c1_504] : memref<4x16xf32, #tpu.memory_space<smem>>
    %874 = vector.broadcast %873 : f32 to vector<8x16xf32>
    %875 = arith.addf %872, %874 : vector<8x16xf32>
    %cst_505 = arith.constant 0.000000e+00 : f32
    %876 = vector.broadcast %cst_505 : f32 to vector<8x16xf32>
    %877 = arith.maximumf %875, %876 : vector<8x16xf32>
    %c3_506 = arith.constant 3 : index
    %c1_507 = arith.constant 1 : index
    %878 = memref.load %arg8[%c3_506, %c1_507] : memref<4x16xf32, #tpu.memory_space<smem>>
    %879 = vector.broadcast %878 : f32 to vector<8x16xf32>
    %880 = arith.mulf %877, %879 : vector<8x16xf32>
    %881 = arith.addf %865, %880 : vector<8x16xf32>
    %c3_508 = arith.constant 3 : index
    %c2_509 = arith.constant 2 : index
    %882 = memref.load %arg5[%c3_508, %c2_509] : memref<4x16xf32, #tpu.memory_space<smem>>
    %883 = vector.broadcast %882 : f32 to vector<8x16xf32>
    %884 = arith.mulf %845, %883 : vector<8x16xf32>
    %c3_510 = arith.constant 3 : index
    %c2_511 = arith.constant 2 : index
    %885 = memref.load %arg6[%c3_510, %c2_511] : memref<4x16xf32, #tpu.memory_space<smem>>
    %886 = vector.broadcast %885 : f32 to vector<8x16xf32>
    %887 = arith.mulf %1, %886 : vector<8x16xf32>
    %888 = arith.addf %884, %887 : vector<8x16xf32>
    %c3_512 = arith.constant 3 : index
    %c2_513 = arith.constant 2 : index
    %889 = memref.load %arg7[%c3_512, %c2_513] : memref<4x16xf32, #tpu.memory_space<smem>>
    %890 = vector.broadcast %889 : f32 to vector<8x16xf32>
    %891 = arith.addf %888, %890 : vector<8x16xf32>
    %cst_514 = arith.constant 0.000000e+00 : f32
    %892 = vector.broadcast %cst_514 : f32 to vector<8x16xf32>
    %893 = arith.maximumf %891, %892 : vector<8x16xf32>
    %c3_515 = arith.constant 3 : index
    %c2_516 = arith.constant 2 : index
    %894 = memref.load %arg8[%c3_515, %c2_516] : memref<4x16xf32, #tpu.memory_space<smem>>
    %895 = vector.broadcast %894 : f32 to vector<8x16xf32>
    %896 = arith.mulf %893, %895 : vector<8x16xf32>
    %897 = arith.addf %881, %896 : vector<8x16xf32>
    %c3_517 = arith.constant 3 : index
    %c3_518 = arith.constant 3 : index
    %898 = memref.load %arg5[%c3_517, %c3_518] : memref<4x16xf32, #tpu.memory_space<smem>>
    %899 = vector.broadcast %898 : f32 to vector<8x16xf32>
    %900 = arith.mulf %845, %899 : vector<8x16xf32>
    %c3_519 = arith.constant 3 : index
    %c3_520 = arith.constant 3 : index
    %901 = memref.load %arg6[%c3_519, %c3_520] : memref<4x16xf32, #tpu.memory_space<smem>>
    %902 = vector.broadcast %901 : f32 to vector<8x16xf32>
    %903 = arith.mulf %1, %902 : vector<8x16xf32>
    %904 = arith.addf %900, %903 : vector<8x16xf32>
    %c3_521 = arith.constant 3 : index
    %c3_522 = arith.constant 3 : index
    %905 = memref.load %arg7[%c3_521, %c3_522] : memref<4x16xf32, #tpu.memory_space<smem>>
    %906 = vector.broadcast %905 : f32 to vector<8x16xf32>
    %907 = arith.addf %904, %906 : vector<8x16xf32>
    %cst_523 = arith.constant 0.000000e+00 : f32
    %908 = vector.broadcast %cst_523 : f32 to vector<8x16xf32>
    %909 = arith.maximumf %907, %908 : vector<8x16xf32>
    %c3_524 = arith.constant 3 : index
    %c3_525 = arith.constant 3 : index
    %910 = memref.load %arg8[%c3_524, %c3_525] : memref<4x16xf32, #tpu.memory_space<smem>>
    %911 = vector.broadcast %910 : f32 to vector<8x16xf32>
    %912 = arith.mulf %909, %911 : vector<8x16xf32>
    %913 = arith.addf %897, %912 : vector<8x16xf32>
    %c3_526 = arith.constant 3 : index
    %c4_527 = arith.constant 4 : index
    %914 = memref.load %arg5[%c3_526, %c4_527] : memref<4x16xf32, #tpu.memory_space<smem>>
    %915 = vector.broadcast %914 : f32 to vector<8x16xf32>
    %916 = arith.mulf %845, %915 : vector<8x16xf32>
    %c3_528 = arith.constant 3 : index
    %c4_529 = arith.constant 4 : index
    %917 = memref.load %arg6[%c3_528, %c4_529] : memref<4x16xf32, #tpu.memory_space<smem>>
    %918 = vector.broadcast %917 : f32 to vector<8x16xf32>
    %919 = arith.mulf %1, %918 : vector<8x16xf32>
    %920 = arith.addf %916, %919 : vector<8x16xf32>
    %c3_530 = arith.constant 3 : index
    %c4_531 = arith.constant 4 : index
    %921 = memref.load %arg7[%c3_530, %c4_531] : memref<4x16xf32, #tpu.memory_space<smem>>
    %922 = vector.broadcast %921 : f32 to vector<8x16xf32>
    %923 = arith.addf %920, %922 : vector<8x16xf32>
    %cst_532 = arith.constant 0.000000e+00 : f32
    %924 = vector.broadcast %cst_532 : f32 to vector<8x16xf32>
    %925 = arith.maximumf %923, %924 : vector<8x16xf32>
    %c3_533 = arith.constant 3 : index
    %c4_534 = arith.constant 4 : index
    %926 = memref.load %arg8[%c3_533, %c4_534] : memref<4x16xf32, #tpu.memory_space<smem>>
    %927 = vector.broadcast %926 : f32 to vector<8x16xf32>
    %928 = arith.mulf %925, %927 : vector<8x16xf32>
    %929 = arith.addf %913, %928 : vector<8x16xf32>
    %c3_535 = arith.constant 3 : index
    %c5_536 = arith.constant 5 : index
    %930 = memref.load %arg5[%c3_535, %c5_536] : memref<4x16xf32, #tpu.memory_space<smem>>
    %931 = vector.broadcast %930 : f32 to vector<8x16xf32>
    %932 = arith.mulf %845, %931 : vector<8x16xf32>
    %c3_537 = arith.constant 3 : index
    %c5_538 = arith.constant 5 : index
    %933 = memref.load %arg6[%c3_537, %c5_538] : memref<4x16xf32, #tpu.memory_space<smem>>
    %934 = vector.broadcast %933 : f32 to vector<8x16xf32>
    %935 = arith.mulf %1, %934 : vector<8x16xf32>
    %936 = arith.addf %932, %935 : vector<8x16xf32>
    %c3_539 = arith.constant 3 : index
    %c5_540 = arith.constant 5 : index
    %937 = memref.load %arg7[%c3_539, %c5_540] : memref<4x16xf32, #tpu.memory_space<smem>>
    %938 = vector.broadcast %937 : f32 to vector<8x16xf32>
    %939 = arith.addf %936, %938 : vector<8x16xf32>
    %cst_541 = arith.constant 0.000000e+00 : f32
    %940 = vector.broadcast %cst_541 : f32 to vector<8x16xf32>
    %941 = arith.maximumf %939, %940 : vector<8x16xf32>
    %c3_542 = arith.constant 3 : index
    %c5_543 = arith.constant 5 : index
    %942 = memref.load %arg8[%c3_542, %c5_543] : memref<4x16xf32, #tpu.memory_space<smem>>
    %943 = vector.broadcast %942 : f32 to vector<8x16xf32>
    %944 = arith.mulf %941, %943 : vector<8x16xf32>
    %945 = arith.addf %929, %944 : vector<8x16xf32>
    %c3_544 = arith.constant 3 : index
    %c6_545 = arith.constant 6 : index
    %946 = memref.load %arg5[%c3_544, %c6_545] : memref<4x16xf32, #tpu.memory_space<smem>>
    %947 = vector.broadcast %946 : f32 to vector<8x16xf32>
    %948 = arith.mulf %845, %947 : vector<8x16xf32>
    %c3_546 = arith.constant 3 : index
    %c6_547 = arith.constant 6 : index
    %949 = memref.load %arg6[%c3_546, %c6_547] : memref<4x16xf32, #tpu.memory_space<smem>>
    %950 = vector.broadcast %949 : f32 to vector<8x16xf32>
    %951 = arith.mulf %1, %950 : vector<8x16xf32>
    %952 = arith.addf %948, %951 : vector<8x16xf32>
    %c3_548 = arith.constant 3 : index
    %c6_549 = arith.constant 6 : index
    %953 = memref.load %arg7[%c3_548, %c6_549] : memref<4x16xf32, #tpu.memory_space<smem>>
    %954 = vector.broadcast %953 : f32 to vector<8x16xf32>
    %955 = arith.addf %952, %954 : vector<8x16xf32>
    %cst_550 = arith.constant 0.000000e+00 : f32
    %956 = vector.broadcast %cst_550 : f32 to vector<8x16xf32>
    %957 = arith.maximumf %955, %956 : vector<8x16xf32>
    %c3_551 = arith.constant 3 : index
    %c6_552 = arith.constant 6 : index
    %958 = memref.load %arg8[%c3_551, %c6_552] : memref<4x16xf32, #tpu.memory_space<smem>>
    %959 = vector.broadcast %958 : f32 to vector<8x16xf32>
    %960 = arith.mulf %957, %959 : vector<8x16xf32>
    %961 = arith.addf %945, %960 : vector<8x16xf32>
    %c3_553 = arith.constant 3 : index
    %c7_554 = arith.constant 7 : index
    %962 = memref.load %arg5[%c3_553, %c7_554] : memref<4x16xf32, #tpu.memory_space<smem>>
    %963 = vector.broadcast %962 : f32 to vector<8x16xf32>
    %964 = arith.mulf %845, %963 : vector<8x16xf32>
    %c3_555 = arith.constant 3 : index
    %c7_556 = arith.constant 7 : index
    %965 = memref.load %arg6[%c3_555, %c7_556] : memref<4x16xf32, #tpu.memory_space<smem>>
    %966 = vector.broadcast %965 : f32 to vector<8x16xf32>
    %967 = arith.mulf %1, %966 : vector<8x16xf32>
    %968 = arith.addf %964, %967 : vector<8x16xf32>
    %c3_557 = arith.constant 3 : index
    %c7_558 = arith.constant 7 : index
    %969 = memref.load %arg7[%c3_557, %c7_558] : memref<4x16xf32, #tpu.memory_space<smem>>
    %970 = vector.broadcast %969 : f32 to vector<8x16xf32>
    %971 = arith.addf %968, %970 : vector<8x16xf32>
    %cst_559 = arith.constant 0.000000e+00 : f32
    %972 = vector.broadcast %cst_559 : f32 to vector<8x16xf32>
    %973 = arith.maximumf %971, %972 : vector<8x16xf32>
    %c3_560 = arith.constant 3 : index
    %c7_561 = arith.constant 7 : index
    %974 = memref.load %arg8[%c3_560, %c7_561] : memref<4x16xf32, #tpu.memory_space<smem>>
    %975 = vector.broadcast %974 : f32 to vector<8x16xf32>
    %976 = arith.mulf %973, %975 : vector<8x16xf32>
    %977 = arith.addf %961, %976 : vector<8x16xf32>
    %c3_562 = arith.constant 3 : index
    %c8_563 = arith.constant 8 : index
    %978 = memref.load %arg5[%c3_562, %c8_563] : memref<4x16xf32, #tpu.memory_space<smem>>
    %979 = vector.broadcast %978 : f32 to vector<8x16xf32>
    %980 = arith.mulf %845, %979 : vector<8x16xf32>
    %c3_564 = arith.constant 3 : index
    %c8_565 = arith.constant 8 : index
    %981 = memref.load %arg6[%c3_564, %c8_565] : memref<4x16xf32, #tpu.memory_space<smem>>
    %982 = vector.broadcast %981 : f32 to vector<8x16xf32>
    %983 = arith.mulf %1, %982 : vector<8x16xf32>
    %984 = arith.addf %980, %983 : vector<8x16xf32>
    %c3_566 = arith.constant 3 : index
    %c8_567 = arith.constant 8 : index
    %985 = memref.load %arg7[%c3_566, %c8_567] : memref<4x16xf32, #tpu.memory_space<smem>>
    %986 = vector.broadcast %985 : f32 to vector<8x16xf32>
    %987 = arith.addf %984, %986 : vector<8x16xf32>
    %cst_568 = arith.constant 0.000000e+00 : f32
    %988 = vector.broadcast %cst_568 : f32 to vector<8x16xf32>
    %989 = arith.maximumf %987, %988 : vector<8x16xf32>
    %c3_569 = arith.constant 3 : index
    %c8_570 = arith.constant 8 : index
    %990 = memref.load %arg8[%c3_569, %c8_570] : memref<4x16xf32, #tpu.memory_space<smem>>
    %991 = vector.broadcast %990 : f32 to vector<8x16xf32>
    %992 = arith.mulf %989, %991 : vector<8x16xf32>
    %993 = arith.addf %977, %992 : vector<8x16xf32>
    %c3_571 = arith.constant 3 : index
    %c9_572 = arith.constant 9 : index
    %994 = memref.load %arg5[%c3_571, %c9_572] : memref<4x16xf32, #tpu.memory_space<smem>>
    %995 = vector.broadcast %994 : f32 to vector<8x16xf32>
    %996 = arith.mulf %845, %995 : vector<8x16xf32>
    %c3_573 = arith.constant 3 : index
    %c9_574 = arith.constant 9 : index
    %997 = memref.load %arg6[%c3_573, %c9_574] : memref<4x16xf32, #tpu.memory_space<smem>>
    %998 = vector.broadcast %997 : f32 to vector<8x16xf32>
    %999 = arith.mulf %1, %998 : vector<8x16xf32>
    %1000 = arith.addf %996, %999 : vector<8x16xf32>
    %c3_575 = arith.constant 3 : index
    %c9_576 = arith.constant 9 : index
    %1001 = memref.load %arg7[%c3_575, %c9_576] : memref<4x16xf32, #tpu.memory_space<smem>>
    %1002 = vector.broadcast %1001 : f32 to vector<8x16xf32>
    %1003 = arith.addf %1000, %1002 : vector<8x16xf32>
    %cst_577 = arith.constant 0.000000e+00 : f32
    %1004 = vector.broadcast %cst_577 : f32 to vector<8x16xf32>
    %1005 = arith.maximumf %1003, %1004 : vector<8x16xf32>
    %c3_578 = arith.constant 3 : index
    %c9_579 = arith.constant 9 : index
    %1006 = memref.load %arg8[%c3_578, %c9_579] : memref<4x16xf32, #tpu.memory_space<smem>>
    %1007 = vector.broadcast %1006 : f32 to vector<8x16xf32>
    %1008 = arith.mulf %1005, %1007 : vector<8x16xf32>
    %1009 = arith.addf %993, %1008 : vector<8x16xf32>
    %c3_580 = arith.constant 3 : index
    %c10_581 = arith.constant 10 : index
    %1010 = memref.load %arg5[%c3_580, %c10_581] : memref<4x16xf32, #tpu.memory_space<smem>>
    %1011 = vector.broadcast %1010 : f32 to vector<8x16xf32>
    %1012 = arith.mulf %845, %1011 : vector<8x16xf32>
    %c3_582 = arith.constant 3 : index
    %c10_583 = arith.constant 10 : index
    %1013 = memref.load %arg6[%c3_582, %c10_583] : memref<4x16xf32, #tpu.memory_space<smem>>
    %1014 = vector.broadcast %1013 : f32 to vector<8x16xf32>
    %1015 = arith.mulf %1, %1014 : vector<8x16xf32>
    %1016 = arith.addf %1012, %1015 : vector<8x16xf32>
    %c3_584 = arith.constant 3 : index
    %c10_585 = arith.constant 10 : index
    %1017 = memref.load %arg7[%c3_584, %c10_585] : memref<4x16xf32, #tpu.memory_space<smem>>
    %1018 = vector.broadcast %1017 : f32 to vector<8x16xf32>
    %1019 = arith.addf %1016, %1018 : vector<8x16xf32>
    %cst_586 = arith.constant 0.000000e+00 : f32
    %1020 = vector.broadcast %cst_586 : f32 to vector<8x16xf32>
    %1021 = arith.maximumf %1019, %1020 : vector<8x16xf32>
    %c3_587 = arith.constant 3 : index
    %c10_588 = arith.constant 10 : index
    %1022 = memref.load %arg8[%c3_587, %c10_588] : memref<4x16xf32, #tpu.memory_space<smem>>
    %1023 = vector.broadcast %1022 : f32 to vector<8x16xf32>
    %1024 = arith.mulf %1021, %1023 : vector<8x16xf32>
    %1025 = arith.addf %1009, %1024 : vector<8x16xf32>
    %c3_589 = arith.constant 3 : index
    %c11_590 = arith.constant 11 : index
    %1026 = memref.load %arg5[%c3_589, %c11_590] : memref<4x16xf32, #tpu.memory_space<smem>>
    %1027 = vector.broadcast %1026 : f32 to vector<8x16xf32>
    %1028 = arith.mulf %845, %1027 : vector<8x16xf32>
    %c3_591 = arith.constant 3 : index
    %c11_592 = arith.constant 11 : index
    %1029 = memref.load %arg6[%c3_591, %c11_592] : memref<4x16xf32, #tpu.memory_space<smem>>
    %1030 = vector.broadcast %1029 : f32 to vector<8x16xf32>
    %1031 = arith.mulf %1, %1030 : vector<8x16xf32>
    %1032 = arith.addf %1028, %1031 : vector<8x16xf32>
    %c3_593 = arith.constant 3 : index
    %c11_594 = arith.constant 11 : index
    %1033 = memref.load %arg7[%c3_593, %c11_594] : memref<4x16xf32, #tpu.memory_space<smem>>
    %1034 = vector.broadcast %1033 : f32 to vector<8x16xf32>
    %1035 = arith.addf %1032, %1034 : vector<8x16xf32>
    %cst_595 = arith.constant 0.000000e+00 : f32
    %1036 = vector.broadcast %cst_595 : f32 to vector<8x16xf32>
    %1037 = arith.maximumf %1035, %1036 : vector<8x16xf32>
    %c3_596 = arith.constant 3 : index
    %c11_597 = arith.constant 11 : index
    %1038 = memref.load %arg8[%c3_596, %c11_597] : memref<4x16xf32, #tpu.memory_space<smem>>
    %1039 = vector.broadcast %1038 : f32 to vector<8x16xf32>
    %1040 = arith.mulf %1037, %1039 : vector<8x16xf32>
    %1041 = arith.addf %1025, %1040 : vector<8x16xf32>
    %c3_598 = arith.constant 3 : index
    %c12_599 = arith.constant 12 : index
    %1042 = memref.load %arg5[%c3_598, %c12_599] : memref<4x16xf32, #tpu.memory_space<smem>>
    %1043 = vector.broadcast %1042 : f32 to vector<8x16xf32>
    %1044 = arith.mulf %845, %1043 : vector<8x16xf32>
    %c3_600 = arith.constant 3 : index
    %c12_601 = arith.constant 12 : index
    %1045 = memref.load %arg6[%c3_600, %c12_601] : memref<4x16xf32, #tpu.memory_space<smem>>
    %1046 = vector.broadcast %1045 : f32 to vector<8x16xf32>
    %1047 = arith.mulf %1, %1046 : vector<8x16xf32>
    %1048 = arith.addf %1044, %1047 : vector<8x16xf32>
    %c3_602 = arith.constant 3 : index
    %c12_603 = arith.constant 12 : index
    %1049 = memref.load %arg7[%c3_602, %c12_603] : memref<4x16xf32, #tpu.memory_space<smem>>
    %1050 = vector.broadcast %1049 : f32 to vector<8x16xf32>
    %1051 = arith.addf %1048, %1050 : vector<8x16xf32>
    %cst_604 = arith.constant 0.000000e+00 : f32
    %1052 = vector.broadcast %cst_604 : f32 to vector<8x16xf32>
    %1053 = arith.maximumf %1051, %1052 : vector<8x16xf32>
    %c3_605 = arith.constant 3 : index
    %c12_606 = arith.constant 12 : index
    %1054 = memref.load %arg8[%c3_605, %c12_606] : memref<4x16xf32, #tpu.memory_space<smem>>
    %1055 = vector.broadcast %1054 : f32 to vector<8x16xf32>
    %1056 = arith.mulf %1053, %1055 : vector<8x16xf32>
    %1057 = arith.addf %1041, %1056 : vector<8x16xf32>
    %c3_607 = arith.constant 3 : index
    %c13_608 = arith.constant 13 : index
    %1058 = memref.load %arg5[%c3_607, %c13_608] : memref<4x16xf32, #tpu.memory_space<smem>>
    %1059 = vector.broadcast %1058 : f32 to vector<8x16xf32>
    %1060 = arith.mulf %845, %1059 : vector<8x16xf32>
    %c3_609 = arith.constant 3 : index
    %c13_610 = arith.constant 13 : index
    %1061 = memref.load %arg6[%c3_609, %c13_610] : memref<4x16xf32, #tpu.memory_space<smem>>
    %1062 = vector.broadcast %1061 : f32 to vector<8x16xf32>
    %1063 = arith.mulf %1, %1062 : vector<8x16xf32>
    %1064 = arith.addf %1060, %1063 : vector<8x16xf32>
    %c3_611 = arith.constant 3 : index
    %c13_612 = arith.constant 13 : index
    %1065 = memref.load %arg7[%c3_611, %c13_612] : memref<4x16xf32, #tpu.memory_space<smem>>
    %1066 = vector.broadcast %1065 : f32 to vector<8x16xf32>
    %1067 = arith.addf %1064, %1066 : vector<8x16xf32>
    %cst_613 = arith.constant 0.000000e+00 : f32
    %1068 = vector.broadcast %cst_613 : f32 to vector<8x16xf32>
    %1069 = arith.maximumf %1067, %1068 : vector<8x16xf32>
    %c3_614 = arith.constant 3 : index
    %c13_615 = arith.constant 13 : index
    %1070 = memref.load %arg8[%c3_614, %c13_615] : memref<4x16xf32, #tpu.memory_space<smem>>
    %1071 = vector.broadcast %1070 : f32 to vector<8x16xf32>
    %1072 = arith.mulf %1069, %1071 : vector<8x16xf32>
    %1073 = arith.addf %1057, %1072 : vector<8x16xf32>
    %c3_616 = arith.constant 3 : index
    %c14_617 = arith.constant 14 : index
    %1074 = memref.load %arg5[%c3_616, %c14_617] : memref<4x16xf32, #tpu.memory_space<smem>>
    %1075 = vector.broadcast %1074 : f32 to vector<8x16xf32>
    %1076 = arith.mulf %845, %1075 : vector<8x16xf32>
    %c3_618 = arith.constant 3 : index
    %c14_619 = arith.constant 14 : index
    %1077 = memref.load %arg6[%c3_618, %c14_619] : memref<4x16xf32, #tpu.memory_space<smem>>
    %1078 = vector.broadcast %1077 : f32 to vector<8x16xf32>
    %1079 = arith.mulf %1, %1078 : vector<8x16xf32>
    %1080 = arith.addf %1076, %1079 : vector<8x16xf32>
    %c3_620 = arith.constant 3 : index
    %c14_621 = arith.constant 14 : index
    %1081 = memref.load %arg7[%c3_620, %c14_621] : memref<4x16xf32, #tpu.memory_space<smem>>
    %1082 = vector.broadcast %1081 : f32 to vector<8x16xf32>
    %1083 = arith.addf %1080, %1082 : vector<8x16xf32>
    %cst_622 = arith.constant 0.000000e+00 : f32
    %1084 = vector.broadcast %cst_622 : f32 to vector<8x16xf32>
    %1085 = arith.maximumf %1083, %1084 : vector<8x16xf32>
    %c3_623 = arith.constant 3 : index
    %c14_624 = arith.constant 14 : index
    %1086 = memref.load %arg8[%c3_623, %c14_624] : memref<4x16xf32, #tpu.memory_space<smem>>
    %1087 = vector.broadcast %1086 : f32 to vector<8x16xf32>
    %1088 = arith.mulf %1085, %1087 : vector<8x16xf32>
    %1089 = arith.addf %1073, %1088 : vector<8x16xf32>
    %c3_625 = arith.constant 3 : index
    %c15_626 = arith.constant 15 : index
    %1090 = memref.load %arg5[%c3_625, %c15_626] : memref<4x16xf32, #tpu.memory_space<smem>>
    %1091 = vector.broadcast %1090 : f32 to vector<8x16xf32>
    %1092 = arith.mulf %845, %1091 : vector<8x16xf32>
    %c3_627 = arith.constant 3 : index
    %c15_628 = arith.constant 15 : index
    %1093 = memref.load %arg6[%c3_627, %c15_628] : memref<4x16xf32, #tpu.memory_space<smem>>
    %1094 = vector.broadcast %1093 : f32 to vector<8x16xf32>
    %1095 = arith.mulf %1, %1094 : vector<8x16xf32>
    %1096 = arith.addf %1092, %1095 : vector<8x16xf32>
    %c3_629 = arith.constant 3 : index
    %c15_630 = arith.constant 15 : index
    %1097 = memref.load %arg7[%c3_629, %c15_630] : memref<4x16xf32, #tpu.memory_space<smem>>
    %1098 = vector.broadcast %1097 : f32 to vector<8x16xf32>
    %1099 = arith.addf %1096, %1098 : vector<8x16xf32>
    %cst_631 = arith.constant 0.000000e+00 : f32
    %1100 = vector.broadcast %cst_631 : f32 to vector<8x16xf32>
    %1101 = arith.maximumf %1099, %1100 : vector<8x16xf32>
    %c3_632 = arith.constant 3 : index
    %c15_633 = arith.constant 15 : index
    %1102 = memref.load %arg8[%c3_632, %c15_633] : memref<4x16xf32, #tpu.memory_space<smem>>
    %1103 = vector.broadcast %1102 : f32 to vector<8x16xf32>
    %1104 = arith.mulf %1101, %1103 : vector<8x16xf32>
    %1105 = arith.addf %1089, %1104 : vector<8x16xf32>
    %cst_634 = arith.constant dense<0xFF800000> : vector<8xf32>
    %1106 = vector.multi_reduction <maximumf>, %1105, %cst_634 [1] : vector<8x16xf32> to vector<8xf32>
    %1107 = vector.shape_cast %1106 : vector<8xf32> to vector<8x1xf32>
    %1108 = vector.broadcast %1107 : vector<8x1xf32> to vector<8x16xf32>
    %1109 = arith.subf %1105, %1108 : vector<8x16xf32>
    %1110 = math.exp %1109 : vector<8x16xf32>
    %cst_635 = arith.constant dense<0.000000e+00> : vector<8xf32>
    %1111 = vector.multi_reduction <add>, %1110, %cst_635 [1] : vector<8x16xf32> to vector<8xf32>
    %1112 = vector.shape_cast %1111 : vector<8xf32> to vector<8x1xf32>
    %cst_636 = arith.constant dense<0.000000e+00> : vector<8x8xf32>
    %1113 = tpu.matmul %1110, %844, %cst_636 {dimension_numbers = #tpu.dot_dimension_numbers<[1], [0], [0], [1], [0, 0, 1, 1], [], []>} : vector<8x16xf32>, vector<16x8xf32>, vector<8x8xf32> -> vector<8x8xf32>
    %cst_637 = arith.constant 1.000000e+00 : f32
    %1114 = vector.broadcast %cst_637 : f32 to vector<8x1xf32>
    %1115 = arith.divf %1114, %1112 : vector<8x1xf32>
    %1116 = vector.broadcast %1115 : vector<8x1xf32> to vector<8x8xf32>
    %1117 = arith.mulf %1113, %1116 : vector<8x8xf32>
    %1118 = tpu.concatenate %280, %559, %838, %1117 in 1 : vector<8x8xf32>, vector<8x8xf32>, vector<8x8xf32>, vector<8x8xf32> -> vector<8x32xf32>
    %c0_638 = arith.constant 0 : index
    %c0_639 = arith.constant 0 : index
    %c0_640 = arith.constant 0 : index
    %1119 = vector.load %arg10[%c0_638, %c0_639, %c0_640] : memref<2x8x32xf32, #tpu.memory_space<vmem>>, vector<1x8x32xf32>
    %1120 = vector.shape_cast %1119 : vector<1x8x32xf32> to vector<8x32xf32>
    %1121 = vector.shape_cast %1118 : vector<8x32xf32> to vector<1x8x32xf32>
    tpu.vector_store %arg10[%c0_638, %c0_639, %c0_640], %1121 {strides = array<i32>} : memref<2x8x32xf32, #tpu.memory_space<vmem>>, vector<1x8x32xf32>,
    %c1_641 = arith.constant 1 : index
    %c0_642 = arith.constant 0 : index
    %c0_643 = arith.constant 0 : index
    %1122 = vector.load %arg4[%c1_641, %c0_642, %c0_643] : memref<2x8x16xf32, #tpu.memory_space<vmem>>, vector<1x8x16xf32>
    %1123 = vector.shape_cast %1122 : vector<1x8x16xf32> to vector<8x16xf32>
    %c1_644 = arith.constant 1 : index
    %c0_645 = arith.constant 0 : index
    %c0_646 = arith.constant 0 : index
    %c0_647 = arith.constant 0 : index
    %1124 = vector.load %arg1[%c1_644, %c0_645, %c0_646, %c0_647] : memref<2x4x8x8xf32, #tpu.memory_space<vmem>>, vector<1x1x8x8xf32>
    %1125 = vector.shape_cast %1124 : vector<1x1x8x8xf32> to vector<8x8xf32>
    %c1_648 = arith.constant 1 : index
    %c0_649 = arith.constant 0 : index
    %c0_650 = arith.constant 0 : index
    %c0_651 = arith.constant 0 : index
    %1126 = vector.load %arg2[%c1_648, %c0_649, %c0_650, %c0_651] : memref<2x4x16x8xf32, #tpu.memory_space<vmem>>, vector<1x1x16x8xf32>
    %1127 = vector.shape_cast %1126 : vector<1x1x16x8xf32> to vector<16x8xf32>
    %c1_652 = arith.constant 1 : index
    %c0_653 = arith.constant 0 : index
    %c0_654 = arith.constant 0 : index
    %c0_655 = arith.constant 0 : index
    %1128 = vector.load %arg3[%c1_652, %c0_653, %c0_654, %c0_655] : memref<2x4x16x8xf32, #tpu.memory_space<vmem>>, vector<1x1x16x8xf32>
    %1129 = vector.shape_cast %1128 : vector<1x1x16x8xf32> to vector<16x8xf32>
    %cst_656 = arith.constant dense<0.000000e+00> : vector<8x16xf32>
    %1130 = tpu.matmul %1125, %1127, %cst_656 {dimension_numbers = #tpu.dot_dimension_numbers<[1], [1], [0], [0], [0, 0, 1, 0], [], []>} : vector<8x8xf32>, vector<16x8xf32>, vector<8x16xf32> -> vector<8x16xf32>
    %cst_657 = arith.constant 0.000000e+00 : f32
    %1131 = vector.broadcast %cst_657 : f32 to vector<8x16xf32>
    %c0_658 = arith.constant 0 : index
    %1132 = memref.load %arg9[%c0_658] : memref<4xf32, #tpu.memory_space<smem>>
    %1133 = vector.broadcast %1132 : f32 to vector<8x16xf32>
    %1134 = arith.addf %1131, %1133 : vector<8x16xf32>
    %c0_659 = arith.constant 0 : index
    %c0_660 = arith.constant 0 : index
    %1135 = memref.load %arg5[%c0_659, %c0_660] : memref<4x16xf32, #tpu.memory_space<smem>>
    %1136 = vector.broadcast %1135 : f32 to vector<8x16xf32>
    %1137 = arith.mulf %1130, %1136 : vector<8x16xf32>
    %c0_661 = arith.constant 0 : index
    %c0_662 = arith.constant 0 : index
    %1138 = memref.load %arg6[%c0_661, %c0_662] : memref<4x16xf32, #tpu.memory_space<smem>>
    %1139 = vector.broadcast %1138 : f32 to vector<8x16xf32>
    %1140 = arith.mulf %1123, %1139 : vector<8x16xf32>
    %1141 = arith.addf %1137, %1140 : vector<8x16xf32>
    %c0_663 = arith.constant 0 : index
    %c0_664 = arith.constant 0 : index
    %1142 = memref.load %arg7[%c0_663, %c0_664] : memref<4x16xf32, #tpu.memory_space<smem>>
    %1143 = vector.broadcast %1142 : f32 to vector<8x16xf32>
    %1144 = arith.addf %1141, %1143 : vector<8x16xf32>
    %cst_665 = arith.constant 0.000000e+00 : f32
    %1145 = vector.broadcast %cst_665 : f32 to vector<8x16xf32>
    %1146 = arith.maximumf %1144, %1145 : vector<8x16xf32>
    %c0_666 = arith.constant 0 : index
    %c0_667 = arith.constant 0 : index
    %1147 = memref.load %arg8[%c0_666, %c0_667] : memref<4x16xf32, #tpu.memory_space<smem>>
    %1148 = vector.broadcast %1147 : f32 to vector<8x16xf32>
    %1149 = arith.mulf %1146, %1148 : vector<8x16xf32>
    %1150 = arith.addf %1134, %1149 : vector<8x16xf32>
    %c0_668 = arith.constant 0 : index
    %c1_669 = arith.constant 1 : index
    %1151 = memref.load %arg5[%c0_668, %c1_669] : memref<4x16xf32, #tpu.memory_space<smem>>
    %1152 = vector.broadcast %1151 : f32 to vector<8x16xf32>
    %1153 = arith.mulf %1130, %1152 : vector<8x16xf32>
    %c0_670 = arith.constant 0 : index
    %c1_671 = arith.constant 1 : index
    %1154 = memref.load %arg6[%c0_670, %c1_671] : memref<4x16xf32, #tpu.memory_space<smem>>
    %1155 = vector.broadcast %1154 : f32 to vector<8x16xf32>
    %1156 = arith.mulf %1123, %1155 : vector<8x16xf32>
    %1157 = arith.addf %1153, %1156 : vector<8x16xf32>
    %c0_672 = arith.constant 0 : index
    %c1_673 = arith.constant 1 : index
    %1158 = memref.load %arg7[%c0_672, %c1_673] : memref<4x16xf32, #tpu.memory_space<smem>>
    %1159 = vector.broadcast %1158 : f32 to vector<8x16xf32>
    %1160 = arith.addf %1157, %1159 : vector<8x16xf32>
    %cst_674 = arith.constant 0.000000e+00 : f32
    %1161 = vector.broadcast %cst_674 : f32 to vector<8x16xf32>
    %1162 = arith.maximumf %1160, %1161 : vector<8x16xf32>
    %c0_675 = arith.constant 0 : index
    %c1_676 = arith.constant 1 : index
    %1163 = memref.load %arg8[%c0_675, %c1_676] : memref<4x16xf32, #tpu.memory_space<smem>>
    %1164 = vector.broadcast %1163 : f32 to vector<8x16xf32>
    %1165 = arith.mulf %1162, %1164 : vector<8x16xf32>
    %1166 = arith.addf %1150, %1165 : vector<8x16xf32>
    %c0_677 = arith.constant 0 : index
    %c2_678 = arith.constant 2 : index
    %1167 = memref.load %arg5[%c0_677, %c2_678] : memref<4x16xf32, #tpu.memory_space<smem>>
    %1168 = vector.broadcast %1167 : f32 to vector<8x16xf32>
    %1169 = arith.mulf %1130, %1168 : vector<8x16xf32>
    %c0_679 = arith.constant 0 : index
    %c2_680 = arith.constant 2 : index
    %1170 = memref.load %arg6[%c0_679, %c2_680] : memref<4x16xf32, #tpu.memory_space<smem>>
    %1171 = vector.broadcast %1170 : f32 to vector<8x16xf32>
    %1172 = arith.mulf %1123, %1171 : vector<8x16xf32>
    %1173 = arith.addf %1169, %1172 : vector<8x16xf32>
    %c0_681 = arith.constant 0 : index
    %c2_682 = arith.constant 2 : index
    %1174 = memref.load %arg7[%c0_681, %c2_682] : memref<4x16xf32, #tpu.memory_space<smem>>
    %1175 = vector.broadcast %1174 : f32 to vector<8x16xf32>
    %1176 = arith.addf %1173, %1175 : vector<8x16xf32>
    %cst_683 = arith.constant 0.000000e+00 : f32
    %1177 = vector.broadcast %cst_683 : f32 to vector<8x16xf32>
    %1178 = arith.maximumf %1176, %1177 : vector<8x16xf32>
    %c0_684 = arith.constant 0 : index
    %c2_685 = arith.constant 2 : index
    %1179 = memref.load %arg8[%c0_684, %c2_685] : memref<4x16xf32, #tpu.memory_space<smem>>
    %1180 = vector.broadcast %1179 : f32 to vector<8x16xf32>
    %1181 = arith.mulf %1178, %1180 : vector<8x16xf32>
    %1182 = arith.addf %1166, %1181 : vector<8x16xf32>
    %c0_686 = arith.constant 0 : index
    %c3_687 = arith.constant 3 : index
    %1183 = memref.load %arg5[%c0_686, %c3_687] : memref<4x16xf32, #tpu.memory_space<smem>>
    %1184 = vector.broadcast %1183 : f32 to vector<8x16xf32>
    %1185 = arith.mulf %1130, %1184 : vector<8x16xf32>
    %c0_688 = arith.constant 0 : index
    %c3_689 = arith.constant 3 : index
    %1186 = memref.load %arg6[%c0_688, %c3_689] : memref<4x16xf32, #tpu.memory_space<smem>>
    %1187 = vector.broadcast %1186 : f32 to vector<8x16xf32>
    %1188 = arith.mulf %1123, %1187 : vector<8x16xf32>
    %1189 = arith.addf %1185, %1188 : vector<8x16xf32>
    %c0_690 = arith.constant 0 : index
    %c3_691 = arith.constant 3 : index
    %1190 = memref.load %arg7[%c0_690, %c3_691] : memref<4x16xf32, #tpu.memory_space<smem>>
    %1191 = vector.broadcast %1190 : f32 to vector<8x16xf32>
    %1192 = arith.addf %1189, %1191 : vector<8x16xf32>
    %cst_692 = arith.constant 0.000000e+00 : f32
    %1193 = vector.broadcast %cst_692 : f32 to vector<8x16xf32>
    %1194 = arith.maximumf %1192, %1193 : vector<8x16xf32>
    %c0_693 = arith.constant 0 : index
    %c3_694 = arith.constant 3 : index
    %1195 = memref.load %arg8[%c0_693, %c3_694] : memref<4x16xf32, #tpu.memory_space<smem>>
    %1196 = vector.broadcast %1195 : f32 to vector<8x16xf32>
    %1197 = arith.mulf %1194, %1196 : vector<8x16xf32>
    %1198 = arith.addf %1182, %1197 : vector<8x16xf32>
    %c0_695 = arith.constant 0 : index
    %c4_696 = arith.constant 4 : index
    %1199 = memref.load %arg5[%c0_695, %c4_696] : memref<4x16xf32, #tpu.memory_space<smem>>
    %1200 = vector.broadcast %1199 : f32 to vector<8x16xf32>
    %1201 = arith.mulf %1130, %1200 : vector<8x16xf32>
    %c0_697 = arith.constant 0 : index
    %c4_698 = arith.constant 4 : index
    %1202 = memref.load %arg6[%c0_697, %c4_698] : memref<4x16xf32, #tpu.memory_space<smem>>
    %1203 = vector.broadcast %1202 : f32 to vector<8x16xf32>
    %1204 = arith.mulf %1123, %1203 : vector<8x16xf32>
    %1205 = arith.addf %1201, %1204 : vector<8x16xf32>
    %c0_699 = arith.constant 0 : index
    %c4_700 = arith.constant 4 : index
    %1206 = memref.load %arg7[%c0_699, %c4_700] : memref<4x16xf32, #tpu.memory_space<smem>>
    %1207 = vector.broadcast %1206 : f32 to vector<8x16xf32>
    %1208 = arith.addf %1205, %1207 : vector<8x16xf32>
    %cst_701 = arith.constant 0.000000e+00 : f32
    %1209 = vector.broadcast %cst_701 : f32 to vector<8x16xf32>
    %1210 = arith.maximumf %1208, %1209 : vector<8x16xf32>
    %c0_702 = arith.constant 0 : index
    %c4_703 = arith.constant 4 : index
    %1211 = memref.load %arg8[%c0_702, %c4_703] : memref<4x16xf32, #tpu.memory_space<smem>>
    %1212 = vector.broadcast %1211 : f32 to vector<8x16xf32>
    %1213 = arith.mulf %1210, %1212 : vector<8x16xf32>
    %1214 = arith.addf %1198, %1213 : vector<8x16xf32>
    %c0_704 = arith.constant 0 : index
    %c5_705 = arith.constant 5 : index
    %1215 = memref.load %arg5[%c0_704, %c5_705] : memref<4x16xf32, #tpu.memory_space<smem>>
    %1216 = vector.broadcast %1215 : f32 to vector<8x16xf32>
    %1217 = arith.mulf %1130, %1216 : vector<8x16xf32>
    %c0_706 = arith.constant 0 : index
    %c5_707 = arith.constant 5 : index
    %1218 = memref.load %arg6[%c0_706, %c5_707] : memref<4x16xf32, #tpu.memory_space<smem>>
    %1219 = vector.broadcast %1218 : f32 to vector<8x16xf32>
    %1220 = arith.mulf %1123, %1219 : vector<8x16xf32>
    %1221 = arith.addf %1217, %1220 : vector<8x16xf32>
    %c0_708 = arith.constant 0 : index
    %c5_709 = arith.constant 5 : index
    %1222 = memref.load %arg7[%c0_708, %c5_709] : memref<4x16xf32, #tpu.memory_space<smem>>
    %1223 = vector.broadcast %1222 : f32 to vector<8x16xf32>
    %1224 = arith.addf %1221, %1223 : vector<8x16xf32>
    %cst_710 = arith.constant 0.000000e+00 : f32
    %1225 = vector.broadcast %cst_710 : f32 to vector<8x16xf32>
    %1226 = arith.maximumf %1224, %1225 : vector<8x16xf32>
    %c0_711 = arith.constant 0 : index
    %c5_712 = arith.constant 5 : index
    %1227 = memref.load %arg8[%c0_711, %c5_712] : memref<4x16xf32, #tpu.memory_space<smem>>
    %1228 = vector.broadcast %1227 : f32 to vector<8x16xf32>
    %1229 = arith.mulf %1226, %1228 : vector<8x16xf32>
    %1230 = arith.addf %1214, %1229 : vector<8x16xf32>
    %c0_713 = arith.constant 0 : index
    %c6_714 = arith.constant 6 : index
    %1231 = memref.load %arg5[%c0_713, %c6_714] : memref<4x16xf32, #tpu.memory_space<smem>>
    %1232 = vector.broadcast %1231 : f32 to vector<8x16xf32>
    %1233 = arith.mulf %1130, %1232 : vector<8x16xf32>
    %c0_715 = arith.constant 0 : index
    %c6_716 = arith.constant 6 : index
    %1234 = memref.load %arg6[%c0_715, %c6_716] : memref<4x16xf32, #tpu.memory_space<smem>>
    %1235 = vector.broadcast %1234 : f32 to vector<8x16xf32>
    %1236 = arith.mulf %1123, %1235 : vector<8x16xf32>
    %1237 = arith.addf %1233, %1236 : vector<8x16xf32>
    %c0_717 = arith.constant 0 : index
    %c6_718 = arith.constant 6 : index
    %1238 = memref.load %arg7[%c0_717, %c6_718] : memref<4x16xf32, #tpu.memory_space<smem>>
    %1239 = vector.broadcast %1238 : f32 to vector<8x16xf32>
    %1240 = arith.addf %1237, %1239 : vector<8x16xf32>
    %cst_719 = arith.constant 0.000000e+00 : f32
    %1241 = vector.broadcast %cst_719 : f32 to vector<8x16xf32>
    %1242 = arith.maximumf %1240, %1241 : vector<8x16xf32>
    %c0_720 = arith.constant 0 : index
    %c6_721 = arith.constant 6 : index
    %1243 = memref.load %arg8[%c0_720, %c6_721] : memref<4x16xf32, #tpu.memory_space<smem>>
    %1244 = vector.broadcast %1243 : f32 to vector<8x16xf32>
    %1245 = arith.mulf %1242, %1244 : vector<8x16xf32>
    %1246 = arith.addf %1230, %1245 : vector<8x16xf32>
    %c0_722 = arith.constant 0 : index
    %c7_723 = arith.constant 7 : index
    %1247 = memref.load %arg5[%c0_722, %c7_723] : memref<4x16xf32, #tpu.memory_space<smem>>
    %1248 = vector.broadcast %1247 : f32 to vector<8x16xf32>
    %1249 = arith.mulf %1130, %1248 : vector<8x16xf32>
    %c0_724 = arith.constant 0 : index
    %c7_725 = arith.constant 7 : index
    %1250 = memref.load %arg6[%c0_724, %c7_725] : memref<4x16xf32, #tpu.memory_space<smem>>
    %1251 = vector.broadcast %1250 : f32 to vector<8x16xf32>
    %1252 = arith.mulf %1123, %1251 : vector<8x16xf32>
    %1253 = arith.addf %1249, %1252 : vector<8x16xf32>
    %c0_726 = arith.constant 0 : index
    %c7_727 = arith.constant 7 : index
    %1254 = memref.load %arg7[%c0_726, %c7_727] : memref<4x16xf32, #tpu.memory_space<smem>>
    %1255 = vector.broadcast %1254 : f32 to vector<8x16xf32>
    %1256 = arith.addf %1253, %1255 : vector<8x16xf32>
    %cst_728 = arith.constant 0.000000e+00 : f32
    %1257 = vector.broadcast %cst_728 : f32 to vector<8x16xf32>
    %1258 = arith.maximumf %1256, %1257 : vector<8x16xf32>
    %c0_729 = arith.constant 0 : index
    %c7_730 = arith.constant 7 : index
    %1259 = memref.load %arg8[%c0_729, %c7_730] : memref<4x16xf32, #tpu.memory_space<smem>>
    %1260 = vector.broadcast %1259 : f32 to vector<8x16xf32>
    %1261 = arith.mulf %1258, %1260 : vector<8x16xf32>
    %1262 = arith.addf %1246, %1261 : vector<8x16xf32>
    %c0_731 = arith.constant 0 : index
    %c8_732 = arith.constant 8 : index
    %1263 = memref.load %arg5[%c0_731, %c8_732] : memref<4x16xf32, #tpu.memory_space<smem>>
    %1264 = vector.broadcast %1263 : f32 to vector<8x16xf32>
    %1265 = arith.mulf %1130, %1264 : vector<8x16xf32>
    %c0_733 = arith.constant 0 : index
    %c8_734 = arith.constant 8 : index
    %1266 = memref.load %arg6[%c0_733, %c8_734] : memref<4x16xf32, #tpu.memory_space<smem>>
    %1267 = vector.broadcast %1266 : f32 to vector<8x16xf32>
    %1268 = arith.mulf %1123, %1267 : vector<8x16xf32>
    %1269 = arith.addf %1265, %1268 : vector<8x16xf32>
    %c0_735 = arith.constant 0 : index
    %c8_736 = arith.constant 8 : index
    %1270 = memref.load %arg7[%c0_735, %c8_736] : memref<4x16xf32, #tpu.memory_space<smem>>
    %1271 = vector.broadcast %1270 : f32 to vector<8x16xf32>
    %1272 = arith.addf %1269, %1271 : vector<8x16xf32>
    %cst_737 = arith.constant 0.000000e+00 : f32
    %1273 = vector.broadcast %cst_737 : f32 to vector<8x16xf32>
    %1274 = arith.maximumf %1272, %1273 : vector<8x16xf32>
    %c0_738 = arith.constant 0 : index
    %c8_739 = arith.constant 8 : index
    %1275 = memref.load %arg8[%c0_738, %c8_739] : memref<4x16xf32, #tpu.memory_space<smem>>
    %1276 = vector.broadcast %1275 : f32 to vector<8x16xf32>
    %1277 = arith.mulf %1274, %1276 : vector<8x16xf32>
    %1278 = arith.addf %1262, %1277 : vector<8x16xf32>
    %c0_740 = arith.constant 0 : index
    %c9_741 = arith.constant 9 : index
    %1279 = memref.load %arg5[%c0_740, %c9_741] : memref<4x16xf32, #tpu.memory_space<smem>>
    %1280 = vector.broadcast %1279 : f32 to vector<8x16xf32>
    %1281 = arith.mulf %1130, %1280 : vector<8x16xf32>
    %c0_742 = arith.constant 0 : index
    %c9_743 = arith.constant 9 : index
    %1282 = memref.load %arg6[%c0_742, %c9_743] : memref<4x16xf32, #tpu.memory_space<smem>>
    %1283 = vector.broadcast %1282 : f32 to vector<8x16xf32>
    %1284 = arith.mulf %1123, %1283 : vector<8x16xf32>
    %1285 = arith.addf %1281, %1284 : vector<8x16xf32>
    %c0_744 = arith.constant 0 : index
    %c9_745 = arith.constant 9 : index
    %1286 = memref.load %arg7[%c0_744, %c9_745] : memref<4x16xf32, #tpu.memory_space<smem>>
    %1287 = vector.broadcast %1286 : f32 to vector<8x16xf32>
    %1288 = arith.addf %1285, %1287 : vector<8x16xf32>
    %cst_746 = arith.constant 0.000000e+00 : f32
    %1289 = vector.broadcast %cst_746 : f32 to vector<8x16xf32>
    %1290 = arith.maximumf %1288, %1289 : vector<8x16xf32>
    %c0_747 = arith.constant 0 : index
    %c9_748 = arith.constant 9 : index
    %1291 = memref.load %arg8[%c0_747, %c9_748] : memref<4x16xf32, #tpu.memory_space<smem>>
    %1292 = vector.broadcast %1291 : f32 to vector<8x16xf32>
    %1293 = arith.mulf %1290, %1292 : vector<8x16xf32>
    %1294 = arith.addf %1278, %1293 : vector<8x16xf32>
    %c0_749 = arith.constant 0 : index
    %c10_750 = arith.constant 10 : index
    %1295 = memref.load %arg5[%c0_749, %c10_750] : memref<4x16xf32, #tpu.memory_space<smem>>
    %1296 = vector.broadcast %1295 : f32 to vector<8x16xf32>
    %1297 = arith.mulf %1130, %1296 : vector<8x16xf32>
    %c0_751 = arith.constant 0 : index
    %c10_752 = arith.constant 10 : index
    %1298 = memref.load %arg6[%c0_751, %c10_752] : memref<4x16xf32, #tpu.memory_space<smem>>
    %1299 = vector.broadcast %1298 : f32 to vector<8x16xf32>
    %1300 = arith.mulf %1123, %1299 : vector<8x16xf32>
    %1301 = arith.addf %1297, %1300 : vector<8x16xf32>
    %c0_753 = arith.constant 0 : index
    %c10_754 = arith.constant 10 : index
    %1302 = memref.load %arg7[%c0_753, %c10_754] : memref<4x16xf32, #tpu.memory_space<smem>>
    %1303 = vector.broadcast %1302 : f32 to vector<8x16xf32>
    %1304 = arith.addf %1301, %1303 : vector<8x16xf32>
    %cst_755 = arith.constant 0.000000e+00 : f32
    %1305 = vector.broadcast %cst_755 : f32 to vector<8x16xf32>
    %1306 = arith.maximumf %1304, %1305 : vector<8x16xf32>
    %c0_756 = arith.constant 0 : index
    %c10_757 = arith.constant 10 : index
    %1307 = memref.load %arg8[%c0_756, %c10_757] : memref<4x16xf32, #tpu.memory_space<smem>>
    %1308 = vector.broadcast %1307 : f32 to vector<8x16xf32>
    %1309 = arith.mulf %1306, %1308 : vector<8x16xf32>
    %1310 = arith.addf %1294, %1309 : vector<8x16xf32>
    %c0_758 = arith.constant 0 : index
    %c11_759 = arith.constant 11 : index
    %1311 = memref.load %arg5[%c0_758, %c11_759] : memref<4x16xf32, #tpu.memory_space<smem>>
    %1312 = vector.broadcast %1311 : f32 to vector<8x16xf32>
    %1313 = arith.mulf %1130, %1312 : vector<8x16xf32>
    %c0_760 = arith.constant 0 : index
    %c11_761 = arith.constant 11 : index
    %1314 = memref.load %arg6[%c0_760, %c11_761] : memref<4x16xf32, #tpu.memory_space<smem>>
    %1315 = vector.broadcast %1314 : f32 to vector<8x16xf32>
    %1316 = arith.mulf %1123, %1315 : vector<8x16xf32>
    %1317 = arith.addf %1313, %1316 : vector<8x16xf32>
    %c0_762 = arith.constant 0 : index
    %c11_763 = arith.constant 11 : index
    %1318 = memref.load %arg7[%c0_762, %c11_763] : memref<4x16xf32, #tpu.memory_space<smem>>
    %1319 = vector.broadcast %1318 : f32 to vector<8x16xf32>
    %1320 = arith.addf %1317, %1319 : vector<8x16xf32>
    %cst_764 = arith.constant 0.000000e+00 : f32
    %1321 = vector.broadcast %cst_764 : f32 to vector<8x16xf32>
    %1322 = arith.maximumf %1320, %1321 : vector<8x16xf32>
    %c0_765 = arith.constant 0 : index
    %c11_766 = arith.constant 11 : index
    %1323 = memref.load %arg8[%c0_765, %c11_766] : memref<4x16xf32, #tpu.memory_space<smem>>
    %1324 = vector.broadcast %1323 : f32 to vector<8x16xf32>
    %1325 = arith.mulf %1322, %1324 : vector<8x16xf32>
    %1326 = arith.addf %1310, %1325 : vector<8x16xf32>
    %c0_767 = arith.constant 0 : index
    %c12_768 = arith.constant 12 : index
    %1327 = memref.load %arg5[%c0_767, %c12_768] : memref<4x16xf32, #tpu.memory_space<smem>>
    %1328 = vector.broadcast %1327 : f32 to vector<8x16xf32>
    %1329 = arith.mulf %1130, %1328 : vector<8x16xf32>
    %c0_769 = arith.constant 0 : index
    %c12_770 = arith.constant 12 : index
    %1330 = memref.load %arg6[%c0_769, %c12_770] : memref<4x16xf32, #tpu.memory_space<smem>>
    %1331 = vector.broadcast %1330 : f32 to vector<8x16xf32>
    %1332 = arith.mulf %1123, %1331 : vector<8x16xf32>
    %1333 = arith.addf %1329, %1332 : vector<8x16xf32>
    %c0_771 = arith.constant 0 : index
    %c12_772 = arith.constant 12 : index
    %1334 = memref.load %arg7[%c0_771, %c12_772] : memref<4x16xf32, #tpu.memory_space<smem>>
    %1335 = vector.broadcast %1334 : f32 to vector<8x16xf32>
    %1336 = arith.addf %1333, %1335 : vector<8x16xf32>
    %cst_773 = arith.constant 0.000000e+00 : f32
    %1337 = vector.broadcast %cst_773 : f32 to vector<8x16xf32>
    %1338 = arith.maximumf %1336, %1337 : vector<8x16xf32>
    %c0_774 = arith.constant 0 : index
    %c12_775 = arith.constant 12 : index
    %1339 = memref.load %arg8[%c0_774, %c12_775] : memref<4x16xf32, #tpu.memory_space<smem>>
    %1340 = vector.broadcast %1339 : f32 to vector<8x16xf32>
    %1341 = arith.mulf %1338, %1340 : vector<8x16xf32>
    %1342 = arith.addf %1326, %1341 : vector<8x16xf32>
    %c0_776 = arith.constant 0 : index
    %c13_777 = arith.constant 13 : index
    %1343 = memref.load %arg5[%c0_776, %c13_777] : memref<4x16xf32, #tpu.memory_space<smem>>
    %1344 = vector.broadcast %1343 : f32 to vector<8x16xf32>
    %1345 = arith.mulf %1130, %1344 : vector<8x16xf32>
    %c0_778 = arith.constant 0 : index
    %c13_779 = arith.constant 13 : index
    %1346 = memref.load %arg6[%c0_778, %c13_779] : memref<4x16xf32, #tpu.memory_space<smem>>
    %1347 = vector.broadcast %1346 : f32 to vector<8x16xf32>
    %1348 = arith.mulf %1123, %1347 : vector<8x16xf32>
    %1349 = arith.addf %1345, %1348 : vector<8x16xf32>
    %c0_780 = arith.constant 0 : index
    %c13_781 = arith.constant 13 : index
    %1350 = memref.load %arg7[%c0_780, %c13_781] : memref<4x16xf32, #tpu.memory_space<smem>>
    %1351 = vector.broadcast %1350 : f32 to vector<8x16xf32>
    %1352 = arith.addf %1349, %1351 : vector<8x16xf32>
    %cst_782 = arith.constant 0.000000e+00 : f32
    %1353 = vector.broadcast %cst_782 : f32 to vector<8x16xf32>
    %1354 = arith.maximumf %1352, %1353 : vector<8x16xf32>
    %c0_783 = arith.constant 0 : index
    %c13_784 = arith.constant 13 : index
    %1355 = memref.load %arg8[%c0_783, %c13_784] : memref<4x16xf32, #tpu.memory_space<smem>>
    %1356 = vector.broadcast %1355 : f32 to vector<8x16xf32>
    %1357 = arith.mulf %1354, %1356 : vector<8x16xf32>
    %1358 = arith.addf %1342, %1357 : vector<8x16xf32>
    %c0_785 = arith.constant 0 : index
    %c14_786 = arith.constant 14 : index
    %1359 = memref.load %arg5[%c0_785, %c14_786] : memref<4x16xf32, #tpu.memory_space<smem>>
    %1360 = vector.broadcast %1359 : f32 to vector<8x16xf32>
    %1361 = arith.mulf %1130, %1360 : vector<8x16xf32>
    %c0_787 = arith.constant 0 : index
    %c14_788 = arith.constant 14 : index
    %1362 = memref.load %arg6[%c0_787, %c14_788] : memref<4x16xf32, #tpu.memory_space<smem>>
    %1363 = vector.broadcast %1362 : f32 to vector<8x16xf32>
    %1364 = arith.mulf %1123, %1363 : vector<8x16xf32>
    %1365 = arith.addf %1361, %1364 : vector<8x16xf32>
    %c0_789 = arith.constant 0 : index
    %c14_790 = arith.constant 14 : index
    %1366 = memref.load %arg7[%c0_789, %c14_790] : memref<4x16xf32, #tpu.memory_space<smem>>
    %1367 = vector.broadcast %1366 : f32 to vector<8x16xf32>
    %1368 = arith.addf %1365, %1367 : vector<8x16xf32>
    %cst_791 = arith.constant 0.000000e+00 : f32
    %1369 = vector.broadcast %cst_791 : f32 to vector<8x16xf32>
    %1370 = arith.maximumf %1368, %1369 : vector<8x16xf32>
    %c0_792 = arith.constant 0 : index
    %c14_793 = arith.constant 14 : index
    %1371 = memref.load %arg8[%c0_792, %c14_793] : memref<4x16xf32, #tpu.memory_space<smem>>
    %1372 = vector.broadcast %1371 : f32 to vector<8x16xf32>
    %1373 = arith.mulf %1370, %1372 : vector<8x16xf32>
    %1374 = arith.addf %1358, %1373 : vector<8x16xf32>
    %c0_794 = arith.constant 0 : index
    %c15_795 = arith.constant 15 : index
    %1375 = memref.load %arg5[%c0_794, %c15_795] : memref<4x16xf32, #tpu.memory_space<smem>>
    %1376 = vector.broadcast %1375 : f32 to vector<8x16xf32>
    %1377 = arith.mulf %1130, %1376 : vector<8x16xf32>
    %c0_796 = arith.constant 0 : index
    %c15_797 = arith.constant 15 : index
    %1378 = memref.load %arg6[%c0_796, %c15_797] : memref<4x16xf32, #tpu.memory_space<smem>>
    %1379 = vector.broadcast %1378 : f32 to vector<8x16xf32>
    %1380 = arith.mulf %1123, %1379 : vector<8x16xf32>
    %1381 = arith.addf %1377, %1380 : vector<8x16xf32>
    %c0_798 = arith.constant 0 : index
    %c15_799 = arith.constant 15 : index
    %1382 = memref.load %arg7[%c0_798, %c15_799] : memref<4x16xf32, #tpu.memory_space<smem>>
    %1383 = vector.broadcast %1382 : f32 to vector<8x16xf32>
    %1384 = arith.addf %1381, %1383 : vector<8x16xf32>
    %cst_800 = arith.constant 0.000000e+00 : f32
    %1385 = vector.broadcast %cst_800 : f32 to vector<8x16xf32>
    %1386 = arith.maximumf %1384, %1385 : vector<8x16xf32>
    %c0_801 = arith.constant 0 : index
    %c15_802 = arith.constant 15 : index
    %1387 = memref.load %arg8[%c0_801, %c15_802] : memref<4x16xf32, #tpu.memory_space<smem>>
    %1388 = vector.broadcast %1387 : f32 to vector<8x16xf32>
    %1389 = arith.mulf %1386, %1388 : vector<8x16xf32>
    %1390 = arith.addf %1374, %1389 : vector<8x16xf32>
    %cst_803 = arith.constant dense<0xFF800000> : vector<8xf32>
    %1391 = vector.multi_reduction <maximumf>, %1390, %cst_803 [1] : vector<8x16xf32> to vector<8xf32>
    %1392 = vector.shape_cast %1391 : vector<8xf32> to vector<8x1xf32>
    %1393 = vector.broadcast %1392 : vector<8x1xf32> to vector<8x16xf32>
    %1394 = arith.subf %1390, %1393 : vector<8x16xf32>
    %1395 = math.exp %1394 : vector<8x16xf32>
    %cst_804 = arith.constant dense<0.000000e+00> : vector<8xf32>
    %1396 = vector.multi_reduction <add>, %1395, %cst_804 [1] : vector<8x16xf32> to vector<8xf32>
    %1397 = vector.shape_cast %1396 : vector<8xf32> to vector<8x1xf32>
    %cst_805 = arith.constant dense<0.000000e+00> : vector<8x8xf32>
    %1398 = tpu.matmul %1395, %1129, %cst_805 {dimension_numbers = #tpu.dot_dimension_numbers<[1], [0], [0], [1], [0, 0, 1, 1], [], []>} : vector<8x16xf32>, vector<16x8xf32>, vector<8x8xf32> -> vector<8x8xf32>
    %cst_806 = arith.constant 1.000000e+00 : f32
    %1399 = vector.broadcast %cst_806 : f32 to vector<8x1xf32>
    %1400 = arith.divf %1399, %1397 : vector<8x1xf32>
    %1401 = vector.broadcast %1400 : vector<8x1xf32> to vector<8x8xf32>
    %1402 = arith.mulf %1398, %1401 : vector<8x8xf32>
    %c1_807 = arith.constant 1 : index
    %c1_808 = arith.constant 1 : index
    %c0_809 = arith.constant 0 : index
    %c0_810 = arith.constant 0 : index
    %1403 = vector.load %arg1[%c1_807, %c1_808, %c0_809, %c0_810] : memref<2x4x8x8xf32, #tpu.memory_space<vmem>>, vector<1x1x8x8xf32>
    %1404 = vector.shape_cast %1403 : vector<1x1x8x8xf32> to vector<8x8xf32>
    %c1_811 = arith.constant 1 : index
    %c1_812 = arith.constant 1 : index
    %c0_813 = arith.constant 0 : index
    %c0_814 = arith.constant 0 : index
    %1405 = vector.load %arg2[%c1_811, %c1_812, %c0_813, %c0_814] : memref<2x4x16x8xf32, #tpu.memory_space<vmem>>, vector<1x1x16x8xf32>
    %1406 = vector.shape_cast %1405 : vector<1x1x16x8xf32> to vector<16x8xf32>
    %c1_815 = arith.constant 1 : index
    %c1_816 = arith.constant 1 : index
    %c0_817 = arith.constant 0 : index
    %c0_818 = arith.constant 0 : index
    %1407 = vector.load %arg3[%c1_815, %c1_816, %c0_817, %c0_818] : memref<2x4x16x8xf32, #tpu.memory_space<vmem>>, vector<1x1x16x8xf32>
    %1408 = vector.shape_cast %1407 : vector<1x1x16x8xf32> to vector<16x8xf32>
    %cst_819 = arith.constant dense<0.000000e+00> : vector<8x16xf32>
    %1409 = tpu.matmul %1404, %1406, %cst_819 {dimension_numbers = #tpu.dot_dimension_numbers<[1], [1], [0], [0], [0, 0, 1, 0], [], []>} : vector<8x8xf32>, vector<16x8xf32>, vector<8x16xf32> -> vector<8x16xf32>
    %cst_820 = arith.constant 0.000000e+00 : f32
    %1410 = vector.broadcast %cst_820 : f32 to vector<8x16xf32>
    %c1_821 = arith.constant 1 : index
    %1411 = memref.load %arg9[%c1_821] : memref<4xf32, #tpu.memory_space<smem>>
    %1412 = vector.broadcast %1411 : f32 to vector<8x16xf32>
    %1413 = arith.addf %1410, %1412 : vector<8x16xf32>
    %c1_822 = arith.constant 1 : index
    %c0_823 = arith.constant 0 : index
    %1414 = memref.load %arg5[%c1_822, %c0_823] : memref<4x16xf32, #tpu.memory_space<smem>>
    %1415 = vector.broadcast %1414 : f32 to vector<8x16xf32>
    %1416 = arith.mulf %1409, %1415 : vector<8x16xf32>
    %c1_824 = arith.constant 1 : index
    %c0_825 = arith.constant 0 : index
    %1417 = memref.load %arg6[%c1_824, %c0_825] : memref<4x16xf32, #tpu.memory_space<smem>>
    %1418 = vector.broadcast %1417 : f32 to vector<8x16xf32>
    %1419 = arith.mulf %1123, %1418 : vector<8x16xf32>
    %1420 = arith.addf %1416, %1419 : vector<8x16xf32>
    %c1_826 = arith.constant 1 : index
    %c0_827 = arith.constant 0 : index
    %1421 = memref.load %arg7[%c1_826, %c0_827] : memref<4x16xf32, #tpu.memory_space<smem>>
    %1422 = vector.broadcast %1421 : f32 to vector<8x16xf32>
    %1423 = arith.addf %1420, %1422 : vector<8x16xf32>
    %cst_828 = arith.constant 0.000000e+00 : f32
    %1424 = vector.broadcast %cst_828 : f32 to vector<8x16xf32>
    %1425 = arith.maximumf %1423, %1424 : vector<8x16xf32>
    %c1_829 = arith.constant 1 : index
    %c0_830 = arith.constant 0 : index
    %1426 = memref.load %arg8[%c1_829, %c0_830] : memref<4x16xf32, #tpu.memory_space<smem>>
    %1427 = vector.broadcast %1426 : f32 to vector<8x16xf32>
    %1428 = arith.mulf %1425, %1427 : vector<8x16xf32>
    %1429 = arith.addf %1413, %1428 : vector<8x16xf32>
    %c1_831 = arith.constant 1 : index
    %c1_832 = arith.constant 1 : index
    %1430 = memref.load %arg5[%c1_831, %c1_832] : memref<4x16xf32, #tpu.memory_space<smem>>
    %1431 = vector.broadcast %1430 : f32 to vector<8x16xf32>
    %1432 = arith.mulf %1409, %1431 : vector<8x16xf32>
    %c1_833 = arith.constant 1 : index
    %c1_834 = arith.constant 1 : index
    %1433 = memref.load %arg6[%c1_833, %c1_834] : memref<4x16xf32, #tpu.memory_space<smem>>
    %1434 = vector.broadcast %1433 : f32 to vector<8x16xf32>
    %1435 = arith.mulf %1123, %1434 : vector<8x16xf32>
    %1436 = arith.addf %1432, %1435 : vector<8x16xf32>
    %c1_835 = arith.constant 1 : index
    %c1_836 = arith.constant 1 : index
    %1437 = memref.load %arg7[%c1_835, %c1_836] : memref<4x16xf32, #tpu.memory_space<smem>>
    %1438 = vector.broadcast %1437 : f32 to vector<8x16xf32>
    %1439 = arith.addf %1436, %1438 : vector<8x16xf32>
    %cst_837 = arith.constant 0.000000e+00 : f32
    %1440 = vector.broadcast %cst_837 : f32 to vector<8x16xf32>
    %1441 = arith.maximumf %1439, %1440 : vector<8x16xf32>
    %c1_838 = arith.constant 1 : index
    %c1_839 = arith.constant 1 : index
    %1442 = memref.load %arg8[%c1_838, %c1_839] : memref<4x16xf32, #tpu.memory_space<smem>>
    %1443 = vector.broadcast %1442 : f32 to vector<8x16xf32>
    %1444 = arith.mulf %1441, %1443 : vector<8x16xf32>
    %1445 = arith.addf %1429, %1444 : vector<8x16xf32>
    %c1_840 = arith.constant 1 : index
    %c2_841 = arith.constant 2 : index
    %1446 = memref.load %arg5[%c1_840, %c2_841] : memref<4x16xf32, #tpu.memory_space<smem>>
    %1447 = vector.broadcast %1446 : f32 to vector<8x16xf32>
    %1448 = arith.mulf %1409, %1447 : vector<8x16xf32>
    %c1_842 = arith.constant 1 : index
    %c2_843 = arith.constant 2 : index
    %1449 = memref.load %arg6[%c1_842, %c2_843] : memref<4x16xf32, #tpu.memory_space<smem>>
    %1450 = vector.broadcast %1449 : f32 to vector<8x16xf32>
    %1451 = arith.mulf %1123, %1450 : vector<8x16xf32>
    %1452 = arith.addf %1448, %1451 : vector<8x16xf32>
    %c1_844 = arith.constant 1 : index
    %c2_845 = arith.constant 2 : index
    %1453 = memref.load %arg7[%c1_844, %c2_845] : memref<4x16xf32, #tpu.memory_space<smem>>
    %1454 = vector.broadcast %1453 : f32 to vector<8x16xf32>
    %1455 = arith.addf %1452, %1454 : vector<8x16xf32>
    %cst_846 = arith.constant 0.000000e+00 : f32
    %1456 = vector.broadcast %cst_846 : f32 to vector<8x16xf32>
    %1457 = arith.maximumf %1455, %1456 : vector<8x16xf32>
    %c1_847 = arith.constant 1 : index
    %c2_848 = arith.constant 2 : index
    %1458 = memref.load %arg8[%c1_847, %c2_848] : memref<4x16xf32, #tpu.memory_space<smem>>
    %1459 = vector.broadcast %1458 : f32 to vector<8x16xf32>
    %1460 = arith.mulf %1457, %1459 : vector<8x16xf32>
    %1461 = arith.addf %1445, %1460 : vector<8x16xf32>
    %c1_849 = arith.constant 1 : index
    %c3_850 = arith.constant 3 : index
    %1462 = memref.load %arg5[%c1_849, %c3_850] : memref<4x16xf32, #tpu.memory_space<smem>>
    %1463 = vector.broadcast %1462 : f32 to vector<8x16xf32>
    %1464 = arith.mulf %1409, %1463 : vector<8x16xf32>
    %c1_851 = arith.constant 1 : index
    %c3_852 = arith.constant 3 : index
    %1465 = memref.load %arg6[%c1_851, %c3_852] : memref<4x16xf32, #tpu.memory_space<smem>>
    %1466 = vector.broadcast %1465 : f32 to vector<8x16xf32>
    %1467 = arith.mulf %1123, %1466 : vector<8x16xf32>
    %1468 = arith.addf %1464, %1467 : vector<8x16xf32>
    %c1_853 = arith.constant 1 : index
    %c3_854 = arith.constant 3 : index
    %1469 = memref.load %arg7[%c1_853, %c3_854] : memref<4x16xf32, #tpu.memory_space<smem>>
    %1470 = vector.broadcast %1469 : f32 to vector<8x16xf32>
    %1471 = arith.addf %1468, %1470 : vector<8x16xf32>
    %cst_855 = arith.constant 0.000000e+00 : f32
    %1472 = vector.broadcast %cst_855 : f32 to vector<8x16xf32>
    %1473 = arith.maximumf %1471, %1472 : vector<8x16xf32>
    %c1_856 = arith.constant 1 : index
    %c3_857 = arith.constant 3 : index
    %1474 = memref.load %arg8[%c1_856, %c3_857] : memref<4x16xf32, #tpu.memory_space<smem>>
    %1475 = vector.broadcast %1474 : f32 to vector<8x16xf32>
    %1476 = arith.mulf %1473, %1475 : vector<8x16xf32>
    %1477 = arith.addf %1461, %1476 : vector<8x16xf32>
    %c1_858 = arith.constant 1 : index
    %c4_859 = arith.constant 4 : index
    %1478 = memref.load %arg5[%c1_858, %c4_859] : memref<4x16xf32, #tpu.memory_space<smem>>
    %1479 = vector.broadcast %1478 : f32 to vector<8x16xf32>
    %1480 = arith.mulf %1409, %1479 : vector<8x16xf32>
    %c1_860 = arith.constant 1 : index
    %c4_861 = arith.constant 4 : index
    %1481 = memref.load %arg6[%c1_860, %c4_861] : memref<4x16xf32, #tpu.memory_space<smem>>
    %1482 = vector.broadcast %1481 : f32 to vector<8x16xf32>
    %1483 = arith.mulf %1123, %1482 : vector<8x16xf32>
    %1484 = arith.addf %1480, %1483 : vector<8x16xf32>
    %c1_862 = arith.constant 1 : index
    %c4_863 = arith.constant 4 : index
    %1485 = memref.load %arg7[%c1_862, %c4_863] : memref<4x16xf32, #tpu.memory_space<smem>>
    %1486 = vector.broadcast %1485 : f32 to vector<8x16xf32>
    %1487 = arith.addf %1484, %1486 : vector<8x16xf32>
    %cst_864 = arith.constant 0.000000e+00 : f32
    %1488 = vector.broadcast %cst_864 : f32 to vector<8x16xf32>
    %1489 = arith.maximumf %1487, %1488 : vector<8x16xf32>
    %c1_865 = arith.constant 1 : index
    %c4_866 = arith.constant 4 : index
    %1490 = memref.load %arg8[%c1_865, %c4_866] : memref<4x16xf32, #tpu.memory_space<smem>>
    %1491 = vector.broadcast %1490 : f32 to vector<8x16xf32>
    %1492 = arith.mulf %1489, %1491 : vector<8x16xf32>
    %1493 = arith.addf %1477, %1492 : vector<8x16xf32>
    %c1_867 = arith.constant 1 : index
    %c5_868 = arith.constant 5 : index
    %1494 = memref.load %arg5[%c1_867, %c5_868] : memref<4x16xf32, #tpu.memory_space<smem>>
    %1495 = vector.broadcast %1494 : f32 to vector<8x16xf32>
    %1496 = arith.mulf %1409, %1495 : vector<8x16xf32>
    %c1_869 = arith.constant 1 : index
    %c5_870 = arith.constant 5 : index
    %1497 = memref.load %arg6[%c1_869, %c5_870] : memref<4x16xf32, #tpu.memory_space<smem>>
    %1498 = vector.broadcast %1497 : f32 to vector<8x16xf32>
    %1499 = arith.mulf %1123, %1498 : vector<8x16xf32>
    %1500 = arith.addf %1496, %1499 : vector<8x16xf32>
    %c1_871 = arith.constant 1 : index
    %c5_872 = arith.constant 5 : index
    %1501 = memref.load %arg7[%c1_871, %c5_872] : memref<4x16xf32, #tpu.memory_space<smem>>
    %1502 = vector.broadcast %1501 : f32 to vector<8x16xf32>
    %1503 = arith.addf %1500, %1502 : vector<8x16xf32>
    %cst_873 = arith.constant 0.000000e+00 : f32
    %1504 = vector.broadcast %cst_873 : f32 to vector<8x16xf32>
    %1505 = arith.maximumf %1503, %1504 : vector<8x16xf32>
    %c1_874 = arith.constant 1 : index
    %c5_875 = arith.constant 5 : index
    %1506 = memref.load %arg8[%c1_874, %c5_875] : memref<4x16xf32, #tpu.memory_space<smem>>
    %1507 = vector.broadcast %1506 : f32 to vector<8x16xf32>
    %1508 = arith.mulf %1505, %1507 : vector<8x16xf32>
    %1509 = arith.addf %1493, %1508 : vector<8x16xf32>
    %c1_876 = arith.constant 1 : index
    %c6_877 = arith.constant 6 : index
    %1510 = memref.load %arg5[%c1_876, %c6_877] : memref<4x16xf32, #tpu.memory_space<smem>>
    %1511 = vector.broadcast %1510 : f32 to vector<8x16xf32>
    %1512 = arith.mulf %1409, %1511 : vector<8x16xf32>
    %c1_878 = arith.constant 1 : index
    %c6_879 = arith.constant 6 : index
    %1513 = memref.load %arg6[%c1_878, %c6_879] : memref<4x16xf32, #tpu.memory_space<smem>>
    %1514 = vector.broadcast %1513 : f32 to vector<8x16xf32>
    %1515 = arith.mulf %1123, %1514 : vector<8x16xf32>
    %1516 = arith.addf %1512, %1515 : vector<8x16xf32>
    %c1_880 = arith.constant 1 : index
    %c6_881 = arith.constant 6 : index
    %1517 = memref.load %arg7[%c1_880, %c6_881] : memref<4x16xf32, #tpu.memory_space<smem>>
    %1518 = vector.broadcast %1517 : f32 to vector<8x16xf32>
    %1519 = arith.addf %1516, %1518 : vector<8x16xf32>
    %cst_882 = arith.constant 0.000000e+00 : f32
    %1520 = vector.broadcast %cst_882 : f32 to vector<8x16xf32>
    %1521 = arith.maximumf %1519, %1520 : vector<8x16xf32>
    %c1_883 = arith.constant 1 : index
    %c6_884 = arith.constant 6 : index
    %1522 = memref.load %arg8[%c1_883, %c6_884] : memref<4x16xf32, #tpu.memory_space<smem>>
    %1523 = vector.broadcast %1522 : f32 to vector<8x16xf32>
    %1524 = arith.mulf %1521, %1523 : vector<8x16xf32>
    %1525 = arith.addf %1509, %1524 : vector<8x16xf32>
    %c1_885 = arith.constant 1 : index
    %c7_886 = arith.constant 7 : index
    %1526 = memref.load %arg5[%c1_885, %c7_886] : memref<4x16xf32, #tpu.memory_space<smem>>
    %1527 = vector.broadcast %1526 : f32 to vector<8x16xf32>
    %1528 = arith.mulf %1409, %1527 : vector<8x16xf32>
    %c1_887 = arith.constant 1 : index
    %c7_888 = arith.constant 7 : index
    %1529 = memref.load %arg6[%c1_887, %c7_888] : memref<4x16xf32, #tpu.memory_space<smem>>
    %1530 = vector.broadcast %1529 : f32 to vector<8x16xf32>
    %1531 = arith.mulf %1123, %1530 : vector<8x16xf32>
    %1532 = arith.addf %1528, %1531 : vector<8x16xf32>
    %c1_889 = arith.constant 1 : index
    %c7_890 = arith.constant 7 : index
    %1533 = memref.load %arg7[%c1_889, %c7_890] : memref<4x16xf32, #tpu.memory_space<smem>>
    %1534 = vector.broadcast %1533 : f32 to vector<8x16xf32>
    %1535 = arith.addf %1532, %1534 : vector<8x16xf32>
    %cst_891 = arith.constant 0.000000e+00 : f32
    %1536 = vector.broadcast %cst_891 : f32 to vector<8x16xf32>
    %1537 = arith.maximumf %1535, %1536 : vector<8x16xf32>
    %c1_892 = arith.constant 1 : index
    %c7_893 = arith.constant 7 : index
    %1538 = memref.load %arg8[%c1_892, %c7_893] : memref<4x16xf32, #tpu.memory_space<smem>>
    %1539 = vector.broadcast %1538 : f32 to vector<8x16xf32>
    %1540 = arith.mulf %1537, %1539 : vector<8x16xf32>
    %1541 = arith.addf %1525, %1540 : vector<8x16xf32>
    %c1_894 = arith.constant 1 : index
    %c8_895 = arith.constant 8 : index
    %1542 = memref.load %arg5[%c1_894, %c8_895] : memref<4x16xf32, #tpu.memory_space<smem>>
    %1543 = vector.broadcast %1542 : f32 to vector<8x16xf32>
    %1544 = arith.mulf %1409, %1543 : vector<8x16xf32>
    %c1_896 = arith.constant 1 : index
    %c8_897 = arith.constant 8 : index
    %1545 = memref.load %arg6[%c1_896, %c8_897] : memref<4x16xf32, #tpu.memory_space<smem>>
    %1546 = vector.broadcast %1545 : f32 to vector<8x16xf32>
    %1547 = arith.mulf %1123, %1546 : vector<8x16xf32>
    %1548 = arith.addf %1544, %1547 : vector<8x16xf32>
    %c1_898 = arith.constant 1 : index
    %c8_899 = arith.constant 8 : index
    %1549 = memref.load %arg7[%c1_898, %c8_899] : memref<4x16xf32, #tpu.memory_space<smem>>
    %1550 = vector.broadcast %1549 : f32 to vector<8x16xf32>
    %1551 = arith.addf %1548, %1550 : vector<8x16xf32>
    %cst_900 = arith.constant 0.000000e+00 : f32
    %1552 = vector.broadcast %cst_900 : f32 to vector<8x16xf32>
    %1553 = arith.maximumf %1551, %1552 : vector<8x16xf32>
    %c1_901 = arith.constant 1 : index
    %c8_902 = arith.constant 8 : index
    %1554 = memref.load %arg8[%c1_901, %c8_902] : memref<4x16xf32, #tpu.memory_space<smem>>
    %1555 = vector.broadcast %1554 : f32 to vector<8x16xf32>
    %1556 = arith.mulf %1553, %1555 : vector<8x16xf32>
    %1557 = arith.addf %1541, %1556 : vector<8x16xf32>
    %c1_903 = arith.constant 1 : index
    %c9_904 = arith.constant 9 : index
    %1558 = memref.load %arg5[%c1_903, %c9_904] : memref<4x16xf32, #tpu.memory_space<smem>>
    %1559 = vector.broadcast %1558 : f32 to vector<8x16xf32>
    %1560 = arith.mulf %1409, %1559 : vector<8x16xf32>
    %c1_905 = arith.constant 1 : index
    %c9_906 = arith.constant 9 : index
    %1561 = memref.load %arg6[%c1_905, %c9_906] : memref<4x16xf32, #tpu.memory_space<smem>>
    %1562 = vector.broadcast %1561 : f32 to vector<8x16xf32>
    %1563 = arith.mulf %1123, %1562 : vector<8x16xf32>
    %1564 = arith.addf %1560, %1563 : vector<8x16xf32>
    %c1_907 = arith.constant 1 : index
    %c9_908 = arith.constant 9 : index
    %1565 = memref.load %arg7[%c1_907, %c9_908] : memref<4x16xf32, #tpu.memory_space<smem>>
    %1566 = vector.broadcast %1565 : f32 to vector<8x16xf32>
    %1567 = arith.addf %1564, %1566 : vector<8x16xf32>
    %cst_909 = arith.constant 0.000000e+00 : f32
    %1568 = vector.broadcast %cst_909 : f32 to vector<8x16xf32>
    %1569 = arith.maximumf %1567, %1568 : vector<8x16xf32>
    %c1_910 = arith.constant 1 : index
    %c9_911 = arith.constant 9 : index
    %1570 = memref.load %arg8[%c1_910, %c9_911] : memref<4x16xf32, #tpu.memory_space<smem>>
    %1571 = vector.broadcast %1570 : f32 to vector<8x16xf32>
    %1572 = arith.mulf %1569, %1571 : vector<8x16xf32>
    %1573 = arith.addf %1557, %1572 : vector<8x16xf32>
    %c1_912 = arith.constant 1 : index
    %c10_913 = arith.constant 10 : index
    %1574 = memref.load %arg5[%c1_912, %c10_913] : memref<4x16xf32, #tpu.memory_space<smem>>
    %1575 = vector.broadcast %1574 : f32 to vector<8x16xf32>
    %1576 = arith.mulf %1409, %1575 : vector<8x16xf32>
    %c1_914 = arith.constant 1 : index
    %c10_915 = arith.constant 10 : index
    %1577 = memref.load %arg6[%c1_914, %c10_915] : memref<4x16xf32, #tpu.memory_space<smem>>
    %1578 = vector.broadcast %1577 : f32 to vector<8x16xf32>
    %1579 = arith.mulf %1123, %1578 : vector<8x16xf32>
    %1580 = arith.addf %1576, %1579 : vector<8x16xf32>
    %c1_916 = arith.constant 1 : index
    %c10_917 = arith.constant 10 : index
    %1581 = memref.load %arg7[%c1_916, %c10_917] : memref<4x16xf32, #tpu.memory_space<smem>>
    %1582 = vector.broadcast %1581 : f32 to vector<8x16xf32>
    %1583 = arith.addf %1580, %1582 : vector<8x16xf32>
    %cst_918 = arith.constant 0.000000e+00 : f32
    %1584 = vector.broadcast %cst_918 : f32 to vector<8x16xf32>
    %1585 = arith.maximumf %1583, %1584 : vector<8x16xf32>
    %c1_919 = arith.constant 1 : index
    %c10_920 = arith.constant 10 : index
    %1586 = memref.load %arg8[%c1_919, %c10_920] : memref<4x16xf32, #tpu.memory_space<smem>>
    %1587 = vector.broadcast %1586 : f32 to vector<8x16xf32>
    %1588 = arith.mulf %1585, %1587 : vector<8x16xf32>
    %1589 = arith.addf %1573, %1588 : vector<8x16xf32>
    %c1_921 = arith.constant 1 : index
    %c11_922 = arith.constant 11 : index
    %1590 = memref.load %arg5[%c1_921, %c11_922] : memref<4x16xf32, #tpu.memory_space<smem>>
    %1591 = vector.broadcast %1590 : f32 to vector<8x16xf32>
    %1592 = arith.mulf %1409, %1591 : vector<8x16xf32>
    %c1_923 = arith.constant 1 : index
    %c11_924 = arith.constant 11 : index
    %1593 = memref.load %arg6[%c1_923, %c11_924] : memref<4x16xf32, #tpu.memory_space<smem>>
    %1594 = vector.broadcast %1593 : f32 to vector<8x16xf32>
    %1595 = arith.mulf %1123, %1594 : vector<8x16xf32>
    %1596 = arith.addf %1592, %1595 : vector<8x16xf32>
    %c1_925 = arith.constant 1 : index
    %c11_926 = arith.constant 11 : index
    %1597 = memref.load %arg7[%c1_925, %c11_926] : memref<4x16xf32, #tpu.memory_space<smem>>
    %1598 = vector.broadcast %1597 : f32 to vector<8x16xf32>
    %1599 = arith.addf %1596, %1598 : vector<8x16xf32>
    %cst_927 = arith.constant 0.000000e+00 : f32
    %1600 = vector.broadcast %cst_927 : f32 to vector<8x16xf32>
    %1601 = arith.maximumf %1599, %1600 : vector<8x16xf32>
    %c1_928 = arith.constant 1 : index
    %c11_929 = arith.constant 11 : index
    %1602 = memref.load %arg8[%c1_928, %c11_929] : memref<4x16xf32, #tpu.memory_space<smem>>
    %1603 = vector.broadcast %1602 : f32 to vector<8x16xf32>
    %1604 = arith.mulf %1601, %1603 : vector<8x16xf32>
    %1605 = arith.addf %1589, %1604 : vector<8x16xf32>
    %c1_930 = arith.constant 1 : index
    %c12_931 = arith.constant 12 : index
    %1606 = memref.load %arg5[%c1_930, %c12_931] : memref<4x16xf32, #tpu.memory_space<smem>>
    %1607 = vector.broadcast %1606 : f32 to vector<8x16xf32>
    %1608 = arith.mulf %1409, %1607 : vector<8x16xf32>
    %c1_932 = arith.constant 1 : index
    %c12_933 = arith.constant 12 : index
    %1609 = memref.load %arg6[%c1_932, %c12_933] : memref<4x16xf32, #tpu.memory_space<smem>>
    %1610 = vector.broadcast %1609 : f32 to vector<8x16xf32>
    %1611 = arith.mulf %1123, %1610 : vector<8x16xf32>
    %1612 = arith.addf %1608, %1611 : vector<8x16xf32>
    %c1_934 = arith.constant 1 : index
    %c12_935 = arith.constant 12 : index
    %1613 = memref.load %arg7[%c1_934, %c12_935] : memref<4x16xf32, #tpu.memory_space<smem>>
    %1614 = vector.broadcast %1613 : f32 to vector<8x16xf32>
    %1615 = arith.addf %1612, %1614 : vector<8x16xf32>
    %cst_936 = arith.constant 0.000000e+00 : f32
    %1616 = vector.broadcast %cst_936 : f32 to vector<8x16xf32>
    %1617 = arith.maximumf %1615, %1616 : vector<8x16xf32>
    %c1_937 = arith.constant 1 : index
    %c12_938 = arith.constant 12 : index
    %1618 = memref.load %arg8[%c1_937, %c12_938] : memref<4x16xf32, #tpu.memory_space<smem>>
    %1619 = vector.broadcast %1618 : f32 to vector<8x16xf32>
    %1620 = arith.mulf %1617, %1619 : vector<8x16xf32>
    %1621 = arith.addf %1605, %1620 : vector<8x16xf32>
    %c1_939 = arith.constant 1 : index
    %c13_940 = arith.constant 13 : index
    %1622 = memref.load %arg5[%c1_939, %c13_940] : memref<4x16xf32, #tpu.memory_space<smem>>
    %1623 = vector.broadcast %1622 : f32 to vector<8x16xf32>
    %1624 = arith.mulf %1409, %1623 : vector<8x16xf32>
    %c1_941 = arith.constant 1 : index
    %c13_942 = arith.constant 13 : index
    %1625 = memref.load %arg6[%c1_941, %c13_942] : memref<4x16xf32, #tpu.memory_space<smem>>
    %1626 = vector.broadcast %1625 : f32 to vector<8x16xf32>
    %1627 = arith.mulf %1123, %1626 : vector<8x16xf32>
    %1628 = arith.addf %1624, %1627 : vector<8x16xf32>
    %c1_943 = arith.constant 1 : index
    %c13_944 = arith.constant 13 : index
    %1629 = memref.load %arg7[%c1_943, %c13_944] : memref<4x16xf32, #tpu.memory_space<smem>>
    %1630 = vector.broadcast %1629 : f32 to vector<8x16xf32>
    %1631 = arith.addf %1628, %1630 : vector<8x16xf32>
    %cst_945 = arith.constant 0.000000e+00 : f32
    %1632 = vector.broadcast %cst_945 : f32 to vector<8x16xf32>
    %1633 = arith.maximumf %1631, %1632 : vector<8x16xf32>
    %c1_946 = arith.constant 1 : index
    %c13_947 = arith.constant 13 : index
    %1634 = memref.load %arg8[%c1_946, %c13_947] : memref<4x16xf32, #tpu.memory_space<smem>>
    %1635 = vector.broadcast %1634 : f32 to vector<8x16xf32>
    %1636 = arith.mulf %1633, %1635 : vector<8x16xf32>
    %1637 = arith.addf %1621, %1636 : vector<8x16xf32>
    %c1_948 = arith.constant 1 : index
    %c14_949 = arith.constant 14 : index
    %1638 = memref.load %arg5[%c1_948, %c14_949] : memref<4x16xf32, #tpu.memory_space<smem>>
    %1639 = vector.broadcast %1638 : f32 to vector<8x16xf32>
    %1640 = arith.mulf %1409, %1639 : vector<8x16xf32>
    %c1_950 = arith.constant 1 : index
    %c14_951 = arith.constant 14 : index
    %1641 = memref.load %arg6[%c1_950, %c14_951] : memref<4x16xf32, #tpu.memory_space<smem>>
    %1642 = vector.broadcast %1641 : f32 to vector<8x16xf32>
    %1643 = arith.mulf %1123, %1642 : vector<8x16xf32>
    %1644 = arith.addf %1640, %1643 : vector<8x16xf32>
    %c1_952 = arith.constant 1 : index
    %c14_953 = arith.constant 14 : index
    %1645 = memref.load %arg7[%c1_952, %c14_953] : memref<4x16xf32, #tpu.memory_space<smem>>
    %1646 = vector.broadcast %1645 : f32 to vector<8x16xf32>
    %1647 = arith.addf %1644, %1646 : vector<8x16xf32>
    %cst_954 = arith.constant 0.000000e+00 : f32
    %1648 = vector.broadcast %cst_954 : f32 to vector<8x16xf32>
    %1649 = arith.maximumf %1647, %1648 : vector<8x16xf32>
    %c1_955 = arith.constant 1 : index
    %c14_956 = arith.constant 14 : index
    %1650 = memref.load %arg8[%c1_955, %c14_956] : memref<4x16xf32, #tpu.memory_space<smem>>
    %1651 = vector.broadcast %1650 : f32 to vector<8x16xf32>
    %1652 = arith.mulf %1649, %1651 : vector<8x16xf32>
    %1653 = arith.addf %1637, %1652 : vector<8x16xf32>
    %c1_957 = arith.constant 1 : index
    %c15_958 = arith.constant 15 : index
    %1654 = memref.load %arg5[%c1_957, %c15_958] : memref<4x16xf32, #tpu.memory_space<smem>>
    %1655 = vector.broadcast %1654 : f32 to vector<8x16xf32>
    %1656 = arith.mulf %1409, %1655 : vector<8x16xf32>
    %c1_959 = arith.constant 1 : index
    %c15_960 = arith.constant 15 : index
    %1657 = memref.load %arg6[%c1_959, %c15_960] : memref<4x16xf32, #tpu.memory_space<smem>>
    %1658 = vector.broadcast %1657 : f32 to vector<8x16xf32>
    %1659 = arith.mulf %1123, %1658 : vector<8x16xf32>
    %1660 = arith.addf %1656, %1659 : vector<8x16xf32>
    %c1_961 = arith.constant 1 : index
    %c15_962 = arith.constant 15 : index
    %1661 = memref.load %arg7[%c1_961, %c15_962] : memref<4x16xf32, #tpu.memory_space<smem>>
    %1662 = vector.broadcast %1661 : f32 to vector<8x16xf32>
    %1663 = arith.addf %1660, %1662 : vector<8x16xf32>
    %cst_963 = arith.constant 0.000000e+00 : f32
    %1664 = vector.broadcast %cst_963 : f32 to vector<8x16xf32>
    %1665 = arith.maximumf %1663, %1664 : vector<8x16xf32>
    %c1_964 = arith.constant 1 : index
    %c15_965 = arith.constant 15 : index
    %1666 = memref.load %arg8[%c1_964, %c15_965] : memref<4x16xf32, #tpu.memory_space<smem>>
    %1667 = vector.broadcast %1666 : f32 to vector<8x16xf32>
    %1668 = arith.mulf %1665, %1667 : vector<8x16xf32>
    %1669 = arith.addf %1653, %1668 : vector<8x16xf32>
    %cst_966 = arith.constant dense<0xFF800000> : vector<8xf32>
    %1670 = vector.multi_reduction <maximumf>, %1669, %cst_966 [1] : vector<8x16xf32> to vector<8xf32>
    %1671 = vector.shape_cast %1670 : vector<8xf32> to vector<8x1xf32>
    %1672 = vector.broadcast %1671 : vector<8x1xf32> to vector<8x16xf32>
    %1673 = arith.subf %1669, %1672 : vector<8x16xf32>
    %1674 = math.exp %1673 : vector<8x16xf32>
    %cst_967 = arith.constant dense<0.000000e+00> : vector<8xf32>
    %1675 = vector.multi_reduction <add>, %1674, %cst_967 [1] : vector<8x16xf32> to vector<8xf32>
    %1676 = vector.shape_cast %1675 : vector<8xf32> to vector<8x1xf32>
    %cst_968 = arith.constant dense<0.000000e+00> : vector<8x8xf32>
    %1677 = tpu.matmul %1674, %1408, %cst_968 {dimension_numbers = #tpu.dot_dimension_numbers<[1], [0], [0], [1], [0, 0, 1, 1], [], []>} : vector<8x16xf32>, vector<16x8xf32>, vector<8x8xf32> -> vector<8x8xf32>
    %cst_969 = arith.constant 1.000000e+00 : f32
    %1678 = vector.broadcast %cst_969 : f32 to vector<8x1xf32>
    %1679 = arith.divf %1678, %1676 : vector<8x1xf32>
    %1680 = vector.broadcast %1679 : vector<8x1xf32> to vector<8x8xf32>
    %1681 = arith.mulf %1677, %1680 : vector<8x8xf32>
    %c1_970 = arith.constant 1 : index
    %c2_971 = arith.constant 2 : index
    %c0_972 = arith.constant 0 : index
    %c0_973 = arith.constant 0 : index
    %1682 = vector.load %arg1[%c1_970, %c2_971, %c0_972, %c0_973] : memref<2x4x8x8xf32, #tpu.memory_space<vmem>>, vector<1x1x8x8xf32>
    %1683 = vector.shape_cast %1682 : vector<1x1x8x8xf32> to vector<8x8xf32>
    %c1_974 = arith.constant 1 : index
    %c2_975 = arith.constant 2 : index
    %c0_976 = arith.constant 0 : index
    %c0_977 = arith.constant 0 : index
    %1684 = vector.load %arg2[%c1_974, %c2_975, %c0_976, %c0_977] : memref<2x4x16x8xf32, #tpu.memory_space<vmem>>, vector<1x1x16x8xf32>
    %1685 = vector.shape_cast %1684 : vector<1x1x16x8xf32> to vector<16x8xf32>
    %c1_978 = arith.constant 1 : index
    %c2_979 = arith.constant 2 : index
    %c0_980 = arith.constant 0 : index
    %c0_981 = arith.constant 0 : index
    %1686 = vector.load %arg3[%c1_978, %c2_979, %c0_980, %c0_981] : memref<2x4x16x8xf32, #tpu.memory_space<vmem>>, vector<1x1x16x8xf32>
    %1687 = vector.shape_cast %1686 : vector<1x1x16x8xf32> to vector<16x8xf32>
    %cst_982 = arith.constant dense<0.000000e+00> : vector<8x16xf32>
    %1688 = tpu.matmul %1683, %1685, %cst_982 {dimension_numbers = #tpu.dot_dimension_numbers<[1], [1], [0], [0], [0, 0, 1, 0], [], []>} : vector<8x8xf32>, vector<16x8xf32>, vector<8x16xf32> -> vector<8x16xf32>
    %cst_983 = arith.constant 0.000000e+00 : f32
    %1689 = vector.broadcast %cst_983 : f32 to vector<8x16xf32>
    %c2_984 = arith.constant 2 : index
    %1690 = memref.load %arg9[%c2_984] : memref<4xf32, #tpu.memory_space<smem>>
    %1691 = vector.broadcast %1690 : f32 to vector<8x16xf32>
    %1692 = arith.addf %1689, %1691 : vector<8x16xf32>
    %c2_985 = arith.constant 2 : index
    %c0_986 = arith.constant 0 : index
    %1693 = memref.load %arg5[%c2_985, %c0_986] : memref<4x16xf32, #tpu.memory_space<smem>>
    %1694 = vector.broadcast %1693 : f32 to vector<8x16xf32>
    %1695 = arith.mulf %1688, %1694 : vector<8x16xf32>
    %c2_987 = arith.constant 2 : index
    %c0_988 = arith.constant 0 : index
    %1696 = memref.load %arg6[%c2_987, %c0_988] : memref<4x16xf32, #tpu.memory_space<smem>>
    %1697 = vector.broadcast %1696 : f32 to vector<8x16xf32>
    %1698 = arith.mulf %1123, %1697 : vector<8x16xf32>
    %1699 = arith.addf %1695, %1698 : vector<8x16xf32>
    %c2_989 = arith.constant 2 : index
    %c0_990 = arith.constant 0 : index
    %1700 = memref.load %arg7[%c2_989, %c0_990] : memref<4x16xf32, #tpu.memory_space<smem>>
    %1701 = vector.broadcast %1700 : f32 to vector<8x16xf32>
    %1702 = arith.addf %1699, %1701 : vector<8x16xf32>
    %cst_991 = arith.constant 0.000000e+00 : f32
    %1703 = vector.broadcast %cst_991 : f32 to vector<8x16xf32>
    %1704 = arith.maximumf %1702, %1703 : vector<8x16xf32>
    %c2_992 = arith.constant 2 : index
    %c0_993 = arith.constant 0 : index
    %1705 = memref.load %arg8[%c2_992, %c0_993] : memref<4x16xf32, #tpu.memory_space<smem>>
    %1706 = vector.broadcast %1705 : f32 to vector<8x16xf32>
    %1707 = arith.mulf %1704, %1706 : vector<8x16xf32>
    %1708 = arith.addf %1692, %1707 : vector<8x16xf32>
    %c2_994 = arith.constant 2 : index
    %c1_995 = arith.constant 1 : index
    %1709 = memref.load %arg5[%c2_994, %c1_995] : memref<4x16xf32, #tpu.memory_space<smem>>
    %1710 = vector.broadcast %1709 : f32 to vector<8x16xf32>
    %1711 = arith.mulf %1688, %1710 : vector<8x16xf32>
    %c2_996 = arith.constant 2 : index
    %c1_997 = arith.constant 1 : index
    %1712 = memref.load %arg6[%c2_996, %c1_997] : memref<4x16xf32, #tpu.memory_space<smem>>
    %1713 = vector.broadcast %1712 : f32 to vector<8x16xf32>
    %1714 = arith.mulf %1123, %1713 : vector<8x16xf32>
    %1715 = arith.addf %1711, %1714 : vector<8x16xf32>
    %c2_998 = arith.constant 2 : index
    %c1_999 = arith.constant 1 : index
    %1716 = memref.load %arg7[%c2_998, %c1_999] : memref<4x16xf32, #tpu.memory_space<smem>>
    %1717 = vector.broadcast %1716 : f32 to vector<8x16xf32>
    %1718 = arith.addf %1715, %1717 : vector<8x16xf32>
    %cst_1000 = arith.constant 0.000000e+00 : f32
    %1719 = vector.broadcast %cst_1000 : f32 to vector<8x16xf32>
    %1720 = arith.maximumf %1718, %1719 : vector<8x16xf32>
    %c2_1001 = arith.constant 2 : index
    %c1_1002 = arith.constant 1 : index
    %1721 = memref.load %arg8[%c2_1001, %c1_1002] : memref<4x16xf32, #tpu.memory_space<smem>>
    %1722 = vector.broadcast %1721 : f32 to vector<8x16xf32>
    %1723 = arith.mulf %1720, %1722 : vector<8x16xf32>
    %1724 = arith.addf %1708, %1723 : vector<8x16xf32>
    %c2_1003 = arith.constant 2 : index
    %c2_1004 = arith.constant 2 : index
    %1725 = memref.load %arg5[%c2_1003, %c2_1004] : memref<4x16xf32, #tpu.memory_space<smem>>
    %1726 = vector.broadcast %1725 : f32 to vector<8x16xf32>
    %1727 = arith.mulf %1688, %1726 : vector<8x16xf32>
    %c2_1005 = arith.constant 2 : index
    %c2_1006 = arith.constant 2 : index
    %1728 = memref.load %arg6[%c2_1005, %c2_1006] : memref<4x16xf32, #tpu.memory_space<smem>>
    %1729 = vector.broadcast %1728 : f32 to vector<8x16xf32>
    %1730 = arith.mulf %1123, %1729 : vector<8x16xf32>
    %1731 = arith.addf %1727, %1730 : vector<8x16xf32>
    %c2_1007 = arith.constant 2 : index
    %c2_1008 = arith.constant 2 : index
    %1732 = memref.load %arg7[%c2_1007, %c2_1008] : memref<4x16xf32, #tpu.memory_space<smem>>
    %1733 = vector.broadcast %1732 : f32 to vector<8x16xf32>
    %1734 = arith.addf %1731, %1733 : vector<8x16xf32>
    %cst_1009 = arith.constant 0.000000e+00 : f32
    %1735 = vector.broadcast %cst_1009 : f32 to vector<8x16xf32>
    %1736 = arith.maximumf %1734, %1735 : vector<8x16xf32>
    %c2_1010 = arith.constant 2 : index
    %c2_1011 = arith.constant 2 : index
    %1737 = memref.load %arg8[%c2_1010, %c2_1011] : memref<4x16xf32, #tpu.memory_space<smem>>
    %1738 = vector.broadcast %1737 : f32 to vector<8x16xf32>
    %1739 = arith.mulf %1736, %1738 : vector<8x16xf32>
    %1740 = arith.addf %1724, %1739 : vector<8x16xf32>
    %c2_1012 = arith.constant 2 : index
    %c3_1013 = arith.constant 3 : index
    %1741 = memref.load %arg5[%c2_1012, %c3_1013] : memref<4x16xf32, #tpu.memory_space<smem>>
    %1742 = vector.broadcast %1741 : f32 to vector<8x16xf32>
    %1743 = arith.mulf %1688, %1742 : vector<8x16xf32>
    %c2_1014 = arith.constant 2 : index
    %c3_1015 = arith.constant 3 : index
    %1744 = memref.load %arg6[%c2_1014, %c3_1015] : memref<4x16xf32, #tpu.memory_space<smem>>
    %1745 = vector.broadcast %1744 : f32 to vector<8x16xf32>
    %1746 = arith.mulf %1123, %1745 : vector<8x16xf32>
    %1747 = arith.addf %1743, %1746 : vector<8x16xf32>
    %c2_1016 = arith.constant 2 : index
    %c3_1017 = arith.constant 3 : index
    %1748 = memref.load %arg7[%c2_1016, %c3_1017] : memref<4x16xf32, #tpu.memory_space<smem>>
    %1749 = vector.broadcast %1748 : f32 to vector<8x16xf32>
    %1750 = arith.addf %1747, %1749 : vector<8x16xf32>
    %cst_1018 = arith.constant 0.000000e+00 : f32
    %1751 = vector.broadcast %cst_1018 : f32 to vector<8x16xf32>
    %1752 = arith.maximumf %1750, %1751 : vector<8x16xf32>
    %c2_1019 = arith.constant 2 : index
    %c3_1020 = arith.constant 3 : index
    %1753 = memref.load %arg8[%c2_1019, %c3_1020] : memref<4x16xf32, #tpu.memory_space<smem>>
    %1754 = vector.broadcast %1753 : f32 to vector<8x16xf32>
    %1755 = arith.mulf %1752, %1754 : vector<8x16xf32>
    %1756 = arith.addf %1740, %1755 : vector<8x16xf32>
    %c2_1021 = arith.constant 2 : index
    %c4_1022 = arith.constant 4 : index
    %1757 = memref.load %arg5[%c2_1021, %c4_1022] : memref<4x16xf32, #tpu.memory_space<smem>>
    %1758 = vector.broadcast %1757 : f32 to vector<8x16xf32>
    %1759 = arith.mulf %1688, %1758 : vector<8x16xf32>
    %c2_1023 = arith.constant 2 : index
    %c4_1024 = arith.constant 4 : index
    %1760 = memref.load %arg6[%c2_1023, %c4_1024] : memref<4x16xf32, #tpu.memory_space<smem>>
    %1761 = vector.broadcast %1760 : f32 to vector<8x16xf32>
    %1762 = arith.mulf %1123, %1761 : vector<8x16xf32>
    %1763 = arith.addf %1759, %1762 : vector<8x16xf32>
    %c2_1025 = arith.constant 2 : index
    %c4_1026 = arith.constant 4 : index
    %1764 = memref.load %arg7[%c2_1025, %c4_1026] : memref<4x16xf32, #tpu.memory_space<smem>>
    %1765 = vector.broadcast %1764 : f32 to vector<8x16xf32>
    %1766 = arith.addf %1763, %1765 : vector<8x16xf32>
    %cst_1027 = arith.constant 0.000000e+00 : f32
    %1767 = vector.broadcast %cst_1027 : f32 to vector<8x16xf32>
    %1768 = arith.maximumf %1766, %1767 : vector<8x16xf32>
    %c2_1028 = arith.constant 2 : index
    %c4_1029 = arith.constant 4 : index
    %1769 = memref.load %arg8[%c2_1028, %c4_1029] : memref<4x16xf32, #tpu.memory_space<smem>>
    %1770 = vector.broadcast %1769 : f32 to vector<8x16xf32>
    %1771 = arith.mulf %1768, %1770 : vector<8x16xf32>
    %1772 = arith.addf %1756, %1771 : vector<8x16xf32>
    %c2_1030 = arith.constant 2 : index
    %c5_1031 = arith.constant 5 : index
    %1773 = memref.load %arg5[%c2_1030, %c5_1031] : memref<4x16xf32, #tpu.memory_space<smem>>
    %1774 = vector.broadcast %1773 : f32 to vector<8x16xf32>
    %1775 = arith.mulf %1688, %1774 : vector<8x16xf32>
    %c2_1032 = arith.constant 2 : index
    %c5_1033 = arith.constant 5 : index
    %1776 = memref.load %arg6[%c2_1032, %c5_1033] : memref<4x16xf32, #tpu.memory_space<smem>>
    %1777 = vector.broadcast %1776 : f32 to vector<8x16xf32>
    %1778 = arith.mulf %1123, %1777 : vector<8x16xf32>
    %1779 = arith.addf %1775, %1778 : vector<8x16xf32>
    %c2_1034 = arith.constant 2 : index
    %c5_1035 = arith.constant 5 : index
    %1780 = memref.load %arg7[%c2_1034, %c5_1035] : memref<4x16xf32, #tpu.memory_space<smem>>
    %1781 = vector.broadcast %1780 : f32 to vector<8x16xf32>
    %1782 = arith.addf %1779, %1781 : vector<8x16xf32>
    %cst_1036 = arith.constant 0.000000e+00 : f32
    %1783 = vector.broadcast %cst_1036 : f32 to vector<8x16xf32>
    %1784 = arith.maximumf %1782, %1783 : vector<8x16xf32>
    %c2_1037 = arith.constant 2 : index
    %c5_1038 = arith.constant 5 : index
    %1785 = memref.load %arg8[%c2_1037, %c5_1038] : memref<4x16xf32, #tpu.memory_space<smem>>
    %1786 = vector.broadcast %1785 : f32 to vector<8x16xf32>
    %1787 = arith.mulf %1784, %1786 : vector<8x16xf32>
    %1788 = arith.addf %1772, %1787 : vector<8x16xf32>
    %c2_1039 = arith.constant 2 : index
    %c6_1040 = arith.constant 6 : index
    %1789 = memref.load %arg5[%c2_1039, %c6_1040] : memref<4x16xf32, #tpu.memory_space<smem>>
    %1790 = vector.broadcast %1789 : f32 to vector<8x16xf32>
    %1791 = arith.mulf %1688, %1790 : vector<8x16xf32>
    %c2_1041 = arith.constant 2 : index
    %c6_1042 = arith.constant 6 : index
    %1792 = memref.load %arg6[%c2_1041, %c6_1042] : memref<4x16xf32, #tpu.memory_space<smem>>
    %1793 = vector.broadcast %1792 : f32 to vector<8x16xf32>
    %1794 = arith.mulf %1123, %1793 : vector<8x16xf32>
    %1795 = arith.addf %1791, %1794 : vector<8x16xf32>
    %c2_1043 = arith.constant 2 : index
    %c6_1044 = arith.constant 6 : index
    %1796 = memref.load %arg7[%c2_1043, %c6_1044] : memref<4x16xf32, #tpu.memory_space<smem>>
    %1797 = vector.broadcast %1796 : f32 to vector<8x16xf32>
    %1798 = arith.addf %1795, %1797 : vector<8x16xf32>
    %cst_1045 = arith.constant 0.000000e+00 : f32
    %1799 = vector.broadcast %cst_1045 : f32 to vector<8x16xf32>
    %1800 = arith.maximumf %1798, %1799 : vector<8x16xf32>
    %c2_1046 = arith.constant 2 : index
    %c6_1047 = arith.constant 6 : index
    %1801 = memref.load %arg8[%c2_1046, %c6_1047] : memref<4x16xf32, #tpu.memory_space<smem>>
    %1802 = vector.broadcast %1801 : f32 to vector<8x16xf32>
    %1803 = arith.mulf %1800, %1802 : vector<8x16xf32>
    %1804 = arith.addf %1788, %1803 : vector<8x16xf32>
    %c2_1048 = arith.constant 2 : index
    %c7_1049 = arith.constant 7 : index
    %1805 = memref.load %arg5[%c2_1048, %c7_1049] : memref<4x16xf32, #tpu.memory_space<smem>>
    %1806 = vector.broadcast %1805 : f32 to vector<8x16xf32>
    %1807 = arith.mulf %1688, %1806 : vector<8x16xf32>
    %c2_1050 = arith.constant 2 : index
    %c7_1051 = arith.constant 7 : index
    %1808 = memref.load %arg6[%c2_1050, %c7_1051] : memref<4x16xf32, #tpu.memory_space<smem>>
    %1809 = vector.broadcast %1808 : f32 to vector<8x16xf32>
    %1810 = arith.mulf %1123, %1809 : vector<8x16xf32>
    %1811 = arith.addf %1807, %1810 : vector<8x16xf32>
    %c2_1052 = arith.constant 2 : index
    %c7_1053 = arith.constant 7 : index
    %1812 = memref.load %arg7[%c2_1052, %c7_1053] : memref<4x16xf32, #tpu.memory_space<smem>>
    %1813 = vector.broadcast %1812 : f32 to vector<8x16xf32>
    %1814 = arith.addf %1811, %1813 : vector<8x16xf32>
    %cst_1054 = arith.constant 0.000000e+00 : f32
    %1815 = vector.broadcast %cst_1054 : f32 to vector<8x16xf32>
    %1816 = arith.maximumf %1814, %1815 : vector<8x16xf32>
    %c2_1055 = arith.constant 2 : index
    %c7_1056 = arith.constant 7 : index
    %1817 = memref.load %arg8[%c2_1055, %c7_1056] : memref<4x16xf32, #tpu.memory_space<smem>>
    %1818 = vector.broadcast %1817 : f32 to vector<8x16xf32>
    %1819 = arith.mulf %1816, %1818 : vector<8x16xf32>
    %1820 = arith.addf %1804, %1819 : vector<8x16xf32>
    %c2_1057 = arith.constant 2 : index
    %c8_1058 = arith.constant 8 : index
    %1821 = memref.load %arg5[%c2_1057, %c8_1058] : memref<4x16xf32, #tpu.memory_space<smem>>
    %1822 = vector.broadcast %1821 : f32 to vector<8x16xf32>
    %1823 = arith.mulf %1688, %1822 : vector<8x16xf32>
    %c2_1059 = arith.constant 2 : index
    %c8_1060 = arith.constant 8 : index
    %1824 = memref.load %arg6[%c2_1059, %c8_1060] : memref<4x16xf32, #tpu.memory_space<smem>>
    %1825 = vector.broadcast %1824 : f32 to vector<8x16xf32>
    %1826 = arith.mulf %1123, %1825 : vector<8x16xf32>
    %1827 = arith.addf %1823, %1826 : vector<8x16xf32>
    %c2_1061 = arith.constant 2 : index
    %c8_1062 = arith.constant 8 : index
    %1828 = memref.load %arg7[%c2_1061, %c8_1062] : memref<4x16xf32, #tpu.memory_space<smem>>
    %1829 = vector.broadcast %1828 : f32 to vector<8x16xf32>
    %1830 = arith.addf %1827, %1829 : vector<8x16xf32>
    %cst_1063 = arith.constant 0.000000e+00 : f32
    %1831 = vector.broadcast %cst_1063 : f32 to vector<8x16xf32>
    %1832 = arith.maximumf %1830, %1831 : vector<8x16xf32>
    %c2_1064 = arith.constant 2 : index
    %c8_1065 = arith.constant 8 : index
    %1833 = memref.load %arg8[%c2_1064, %c8_1065] : memref<4x16xf32, #tpu.memory_space<smem>>
    %1834 = vector.broadcast %1833 : f32 to vector<8x16xf32>
    %1835 = arith.mulf %1832, %1834 : vector<8x16xf32>
    %1836 = arith.addf %1820, %1835 : vector<8x16xf32>
    %c2_1066 = arith.constant 2 : index
    %c9_1067 = arith.constant 9 : index
    %1837 = memref.load %arg5[%c2_1066, %c9_1067] : memref<4x16xf32, #tpu.memory_space<smem>>
    %1838 = vector.broadcast %1837 : f32 to vector<8x16xf32>
    %1839 = arith.mulf %1688, %1838 : vector<8x16xf32>
    %c2_1068 = arith.constant 2 : index
    %c9_1069 = arith.constant 9 : index
    %1840 = memref.load %arg6[%c2_1068, %c9_1069] : memref<4x16xf32, #tpu.memory_space<smem>>
    %1841 = vector.broadcast %1840 : f32 to vector<8x16xf32>
    %1842 = arith.mulf %1123, %1841 : vector<8x16xf32>
    %1843 = arith.addf %1839, %1842 : vector<8x16xf32>
    %c2_1070 = arith.constant 2 : index
    %c9_1071 = arith.constant 9 : index
    %1844 = memref.load %arg7[%c2_1070, %c9_1071] : memref<4x16xf32, #tpu.memory_space<smem>>
    %1845 = vector.broadcast %1844 : f32 to vector<8x16xf32>
    %1846 = arith.addf %1843, %1845 : vector<8x16xf32>
    %cst_1072 = arith.constant 0.000000e+00 : f32
    %1847 = vector.broadcast %cst_1072 : f32 to vector<8x16xf32>
    %1848 = arith.maximumf %1846, %1847 : vector<8x16xf32>
    %c2_1073 = arith.constant 2 : index
    %c9_1074 = arith.constant 9 : index
    %1849 = memref.load %arg8[%c2_1073, %c9_1074] : memref<4x16xf32, #tpu.memory_space<smem>>
    %1850 = vector.broadcast %1849 : f32 to vector<8x16xf32>
    %1851 = arith.mulf %1848, %1850 : vector<8x16xf32>
    %1852 = arith.addf %1836, %1851 : vector<8x16xf32>
    %c2_1075 = arith.constant 2 : index
    %c10_1076 = arith.constant 10 : index
    %1853 = memref.load %arg5[%c2_1075, %c10_1076] : memref<4x16xf32, #tpu.memory_space<smem>>
    %1854 = vector.broadcast %1853 : f32 to vector<8x16xf32>
    %1855 = arith.mulf %1688, %1854 : vector<8x16xf32>
    %c2_1077 = arith.constant 2 : index
    %c10_1078 = arith.constant 10 : index
    %1856 = memref.load %arg6[%c2_1077, %c10_1078] : memref<4x16xf32, #tpu.memory_space<smem>>
    %1857 = vector.broadcast %1856 : f32 to vector<8x16xf32>
    %1858 = arith.mulf %1123, %1857 : vector<8x16xf32>
    %1859 = arith.addf %1855, %1858 : vector<8x16xf32>
    %c2_1079 = arith.constant 2 : index
    %c10_1080 = arith.constant 10 : index
    %1860 = memref.load %arg7[%c2_1079, %c10_1080] : memref<4x16xf32, #tpu.memory_space<smem>>
    %1861 = vector.broadcast %1860 : f32 to vector<8x16xf32>
    %1862 = arith.addf %1859, %1861 : vector<8x16xf32>
    %cst_1081 = arith.constant 0.000000e+00 : f32
    %1863 = vector.broadcast %cst_1081 : f32 to vector<8x16xf32>
    %1864 = arith.maximumf %1862, %1863 : vector<8x16xf32>
    %c2_1082 = arith.constant 2 : index
    %c10_1083 = arith.constant 10 : index
    %1865 = memref.load %arg8[%c2_1082, %c10_1083] : memref<4x16xf32, #tpu.memory_space<smem>>
    %1866 = vector.broadcast %1865 : f32 to vector<8x16xf32>
    %1867 = arith.mulf %1864, %1866 : vector<8x16xf32>
    %1868 = arith.addf %1852, %1867 : vector<8x16xf32>
    %c2_1084 = arith.constant 2 : index
    %c11_1085 = arith.constant 11 : index
    %1869 = memref.load %arg5[%c2_1084, %c11_1085] : memref<4x16xf32, #tpu.memory_space<smem>>
    %1870 = vector.broadcast %1869 : f32 to vector<8x16xf32>
    %1871 = arith.mulf %1688, %1870 : vector<8x16xf32>
    %c2_1086 = arith.constant 2 : index
    %c11_1087 = arith.constant 11 : index
    %1872 = memref.load %arg6[%c2_1086, %c11_1087] : memref<4x16xf32, #tpu.memory_space<smem>>
    %1873 = vector.broadcast %1872 : f32 to vector<8x16xf32>
    %1874 = arith.mulf %1123, %1873 : vector<8x16xf32>
    %1875 = arith.addf %1871, %1874 : vector<8x16xf32>
    %c2_1088 = arith.constant 2 : index
    %c11_1089 = arith.constant 11 : index
    %1876 = memref.load %arg7[%c2_1088, %c11_1089] : memref<4x16xf32, #tpu.memory_space<smem>>
    %1877 = vector.broadcast %1876 : f32 to vector<8x16xf32>
    %1878 = arith.addf %1875, %1877 : vector<8x16xf32>
    %cst_1090 = arith.constant 0.000000e+00 : f32
    %1879 = vector.broadcast %cst_1090 : f32 to vector<8x16xf32>
    %1880 = arith.maximumf %1878, %1879 : vector<8x16xf32>
    %c2_1091 = arith.constant 2 : index
    %c11_1092 = arith.constant 11 : index
    %1881 = memref.load %arg8[%c2_1091, %c11_1092] : memref<4x16xf32, #tpu.memory_space<smem>>
    %1882 = vector.broadcast %1881 : f32 to vector<8x16xf32>
    %1883 = arith.mulf %1880, %1882 : vector<8x16xf32>
    %1884 = arith.addf %1868, %1883 : vector<8x16xf32>
    %c2_1093 = arith.constant 2 : index
    %c12_1094 = arith.constant 12 : index
    %1885 = memref.load %arg5[%c2_1093, %c12_1094] : memref<4x16xf32, #tpu.memory_space<smem>>
    %1886 = vector.broadcast %1885 : f32 to vector<8x16xf32>
    %1887 = arith.mulf %1688, %1886 : vector<8x16xf32>
    %c2_1095 = arith.constant 2 : index
    %c12_1096 = arith.constant 12 : index
    %1888 = memref.load %arg6[%c2_1095, %c12_1096] : memref<4x16xf32, #tpu.memory_space<smem>>
    %1889 = vector.broadcast %1888 : f32 to vector<8x16xf32>
    %1890 = arith.mulf %1123, %1889 : vector<8x16xf32>
    %1891 = arith.addf %1887, %1890 : vector<8x16xf32>
    %c2_1097 = arith.constant 2 : index
    %c12_1098 = arith.constant 12 : index
    %1892 = memref.load %arg7[%c2_1097, %c12_1098] : memref<4x16xf32, #tpu.memory_space<smem>>
    %1893 = vector.broadcast %1892 : f32 to vector<8x16xf32>
    %1894 = arith.addf %1891, %1893 : vector<8x16xf32>
    %cst_1099 = arith.constant 0.000000e+00 : f32
    %1895 = vector.broadcast %cst_1099 : f32 to vector<8x16xf32>
    %1896 = arith.maximumf %1894, %1895 : vector<8x16xf32>
    %c2_1100 = arith.constant 2 : index
    %c12_1101 = arith.constant 12 : index
    %1897 = memref.load %arg8[%c2_1100, %c12_1101] : memref<4x16xf32, #tpu.memory_space<smem>>
    %1898 = vector.broadcast %1897 : f32 to vector<8x16xf32>
    %1899 = arith.mulf %1896, %1898 : vector<8x16xf32>
    %1900 = arith.addf %1884, %1899 : vector<8x16xf32>
    %c2_1102 = arith.constant 2 : index
    %c13_1103 = arith.constant 13 : index
    %1901 = memref.load %arg5[%c2_1102, %c13_1103] : memref<4x16xf32, #tpu.memory_space<smem>>
    %1902 = vector.broadcast %1901 : f32 to vector<8x16xf32>
    %1903 = arith.mulf %1688, %1902 : vector<8x16xf32>
    %c2_1104 = arith.constant 2 : index
    %c13_1105 = arith.constant 13 : index
    %1904 = memref.load %arg6[%c2_1104, %c13_1105] : memref<4x16xf32, #tpu.memory_space<smem>>
    %1905 = vector.broadcast %1904 : f32 to vector<8x16xf32>
    %1906 = arith.mulf %1123, %1905 : vector<8x16xf32>
    %1907 = arith.addf %1903, %1906 : vector<8x16xf32>
    %c2_1106 = arith.constant 2 : index
    %c13_1107 = arith.constant 13 : index
    %1908 = memref.load %arg7[%c2_1106, %c13_1107] : memref<4x16xf32, #tpu.memory_space<smem>>
    %1909 = vector.broadcast %1908 : f32 to vector<8x16xf32>
    %1910 = arith.addf %1907, %1909 : vector<8x16xf32>
    %cst_1108 = arith.constant 0.000000e+00 : f32
    %1911 = vector.broadcast %cst_1108 : f32 to vector<8x16xf32>
    %1912 = arith.maximumf %1910, %1911 : vector<8x16xf32>
    %c2_1109 = arith.constant 2 : index
    %c13_1110 = arith.constant 13 : index
    %1913 = memref.load %arg8[%c2_1109, %c13_1110] : memref<4x16xf32, #tpu.memory_space<smem>>
    %1914 = vector.broadcast %1913 : f32 to vector<8x16xf32>
    %1915 = arith.mulf %1912, %1914 : vector<8x16xf32>
    %1916 = arith.addf %1900, %1915 : vector<8x16xf32>
    %c2_1111 = arith.constant 2 : index
    %c14_1112 = arith.constant 14 : index
    %1917 = memref.load %arg5[%c2_1111, %c14_1112] : memref<4x16xf32, #tpu.memory_space<smem>>
    %1918 = vector.broadcast %1917 : f32 to vector<8x16xf32>
    %1919 = arith.mulf %1688, %1918 : vector<8x16xf32>
    %c2_1113 = arith.constant 2 : index
    %c14_1114 = arith.constant 14 : index
    %1920 = memref.load %arg6[%c2_1113, %c14_1114] : memref<4x16xf32, #tpu.memory_space<smem>>
    %1921 = vector.broadcast %1920 : f32 to vector<8x16xf32>
    %1922 = arith.mulf %1123, %1921 : vector<8x16xf32>
    %1923 = arith.addf %1919, %1922 : vector<8x16xf32>
    %c2_1115 = arith.constant 2 : index
    %c14_1116 = arith.constant 14 : index
    %1924 = memref.load %arg7[%c2_1115, %c14_1116] : memref<4x16xf32, #tpu.memory_space<smem>>
    %1925 = vector.broadcast %1924 : f32 to vector<8x16xf32>
    %1926 = arith.addf %1923, %1925 : vector<8x16xf32>
    %cst_1117 = arith.constant 0.000000e+00 : f32
    %1927 = vector.broadcast %cst_1117 : f32 to vector<8x16xf32>
    %1928 = arith.maximumf %1926, %1927 : vector<8x16xf32>
    %c2_1118 = arith.constant 2 : index
    %c14_1119 = arith.constant 14 : index
    %1929 = memref.load %arg8[%c2_1118, %c14_1119] : memref<4x16xf32, #tpu.memory_space<smem>>
    %1930 = vector.broadcast %1929 : f32 to vector<8x16xf32>
    %1931 = arith.mulf %1928, %1930 : vector<8x16xf32>
    %1932 = arith.addf %1916, %1931 : vector<8x16xf32>
    %c2_1120 = arith.constant 2 : index
    %c15_1121 = arith.constant 15 : index
    %1933 = memref.load %arg5[%c2_1120, %c15_1121] : memref<4x16xf32, #tpu.memory_space<smem>>
    %1934 = vector.broadcast %1933 : f32 to vector<8x16xf32>
    %1935 = arith.mulf %1688, %1934 : vector<8x16xf32>
    %c2_1122 = arith.constant 2 : index
    %c15_1123 = arith.constant 15 : index
    %1936 = memref.load %arg6[%c2_1122, %c15_1123] : memref<4x16xf32, #tpu.memory_space<smem>>
    %1937 = vector.broadcast %1936 : f32 to vector<8x16xf32>
    %1938 = arith.mulf %1123, %1937 : vector<8x16xf32>
    %1939 = arith.addf %1935, %1938 : vector<8x16xf32>
    %c2_1124 = arith.constant 2 : index
    %c15_1125 = arith.constant 15 : index
    %1940 = memref.load %arg7[%c2_1124, %c15_1125] : memref<4x16xf32, #tpu.memory_space<smem>>
    %1941 = vector.broadcast %1940 : f32 to vector<8x16xf32>
    %1942 = arith.addf %1939, %1941 : vector<8x16xf32>
    %cst_1126 = arith.constant 0.000000e+00 : f32
    %1943 = vector.broadcast %cst_1126 : f32 to vector<8x16xf32>
    %1944 = arith.maximumf %1942, %1943 : vector<8x16xf32>
    %c2_1127 = arith.constant 2 : index
    %c15_1128 = arith.constant 15 : index
    %1945 = memref.load %arg8[%c2_1127, %c15_1128] : memref<4x16xf32, #tpu.memory_space<smem>>
    %1946 = vector.broadcast %1945 : f32 to vector<8x16xf32>
    %1947 = arith.mulf %1944, %1946 : vector<8x16xf32>
    %1948 = arith.addf %1932, %1947 : vector<8x16xf32>
    %cst_1129 = arith.constant dense<0xFF800000> : vector<8xf32>
    %1949 = vector.multi_reduction <maximumf>, %1948, %cst_1129 [1] : vector<8x16xf32> to vector<8xf32>
    %1950 = vector.shape_cast %1949 : vector<8xf32> to vector<8x1xf32>
    %1951 = vector.broadcast %1950 : vector<8x1xf32> to vector<8x16xf32>
    %1952 = arith.subf %1948, %1951 : vector<8x16xf32>
    %1953 = math.exp %1952 : vector<8x16xf32>
    %cst_1130 = arith.constant dense<0.000000e+00> : vector<8xf32>
    %1954 = vector.multi_reduction <add>, %1953, %cst_1130 [1] : vector<8x16xf32> to vector<8xf32>
    %1955 = vector.shape_cast %1954 : vector<8xf32> to vector<8x1xf32>
    %cst_1131 = arith.constant dense<0.000000e+00> : vector<8x8xf32>
    %1956 = tpu.matmul %1953, %1687, %cst_1131 {dimension_numbers = #tpu.dot_dimension_numbers<[1], [0], [0], [1], [0, 0, 1, 1], [], []>} : vector<8x16xf32>, vector<16x8xf32>, vector<8x8xf32> -> vector<8x8xf32>
    %cst_1132 = arith.constant 1.000000e+00 : f32
    %1957 = vector.broadcast %cst_1132 : f32 to vector<8x1xf32>
    %1958 = arith.divf %1957, %1955 : vector<8x1xf32>
    %1959 = vector.broadcast %1958 : vector<8x1xf32> to vector<8x8xf32>
    %1960 = arith.mulf %1956, %1959 : vector<8x8xf32>
    %c1_1133 = arith.constant 1 : index
    %c3_1134 = arith.constant 3 : index
    %c0_1135 = arith.constant 0 : index
    %c0_1136 = arith.constant 0 : index
    %1961 = vector.load %arg1[%c1_1133, %c3_1134, %c0_1135, %c0_1136] : memref<2x4x8x8xf32, #tpu.memory_space<vmem>>, vector<1x1x8x8xf32>
    %1962 = vector.shape_cast %1961 : vector<1x1x8x8xf32> to vector<8x8xf32>
    %c1_1137 = arith.constant 1 : index
    %c3_1138 = arith.constant 3 : index
    %c0_1139 = arith.constant 0 : index
    %c0_1140 = arith.constant 0 : index
    %1963 = vector.load %arg2[%c1_1137, %c3_1138, %c0_1139, %c0_1140] : memref<2x4x16x8xf32, #tpu.memory_space<vmem>>, vector<1x1x16x8xf32>
    %1964 = vector.shape_cast %1963 : vector<1x1x16x8xf32> to vector<16x8xf32>
    %c1_1141 = arith.constant 1 : index
    %c3_1142 = arith.constant 3 : index
    %c0_1143 = arith.constant 0 : index
    %c0_1144 = arith.constant 0 : index
    %1965 = vector.load %arg3[%c1_1141, %c3_1142, %c0_1143, %c0_1144] : memref<2x4x16x8xf32, #tpu.memory_space<vmem>>, vector<1x1x16x8xf32>
    %1966 = vector.shape_cast %1965 : vector<1x1x16x8xf32> to vector<16x8xf32>
    %cst_1145 = arith.constant dense<0.000000e+00> : vector<8x16xf32>
    %1967 = tpu.matmul %1962, %1964, %cst_1145 {dimension_numbers = #tpu.dot_dimension_numbers<[1], [1], [0], [0], [0, 0, 1, 0], [], []>} : vector<8x8xf32>, vector<16x8xf32>, vector<8x16xf32> -> vector<8x16xf32>
    %cst_1146 = arith.constant 0.000000e+00 : f32
    %1968 = vector.broadcast %cst_1146 : f32 to vector<8x16xf32>
    %c3_1147 = arith.constant 3 : index
    %1969 = memref.load %arg9[%c3_1147] : memref<4xf32, #tpu.memory_space<smem>>
    %1970 = vector.broadcast %1969 : f32 to vector<8x16xf32>
    %1971 = arith.addf %1968, %1970 : vector<8x16xf32>
    %c3_1148 = arith.constant 3 : index
    %c0_1149 = arith.constant 0 : index
    %1972 = memref.load %arg5[%c3_1148, %c0_1149] : memref<4x16xf32, #tpu.memory_space<smem>>
    %1973 = vector.broadcast %1972 : f32 to vector<8x16xf32>
    %1974 = arith.mulf %1967, %1973 : vector<8x16xf32>
    %c3_1150 = arith.constant 3 : index
    %c0_1151 = arith.constant 0 : index
    %1975 = memref.load %arg6[%c3_1150, %c0_1151] : memref<4x16xf32, #tpu.memory_space<smem>>
    %1976 = vector.broadcast %1975 : f32 to vector<8x16xf32>
    %1977 = arith.mulf %1123, %1976 : vector<8x16xf32>
    %1978 = arith.addf %1974, %1977 : vector<8x16xf32>
    %c3_1152 = arith.constant 3 : index
    %c0_1153 = arith.constant 0 : index
    %1979 = memref.load %arg7[%c3_1152, %c0_1153] : memref<4x16xf32, #tpu.memory_space<smem>>
    %1980 = vector.broadcast %1979 : f32 to vector<8x16xf32>
    %1981 = arith.addf %1978, %1980 : vector<8x16xf32>
    %cst_1154 = arith.constant 0.000000e+00 : f32
    %1982 = vector.broadcast %cst_1154 : f32 to vector<8x16xf32>
    %1983 = arith.maximumf %1981, %1982 : vector<8x16xf32>
    %c3_1155 = arith.constant 3 : index
    %c0_1156 = arith.constant 0 : index
    %1984 = memref.load %arg8[%c3_1155, %c0_1156] : memref<4x16xf32, #tpu.memory_space<smem>>
    %1985 = vector.broadcast %1984 : f32 to vector<8x16xf32>
    %1986 = arith.mulf %1983, %1985 : vector<8x16xf32>
    %1987 = arith.addf %1971, %1986 : vector<8x16xf32>
    %c3_1157 = arith.constant 3 : index
    %c1_1158 = arith.constant 1 : index
    %1988 = memref.load %arg5[%c3_1157, %c1_1158] : memref<4x16xf32, #tpu.memory_space<smem>>
    %1989 = vector.broadcast %1988 : f32 to vector<8x16xf32>
    %1990 = arith.mulf %1967, %1989 : vector<8x16xf32>
    %c3_1159 = arith.constant 3 : index
    %c1_1160 = arith.constant 1 : index
    %1991 = memref.load %arg6[%c3_1159, %c1_1160] : memref<4x16xf32, #tpu.memory_space<smem>>
    %1992 = vector.broadcast %1991 : f32 to vector<8x16xf32>
    %1993 = arith.mulf %1123, %1992 : vector<8x16xf32>
    %1994 = arith.addf %1990, %1993 : vector<8x16xf32>
    %c3_1161 = arith.constant 3 : index
    %c1_1162 = arith.constant 1 : index
    %1995 = memref.load %arg7[%c3_1161, %c1_1162] : memref<4x16xf32, #tpu.memory_space<smem>>
    %1996 = vector.broadcast %1995 : f32 to vector<8x16xf32>
    %1997 = arith.addf %1994, %1996 : vector<8x16xf32>
    %cst_1163 = arith.constant 0.000000e+00 : f32
    %1998 = vector.broadcast %cst_1163 : f32 to vector<8x16xf32>
    %1999 = arith.maximumf %1997, %1998 : vector<8x16xf32>
    %c3_1164 = arith.constant 3 : index
    %c1_1165 = arith.constant 1 : index
    %2000 = memref.load %arg8[%c3_1164, %c1_1165] : memref<4x16xf32, #tpu.memory_space<smem>>
    %2001 = vector.broadcast %2000 : f32 to vector<8x16xf32>
    %2002 = arith.mulf %1999, %2001 : vector<8x16xf32>
    %2003 = arith.addf %1987, %2002 : vector<8x16xf32>
    %c3_1166 = arith.constant 3 : index
    %c2_1167 = arith.constant 2 : index
    %2004 = memref.load %arg5[%c3_1166, %c2_1167] : memref<4x16xf32, #tpu.memory_space<smem>>
    %2005 = vector.broadcast %2004 : f32 to vector<8x16xf32>
    %2006 = arith.mulf %1967, %2005 : vector<8x16xf32>
    %c3_1168 = arith.constant 3 : index
    %c2_1169 = arith.constant 2 : index
    %2007 = memref.load %arg6[%c3_1168, %c2_1169] : memref<4x16xf32, #tpu.memory_space<smem>>
    %2008 = vector.broadcast %2007 : f32 to vector<8x16xf32>
    %2009 = arith.mulf %1123, %2008 : vector<8x16xf32>
    %2010 = arith.addf %2006, %2009 : vector<8x16xf32>
    %c3_1170 = arith.constant 3 : index
    %c2_1171 = arith.constant 2 : index
    %2011 = memref.load %arg7[%c3_1170, %c2_1171] : memref<4x16xf32, #tpu.memory_space<smem>>
    %2012 = vector.broadcast %2011 : f32 to vector<8x16xf32>
    %2013 = arith.addf %2010, %2012 : vector<8x16xf32>
    %cst_1172 = arith.constant 0.000000e+00 : f32
    %2014 = vector.broadcast %cst_1172 : f32 to vector<8x16xf32>
    %2015 = arith.maximumf %2013, %2014 : vector<8x16xf32>
    %c3_1173 = arith.constant 3 : index
    %c2_1174 = arith.constant 2 : index
    %2016 = memref.load %arg8[%c3_1173, %c2_1174] : memref<4x16xf32, #tpu.memory_space<smem>>
    %2017 = vector.broadcast %2016 : f32 to vector<8x16xf32>
    %2018 = arith.mulf %2015, %2017 : vector<8x16xf32>
    %2019 = arith.addf %2003, %2018 : vector<8x16xf32>
    %c3_1175 = arith.constant 3 : index
    %c3_1176 = arith.constant 3 : index
    %2020 = memref.load %arg5[%c3_1175, %c3_1176] : memref<4x16xf32, #tpu.memory_space<smem>>
    %2021 = vector.broadcast %2020 : f32 to vector<8x16xf32>
    %2022 = arith.mulf %1967, %2021 : vector<8x16xf32>
    %c3_1177 = arith.constant 3 : index
    %c3_1178 = arith.constant 3 : index
    %2023 = memref.load %arg6[%c3_1177, %c3_1178] : memref<4x16xf32, #tpu.memory_space<smem>>
    %2024 = vector.broadcast %2023 : f32 to vector<8x16xf32>
    %2025 = arith.mulf %1123, %2024 : vector<8x16xf32>
    %2026 = arith.addf %2022, %2025 : vector<8x16xf32>
    %c3_1179 = arith.constant 3 : index
    %c3_1180 = arith.constant 3 : index
    %2027 = memref.load %arg7[%c3_1179, %c3_1180] : memref<4x16xf32, #tpu.memory_space<smem>>
    %2028 = vector.broadcast %2027 : f32 to vector<8x16xf32>
    %2029 = arith.addf %2026, %2028 : vector<8x16xf32>
    %cst_1181 = arith.constant 0.000000e+00 : f32
    %2030 = vector.broadcast %cst_1181 : f32 to vector<8x16xf32>
    %2031 = arith.maximumf %2029, %2030 : vector<8x16xf32>
    %c3_1182 = arith.constant 3 : index
    %c3_1183 = arith.constant 3 : index
    %2032 = memref.load %arg8[%c3_1182, %c3_1183] : memref<4x16xf32, #tpu.memory_space<smem>>
    %2033 = vector.broadcast %2032 : f32 to vector<8x16xf32>
    %2034 = arith.mulf %2031, %2033 : vector<8x16xf32>
    %2035 = arith.addf %2019, %2034 : vector<8x16xf32>
    %c3_1184 = arith.constant 3 : index
    %c4_1185 = arith.constant 4 : index
    %2036 = memref.load %arg5[%c3_1184, %c4_1185] : memref<4x16xf32, #tpu.memory_space<smem>>
    %2037 = vector.broadcast %2036 : f32 to vector<8x16xf32>
    %2038 = arith.mulf %1967, %2037 : vector<8x16xf32>
    %c3_1186 = arith.constant 3 : index
    %c4_1187 = arith.constant 4 : index
    %2039 = memref.load %arg6[%c3_1186, %c4_1187] : memref<4x16xf32, #tpu.memory_space<smem>>
    %2040 = vector.broadcast %2039 : f32 to vector<8x16xf32>
    %2041 = arith.mulf %1123, %2040 : vector<8x16xf32>
    %2042 = arith.addf %2038, %2041 : vector<8x16xf32>
    %c3_1188 = arith.constant 3 : index
    %c4_1189 = arith.constant 4 : index
    %2043 = memref.load %arg7[%c3_1188, %c4_1189] : memref<4x16xf32, #tpu.memory_space<smem>>
    %2044 = vector.broadcast %2043 : f32 to vector<8x16xf32>
    %2045 = arith.addf %2042, %2044 : vector<8x16xf32>
    %cst_1190 = arith.constant 0.000000e+00 : f32
    %2046 = vector.broadcast %cst_1190 : f32 to vector<8x16xf32>
    %2047 = arith.maximumf %2045, %2046 : vector<8x16xf32>
    %c3_1191 = arith.constant 3 : index
    %c4_1192 = arith.constant 4 : index
    %2048 = memref.load %arg8[%c3_1191, %c4_1192] : memref<4x16xf32, #tpu.memory_space<smem>>
    %2049 = vector.broadcast %2048 : f32 to vector<8x16xf32>
    %2050 = arith.mulf %2047, %2049 : vector<8x16xf32>
    %2051 = arith.addf %2035, %2050 : vector<8x16xf32>
    %c3_1193 = arith.constant 3 : index
    %c5_1194 = arith.constant 5 : index
    %2052 = memref.load %arg5[%c3_1193, %c5_1194] : memref<4x16xf32, #tpu.memory_space<smem>>
    %2053 = vector.broadcast %2052 : f32 to vector<8x16xf32>
    %2054 = arith.mulf %1967, %2053 : vector<8x16xf32>
    %c3_1195 = arith.constant 3 : index
    %c5_1196 = arith.constant 5 : index
    %2055 = memref.load %arg6[%c3_1195, %c5_1196] : memref<4x16xf32, #tpu.memory_space<smem>>
    %2056 = vector.broadcast %2055 : f32 to vector<8x16xf32>
    %2057 = arith.mulf %1123, %2056 : vector<8x16xf32>
    %2058 = arith.addf %2054, %2057 : vector<8x16xf32>
    %c3_1197 = arith.constant 3 : index
    %c5_1198 = arith.constant 5 : index
    %2059 = memref.load %arg7[%c3_1197, %c5_1198] : memref<4x16xf32, #tpu.memory_space<smem>>
    %2060 = vector.broadcast %2059 : f32 to vector<8x16xf32>
    %2061 = arith.addf %2058, %2060 : vector<8x16xf32>
    %cst_1199 = arith.constant 0.000000e+00 : f32
    %2062 = vector.broadcast %cst_1199 : f32 to vector<8x16xf32>
    %2063 = arith.maximumf %2061, %2062 : vector<8x16xf32>
    %c3_1200 = arith.constant 3 : index
    %c5_1201 = arith.constant 5 : index
    %2064 = memref.load %arg8[%c3_1200, %c5_1201] : memref<4x16xf32, #tpu.memory_space<smem>>
    %2065 = vector.broadcast %2064 : f32 to vector<8x16xf32>
    %2066 = arith.mulf %2063, %2065 : vector<8x16xf32>
    %2067 = arith.addf %2051, %2066 : vector<8x16xf32>
    %c3_1202 = arith.constant 3 : index
    %c6_1203 = arith.constant 6 : index
    %2068 = memref.load %arg5[%c3_1202, %c6_1203] : memref<4x16xf32, #tpu.memory_space<smem>>
    %2069 = vector.broadcast %2068 : f32 to vector<8x16xf32>
    %2070 = arith.mulf %1967, %2069 : vector<8x16xf32>
    %c3_1204 = arith.constant 3 : index
    %c6_1205 = arith.constant 6 : index
    %2071 = memref.load %arg6[%c3_1204, %c6_1205] : memref<4x16xf32, #tpu.memory_space<smem>>
    %2072 = vector.broadcast %2071 : f32 to vector<8x16xf32>
    %2073 = arith.mulf %1123, %2072 : vector<8x16xf32>
    %2074 = arith.addf %2070, %2073 : vector<8x16xf32>
    %c3_1206 = arith.constant 3 : index
    %c6_1207 = arith.constant 6 : index
    %2075 = memref.load %arg7[%c3_1206, %c6_1207] : memref<4x16xf32, #tpu.memory_space<smem>>
    %2076 = vector.broadcast %2075 : f32 to vector<8x16xf32>
    %2077 = arith.addf %2074, %2076 : vector<8x16xf32>
    %cst_1208 = arith.constant 0.000000e+00 : f32
    %2078 = vector.broadcast %cst_1208 : f32 to vector<8x16xf32>
    %2079 = arith.maximumf %2077, %2078 : vector<8x16xf32>
    %c3_1209 = arith.constant 3 : index
    %c6_1210 = arith.constant 6 : index
    %2080 = memref.load %arg8[%c3_1209, %c6_1210] : memref<4x16xf32, #tpu.memory_space<smem>>
    %2081 = vector.broadcast %2080 : f32 to vector<8x16xf32>
    %2082 = arith.mulf %2079, %2081 : vector<8x16xf32>
    %2083 = arith.addf %2067, %2082 : vector<8x16xf32>
    %c3_1211 = arith.constant 3 : index
    %c7_1212 = arith.constant 7 : index
    %2084 = memref.load %arg5[%c3_1211, %c7_1212] : memref<4x16xf32, #tpu.memory_space<smem>>
    %2085 = vector.broadcast %2084 : f32 to vector<8x16xf32>
    %2086 = arith.mulf %1967, %2085 : vector<8x16xf32>
    %c3_1213 = arith.constant 3 : index
    %c7_1214 = arith.constant 7 : index
    %2087 = memref.load %arg6[%c3_1213, %c7_1214] : memref<4x16xf32, #tpu.memory_space<smem>>
    %2088 = vector.broadcast %2087 : f32 to vector<8x16xf32>
    %2089 = arith.mulf %1123, %2088 : vector<8x16xf32>
    %2090 = arith.addf %2086, %2089 : vector<8x16xf32>
    %c3_1215 = arith.constant 3 : index
    %c7_1216 = arith.constant 7 : index
    %2091 = memref.load %arg7[%c3_1215, %c7_1216] : memref<4x16xf32, #tpu.memory_space<smem>>
    %2092 = vector.broadcast %2091 : f32 to vector<8x16xf32>
    %2093 = arith.addf %2090, %2092 : vector<8x16xf32>
    %cst_1217 = arith.constant 0.000000e+00 : f32
    %2094 = vector.broadcast %cst_1217 : f32 to vector<8x16xf32>
    %2095 = arith.maximumf %2093, %2094 : vector<8x16xf32>
    %c3_1218 = arith.constant 3 : index
    %c7_1219 = arith.constant 7 : index
    %2096 = memref.load %arg8[%c3_1218, %c7_1219] : memref<4x16xf32, #tpu.memory_space<smem>>
    %2097 = vector.broadcast %2096 : f32 to vector<8x16xf32>
    %2098 = arith.mulf %2095, %2097 : vector<8x16xf32>
    %2099 = arith.addf %2083, %2098 : vector<8x16xf32>
    %c3_1220 = arith.constant 3 : index
    %c8_1221 = arith.constant 8 : index
    %2100 = memref.load %arg5[%c3_1220, %c8_1221] : memref<4x16xf32, #tpu.memory_space<smem>>
    %2101 = vector.broadcast %2100 : f32 to vector<8x16xf32>
    %2102 = arith.mulf %1967, %2101 : vector<8x16xf32>
    %c3_1222 = arith.constant 3 : index
    %c8_1223 = arith.constant 8 : index
    %2103 = memref.load %arg6[%c3_1222, %c8_1223] : memref<4x16xf32, #tpu.memory_space<smem>>
    %2104 = vector.broadcast %2103 : f32 to vector<8x16xf32>
    %2105 = arith.mulf %1123, %2104 : vector<8x16xf32>
    %2106 = arith.addf %2102, %2105 : vector<8x16xf32>
    %c3_1224 = arith.constant 3 : index
    %c8_1225 = arith.constant 8 : index
    %2107 = memref.load %arg7[%c3_1224, %c8_1225] : memref<4x16xf32, #tpu.memory_space<smem>>
    %2108 = vector.broadcast %2107 : f32 to vector<8x16xf32>
    %2109 = arith.addf %2106, %2108 : vector<8x16xf32>
    %cst_1226 = arith.constant 0.000000e+00 : f32
    %2110 = vector.broadcast %cst_1226 : f32 to vector<8x16xf32>
    %2111 = arith.maximumf %2109, %2110 : vector<8x16xf32>
    %c3_1227 = arith.constant 3 : index
    %c8_1228 = arith.constant 8 : index
    %2112 = memref.load %arg8[%c3_1227, %c8_1228] : memref<4x16xf32, #tpu.memory_space<smem>>
    %2113 = vector.broadcast %2112 : f32 to vector<8x16xf32>
    %2114 = arith.mulf %2111, %2113 : vector<8x16xf32>
    %2115 = arith.addf %2099, %2114 : vector<8x16xf32>
    %c3_1229 = arith.constant 3 : index
    %c9_1230 = arith.constant 9 : index
    %2116 = memref.load %arg5[%c3_1229, %c9_1230] : memref<4x16xf32, #tpu.memory_space<smem>>
    %2117 = vector.broadcast %2116 : f32 to vector<8x16xf32>
    %2118 = arith.mulf %1967, %2117 : vector<8x16xf32>
    %c3_1231 = arith.constant 3 : index
    %c9_1232 = arith.constant 9 : index
    %2119 = memref.load %arg6[%c3_1231, %c9_1232] : memref<4x16xf32, #tpu.memory_space<smem>>
    %2120 = vector.broadcast %2119 : f32 to vector<8x16xf32>
    %2121 = arith.mulf %1123, %2120 : vector<8x16xf32>
    %2122 = arith.addf %2118, %2121 : vector<8x16xf32>
    %c3_1233 = arith.constant 3 : index
    %c9_1234 = arith.constant 9 : index
    %2123 = memref.load %arg7[%c3_1233, %c9_1234] : memref<4x16xf32, #tpu.memory_space<smem>>
    %2124 = vector.broadcast %2123 : f32 to vector<8x16xf32>
    %2125 = arith.addf %2122, %2124 : vector<8x16xf32>
    %cst_1235 = arith.constant 0.000000e+00 : f32
    %2126 = vector.broadcast %cst_1235 : f32 to vector<8x16xf32>
    %2127 = arith.maximumf %2125, %2126 : vector<8x16xf32>
    %c3_1236 = arith.constant 3 : index
    %c9_1237 = arith.constant 9 : index
    %2128 = memref.load %arg8[%c3_1236, %c9_1237] : memref<4x16xf32, #tpu.memory_space<smem>>
    %2129 = vector.broadcast %2128 : f32 to vector<8x16xf32>
    %2130 = arith.mulf %2127, %2129 : vector<8x16xf32>
    %2131 = arith.addf %2115, %2130 : vector<8x16xf32>
    %c3_1238 = arith.constant 3 : index
    %c10_1239 = arith.constant 10 : index
    %2132 = memref.load %arg5[%c3_1238, %c10_1239] : memref<4x16xf32, #tpu.memory_space<smem>>
    %2133 = vector.broadcast %2132 : f32 to vector<8x16xf32>
    %2134 = arith.mulf %1967, %2133 : vector<8x16xf32>
    %c3_1240 = arith.constant 3 : index
    %c10_1241 = arith.constant 10 : index
    %2135 = memref.load %arg6[%c3_1240, %c10_1241] : memref<4x16xf32, #tpu.memory_space<smem>>
    %2136 = vector.broadcast %2135 : f32 to vector<8x16xf32>
    %2137 = arith.mulf %1123, %2136 : vector<8x16xf32>
    %2138 = arith.addf %2134, %2137 : vector<8x16xf32>
    %c3_1242 = arith.constant 3 : index
    %c10_1243 = arith.constant 10 : index
    %2139 = memref.load %arg7[%c3_1242, %c10_1243] : memref<4x16xf32, #tpu.memory_space<smem>>
    %2140 = vector.broadcast %2139 : f32 to vector<8x16xf32>
    %2141 = arith.addf %2138, %2140 : vector<8x16xf32>
    %cst_1244 = arith.constant 0.000000e+00 : f32
    %2142 = vector.broadcast %cst_1244 : f32 to vector<8x16xf32>
    %2143 = arith.maximumf %2141, %2142 : vector<8x16xf32>
    %c3_1245 = arith.constant 3 : index
    %c10_1246 = arith.constant 10 : index
    %2144 = memref.load %arg8[%c3_1245, %c10_1246] : memref<4x16xf32, #tpu.memory_space<smem>>
    %2145 = vector.broadcast %2144 : f32 to vector<8x16xf32>
    %2146 = arith.mulf %2143, %2145 : vector<8x16xf32>
    %2147 = arith.addf %2131, %2146 : vector<8x16xf32>
    %c3_1247 = arith.constant 3 : index
    %c11_1248 = arith.constant 11 : index
    %2148 = memref.load %arg5[%c3_1247, %c11_1248] : memref<4x16xf32, #tpu.memory_space<smem>>
    %2149 = vector.broadcast %2148 : f32 to vector<8x16xf32>
    %2150 = arith.mulf %1967, %2149 : vector<8x16xf32>
    %c3_1249 = arith.constant 3 : index
    %c11_1250 = arith.constant 11 : index
    %2151 = memref.load %arg6[%c3_1249, %c11_1250] : memref<4x16xf32, #tpu.memory_space<smem>>
    %2152 = vector.broadcast %2151 : f32 to vector<8x16xf32>
    %2153 = arith.mulf %1123, %2152 : vector<8x16xf32>
    %2154 = arith.addf %2150, %2153 : vector<8x16xf32>
    %c3_1251 = arith.constant 3 : index
    %c11_1252 = arith.constant 11 : index
    %2155 = memref.load %arg7[%c3_1251, %c11_1252] : memref<4x16xf32, #tpu.memory_space<smem>>
    %2156 = vector.broadcast %2155 : f32 to vector<8x16xf32>
    %2157 = arith.addf %2154, %2156 : vector<8x16xf32>
    %cst_1253 = arith.constant 0.000000e+00 : f32
    %2158 = vector.broadcast %cst_1253 : f32 to vector<8x16xf32>
    %2159 = arith.maximumf %2157, %2158 : vector<8x16xf32>
    %c3_1254 = arith.constant 3 : index
    %c11_1255 = arith.constant 11 : index
    %2160 = memref.load %arg8[%c3_1254, %c11_1255] : memref<4x16xf32, #tpu.memory_space<smem>>
    %2161 = vector.broadcast %2160 : f32 to vector<8x16xf32>
    %2162 = arith.mulf %2159, %2161 : vector<8x16xf32>
    %2163 = arith.addf %2147, %2162 : vector<8x16xf32>
    %c3_1256 = arith.constant 3 : index
    %c12_1257 = arith.constant 12 : index
    %2164 = memref.load %arg5[%c3_1256, %c12_1257] : memref<4x16xf32, #tpu.memory_space<smem>>
    %2165 = vector.broadcast %2164 : f32 to vector<8x16xf32>
    %2166 = arith.mulf %1967, %2165 : vector<8x16xf32>
    %c3_1258 = arith.constant 3 : index
    %c12_1259 = arith.constant 12 : index
    %2167 = memref.load %arg6[%c3_1258, %c12_1259] : memref<4x16xf32, #tpu.memory_space<smem>>
    %2168 = vector.broadcast %2167 : f32 to vector<8x16xf32>
    %2169 = arith.mulf %1123, %2168 : vector<8x16xf32>
    %2170 = arith.addf %2166, %2169 : vector<8x16xf32>
    %c3_1260 = arith.constant 3 : index
    %c12_1261 = arith.constant 12 : index
    %2171 = memref.load %arg7[%c3_1260, %c12_1261] : memref<4x16xf32, #tpu.memory_space<smem>>
    %2172 = vector.broadcast %2171 : f32 to vector<8x16xf32>
    %2173 = arith.addf %2170, %2172 : vector<8x16xf32>
    %cst_1262 = arith.constant 0.000000e+00 : f32
    %2174 = vector.broadcast %cst_1262 : f32 to vector<8x16xf32>
    %2175 = arith.maximumf %2173, %2174 : vector<8x16xf32>
    %c3_1263 = arith.constant 3 : index
    %c12_1264 = arith.constant 12 : index
    %2176 = memref.load %arg8[%c3_1263, %c12_1264] : memref<4x16xf32, #tpu.memory_space<smem>>
    %2177 = vector.broadcast %2176 : f32 to vector<8x16xf32>
    %2178 = arith.mulf %2175, %2177 : vector<8x16xf32>
    %2179 = arith.addf %2163, %2178 : vector<8x16xf32>
    %c3_1265 = arith.constant 3 : index
    %c13_1266 = arith.constant 13 : index
    %2180 = memref.load %arg5[%c3_1265, %c13_1266] : memref<4x16xf32, #tpu.memory_space<smem>>
    %2181 = vector.broadcast %2180 : f32 to vector<8x16xf32>
    %2182 = arith.mulf %1967, %2181 : vector<8x16xf32>
    %c3_1267 = arith.constant 3 : index
    %c13_1268 = arith.constant 13 : index
    %2183 = memref.load %arg6[%c3_1267, %c13_1268] : memref<4x16xf32, #tpu.memory_space<smem>>
    %2184 = vector.broadcast %2183 : f32 to vector<8x16xf32>
    %2185 = arith.mulf %1123, %2184 : vector<8x16xf32>
    %2186 = arith.addf %2182, %2185 : vector<8x16xf32>
    %c3_1269 = arith.constant 3 : index
    %c13_1270 = arith.constant 13 : index
    %2187 = memref.load %arg7[%c3_1269, %c13_1270] : memref<4x16xf32, #tpu.memory_space<smem>>
    %2188 = vector.broadcast %2187 : f32 to vector<8x16xf32>
    %2189 = arith.addf %2186, %2188 : vector<8x16xf32>
    %cst_1271 = arith.constant 0.000000e+00 : f32
    %2190 = vector.broadcast %cst_1271 : f32 to vector<8x16xf32>
    %2191 = arith.maximumf %2189, %2190 : vector<8x16xf32>
    %c3_1272 = arith.constant 3 : index
    %c13_1273 = arith.constant 13 : index
    %2192 = memref.load %arg8[%c3_1272, %c13_1273] : memref<4x16xf32, #tpu.memory_space<smem>>
    %2193 = vector.broadcast %2192 : f32 to vector<8x16xf32>
    %2194 = arith.mulf %2191, %2193 : vector<8x16xf32>
    %2195 = arith.addf %2179, %2194 : vector<8x16xf32>
    %c3_1274 = arith.constant 3 : index
    %c14_1275 = arith.constant 14 : index
    %2196 = memref.load %arg5[%c3_1274, %c14_1275] : memref<4x16xf32, #tpu.memory_space<smem>>
    %2197 = vector.broadcast %2196 : f32 to vector<8x16xf32>
    %2198 = arith.mulf %1967, %2197 : vector<8x16xf32>
    %c3_1276 = arith.constant 3 : index
    %c14_1277 = arith.constant 14 : index
    %2199 = memref.load %arg6[%c3_1276, %c14_1277] : memref<4x16xf32, #tpu.memory_space<smem>>
    %2200 = vector.broadcast %2199 : f32 to vector<8x16xf32>
    %2201 = arith.mulf %1123, %2200 : vector<8x16xf32>
    %2202 = arith.addf %2198, %2201 : vector<8x16xf32>
    %c3_1278 = arith.constant 3 : index
    %c14_1279 = arith.constant 14 : index
    %2203 = memref.load %arg7[%c3_1278, %c14_1279] : memref<4x16xf32, #tpu.memory_space<smem>>
    %2204 = vector.broadcast %2203 : f32 to vector<8x16xf32>
    %2205 = arith.addf %2202, %2204 : vector<8x16xf32>
    %cst_1280 = arith.constant 0.000000e+00 : f32
    %2206 = vector.broadcast %cst_1280 : f32 to vector<8x16xf32>
    %2207 = arith.maximumf %2205, %2206 : vector<8x16xf32>
    %c3_1281 = arith.constant 3 : index
    %c14_1282 = arith.constant 14 : index
    %2208 = memref.load %arg8[%c3_1281, %c14_1282] : memref<4x16xf32, #tpu.memory_space<smem>>
    %2209 = vector.broadcast %2208 : f32 to vector<8x16xf32>
    %2210 = arith.mulf %2207, %2209 : vector<8x16xf32>
    %2211 = arith.addf %2195, %2210 : vector<8x16xf32>
    %c3_1283 = arith.constant 3 : index
    %c15_1284 = arith.constant 15 : index
    %2212 = memref.load %arg5[%c3_1283, %c15_1284] : memref<4x16xf32, #tpu.memory_space<smem>>
    %2213 = vector.broadcast %2212 : f32 to vector<8x16xf32>
    %2214 = arith.mulf %1967, %2213 : vector<8x16xf32>
    %c3_1285 = arith.constant 3 : index
    %c15_1286 = arith.constant 15 : index
    %2215 = memref.load %arg6[%c3_1285, %c15_1286] : memref<4x16xf32, #tpu.memory_space<smem>>
    %2216 = vector.broadcast %2215 : f32 to vector<8x16xf32>
    %2217 = arith.mulf %1123, %2216 : vector<8x16xf32>
    %2218 = arith.addf %2214, %2217 : vector<8x16xf32>
    %c3_1287 = arith.constant 3 : index
    %c15_1288 = arith.constant 15 : index
    %2219 = memref.load %arg7[%c3_1287, %c15_1288] : memref<4x16xf32, #tpu.memory_space<smem>>
    %2220 = vector.broadcast %2219 : f32 to vector<8x16xf32>
    %2221 = arith.addf %2218, %2220 : vector<8x16xf32>
    %cst_1289 = arith.constant 0.000000e+00 : f32
    %2222 = vector.broadcast %cst_1289 : f32 to vector<8x16xf32>
    %2223 = arith.maximumf %2221, %2222 : vector<8x16xf32>
    %c3_1290 = arith.constant 3 : index
    %c15_1291 = arith.constant 15 : index
    %2224 = memref.load %arg8[%c3_1290, %c15_1291] : memref<4x16xf32, #tpu.memory_space<smem>>
    %2225 = vector.broadcast %2224 : f32 to vector<8x16xf32>
    %2226 = arith.mulf %2223, %2225 : vector<8x16xf32>
    %2227 = arith.addf %2211, %2226 : vector<8x16xf32>
    %cst_1292 = arith.constant dense<0xFF800000> : vector<8xf32>
    %2228 = vector.multi_reduction <maximumf>, %2227, %cst_1292 [1] : vector<8x16xf32> to vector<8xf32>
    %2229 = vector.shape_cast %2228 : vector<8xf32> to vector<8x1xf32>
    %2230 = vector.broadcast %2229 : vector<8x1xf32> to vector<8x16xf32>
    %2231 = arith.subf %2227, %2230 : vector<8x16xf32>
    %2232 = math.exp %2231 : vector<8x16xf32>
    %cst_1293 = arith.constant dense<0.000000e+00> : vector<8xf32>
    %2233 = vector.multi_reduction <add>, %2232, %cst_1293 [1] : vector<8x16xf32> to vector<8xf32>
    %2234 = vector.shape_cast %2233 : vector<8xf32> to vector<8x1xf32>
    %cst_1294 = arith.constant dense<0.000000e+00> : vector<8x8xf32>
    %2235 = tpu.matmul %2232, %1966, %cst_1294 {dimension_numbers = #tpu.dot_dimension_numbers<[1], [0], [0], [1], [0, 0, 1, 1], [], []>} : vector<8x16xf32>, vector<16x8xf32>, vector<8x8xf32> -> vector<8x8xf32>
    %cst_1295 = arith.constant 1.000000e+00 : f32
    %2236 = vector.broadcast %cst_1295 : f32 to vector<8x1xf32>
    %2237 = arith.divf %2236, %2234 : vector<8x1xf32>
    %2238 = vector.broadcast %2237 : vector<8x1xf32> to vector<8x8xf32>
    %2239 = arith.mulf %2235, %2238 : vector<8x8xf32>
    %2240 = tpu.concatenate %1402, %1681, %1960, %2239 in 1 : vector<8x8xf32>, vector<8x8xf32>, vector<8x8xf32>, vector<8x8xf32> -> vector<8x32xf32>
    %c1_1296 = arith.constant 1 : index
    %c0_1297 = arith.constant 0 : index
    %c0_1298 = arith.constant 0 : index
    %2241 = vector.load %arg10[%c1_1296, %c0_1297, %c0_1298] : memref<2x8x32xf32, #tpu.memory_space<vmem>>, vector<1x8x32xf32>
    %2242 = vector.shape_cast %2241 : vector<1x8x32xf32> to vector<8x32xf32>
    %2243 = vector.shape_cast %2240 : vector<8x32xf32> to vector<1x8x32xf32>
    tpu.vector_store %arg10[%c1_1296, %c0_1297, %c0_1298], %2243 {strides = array<i32>} : memref<2x8x32xf32, #tpu.memory_space<vmem>>, vector<1x8x32xf32>,
    return
  }
  func.func @transform_0(%arg0: i32) -> (i32, i32, i32, i32) {
    %c0_i32 = arith.constant 0 : i32
    %c0_i32_0 = arith.constant 0 : i32
    %c0_i32_1 = arith.constant 0 : i32
    %c0_i32_2 = arith.constant 0 : i32
    return %arg0, %c0_i32, %c0_i32_0, %c0_i32_1 : i32, i32, i32, i32
  }
  func.func @transform_1(%arg0: i32) -> (i32, i32, i32, i32) {
    %c0_i32 = arith.constant 0 : i32
    %c0_i32_0 = arith.constant 0 : i32
    %c0_i32_1 = arith.constant 0 : i32
    %c0_i32_2 = arith.constant 0 : i32
    return %arg0, %c0_i32, %c0_i32_0, %c0_i32_1 : i32, i32, i32, i32
  }
  func.func @transform_2(%arg0: i32) -> (i32, i32, i32, i32) {
    %c0_i32 = arith.constant 0 : i32
    %c0_i32_0 = arith.constant 0 : i32
    %c0_i32_1 = arith.constant 0 : i32
    %c0_i32_2 = arith.constant 0 : i32
    return %arg0, %c0_i32, %c0_i32_0, %c0_i32_1 : i32, i32, i32, i32
  }
  func.func @transform_3(%arg0: i32) -> (i32, i32, i32) {
    %c0_i32 = arith.constant 0 : i32
    %c0_i32_0 = arith.constant 0 : i32
    %c0_i32_1 = arith.constant 0 : i32
    return %arg0, %c0_i32, %c0_i32_0 : i32, i32, i32
  }
  func.func @transform_4(%arg0: i32) -> (i32, i32) {
    %c0_i32 = arith.constant 0 : i32
    %c0_i32_0 = arith.constant 0 : i32
    %c0_i32_1 = arith.constant 0 : i32
    return %c0_i32, %c0_i32_0 : i32, i32
  }
  func.func @transform_5(%arg0: i32) -> (i32, i32) {
    %c0_i32 = arith.constant 0 : i32
    %c0_i32_0 = arith.constant 0 : i32
    %c0_i32_1 = arith.constant 0 : i32
    return %c0_i32, %c0_i32_0 : i32, i32
  }
  func.func @transform_6(%arg0: i32) -> (i32, i32) {
    %c0_i32 = arith.constant 0 : i32
    %c0_i32_0 = arith.constant 0 : i32
    %c0_i32_1 = arith.constant 0 : i32
    return %c0_i32, %c0_i32_0 : i32, i32
  }
  func.func @transform_7(%arg0: i32) -> (i32, i32) {
    %c0_i32 = arith.constant 0 : i32
    %c0_i32_0 = arith.constant 0 : i32
    %c0_i32_1 = arith.constant 0 : i32
    return %c0_i32, %c0_i32_0 : i32, i32
  }
  func.func @transform_8(%arg0: i32) -> i32 {
    %c0_i32 = arith.constant 0 : i32
    %c0_i32_0 = arith.constant 0 : i32
    return %c0_i32 : i32
  }
  func.func @transform_9(%arg0: i32) -> (i32, i32, i32) {
    %c0_i32 = arith.constant 0 : i32
    %c0_i32_0 = arith.constant 0 : i32
    %c0_i32_1 = arith.constant 0 : i32
    return %arg0, %c0_i32, %c0_i32_0 : i32, i32, i32
  }
}

</mosaic_0001>

<bundles_post_ra>
// kernel: tpu_custom_call.1
= control target key start
LH: loop header
LB: loop body
LE: loop exit
PB: predicated region body
PF: predicated region fallthrough
CT: control target
= control target key end

     0   :  { %s7736_s0 = inlined_call_operand.vmem [shape: f32[4,4,8,8], index: 0, kind: input, shape index: {}]   ;;  %s7737_s1 = inlined_call_operand.vmem [shape: f32[4,4,16,8], index: 1, kind: input, shape index: {}]   ;;  %s7738_s2 = inlined_call_operand.vmem [shape: f32[4,4,16,8], index: 2, kind: input, shape index: {}]   ;;  %s7739_s3 = inlined_call_operand.vmem [shape: f32[4,8,16], index: 3, kind: input, shape index: {}]   ;;  %s7740_s4 = inlined_call_operand.vmem [shape: f32[4,16], index: 4, kind: input, shape index: {}]   ;;  %s7741_s5 = inlined_call_operand.vmem [shape: f32[4,16], index: 5, kind: input, shape index: {}]   ;;  %s7742_s6 = inlined_call_operand.vmem [shape: f32[4,16], index: 6, kind: input, shape index: {}]   ;;  %s7743_s7 = inlined_call_operand.vmem [shape: f32[4,16], index: 7, kind: input, shape index: {}]   ;;  %s7744_s8 = inlined_call_operand.vmem [shape: f32[4], index: 8, kind: input, shape index: {}]   ;;  %s7745_s9 = inlined_call_operand.hbm [shape: f32[4,8,32], index: 9, kind: output, shape index: {}]  }
   0x1   :  { %7817 = sst [smem:[#allocation36_spill]] %s7736_s0 }
   0x2   :  { %7818 = sst [smem:[#allocation37_spill]] %s7737_s1 }
   0x3   :  { %7819 = sst [smem:[#allocation38_spill]] %s7738_s2 }
   0x4   :  { %7820 = sst [smem:[#allocation39_spill]] %s7739_s3 }
   0x5   :  { %7821 = sst [smem:[#allocation40_spill]] %s7740_s4 }
   0x6   :  { %7822 = sst [smem:[#allocation41_spill]] %s7741_s5 }
   0x7   :  { %7823 = sst [smem:[#allocation42_spill]] %s7742_s6 }
   0x8   :  { %7824 = sst [smem:[#allocation43_spill]] %s7743_s7 }
   0x9   :  { %7825 = sst [smem:[#allocation44_spill]] %s7744_s8 }
   0xa   :  { %7826 = sst [smem:[#allocation45_spill]] %s7745_s9 }
   0xb   :  { %14 = vsyncpa [#allocation4], 0 }
   0xc   :  { %15 = vsyncpa [#allocation6], 0 }
   0xd   :  { %16 = vsyncpa [#allocation9], 0 }
   0xe   :  { %17 = vsyncpa [#allocation3], 0 }
   0xf   :  { %19 = vsyncpa [#allocation3 + $0x1], 0  ;;  %s5107_s30 = smov 0   ;;  %s5109_s10 = smov 0  }
  0x10   :  { %s5111_s11 = smov 0   ;;  %s5113_s12 = smov 0  }
  0x11 LB: > { %7827 = sst [smem:[#allocation16_spill]] %s5031_s30  ;;  %s5128_s13 = sadd.s32 4294967295, %s5043_s12   ;;  %s5043_s12 = sphi %s5113_s12, %s7989_s12   ;;  %s5039_s11 = sphi %s5111_s11, %s7992_s11   ;;  %s5035_s10 = sphi %s5109_s10, %s7991_s10   ;;  %s5031_s30 = sphi %s5107_s30, %s7990_s30  }
  0x12   : > { %7828 = sst [smem:[#allocation17_spill]] %s5035_s10  ;;  %s3992_s14 = sadd.s32 4294967294, %s5043_s12  }
  0x13   : > { %7829 = sst [smem:[#allocation18_spill]] %s5039_s11  ;;  %s5132_s15 = sadd.s32 1, %s5043_s12  }
  0x14   : > { %7830 = sst [smem:[#allocation19_spill]] %s5043_s12  ;;  %s241_s16 = sadd.s32 1, %s5039_s11 }
  0x15   : > { %7831 = sst [smem:[#allocation20_spill]] %s5128_s13  ;;  %s238_s17 = ssub.s32 %s5043_s12, %s5132_s15 }
  0x16   : > { %7832 = sst [smem:[#allocation21_spill]] %s5132_s15  ;;  %p251_p0 = scmp.ne.s32.totalorder %s5039_s11, %s5035_s10 }
  0x17   : > { %p239_p1 = scmp.eq.s32.totalorder %s238_s17, 0  ;;  %p252_p2 = scmp.eq.s32.totalorder %s5128_s13, 1 }
  0x18   : > { %p257_p3 = scmp.ne.s32.totalorder %s5035_s10, %s5031_s30  ;;  %p258_p4 = scmp.eq.s32.totalorder %s3992_s14, 1 }
  0x19   : > { %s5143_s18 = scalar_select %p239_p1, %s5039_s11, %s241_s16  }
  0x1a   : > { %p5145_p5 = por %p252_p2, %p251_p0  ;;  %p5149_p6 = por %p258_p4, %p257_p3 }
  0x1b   : > { %7833 = sst [smem:[#allocation22_spill]] %s5143_s18  ;;  %p3993_p7 = scmp.ge.s32.totalorder %s5043_s12, 1 }
  0x1c   : > { %s7834_s19 = scalar_select %p5145_p5, 1, 0 }
  0x1d   : > { %s7836_s20 = scalar_select %p5149_p6, 1, 0 }
  0x1e   : > { %7835 = sst [smem:[#allocation23_spill]] %s7834_s19  ;;  %p265_p8 = scmp.lt.s32.totalorder %s5043_s12, 3 }
  0x1f   : > { %7837 = sst [smem:[#allocation24_spill]] %s7836_s20  ;;  %p7746_p9 = scmp.eq.s32.totalorder %s5128_s13, 0 }
  0x20   : > { %p5156_p10 = pnand %p3993_p7, %p265_p8  ;;  %s7839_s5 = sld [smem:[#allocation41_spill]] }
  0x21   : > { %s7840_s7 = sld [smem:[#allocation43_spill]] }
  0x22   : > { %s7838_s21 = scalar_select %p5156_p10, 1, 0 }
  0x23   : > { %p4788_p11 = pneg %p5156_p10  ;;  %s7842_s4 = sld [smem:[#allocation40_spill]] }
  0x24   : > { %s7843_s6 = sld [smem:[#allocation42_spill]] }
  0x25   : > { %p5170_p12 = pnand %p7746_p9, %p4788_p11 }
  0x26   : > { %s289_s24 = sshll.u32 %s7839_s5, 4  ;;  %s290_s24 = int_to_ptr.vmem [resolvable:$true] %s289_s24 }
  0x27   : > { %s311_s27 = sshll.u32 %s7840_s7, 4  ;;  %s4896_s5 = scalar_lea.vmem %s290_s24, 64  ;;  %s312_s27 = int_to_ptr.vmem [resolvable:$true] %s311_s27 }
  0x28   : > { %p4897_p13 = scmp.ne.s32.totalorder %s290_s24, %s4896_s5  ;;  %p5184_p0 = pneg %p5170_p12 }
  0x29   : > { %s278_s16 = sshll.u32 %s7842_s4, 4  ;;  %p4904_p3 = scmp.lt.s32.totalorder %s290_s24, %s290_s24  ;;  %s5177_s16 = int_to_ptr.vmem [resolvable:$true] %s278_s16 }
  0x2a   : > { %s300_s23 = sshll.u32 %s7843_s6, 4  ;;  %p4899_p1 = pnand %p5184_p0, %p4897_p13  ;;  %s301_s23 = int_to_ptr.vmem [resolvable:$true] %s300_s23 }
  0x2b   : > { %p4905_p4 = scmp.lt.s32.totalorder %s4896_s5, %s4896_s5 }
  0x2c   : > { %p4900_p2 = pneg %p4899_p1 }
  0x2d   : > { %p4906_p7 = por %p4905_p4, %p4904_p3 }
  0x2f   : > { %p4907_p8 = pnand %p4906_p7, %p4900_p2 }
  0x31   : > { %4910 = shalt.err (!%p4907_p8)
}
  0x32   : > { %s5045_s26 = smov [#allocation5]   ;;  %s4911_s29 = scalar_lea.vmem %s312_s27, 64 }
  0x33   : > { %4794 = dma.vmem_to_smem (!%p5170_p12), %s290_s24, 64, %s5045_s26, [#allocation6]  }
  0x34   : > { %p4912_p11 = scmp.ne.s32.totalorder %s312_s27, %s4911_s29  ;;  %p4919_p5 = scmp.lt.s32.totalorder %s312_s27, %s312_s27 }
  0x35   : > { %p4920_p10 = scmp.lt.s32.totalorder %s4911_s29, %s4911_s29 }
  0x36   : > { %p4914_p9 = pnand %p4912_p11, %p5184_p0 }
  0x37   : > { %p4921_p13 = por %p4920_p10, %p4919_p5 }
  0x38   : > { %p4915_p6 = pneg %p4914_p9 }
  0x3a   : > { %p4922_p1 = pnand %p4921_p13, %p4915_p6 }
  0x3c   : > { %4925 = shalt.err (!%p4922_p1)
}
  0x3d   : > { %s5046_s14 = smov [#allocation8]   ;;  %s4926_s5 = scalar_lea.vmem %s5177_s16, 64 }
  0x3e   : > { %4800 = dma.vmem_to_smem (!%p5170_p12), %s312_s27, 64, %s5046_s14, [#allocation9]  }
  0x3f   : > { %p4927_p2 = scmp.ne.s32.totalorder %s5177_s16, %s4926_s5  ;;  %p4934_p9 = scmp.lt.s32.totalorder %s5177_s16, %s5177_s16 }
  0x40   : > { %p4935_p7 = scmp.lt.s32.totalorder %s4926_s5, %s4926_s5 }
  0x41   : > { %p4929_p3 = pnand %p4927_p2, %p5184_p0 }
  0x42   : > { %p4936_p8 = por %p4935_p7, %p4934_p9 }
  0x43   : > { %p4930_p4 = pneg %p4929_p3 }
  0x45   : > { %p4937_p5 = pnand %p4936_p8, %p4930_p4 }
  0x47   : > { %4940 = shalt.err (!%p4937_p5)
}
  0x48   : > { %s5047_s24 = smov [#allocation2]   ;;  %s4941_s27 = scalar_lea.vmem %s301_s23, 64 }
  0x49   : > { %4791 = dma.vmem_to_smem (!%p5170_p12), %s5177_s16, 64, %s5047_s24, [#allocation4]  }
  0x4a   : > { %p4942_p6 = scmp.ne.s32.totalorder %s301_s23, %s4941_s27  ;;  %p4949_p13 = scmp.lt.s32.totalorder %s301_s23, %s301_s23 }
  0x4b   : > { %p4950_p1 = scmp.lt.s32.totalorder %s4941_s27, %s4941_s27 }
  0x4c   : > { %p4944_p10 = pnand %p4942_p6, %p5184_p0 }
  0x4d   : > { %p4951_p2 = por %p4950_p1, %p4949_p13 }
  0x4e   : > { %p4945_p11 = pneg %p4944_p10 }
  0x50   : > { %p4952_p3 = pnand %p4951_p2, %p4945_p11 }
  0x52   : > { %4955 = shalt.err (!%p4952_p3)
}
  0x53   : > { %s5048_s26 = smov [#allocation7]   ;;  %s7845_s8 = sld [smem:[#allocation44_spill]] }
  0x54   : > { %4797 = dma.vmem_to_smem (!%p5170_p12), %s301_s23, 64, %s5048_s26, [#allocation6]  }
  0x59   : > { %s322_s14 = sshll.u32 %s7845_s8, 4  ;;  %s323_s14 = int_to_ptr.vmem [resolvable:$true] %s322_s14 }
  0x5a   : > { %s4956_s5 = scalar_lea.vmem %s323_s14, 16  ;;  %p4964_p8 = scmp.lt.s32.totalorder %s323_s14, %s323_s14 }
  0x5b   : > { %p4957_p4 = scmp.ne.s32.totalorder %s323_s14, %s4956_s5  ;;  %p4965_p5 = scmp.lt.s32.totalorder %s4956_s5, %s4956_s5 }
  0x5d   : > { %p4959_p9 = pnand %p4957_p4, %p5184_p0  ;;  %p4966_p6 = por %p4965_p5, %p4964_p8 }
  0x5f   : > { %p4960_p7 = pneg %p4959_p9 }
  0x61   : > { %p4967_p10 = pnand %p4966_p6, %p4960_p7 }
  0x63   : > { %4970 = shalt.err (!%p4967_p10)
}
  0x64   : > { %s5049_s24 = smov [#allocation10]   ;;  %p7846_p11 = scmp.ne.s32.totalorder %s7838_s21, 0 }
  0x65   : > { %4803 = dma.vmem_to_smem (!%p5170_p12), %s323_s14, 16, %s5049_s24, [#allocation9]  }
  0x66   : > { %374 = sbr.rel (%p7846_p11) target bundleno = 3652 (0xe44), region = 56 }
  0x6b   : > { %p7847_p13 = scmp.eq.s32.totalorder %s5128_s13, 0 }
  0x6d   : > { %5014 = dma.done.wait (%p7847_p13), [#allocation4], 64   ;;  %p7848_p1 = pmov %p7847_p13 }
  0x6f   : > { %5016 = vsyncadd (%p7848_p1), [#allocation4], 4294967232  ;;  %p7849_p0 = pmov %p7848_p1 }
  0x71   : > { %5018 = dma.done.wait (%p7849_p0), [#allocation6], 128   ;;  %p7850_p2 = pmov %p7849_p0 }
  0x72   : > { %p7851_p3 = pmov %p7849_p0 }
  0x73   : > { %5020 = vsyncadd (%p7850_p2), [#allocation6], 4294967168 }
  0x74   : > { %5022 = dma.done.wait (%p7851_p3), [#allocation9], 80   ;;  %p7852_p12 = pmov %p7849_p0 }
  0x76   : > { %5024 = vsyncadd (%p7852_p12), [#allocation9], 4294967216 }
  0x77   : > { %396 = sfence }
  0x78   : > { %s4007_s21 = sshll.u32 %s5128_s13, 1  ;;  %v5050_v0 = vmov 0.0   ;;  %vm5051_vm0 = vmmov 0   ;;  %vm479_vm1 = vcmask 64512   ;;  %s7854_s1 = sld [smem:[#allocation37_spill]]  ;;  %vm802_vm2 = vcmask 130048  }
  0x79   : > { %4654 = vmatprep.subr.mxu0 %v5050_v0  ;;  %p446_p4 = scmp.lt.s32.totalorder %s4007_s21, 3  ;;  %4658 = vmatprep.mubr.msk.f32.mxu0 %vm5051_vm0, %v5050_v0  ;;  %s7856_s0 = sld [smem:[#allocation36_spill]]  ;;  %vm2147_vm3 = vcmask 195584   ;;  %vm2149_vm4 = vcmask 261120  }
  0x7a   : > { %4661 = vmatprep.subr.mxu1 %v5050_v0  ;;  %4665 = vmatprep.mubr.msk.f32.mxu1 %vm5051_vm0, %v5050_v0  ;;  %s5267_s29 = sld [smem:[#allocation2]] }
  0x7b   : > { %s7994_s21 = smov (!%p446_p4, %s4007_s21), 3  ;;  %s5269_s14 = sld [smem:[#allocation5]] }
  0x7c   : > { %7853 = sst [smem:[#allocation25_spill]] %s7994_s21  ;;  %s7749_s28 = sshll.u32 %s7994_s21, 6 }
  0x7d   : > { %s4602_s22 = sshll.u32 %s7994_s21, 5  ;;  %s5271_s5 = sld [smem:[#allocation2 + $0x1]] }
  0x7e   : > { %s5249_s17 = scalar_lea.vmem %s7854_s1, %s7749_s28  ;;  %s5273_s24 = sld [smem:[#allocation5 + $0x1]] }
  0x7f   : > { %7855 = sst [smem:[#allocation26_spill]] %s5249_s17  ;;  %v476_v1 = vld [vmem:[%s5249_s17 + $0x8] sm:$0xff]  ;;  %v475_v2 = vld [vmem:[%s5249_s17] sm:$0xff]  ;;  %s5259_s16 = scalar_lea.vmem %s7856_s0, %s4602_s22 }
  0x80   : > { %4655 = vmatpush3.xpose.msk.msra.mxu0 %vm479_vm1, %v476_v1  ;;  %7857 = sst [smem:[#allocation27_spill]] %s5259_s16  ;;  %v474_v3 = vld [vmem:[%s5259_s16] sm:$0xff]  ;;  %s4017_s16 = sshll.u32 %s7994_s21, 3  ;;  %v563_v8 = vstv %s5267_s29 }
  0x81   : > { %4656 = vmatprep.subr.mxu0 %v5050_v0  ;;  %s5275_s23 = sld [smem:[#allocation7]]  ;;  %v566_v5 = vstv %s5269_s14 }
  0x82   : > { %s5277_s25 = sld [smem:[#allocation7 + $0x1]] }
  0x83   : > { %s5279_s22 = sld [smem:[#allocation2 + $0x2]]  ;;  %v578_v11 = vstv %s5271_s5 }
  0x84   : > { %4657 = vmatpush3.xpose.msk.msra.mxu0 %vm479_vm1, %v475_v2  ;;  %s5281_s27 = sld [smem:[#allocation5 + $0x2]]  ;;  %v581_v6 = vstv %s5273_s24 }
  0x85   : > { %4675 = vmatprep.subr.mxu0 %v5050_v0  ;;  %s5283_s26 = sld [smem:[#allocation10]] }
  0x86   : > { %s5285_s28 = sld [smem:[#allocation8]] }
  0x87   : > { %4659 = vmatmul.mubr.msk.f32.vlgmr.msra.gmra.mxu0 %vm479_vm1, %v474_v3  ;;  %s5287_s0 = sld [smem:[#allocation8 + $0x1]]  ;;  %v570_v10 = vstv %s5275_s23 }
  0x88   : > { %4679 = vmatprep.mubr.msk.f32.mxu0 %vm5051_vm0, %v5050_v0  ;;  %s5289_s1 = sld [smem:[#allocation7 + $0x2]]  ;;  %v585_v13 = vstv %s5277_s25 }
  0x89   : > { %s5291_s4 = sld [smem:[#allocation8 + $0x2]]  ;;  %v593_v14 = vstv %s5279_s22 }
  0x8a   : > { %s5293_s6 = sld [smem:[#allocation2 + $0x3]]  ;;  %v596_v7 = vstv %s5281_s27 }
  0x8b   : > { %s5295_s7 = sld [smem:[#allocation5 + $0x3]]  ;;  %v560_v16 = vstv %s5283_s26 }
  0x8c   : > { %s5297_s8 = sld [smem:[#allocation7 + $0x3]]  ;;  %v574_v17 = vstv %s5285_s28 }
  0x8d   : > { %s5299_s18 = sld [smem:[#allocation8 + $0x3]]  ;;  %v589_v20 = vstv %s5287_s0 }
  0x8e   : > { %s5301_s11 = sld [smem:[#allocation2 + $0x4]]  ;;  %v600_v21 = vstv %s5289_s1 }
  0x8f   : > { %s5303_s15 = sld [smem:[#allocation5 + $0x4]]  ;;  %v604_v22 = vstv %s5291_s4 }
  0x90   : > { %s5305_s20 = sld [smem:[#allocation7 + $0x4]]  ;;  %v608_v24 = vstv %s5293_s6 }
  0x91   : > { %s5307_s30 = sld [smem:[#allocation8 + $0x4]]  ;;  %v611_v15 = vstv %s5295_s7 }
  0x92   : > { %s5309_s12 = sld [smem:[#allocation2 + $0x5]]  ;;  %v615_v26 = vstv %s5297_s8 }
  0x93   : > { %s5311_s9 = sld [smem:[#allocation5 + $0x5]]  ;;  %v619_v27 = vstv %s5299_s18 }
  0x94   : > { %7858 = sst [smem:[#allocation28_spill]] %s5301_s11 }
  0x95   : > { %s5313_s19 = sld [smem:[#allocation7 + $0x5]]  ;;  %v626_v19 = vstv %s5303_s15 }
  0x96   : > { %7859 = sst [smem:[#allocation29_spill]] %s5305_s20 }
  0x97   : > { %7860 = sst [smem:[#allocation30_spill]] %s5307_s30 }
  0x98   : > { %7861 = sst [smem:[#allocation31_spill]] %s5309_s12 }
  0x99   : > { %s5315_s13 = sld [smem:[#allocation8 + $0x5]]  ;;  %v641_v23 = vstv %s5311_s9 }
  0x9a   : > { %s5317_s10 = sld [smem:[#allocation2 + $0x6]] }
  0x9b   : > { %7862 = sst [smem:[#allocation32_spill]] %s5313_s19 }
  0x9c   : > { %s5320_s2 = sld [smem:[#allocation5 + $0x6]] }
  0x9d   : > { %s5322_s17 = sld [smem:[#allocation7 + $0x6]] }
  0x9e   : > { %s5324_s30 = sld [smem:[#allocation8 + $0x6]] }
  0x9f   : > { %s7865_s3 = sld [smem:[#allocation39_spill]]  ;;  %v649_v37 = vstv %s5315_s13 }
  0xa0   : > { %7863 = sst [smem:[#allocation33_spill]] %s5317_s10 }
  0xa1   : > { %s5331_s19 = sld [smem:[#allocation2 + $0x7]] }
  0xa2   : > { %s5333_s10 = sld [smem:[#allocation5 + $0x7]]  ;;  %v656_v31 = vstv %s5320_s2 }
  0xa3   : > { %s5335_s21 = sld [smem:[#allocation7 + $0x7]]  ;;  %v660_v41 = vstv %s5322_s17 }
  0xa4   : > { %7864 = sst [smem:[#allocation34_spill]] %s5324_s30 }
  0xa5   : > { %s5329_s11 = scalar_lea.vmem %s7865_s3, %s4017_s16  ;;  %s5341_s30 = sld [smem:[#allocation8 + $0x7]] }
  0xa6   : > { %7866 = sst [smem:[#allocation35_spill]] %s5329_s11  ;;  %v5338_v4 = vld [vmem:[%s5329_s11] sm:$0xff] }
  0xa7   : > { %s5344_s12 = sld [smem:[#allocation2 + $0x8]]  ;;  %v5351_v9 = vmul.f32 %v566_v5, %v5338_v4  ;;  %v5358_v12 = vmul.f32 %v581_v6, %v5338_v4  ;;  %v597_v18 = vmul.f32 %v596_v7, %v5338_v4  ;;  %v612_v25 = vmul.f32 %v611_v15, %v5338_v4 }
  0xa8   : > { %s5347_s20 = sld [smem:[#allocation5 + $0x8]]  ;;  %v627_v29 = vmul.f32 %v626_v19, %v5338_v4  ;;  %v642_v34 = vmul.f32 %v641_v23, %v5338_v4  ;;  %v671_v35 = vstv %s5333_s10  ;;  %v657_v40 = vmul.f32 %v656_v31, %v5338_v4 }
  0xa9   : > { %s5355_s16 = sld [smem:[#allocation7 + $0x8]]  ;;  %v668_v43 = vstv %s5331_s19  ;;  %v672_v44 = vmul.f32 %v671_v35, %v5338_v4  ;;  %v675_v45 = vstv %s5335_s21 }
  0xaa   : > { %s5363_s29 = sld [smem:[#allocation5 + $0x9]] }
  0xab   : > { %s7867_s14 = sld [smem:[#allocation28_spill]]  ;;  %v679_v46 = vstv %s5341_s30 }
  0xac   : > { %s7868_s24 = sld [smem:[#allocation29_spill]] }
  0xad   : > { %s5369_s5 = sld [smem:[#allocation8 + $0x8]]  ;;  %v683_v49 = vstv %s5344_s12 }
  0xae   : > { %s7869_s27 = sld [smem:[#allocation30_spill]]  ;;  %v686_v39 = vstv %s5347_s20 }
  0xaf   : > { %s7870_s3 = sld [smem:[#allocation31_spill]]  ;;  %v5417_v50 = vmul.f32 %v686_v39, %v5338_v4  ;;  %v690_v51 = vstv %s5355_s16 }
  0xb0   : > { %s5375_s7 = sld [smem:[#allocation2 + $0x9]]  ;;  %v701_v47 = vstv %s5363_s29 }
  0xb1   : > { %s7871_s22 = sld [smem:[#allocation32_spill]]  ;;  %v623_v28 = vstv %s7867_s14  ;;  %v702_v61 = vmul.f32 %v701_v47, %v5338_v4 }
  0xb2   : > { %s7872_s11 = sld [smem:[#allocation33_spill]]  ;;  %v630_v30 = vstv %s7868_s24 }
  0xb3   : > { %s5381_s15 = sld [smem:[#allocation7 + $0x9]]  ;;  %v694_v52 = vstv %s5369_s5 }
  0xb4   : > { %s7873_s1 = sld [smem:[#allocation34_spill]]  ;;  %v634_v32 = vstv %s7869_s27 }
  0xb5   : > { %s5387_s9 = sld [smem:[#allocation2 + $0xa]]  ;;  %v638_v33 = vstv %s7870_s3 }
  0xb6   : > { %s5393_s6 = sld [smem:[#allocation5 + $0xa]]  ;;  %v698_v60 = vstv %s5375_s7 }
  0xb7   : > { %v645_v36 = vstv %s7871_s22  ;;  %s5399_s2 = sld [smem:[#allocation5 + $0xb]] }
  0xb8   : > { %v653_v38 = vstv %s7872_s11  ;;  %s5405_s3 = sld [smem:[#allocation7 + $0xa]] }
  0xb9   : > { %s5411_s8 = sld [smem:[#allocation2 + $0xb]]  ;;  %v705_v6 = vstv %s5381_s15 }
  0xba   : > { %v664_v42 = vstv %s7873_s1  ;;  %s5421_s10 = sld [smem:[#allocation7 + $0xb]] }
  0xbb   : > { %s5427_s11 = sld [smem:[#allocation5 + $0xc]]  ;;  %v713_v19 = vstv %s5387_s9 }
  0xbc   : > { %s5433_s19 = sld [smem:[#allocation2 + $0xc]]  ;;  %v716_v7 = vstv %s5393_s6 }
  0xbd   : > { %s5440_s12 = sld [smem:[#allocation7 + $0xc]] }
  0xbe   : > { %s5447_s20 = sld [smem:[#allocation2 + $0xd]] }
  0xbf   : > { %s5451_s29 = sld [smem:[#allocation5 + $0xd]] }
  0xc0   : > { %s5455_s23 = sld [smem:[#allocation2 + $0xe]] }
  0xc1   : > { %s5461_s25 = sld [smem:[#allocation5 + $0xe]] }
  0xc2   : > { %s5470_s14 = sld [smem:[#allocation5 + $0xf]] }
  0xc3   : > { %s5482_s28 = sld [smem:[#allocation2 + $0xf]] }
  0xc4   : > { %s5492_s0 = sld [smem:[#allocation7 + $0xd]] }
  0xc5   : > { %s5499_s4 = sld [smem:[#allocation8 + $0x9]] }
  0xc6   : > { %s5505_s18 = sld [smem:[#allocation8 + $0xa]] }
  0xc7   : > { %s5510_s21 = sld [smem:[#allocation7 + $0xe]] }
  0xc8   : > { %s5517_s17 = sld [smem:[#allocation8 + $0xb]] }
  0xc9   : > { %s5524_s26 = sld [smem:[#allocation7 + $0xf]] }
  0xca   : > { %s5530_s13 = sld [smem:[#allocation8 + $0xc]] }
  0xcb   : > { %s5538_s16 = sld [smem:[#allocation8 + $0xd]] }
  0xcc   : > { %s4076_s30 = sld [smem:[#allocation8 + $0xe]] }
  0xcd   : > { %s4080_s24 = sld [smem:[#allocation8 + $0xf]] }
  0xce   : > { %s7874_s5 = sld [smem:[#allocation25_spill]] }
  0xcf   : > { %s7875_s27 = sld [smem:[#allocation26_spill]] }
  0xd0   : > { %s7877_s1 = sld [smem:[#allocation38_spill]] }
  0xd1   : > { %s7879_s6 = sld [smem:[#allocation27_spill]] }
  0xd2   : > { %s5626_s22 = sld [smem:[#allocation2 + $0x86]] }
  0xd3   : > { %s5628_s15 = sld [smem:[#allocation5 + $0x86]] }
  0xd4   : > { %s7876_s7 = sshll.u32 %s7874_s5, 6  ;;  %s5622_s5 = sld [smem:[#allocation7 + $0x85]] }
  0xd6   : > { %s5554_s9 = scalar_lea.vmem %s7877_s1, %s7876_s7  ;;  %s5624_s7 = sld [smem:[#allocation8 + $0x85]] }
  0xd7   : > { %7878 = sst [smem:[#allocation28_spill]] %s5554_s9 }
  0xd8   : > { %7883 = sst [smem:[#allocation32_spill]] %s5626_s22 }
  0xd9   : > { %s5630_s1 = sld [smem:[#allocation7 + $0x86]] }
  0xda   : > { %7881 = sst [smem:[#allocation30_spill]] %s5622_s5 }
  0xdb   : > { %s5638_s5 = sld [smem:[#allocation7 + $0x87]] }
  0xdc   : > { %7882 = sst [smem:[#allocation31_spill]] %s5624_s7 }
  0xdd   : > { %s5641_s7 = sld [smem:[#allocation8 + $0x87]] }
  0xde   : > { %s5644_s22 = sld [smem:[#allocation2 + $0x88]] }
 0x147   : > { %v5413_v48 = vpop.f32.mrf.mxu0 }
 0x148   : > { %v564_v53 = vmul.f32 %v563_v8, %v5413_v48  ;;  %v579_v54 = vmul.f32 %v578_v11, %v5413_v48  ;;  %v594_v55 = vmul.f32 %v593_v14, %v5413_v48  ;;  %v609_v56 = vmul.f32 %v608_v24, %v5413_v48 }
 0x149   : > { %v4660_v57 = vpop.f32.mrf.mxu0  ;;  %v624_v58 = vmul.f32 %v623_v28, %v5413_v48  ;;  %v639_v59 = vmul.f32 %v638_v33, %v5413_v48  ;;  %v654_v5 = vmul.f32 %v653_v38, %v5413_v48  ;;  %v731_v14 = vstv %s5399_s2  ;;  %s5576_s2 = sld [smem:[#allocation10 + $0x1]] }
 0x14a   : > { %v568_v62 = vadd.f32 %v5351_v9, %v564_v53  ;;  %v583_v63 = vadd.f32 %v5358_v12, %v579_v54  ;;  %v598_v1 = vadd.f32 %v597_v18, %v594_v55  ;;  %v613_v2 = vadd.f32 %v612_v25, %v609_v56 }
 0x14b   : > { %v628_v3 = vadd.f32 %v627_v29, %v624_v58  ;;  %v643_v15 = vadd.f32 %v642_v34, %v639_v59  ;;  %v669_v18 = vmul.f32 %v668_v43, %v5413_v48  ;;  %v658_v25 = vadd.f32 %v657_v40, %v654_v5 }
 0x14c   : > { %v571_v8 = vadd.f32 %v570_v10, %v568_v62  ;;  %v586_v11 = vadd.f32 %v585_v13, %v583_v63  ;;  %v601_v9 = vadd.f32 %v600_v21, %v598_v1  ;;  %v616_v12 = vadd.f32 %v615_v26, %v613_v2 }
 0x14d   : > { %v717_v13 = vmul.f32 %v716_v7, %v5338_v4  ;;  %v720_v21 = vstv %s5405_s3  ;;  %v631_v24 = vadd.f32 %v630_v30, %v628_v3  ;;  %v728_v26 = vstv %s5411_s8  ;;  %s5578_s3 = sld [smem:[#allocation2 + $0x80]] }
 0x14e   : > { %v572_v23 = vmax.f32 %v571_v8, 0.0  ;;  %v587_v10 = vmax.f32 %v586_v11, 0.0  ;;  %v732_v28 = vmul.f32 %v731_v14, %v5338_v4  ;;  %v602_v31 = vmax.f32 %v601_v9, 0.0  ;;  %s5580_s8 = sld [smem:[#allocation5 + $0x80]] }
 0x14f   : > { %v735_v33 = vstv %s5421_s10  ;;  %v746_v34 = vstv %s5427_s11  ;;  %v617_v35 = vmax.f32 %v616_v12, 0.0  ;;  %v646_v38 = vadd.f32 %v645_v36, %v643_v15  ;;  %s5582_s10 = sld [smem:[#allocation7 + $0x80]] }
 0x150   : > { %v575_v29 = vmul.f32 %v574_v17, %v572_v23  ;;  %v673_v39 = vadd.f32 %v672_v44, %v669_v18  ;;  %v743_v43 = vstv %s5433_s19  ;;  %v590_v40 = vmul.f32 %v589_v20, %v587_v10  ;;  %s5584_s11 = sld [smem:[#allocation8 + $0x80]] }
 0x151   : > { %v684_v17 = vmul.f32 %v683_v49, %v5413_v48  ;;  %v699_v47 = vmul.f32 %v698_v60, %v5413_v48  ;;  %v632_v53 = vmax.f32 %v631_v24, 0.0  ;;  %v661_v54 = vadd.f32 %v660_v41, %v658_v25  ;;  %s5586_s19 = sld [smem:[#allocation2 + $0x81]] }
 0x152   : > { %v576_v30 = vadd.f32 %v575_v29, %v560_v16  ;;  %v747_v36 = vmul.f32 %v746_v34, %v5338_v4  ;;  %v750_v44 = vstv %s5440_s12  ;;  %v605_v16 = vmul.f32 %v604_v22, %v602_v31  ;;  %s5588_s12 = sld [smem:[#allocation5 + $0x81]] }
 0x153   : > { %v688_v20 = vadd.f32 %v5417_v50, %v684_v17  ;;  %v714_v49 = vmul.f32 %v713_v19, %v5413_v48  ;;  %v647_v56 = vmax.f32 %v646_v38, 0.0  ;;  %v676_v57 = vadd.f32 %v675_v45, %v673_v39 }
 0x154   : > { %v591_v55 = vadd.f32 %v590_v40, %v576_v30  ;;  %v758_v41 = vstv %s5447_s20  ;;  %v761_v58 = vstv %s5451_s29  ;;  %v620_v60 = vmul.f32 %v619_v27, %v617_v35  ;;  %s5590_s20 = sld [smem:[#allocation7 + $0x81]] }
 0x155   : > { %v703_v62 = vadd.f32 %v702_v61, %v699_v47  ;;  %v729_v22 = vmul.f32 %v728_v26, %v5413_v48  ;;  %v635_v63 = vmul.f32 %v634_v32, %v632_v53  ;;  %v662_v50 = vmax.f32 %v661_v54, 0.0  ;;  %s5592_s29 = sld [smem:[#allocation8 + $0x81]] }
 0x156   : > { %v606_v59 = vadd.f32 %v605_v16, %v591_v55  ;;  %v773_v1 = vstv %s5455_s23  ;;  %v776_v45 = vstv %s5461_s25  ;;  %v691_v3 = vadd.f32 %v690_v51, %v688_v20  ;;  %s5594_s23 = sld [smem:[#allocation2 + $0x82]] }
 0x157   : > { %v718_v5 = vadd.f32 %v717_v13, %v714_v49  ;;  %v744_v27 = vmul.f32 %v743_v43, %v5413_v48  ;;  %v677_v61 = vmax.f32 %v676_v57, 0.0  ;;  %v759_v32 = vmul.f32 %v758_v41, %v5413_v48  ;;  %s5596_s25 = sld [smem:[#allocation5 + $0x82]] }
 0x158   : > { %v621_v2 = vadd.f32 %v620_v60, %v606_v59  ;;  %v762_v7 = vmul.f32 %v761_v58, %v5338_v4  ;;  %v791_v8 = vstv %s5470_s14  ;;  %v650_v9 = vmul.f32 %v649_v37, %v647_v56  ;;  %s5598_s14 = sld [smem:[#allocation7 + $0x82]] }
 0x159   : > { %v706_v51 = vadd.f32 %v705_v6, %v703_v62  ;;  %v733_v14 = vadd.f32 %v732_v28, %v729_v22  ;;  %v665_v12 = vmul.f32 %v664_v42, %v662_v50  ;;  %v774_v15 = vmul.f32 %v773_v1, %v5413_v48 }
 0x15a   : > { %v636_v11 = vadd.f32 %v635_v63, %v621_v2  ;;  %v777_v18 = vmul.f32 %v776_v45, %v5338_v4  ;;  %v788_v19 = vstv %s5482_s28  ;;  %v692_v10 = vmax.f32 %v691_v3, 0.0  ;;  %s5600_s28 = sld [smem:[#allocation8 + $0x82]] }
 0x15b   : > { %v721_v37 = vadd.f32 %v720_v21, %v718_v5  ;;  %v748_v6 = vadd.f32 %v747_v36, %v744_v27  ;;  %v680_v13 = vmul.f32 %v679_v46, %v677_v61  ;;  %v763_v42 = vadd.f32 %v762_v7, %v759_v32  ;;  %v478_v32 = vld [vmem:[%s5554_s9 + $0x8] sm:$0xff]  ;;  %v477_v7 = vld [vmem:[%s5554_s9] sm:$0xff]  ;;  %s5636_s9 = sld [smem:[#allocation5 + $0x87]] }
 0x15c   : > { %v651_v23 = vadd.f32 %v650_v9, %v636_v11  ;;  %v765_v24 = vstv %s5492_s0  ;;  %v792_v25 = vmul.f32 %v791_v8, %v5338_v4  ;;  %v707_v28 = vmax.f32 %v706_v51, 0.0  ;;  %4662 = vmatpush3.msra.mxu1 %v478_v32  ;;  %v4084_v51 = vld [vmem:[%s7875_s27 + $0x18] sm:$0xff]  ;;  %s5602_s0 = sld [smem:[#allocation2 + $0x83]] }
 0x15d   : > { %v736_v29 = vadd.f32 %v735_v33, %v733_v14  ;;  %v789_v31 = vmul.f32 %v788_v19, %v5413_v48  ;;  %v709_v34 = vstv %s5499_s4  ;;  %v778_v46 = vadd.f32 %v777_v18, %v774_v15  ;;  %4663 = vmatprep.subr.mxu1 %v5050_v0  ;;  %v4082_v15 = vld [vmem:[%s7879_s6 + $0x8] sm:$0xff]  ;;  %s5604_s4 = sld [smem:[#allocation5 + $0x83]] }
 0x15e   : > { %v666_v26 = vadd.f32 %v665_v12, %v651_v23  ;;  %v695_v35 = vmul.f32 %v694_v52, %v692_v10  ;;  %v722_v38 = vmax.f32 %v721_v37, 0.0  ;;  %v751_v39 = vadd.f32 %v750_v44, %v748_v6  ;;  %4664 = vmatpush3.msra.mxu1 %v477_v7  ;;  %v4083_v12 = vld [vmem:[%s7875_s27 + $0x10] sm:$0xff]  ;;  %s5632_s6 = sld [smem:[#allocation8 + $0x86]] }
 0x15f   : > { %v724_v43 = vstv %s5505_s18  ;;  %v766_v30 = vadd.f32 %v765_v24, %v763_v42  ;;  %v780_v40 = vstv %s5510_s21  ;;  %v710_v33 = vmul.f32 %v709_v34, %v707_v28  ;;  %4668 = vmatprep.subr.mxu1 %v5050_v0  ;;  %s5606_s18 = sld [smem:[#allocation7 + $0x83]] }
 0x160   : > { %v681_v21 = vadd.f32 %v680_v13, %v666_v26  ;;  %v737_v48 = vmax.f32 %v736_v29, 0.0  ;;  %v793_v47 = vadd.f32 %v792_v25, %v789_v31  ;;  %v739_v53 = vstv %s5517_s17  ;;  %7880 = sst [smem:[#allocation29_spill]] %s5600_s28 }
 0x161   : > { %v795_v54 = vstv %s5524_s26  ;;  %v725_v55 = vmul.f32 %v724_v43, %v722_v38  ;;  %v752_v16 = vmax.f32 %v751_v39, 0.0  ;;  %v781_v20 = vadd.f32 %v780_v40, %v778_v46  ;;  %s5608_s21 = sld [smem:[#allocation8 + $0x83]] }
 0x162   : > { %v696_v17 = vadd.f32 %v695_v35, %v681_v21  ;;  %v754_v52 = vstv %s5530_s13  ;;  %v740_v44 = vmul.f32 %v739_v53, %v737_v48  ;;  %v767_v56 = vmax.f32 %v766_v30, 0.0  ;;  %s5610_s17 = sld [smem:[#allocation2 + $0x84]] }
 0x163   : > { %v796_v57 = vadd.f32 %v795_v54, %v793_v47  ;;  %v769_v41 = vstv %s5538_s16  ;;  %v755_v59 = vmul.f32 %v754_v52, %v752_v16  ;;  %v782_v60 = vmax.f32 %v781_v20, 0.0  ;;  %s5612_s26 = sld [smem:[#allocation5 + $0x84]] }
 0x164   : > { %v711_v36 = vadd.f32 %v710_v33, %v696_v17  ;;  %v784_v62 = vstv %s4076_s30  ;;  %v770_v63 = vmul.f32 %v769_v41, %v767_v56  ;;  %v799_v1 = vstv %s4080_s24  ;;  %s5614_s13 = sld [smem:[#allocation7 + $0x84]] }
 0x165   : > { %v797_v50 = vmax.f32 %v796_v57, 0.0  ;;  %v785_v2 = vmul.f32 %v784_v62, %v782_v60  ;;  %s5616_s16 = sld [smem:[#allocation8 + $0x84]]  ;;  %v982_v18 = vstv %s5580_s8  ;;  %v997_v19 = vstv %s5588_s12 }
 0x166   : > { %v726_v49 = vadd.f32 %v725_v55, %v711_v36  ;;  %s5618_s30 = sld [smem:[#allocation2 + $0x85]]  ;;  %v976_v23 = vstv %s5576_s2  ;;  %v979_v10 = vstv %s5578_s3  ;;  %v5651_v37 = vmul.f32 %v982_v18, %v5338_v4 }
 0x167   : > { %v800_v5 = vmul.f32 %v799_v1, %v797_v50  ;;  %s5620_s24 = sld [smem:[#allocation5 + $0x85]]  ;;  %v986_v6 = vstv %s5582_s10  ;;  %v1012_v13 = vstv %s5596_s25  ;;  %v990_v42 = vstv %s5584_s11 }
 0x168   : > { %v741_v58 = vadd.f32 %v740_v44, %v726_v49  ;;  %7884 = sst [smem:[#allocation33_spill]] %s5632_s6  ;;  %v994_v24 = vstv %s5586_s19  ;;  %v5660_v25 = vmul.f32 %v997_v19, %v5338_v4  ;;  %v1027_v26 = vstv %s5604_s4 }
 0x169   : > { %s5634_s27 = sld [smem:[#allocation2 + $0x87]]  ;;  %v1001_v29 = vstv %s5590_s20  ;;  %v1005_v31 = vstv %s5592_s29  ;;  %v1009_v34 = vstv %s5594_s23  ;;  %v1042_v46 = vstv %s5612_s26 }
 0x16a   : > { %v756_v22 = vadd.f32 %v755_v59, %v741_v58  ;;  %s5647_s6 = sld [smem:[#allocation5 + $0x88]]  ;;  %v1013_v21 = vmul.f32 %v1012_v13, %v5338_v4  ;;  %v1016_v35 = vstv %s5598_s14  ;;  %v1020_v38 = vstv %s5600_s28 }
 0x16b   : > { %s5655_s8 = sld [smem:[#allocation7 + $0x88]]  ;;  %v1024_v30 = vstv %s5602_s0  ;;  %v1028_v40 = vmul.f32 %v1027_v26, %v5338_v4  ;;  %v1031_v17 = vstv %s5606_s18  ;;  %v1035_v33 = vstv %s5608_s21 }
 0x16c   : > { %v771_v45 = vadd.f32 %v770_v63, %v756_v22  ;;  %s5663_s12 = sld [smem:[#allocation5 + $0x89]]  ;;  %v1039_v48 = vstv %s5610_s17  ;;  %v1043_v47 = vmul.f32 %v1042_v46, %v5338_v4  ;;  %v1046_v53 = vstv %s5614_s13 }
 0x16d   : > { %s5671_s3 = sld [smem:[#allocation8 + $0x88]]  ;;  %v1057_v39 = vstv %s5620_s24  ;;  %v1072_v54 = vstv %s5628_s15  ;;  %v1050_v36 = vstv %s5616_s16  ;;  %v1054_v55 = vstv %s5618_s30 }
 0x16e   : > { %v786_v3 = vadd.f32 %v785_v2, %v771_v45  ;;  %s5677_s19 = sld [smem:[#allocation2 + $0x89]]  ;;  %v1058_v16 = vmul.f32 %v1057_v39, %v5338_v4  ;;  %v1087_v20 = vstv %s5636_s9  ;;  %v1073_v57 = vmul.f32 %v1072_v54, %v5338_v4 }
 0x16f   : > { %s7885_s25 = sld [smem:[#allocation30_spill]]  ;;  %v1076_v41 = vstv %s5630_s1  ;;  %v1084_v59 = vstv %s5634_s27  ;;  %v1088_v60 = vmul.f32 %v1087_v20, %v5338_v4  ;;  %v1091_v62 = vstv %s5638_s5 }
 0x170   : > { %v801_v27 = vadd.f32 %v800_v5, %v786_v3  ;;  %s7886_s23 = sld [smem:[#allocation31_spill]]  ;;  %v1102_v56 = vstv %s5647_s6  ;;  %v1095_v22 = vstv %s5641_s7  ;;  %v1099_v1 = vstv %s5644_s22 }
 0x171   : > { %s7887_s4 = sld [smem:[#allocation32_spill]]  ;;  %v5719_v45 = vmul.f32 %v1102_v56, %v5338_v4  ;;  %v1106_v2 = vstv %s5655_s8 }
 0x172   : > { %v803_v61 = vsel %vm802_vm2, %v801_v27, -inf  ;;  %s5683_s26 = sld [smem:[#allocation7 + $0x89]]  ;;  %v1117_v63 = vstv %s5663_s12 }
 0x173   : > { %804 = vmax.xlane.f32.xlu0 %v803_v61  ;;  %s7888_s24 = sld [smem:[#allocation33_spill]]  ;;  %v1110_v3 = vstv %s5671_s3 }
 0x174   : > { %s5689_s28 = sld [smem:[#allocation2 + $0x8a]] }
 0x175   : > { %s5695_s0 = sld [smem:[#allocation5 + $0x8a]]  ;;  %v1061_v52 = vstv %s7885_s25 }
 0x176   : > { %v1065_v49 = vstv %s7886_s23  ;;  %s5701_s18 = sld [smem:[#allocation5 + $0x8b]] }
 0x177   : > { %v1069_v44 = vstv %s7887_s4  ;;  %s5707_s17 = sld [smem:[#allocation7 + $0x8a]] }
 0x178   : > { %s5713_s9 = sld [smem:[#allocation2 + $0x8b]] }
 0x179   : > { %v1080_v58 = vstv %s7888_s24  ;;  %s5723_s6 = sld [smem:[#allocation7 + $0x8b]] }
 0x17a   : > { %s5729_s27 = sld [smem:[#allocation5 + $0x8c]] }
 0x17b   : > { %s5735_s30 = sld [smem:[#allocation2 + $0x8c]]  ;;  %v1132_v26 = vstv %s5695_s0 }
 0x17c   : > { %s5742_s22 = sld [smem:[#allocation7 + $0x8c]] }
 0x17d   : > { %s5751_s15 = sld [smem:[#allocation2 + $0x8d]] }
 0x17e   : > { %s5755_s12 = sld [smem:[#allocation5 + $0x8d]] }
 0x17f   : > { %s5759_s10 = sld [smem:[#allocation2 + $0x8e]]  ;;  %v1151_v20 = vstv %s5723_s6 }
 0x180   : > { %s5765_s20 = sld [smem:[#allocation5 + $0x8e]] }
 0x181   : > { %s5786_s11 = sld [smem:[#allocation2 + $0x8f]] }
 0x182   : > { %s5796_s2 = sld [smem:[#allocation7 + $0x8d]] }
 0x183   : > { %s5803_s29 = sld [smem:[#allocation8 + $0x89]] }
 0x184   : > { %s5809_s21 = sld [smem:[#allocation8 + $0x8a]] }
 0x185   : > { %s5814_s13 = sld [smem:[#allocation7 + $0x8e]] }
 0x186   : > { %s5821_s16 = sld [smem:[#allocation8 + $0x8b]] }
 0x187   : > { %s5828_s5 = sld [smem:[#allocation7 + $0x8f]] }
 0x188   : > { %s5834_s1 = sld [smem:[#allocation8 + $0x8c]] }
 0x189   : > { %s5842_s8 = sld [smem:[#allocation8 + $0x8d]] }
 0x18a   : > { %s4150_s7 = sld [smem:[#allocation8 + $0x8e]] }
 0x18b   : > { %s7890_s3 = sld [smem:[#allocation28_spill]] }
 0x18c   : > { %s7891_s25 = sld [smem:[#allocation26_spill]] }
 0x18d   : > { %s7892_s23 = sld [smem:[#allocation27_spill]] }
 0x18e   : > { %s5873_s4 = sld [smem:[#allocation10 + $0x2]] }
 0x18f   : > { %s5877_s24 = sld [smem:[#allocation5 + $0x100]] }
 0x190   : > { %s5879_s0 = sld [smem:[#allocation7 + $0x100]] }
 0x191   : > { %s5887_s6 = sld [smem:[#allocation7 + $0x101]] }
 0x192   : > { %s5903_s14 = sld [smem:[#allocation7 + $0x103]] }
 0x1fc   : > { %v805_v8 = vpop.xlane.xlu0 %804 }
 0x1fd   : > { %v806_v11 = vsub.f32 %v801_v27, %v805_v8 }
 0x1ff   : > { %v807_v9 = vmul.f32 1.442695, %v806_v11 }
 0x201   : > { %4862 = vpow2.f32 %v807_v9  ;;  %v1114_v9 = vstv %s5677_s19  ;;  %s4154_s19 = sld [smem:[#allocation8 + $0x8f]] }
 0x20e   : > { %v5561_v14 = vpop.eup %4862 }
 0x20f   : > { %4666 = vmatmul.mubr.msk.f32.vlgmr.msra.gmra.mxu1 %vm802_vm2, %v5561_v14 }
 0x210   : > { %4669 = vmatpush3.xpose.msk.msra.mxu1 %vm479_vm1, %v4084_v51  ;;  %4672 = vmatprep.mubr.msk.f32.mxu1 %vm5051_vm0, %v5050_v0  ;;  %v1118_v51 = vmul.f32 %v1117_v63, %v5338_v4 }
 0x211   : > { %4670 = vmatprep.subr.mxu1 %v5050_v0 }
 0x214   : > { %4671 = vmatpush3.xpose.msk.msra.mxu1 %vm479_vm1, %v4083_v12 }
 0x215   : > { %4689 = vmatprep.subr.mxu1 %v5050_v0 }
 0x217   : > { %4673 = vmatmul.mubr.msk.f32.vlgmr.msra.gmra.mxu1 %vm479_vm1, %v4082_v15 }
 0x218   : > { %4693 = vmatprep.mubr.msk.f32.mxu1 %vm5051_vm0, %v5050_v0 }
 0x2cf   : > { %v5665_v28 = vpop.f32.mrf.mxu1 }
 0x2d1   : > { %v4667_v43 = vpop.f32.mrf.mxu1 }
 0x2d7   : > { %v5715_v50 = vpop.f32.mrf.mxu1 }
 0x2d8   : > { %v980_v5 = vmul.f32 %v979_v10, %v5715_v50  ;;  %v995_v27 = vmul.f32 %v994_v24, %v5715_v50  ;;  %v1010_v61 = vmul.f32 %v1009_v34, %v5715_v50  ;;  %v1025_v32 = vmul.f32 %v1024_v30, %v5715_v50 }
 0x2d9   : > { %v4674_v7 = vpop.f32.mrf.mxu1  ;;  %v1040_v8 = vmul.f32 %v1039_v48, %v5715_v50  ;;  %v1055_v11 = vmul.f32 %v1054_v55, %v5715_v50  ;;  %v1070_v13 = vmul.f32 %v1069_v44, %v5715_v50  ;;  %v1121_v24 = vstv %s5683_s26  ;;  %s5875_s26 = sld [smem:[#allocation2 + $0x100]] }
 0x2da   : > { %v984_v12 = vadd.f32 %v5651_v37, %v980_v5  ;;  %v999_v15 = vadd.f32 %v5660_v25, %v995_v27  ;;  %v1014_v18 = vadd.f32 %v1013_v21, %v1010_v61  ;;  %v1029_v19 = vadd.f32 %v1028_v40, %v1025_v32 }
 0x2db   : > { %v1044_v10 = vadd.f32 %v1043_v47, %v1040_v8  ;;  %v1147_v25 = vstv %s5701_s18  ;;  %v1059_v39 = vadd.f32 %v1058_v16, %v1055_v11  ;;  %v1085_v43 = vmul.f32 %v1084_v59, %v5715_v50  ;;  %s5881_s18 = sld [smem:[#allocation8 + $0x100]] }
 0x2dc   : > { %v987_v34 = vadd.f32 %v986_v6, %v984_v12  ;;  %v1002_v46 = vadd.f32 %v1001_v29, %v999_v15  ;;  %v1017_v37 = vadd.f32 %v1016_v35, %v1014_v18  ;;  %v1032_v21 = vadd.f32 %v1031_v17, %v1029_v19 }
 0x2dd   : > { %v1129_v30 = vstv %s5689_s28  ;;  %v1133_v29 = vmul.f32 %v1132_v26, %v5338_v4  ;;  %v1136_v35 = vstv %s5707_s17  ;;  %v1047_v17 = vadd.f32 %v1046_v53, %v1044_v10  ;;  %s5774_s28 = sld [smem:[#allocation5 + $0x8f]] }
 0x2de   : > { %v988_v6 = vmax.f32 %v987_v34, 0.0  ;;  %v1003_v40 = vmax.f32 %v1002_v46, 0.0  ;;  %v1074_v48 = vadd.f32 %v1073_v57, %v1070_v13  ;;  %v1144_v47 = vstv %s5713_s9  ;;  %s5883_s17 = sld [smem:[#allocation2 + $0x101]] }
 0x2df   : > { %v1148_v54 = vmul.f32 %v1147_v25, %v5338_v4  ;;  %v1018_v16 = vmax.f32 %v1017_v37, 0.0  ;;  %v1162_v44 = vstv %s5729_s27  ;;  %v1033_v56 = vmax.f32 %v1032_v21, 0.0  ;;  %s5885_s9 = sld [smem:[#allocation5 + $0x101]] }
 0x2e0   : > { %v991_v55 = vmul.f32 %v990_v42, %v988_v6  ;;  %v1062_v59 = vadd.f32 %v1061_v52, %v1059_v39  ;;  %v1089_v63 = vadd.f32 %v1088_v60, %v1085_v43  ;;  %v1159_v5 = vstv %s5735_s30  ;;  %s5889_s27 = sld [smem:[#allocation8 + $0x101]] }
 0x2e1   : > { %v1006_v57 = vmul.f32 %v1005_v31, %v1003_v40  ;;  %v1100_v42 = vmul.f32 %v1099_v1, %v5715_v50  ;;  %v1115_v27 = vmul.f32 %v1114_v9, %v5715_v50  ;;  %v1048_v61 = vmax.f32 %v1047_v17, 0.0  ;;  %s5891_s30 = sld [smem:[#allocation2 + $0x102]] }
 0x2e2   : > { %v992_v53 = vadd.f32 %v991_v55, %v976_v23  ;;  %v1077_v32 = vadd.f32 %v1076_v41, %v1074_v48  ;;  %v1163_v52 = vmul.f32 %v1162_v44, %v5338_v4  ;;  %v1166_v60 = vstv %s5742_s22  ;;  %s5893_s22 = sld [smem:[#allocation5 + $0x102]] }
 0x2e3   : > { %v1021_v23 = vmul.f32 %v1020_v38, %v1018_v16  ;;  %v1104_v31 = vadd.f32 %v5719_v45, %v1100_v42  ;;  %v1130_v1 = vmul.f32 %v1129_v30, %v5715_v50  ;;  %v1063_v8 = vmax.f32 %v1062_v59, 0.0 }
 0x2e4   : > { %v1007_v7 = vadd.f32 %v1006_v57, %v992_v53  ;;  %v1092_v11 = vadd.f32 %v1091_v62, %v1089_v63  ;;  %v1174_v41 = vstv %s5751_s15  ;;  %v1177_v9 = vstv %s5755_s12  ;;  %s5895_s15 = sld [smem:[#allocation7 + $0x102]] }
 0x2e5   : > { %v1036_v15 = vmul.f32 %v1035_v33, %v1033_v56  ;;  %v1119_v18 = vadd.f32 %v1118_v51, %v1115_v27  ;;  %v1145_v38 = vmul.f32 %v1144_v47, %v5715_v50  ;;  %v1051_v19 = vmul.f32 %v1050_v36, %v1048_v61  ;;  %s5897_s12 = sld [smem:[#allocation8 + $0x102]] }
 0x2e6   : > { %v1022_v12 = vadd.f32 %v1021_v23, %v1007_v7  ;;  %v1078_v45 = vmax.f32 %v1077_v32, 0.0  ;;  %v1189_v10 = vstv %s5759_s10  ;;  %v1192_v62 = vstv %s5765_s20  ;;  %s5899_s10 = sld [smem:[#allocation2 + $0x103]] }
 0x2e7   : > { %v1107_v26 = vadd.f32 %v1106_v2, %v1104_v31  ;;  %v1134_v34 = vadd.f32 %v1133_v29, %v1130_v1  ;;  %v1160_v33 = vmul.f32 %v1159_v5, %v5715_v50  ;;  %v1093_v51 = vmax.f32 %v1092_v11, 0.0  ;;  %s5901_s20 = sld [smem:[#allocation5 + $0x103]] }
 0x2e8   : > { %v1037_v13 = vadd.f32 %v1036_v15, %v1022_v12  ;;  %v1175_v36 = vmul.f32 %v1174_v41, %v5715_v50  ;;  %v1178_v46 = vmul.f32 %v1177_v9, %v5338_v4  ;;  %v1207_v37 = vstv %s5774_s28  ;;  %s5905_s28 = sld [smem:[#allocation8 + $0x103]] }
 0x2e9   : > { %v1066_v21 = vmul.f32 %v1065_v49, %v1063_v8  ;;  %v1122_v2 = vadd.f32 %v1121_v24, %v1119_v18  ;;  %v1149_v39 = vadd.f32 %v1148_v54, %v1145_v38  ;;  %v1081_v43 = vmul.f32 %v1080_v58, %v1078_v45 }
 0x2ea   : > { %v1052_v25 = vadd.f32 %v1051_v19, %v1037_v13  ;;  %v1190_v30 = vmul.f32 %v1189_v10, %v5715_v50  ;;  %v1193_v6 = vmul.f32 %v1192_v62, %v5338_v4  ;;  %v1204_v40 = vstv %s5786_s11  ;;  %s5907_s11 = sld [smem:[#allocation2 + $0x104]] }
 0x2eb   : > { %v1108_v17 = vmax.f32 %v1107_v26, 0.0  ;;  %v1137_v49 = vadd.f32 %v1136_v35, %v1134_v34  ;;  %v1164_v24 = vadd.f32 %v1163_v52, %v1160_v33  ;;  %v1096_v48 = vmul.f32 %v1095_v22, %v1093_v51  ;;  %7893 = sst [smem:[#allocation34_spill]] %s5897_s12 }
 0x2ec   : > { %v1067_v29 = vadd.f32 %v1066_v21, %v1052_v25  ;;  %v1179_v58 = vadd.f32 %v1178_v46, %v1175_v36  ;;  %v1181_v47 = vstv %s5796_s2  ;;  %v1208_v54 = vmul.f32 %v1207_v37, %v5338_v4  ;;  %v4086_v46 = vld [vmem:[%s7890_s3 + $0x18] sm:$0xff]  ;;  %v4085_v37 = vld [vmem:[%s7890_s3 + $0x10] sm:$0xff]  ;;  %s5909_s2 = sld [smem:[#allocation5 + $0x104]] }
 0x2ed   : > { %v1123_v16 = vmax.f32 %v1122_v2, 0.0  ;;  %v1152_v44 = vadd.f32 %v1151_v20, %v1149_v39  ;;  %v1205_v56 = vmul.f32 %v1204_v40, %v5715_v50  ;;  %v1125_v59 = vstv %s5803_s29  ;;  %4676 = vmatpush3.msra.mxu0 %v4086_v46  ;;  %v4158_v39 = vld [vmem:[%s7891_s25 + $0x28] sm:$0xff]  ;;  %s5911_s29 = sld [smem:[#allocation7 + $0x104]] }
 0x2ee   : > { %v1082_v55 = vadd.f32 %v1081_v43, %v1067_v29  ;;  %v1194_v22 = vadd.f32 %v1193_v6, %v1190_v30  ;;  %v1111_v63 = vmul.f32 %v1110_v3, %v1108_v17  ;;  %v1138_v5 = vmax.f32 %v1137_v49, 0.0  ;;  %4677 = vmatprep.subr.mxu0 %v5050_v0  ;;  %v4157_v30 = vld [vmem:[%s7891_s25 + $0x20] sm:$0xff]  ;;  %v4156_v6 = vld [vmem:[%s7892_s23 + $0x10] sm:$0xff]  ;;  %s5927_s23 = sld [smem:[#allocation7 + $0x106]] }
 0x2ef   : > { %v1167_v53 = vadd.f32 %v1166_v60, %v1164_v24  ;;  %v1140_v57 = vstv %s5809_s21  ;;  %v1182_v4 = vadd.f32 %v1181_v47, %v1179_v58  ;;  %v1196_v42 = vstv %s5814_s13  ;;  %4678 = vmatpush3.msra.mxu0 %v4085_v37  ;;  %s5913_s21 = sld [smem:[#allocation8 + $0x104]] }
 0x2f0   : > { %v1097_v35 = vadd.f32 %v1096_v48, %v1082_v55  ;;  %v1126_v20 = vmul.f32 %v1125_v59, %v1123_v16  ;;  %v1153_v50 = vmax.f32 %v1152_v44, 0.0  ;;  %v1209_v61 = vadd.f32 %v1208_v54, %v1205_v56  ;;  %4682 = vmatprep.subr.mxu0 %v5050_v0  ;;  %s5915_s13 = sld [smem:[#allocation2 + $0x105]] }
 0x2f1   : > { %v1155_v32 = vstv %s5821_s16  ;;  %v1211_v52 = vstv %s5828_s5  ;;  %v1141_v23 = vmul.f32 %v1140_v57, %v1138_v5  ;;  %v1168_v31 = vmax.f32 %v1167_v53, 0.0  ;;  %s5917_s16 = sld [smem:[#allocation5 + $0x105]] }
 0x2f2   : > { %v1112_v27 = vadd.f32 %v1111_v63, %v1097_v35  ;;  %v1197_v1 = vadd.f32 %v1196_v42, %v1194_v22  ;;  %v1170_v3 = vstv %s5834_s1  ;;  %v1156_v60 = vmul.f32 %v1155_v32, %v1153_v50  ;;  %s5919_s5 = sld [smem:[#allocation7 + $0x105]] }
 0x2f3   : > { %v1183_v11 = vmax.f32 %v1182_v4, 0.0  ;;  %v1212_v41 = vadd.f32 %v1211_v52, %v1209_v61  ;;  %v1185_v9 = vstv %s5842_s8  ;;  %v1171_v15 = vmul.f32 %v1170_v3, %v1168_v31  ;;  %s7896_s1 = sld [smem:[#allocation35_spill]] }
 0x2f4   : > { %v1127_v7 = vadd.f32 %v1126_v20, %v1112_v27  ;;  %v1198_v18 = vmax.f32 %v1197_v1, 0.0  ;;  %v1200_v38 = vstv %s4150_s7  ;;  %v1215_v62 = vstv %s4154_s19  ;;  %s5921_s8 = sld [smem:[#allocation8 + $0x105]] }
 0x2f5   : > { %v1186_v45 = vmul.f32 %v1185_v9, %v1183_v11  ;;  %v1213_v10 = vmax.f32 %v1212_v41, 0.0  ;;  %s5923_s7 = sld [smem:[#allocation2 + $0x106]]  ;;  %v1397_v40 = vstv %s5877_s24  ;;  %v1412_v29 = vstv %s5885_s9 }
 0x2f6   : > { %v1142_v8 = vadd.f32 %v1141_v23, %v1127_v7  ;;  %v1201_v26 = vmul.f32 %v1200_v38, %v1198_v18  ;;  %7894 = sst [smem:[#allocation25_spill]] %s5915_s13  ;;  %v1391_v17 = vstv %s5873_s4  ;;  %v1394_v49 = vstv %s5875_s26 }
 0x2f7   : > { %v1216_v33 = vmul.f32 %v1215_v62, %v1213_v10  ;;  %s5925_s19 = sld [smem:[#allocation5 + $0x106]]  ;;  %v1401_v58 = vstv %s5879_s0  ;;  %v1427_v47 = vstv %s5893_s22  ;;  %v1405_v54 = vstv %s5881_s18 }
 0x2f8   : > { %v1157_v12 = vadd.f32 %v1156_v60, %v1142_v8  ;;  %7895 = sst [smem:[#allocation30_spill]] %s5919_s5  ;;  %v1409_v55 = vstv %s5883_s17  ;;  %v1442_v44 = vstv %s5901_s20  ;;  %v1416_v59 = vstv %s5887_s6 }
 0x2f9   : > { %s5929_s25 = sld [smem:[#allocation8 + $0x106]]  ;;  %v5948_v24 = vld [vmem:[%s7896_s1] sm:$0xff]  ;;  %v1420_v22 = vstv %s5889_s27  ;;  %v1424_v35 = vstv %s5891_s30  ;;  %v1457_v63 = vstv %s5909_s2 }
 0x2fa   : > { %v1172_v19 = vadd.f32 %v1171_v15, %v1157_v12  ;;  %7897 = sst [smem:[#allocation31_spill]] %s5921_s8  ;;  %v5951_v48 = vmul.f32 %v5948_v24, %v1397_v40  ;;  %v5960_v16 = vmul.f32 %v5948_v24, %v1412_v29  ;;  %v1428_v5 = vmul.f32 %v5948_v24, %v1427_v47 }
 0x2fb   : > { %7898 = sst [smem:[#allocation32_spill]] %s5923_s7  ;;  %v1431_v53 = vstv %s5895_s15  ;;  %v1435_v57 = vstv %s5897_s12  ;;  %v1472_v4 = vstv %s5917_s16  ;;  %v1439_v27 = vstv %s5899_s10 }
 0x2fc   : > { %v1187_v13 = vadd.f32 %v1186_v45, %v1172_v19  ;;  %s5931_s3 = sld [smem:[#allocation2 + $0x107]]  ;;  %v1443_v20 = vmul.f32 %v5948_v24, %v1442_v44  ;;  %v1446_v50 = vstv %s5903_s14  ;;  %v1450_v61 = vstv %s5905_s28 }
 0x2fd   : > { %s5933_s13 = sld [smem:[#allocation5 + $0x107]]  ;;  %v1454_v32 = vstv %s5907_s11  ;;  %v1458_v52 = vmul.f32 %v5948_v24, %v1457_v63  ;;  %v1461_v7 = vstv %s5911_s29  ;;  %v1487_v23 = vstv %s5925_s19 }
 0x2fe   : > { %v1202_v34 = vadd.f32 %v1201_v26, %v1187_v13  ;;  %s5935_s5 = sld [smem:[#allocation7 + $0x107]]  ;;  %v1465_v31 = vstv %s5913_s21  ;;  %v1473_v3 = vmul.f32 %v5948_v24, %v1472_v4  ;;  %v1488_v12 = vmul.f32 %v5948_v24, %v1487_v23 }
 0x2ff   : > { %7899 = sst [smem:[#allocation33_spill]] %s5929_s25  ;;  %v1491_v15 = vstv %s5927_s23 }
 0x300   : > { %v1217_v51 = vadd.f32 %v1216_v33, %v1202_v34  ;;  %s5938_s8 = sld [smem:[#allocation8 + $0x107]] }
 0x301   : > { %s5941_s7 = sld [smem:[#allocation2 + $0x108]] }
 0x302   : > { %v1218_v36 = vsel %vm802_vm2, %v1217_v51, -inf  ;;  %s5944_s25 = sld [smem:[#allocation5 + $0x108]]  ;;  %v1499_v38 = vstv %s5931_s3 }
 0x303   : > { %1219 = vmax.xlane.f32.xlu0 %v1218_v36  ;;  %s5955_s24 = sld [smem:[#allocation7 + $0x108]]  ;;  %v1502_v8 = vstv %s5933_s13 }
 0x304   : > { %s5963_s26 = sld [smem:[#allocation5 + $0x109]]  ;;  %v1503_v19 = vmul.f32 %v5948_v24, %v1502_v8  ;;  %v1506_v45 = vstv %s5935_s5 }
 0x305   : > { %s5971_s9 = sld [smem:[#allocation8 + $0x108]] }
 0x306   : > { %s7900_s17 = sld [smem:[#allocation25_spill]]  ;;  %v1510_v10 = vstv %s5938_s8 }
 0x307   : > { %s5977_s22 = sld [smem:[#allocation2 + $0x109]]  ;;  %v1514_v26 = vstv %s5941_s7 }
 0x308   : > { %s7901_s20 = sld [smem:[#allocation30_spill]]  ;;  %v1517_v9 = vstv %s5944_s25 }
 0x309   : > { %s7902_s30 = sld [smem:[#allocation31_spill]]  ;;  %v6019_v34 = vmul.f32 %v5948_v24, %v1517_v9  ;;  %v1521_v33 = vstv %s5955_s24 }
 0x30a   : > { %s7903_s2 = sld [smem:[#allocation32_spill]]  ;;  %v1532_v62 = vstv %s5963_s26 }
 0x30b   : > { %s5983_s1 = sld [smem:[#allocation7 + $0x109]] }
 0x30c   : > { %s7904_s16 = sld [smem:[#allocation33_spill]]  ;;  %v1469_v1 = vstv %s7900_s17 }
 0x30d   : > { %s5989_s12 = sld [smem:[#allocation2 + $0x10a]] }
 0x30e   : > { %s5995_s10 = sld [smem:[#allocation5 + $0x10a]]  ;;  %v1476_v60 = vstv %s7901_s20 }
 0x30f   : > { %v1480_v11 = vstv %s7902_s30  ;;  %s6001_s14 = sld [smem:[#allocation5 + $0x10b]] }
 0x310   : > { %v1484_v41 = vstv %s7903_s2  ;;  %s6007_s11 = sld [smem:[#allocation7 + $0x10a]] }
 0x311   : > { %s6013_s13 = sld [smem:[#allocation2 + $0x10b]] }
 0x312   : > { %v1495_v18 = vstv %s7904_s16  ;;  %s6023_s25 = sld [smem:[#allocation7 + $0x10b]] }
 0x313   : > { %s6029_s3 = sld [smem:[#allocation5 + $0x10c]] }
 0x314   : > { %s6035_s7 = sld [smem:[#allocation2 + $0x10c]]  ;;  %v1547_v63 = vstv %s5995_s10 }
 0x315   : > { %s6042_s19 = sld [smem:[#allocation7 + $0x10c]] }
 0x316   : > { %s6051_s26 = sld [smem:[#allocation2 + $0x10d]] }
 0x317   : > { %s6055_s17 = sld [smem:[#allocation5 + $0x10d]] }
 0x318   : > { %s6059_s0 = sld [smem:[#allocation2 + $0x10e]]  ;;  %v1566_v9 = vstv %s6023_s25 }
 0x319   : > { %s6065_s6 = sld [smem:[#allocation5 + $0x10e]] }
 0x31a   : > { %s6086_s18 = sld [smem:[#allocation2 + $0x10f]] }
 0x31b   : > { %s6096_s23 = sld [smem:[#allocation7 + $0x10d]] }
 0x31c   : > { %s6103_s4 = sld [smem:[#allocation8 + $0x109]] }
 0x31d   : > { %s6109_s27 = sld [smem:[#allocation8 + $0x10a]] }
 0x31e   : > { %s6114_s28 = sld [smem:[#allocation7 + $0x10e]] }
 0x31f   : > { %s6121_s29 = sld [smem:[#allocation8 + $0x10b]] }
 0x320   : > { %s6128_s21 = sld [smem:[#allocation7 + $0x10f]] }
 0x321   : > { %s6134_s5 = sld [smem:[#allocation8 + $0x10c]] }
 0x322   : > { %s4224_s8 = sld [smem:[#allocation8 + $0x10e]] }
 0x323   : > { %s4228_s24 = sld [smem:[#allocation8 + $0x10f]] }
 0x324   : > { %s7908_s20 = sld [smem:[#allocation27_spill]] }
 0x325   : > { %s6173_s30 = sld [smem:[#allocation10 + $0x3]] }
 0x326   : > { %s6175_s2 = sld [smem:[#allocation2 + $0x180]] }
 0x327   : > { %s6177_s16 = sld [smem:[#allocation5 + $0x180]] }
 0x328   : > { %s6179_s10 = sld [smem:[#allocation7 + $0x180]] }
 0x329   : > { %s6187_s25 = sld [smem:[#allocation7 + $0x181]] }
 0x32a   : > { %s6203_s15 = sld [smem:[#allocation7 + $0x183]] }
 0x38c   : > { %v1220_v25 = vpop.xlane.xlu0 %1219 }
 0x38d   : > { %v1221_v21 = vsub.f32 %v1217_v51, %v1220_v25  ;;  %v1525_v51 = vstv %s5971_s9  ;;  %s7906_s9 = sld [smem:[#allocation28_spill]] }
 0x38f   : > { %v1222_v2 = vmul.f32 1.442695, %v1221_v21 }
 0x391   : > { %4864 = vpow2.f32 %v1222_v2 }
 0x39e   : > { %v5858_v43 = vpop.eup %4864 }
 0x39f   : > { %4680 = vmatmul.mubr.msk.f32.vlgmr.msra.gmra.mxu0 %vm802_vm2, %v5858_v43 }
 0x3a0   : > { %4683 = vmatpush3.xpose.msk.msra.mxu0 %vm479_vm1, %v4158_v39  ;;  %4686 = vmatprep.mubr.msk.f32.mxu0 %vm5051_vm0, %v5050_v0 }
 0x3a1   : > { %4684 = vmatprep.subr.mxu0 %v5050_v0 }
 0x3a4   : > { %4685 = vmatpush3.xpose.msk.msra.mxu0 %vm479_vm1, %v4157_v30  ;;  %v1529_v30 = vstv %s5977_s22  ;;  %s7907_s22 = sld [smem:[#allocation26_spill]] }
 0x3a5   : > { %4703 = vmatprep.subr.mxu0 %v5050_v0 }
 0x3a7   : > { %4687 = vmatmul.mubr.msk.f32.vlgmr.msra.gmra.mxu0 %vm479_vm1, %v4156_v6  ;;  %v1533_v6 = vmul.f32 %v5948_v24, %v1532_v62 }
 0x3a8   : > { %4707 = vmatprep.mubr.msk.f32.mxu0 %vm5051_vm0, %v5050_v0 }
 0x45f   : > { %v5965_v56 = vpop.f32.mrf.mxu0 }
 0x461   : > { %v4681_v42 = vpop.f32.mrf.mxu0 }
 0x467   : > { %v6015_v13 = vpop.f32.mrf.mxu0 }
 0x468   : > { %v1395_v36 = vmul.f32 %v1394_v49, %v6015_v13  ;;  %v1410_v46 = vmul.f32 %v1409_v55, %v6015_v13  ;;  %v1425_v37 = vmul.f32 %v1424_v35, %v6015_v13  ;;  %v1440_v25 = vmul.f32 %v1439_v27, %v6015_v13 }
 0x469   : > { %v4688_v21 = vpop.f32.mrf.mxu0  ;;  %v1455_v2 = vmul.f32 %v1454_v32, %v6015_v13  ;;  %v1470_v39 = vmul.f32 %v1469_v1, %v6015_v13  ;;  %v1485_v44 = vmul.f32 %v1484_v41, %v6015_v13  ;;  %v1536_v35 = vstv %s5983_s1  ;;  %s6142_s1 = sld [smem:[#allocation8 + $0x10d]] }
 0x46a   : > { %v1399_v40 = vadd.f32 %v5951_v48, %v1395_v36  ;;  %v1414_v29 = vadd.f32 %v5960_v16, %v1410_v46  ;;  %v1429_v49 = vadd.f32 %v1428_v5, %v1425_v37  ;;  %v1444_v47 = vadd.f32 %v1443_v20, %v1440_v25 }
 0x46b   : > { %v1459_v55 = vadd.f32 %v1458_v52, %v1455_v2  ;;  %v1562_v16 = vstv %s6001_s14  ;;  %v1474_v27 = vadd.f32 %v1473_v3, %v1470_v39  ;;  %v1500_v20 = vmul.f32 %v1499_v38, %v6015_v13  ;;  %s6181_s14 = sld [smem:[#allocation8 + $0x180]] }
 0x46c   : > { %v1402_v4 = vadd.f32 %v1401_v58, %v1399_v40  ;;  %v1417_v42 = vadd.f32 %v1416_v59, %v1414_v29  ;;  %v1432_v48 = vadd.f32 %v1431_v53, %v1429_v49  ;;  %v1447_v5 = vadd.f32 %v1446_v50, %v1444_v47 }
 0x46d   : > { %v1544_v32 = vstv %s5989_s12  ;;  %v1548_v59 = vmul.f32 %v5948_v24, %v1547_v63  ;;  %v1551_v53 = vstv %s6007_s11  ;;  %v1462_v50 = vadd.f32 %v1461_v7, %v1459_v55  ;;  %s6074_s12 = sld [smem:[#allocation5 + $0x10f]] }
 0x46e   : > { %v1403_v58 = vmax.f32 %v1402_v4, 0.0  ;;  %v1418_v52 = vmax.f32 %v1417_v42, 0.0  ;;  %v1489_v23 = vadd.f32 %v1488_v12, %v1485_v44  ;;  %v1559_v1 = vstv %s6013_s13  ;;  %s6183_s11 = sld [smem:[#allocation2 + $0x181]] }
 0x46f   : > { %v1563_v3 = vmul.f32 %v5948_v24, %v1562_v16  ;;  %v1433_v41 = vmax.f32 %v1432_v48, 0.0  ;;  %v1577_v38 = vstv %s6029_s3  ;;  %v1448_v62 = vmax.f32 %v1447_v5, 0.0  ;;  %s6185_s13 = sld [smem:[#allocation5 + $0x181]] }
 0x470   : > { %v1406_v8 = vmul.f32 %v1405_v54, %v1403_v58  ;;  %v1477_v36 = vadd.f32 %v1476_v60, %v1474_v27  ;;  %v1504_v46 = vadd.f32 %v1503_v19, %v1500_v20  ;;  %v1574_v37 = vstv %s6035_s7  ;;  %s6189_s3 = sld [smem:[#allocation8 + $0x181]] }
 0x471   : > { %v1421_v12 = vmul.f32 %v1420_v22, %v1418_v52  ;;  %v1515_v54 = vmul.f32 %v1514_v26, %v6015_v13  ;;  %v1530_v25 = vmul.f32 %v1529_v30, %v6015_v13  ;;  %v1463_v21 = vmax.f32 %v1462_v50, 0.0  ;;  %s6191_s7 = sld [smem:[#allocation2 + $0x182]] }
 0x472   : > { %v1407_v7 = vadd.f32 %v1406_v8, %v1391_v17  ;;  %v1492_v2 = vadd.f32 %v1491_v15, %v1489_v23  ;;  %v1578_v60 = vmul.f32 %v5948_v24, %v1577_v38  ;;  %v1581_v19 = vstv %s6042_s19  ;;  %s6193_s19 = sld [smem:[#allocation5 + $0x182]] }
 0x473   : > { %v1436_v17 = vmul.f32 %v1435_v57, %v1433_v41  ;;  %v1519_v22 = vadd.f32 %v6019_v34, %v1515_v54  ;;  %v1545_v26 = vmul.f32 %v1544_v32, %v6015_v13  ;;  %v1478_v30 = vmax.f32 %v1477_v36, 0.0 }
 0x474   : > { %v1422_v39 = vadd.f32 %v1421_v12, %v1407_v7  ;;  %v1507_v40 = vadd.f32 %v1506_v45, %v1504_v46  ;;  %v1589_v15 = vstv %s6051_s26  ;;  %v1592_v29 = vstv %s6055_s17  ;;  %s6195_s26 = sld [smem:[#allocation7 + $0x182]] }
 0x475   : > { %v1451_v47 = vmul.f32 %v1450_v61, %v1448_v62  ;;  %v1534_v55 = vadd.f32 %v1533_v6, %v1530_v25  ;;  %v1560_v57 = vmul.f32 %v1559_v1, %v6015_v13  ;;  %v1466_v44 = vmul.f32 %v1465_v31, %v1463_v21  ;;  %s6197_s17 = sld [smem:[#allocation8 + $0x182]] }
 0x476   : > { %v1437_v49 = vadd.f32 %v1436_v17, %v1422_v39  ;;  %v1493_v34 = vmax.f32 %v1492_v2, 0.0  ;;  %v1604_v63 = vstv %s6059_s0  ;;  %v1607_v45 = vstv %s6065_s6  ;;  %s6199_s0 = sld [smem:[#allocation2 + $0x183]] }
 0x477   : > { %v1522_v42 = vadd.f32 %v1521_v33, %v1519_v22  ;;  %v1549_v48 = vadd.f32 %v1548_v59, %v1545_v26  ;;  %v1575_v61 = vmul.f32 %v1574_v37, %v6015_v13  ;;  %v1508_v6 = vmax.f32 %v1507_v40, 0.0  ;;  %s6201_s6 = sld [smem:[#allocation5 + $0x183]] }
 0x478   : > { %v1452_v4 = vadd.f32 %v1451_v47, %v1437_v49  ;;  %v1590_v31 = vmul.f32 %v1589_v15, %v6015_v13  ;;  %v1593_v16 = vmul.f32 %v5948_v24, %v1592_v29  ;;  %v1622_v5 = vstv %s6074_s12  ;;  %s6205_s12 = sld [smem:[#allocation8 + $0x183]] }
 0x479   : > { %v1481_v20 = vmul.f32 %v1480_v11, %v1478_v30  ;;  %v1537_v33 = vadd.f32 %v1536_v35, %v1534_v55  ;;  %v1564_v32 = vadd.f32 %v1563_v3, %v1560_v57  ;;  %v1496_v58 = vmul.f32 %v1495_v18, %v1493_v34 }
 0x47a   : > { %v1467_v27 = vadd.f32 %v1466_v44, %v1452_v4  ;;  %v1605_v52 = vmul.f32 %v1604_v63, %v6015_v13  ;;  %v1608_v59 = vmul.f32 %v5948_v24, %v1607_v45  ;;  %v1619_v50 = vstv %s6086_s18  ;;  %s6207_s18 = sld [smem:[#allocation2 + $0x184]] }
 0x47b   : > { %v1523_v1 = vmax.f32 %v1522_v42, 0.0  ;;  %v1552_v11 = vadd.f32 %v1551_v53, %v1549_v48  ;;  %v1579_v35 = vadd.f32 %v1578_v60, %v1575_v61  ;;  %v1511_v3 = vmul.f32 %v1510_v10, %v1508_v6  ;;  %7909 = sst [smem:[#allocation29_spill]] %s6197_s17 }
 0x47c   : > { %v1482_v23 = vadd.f32 %v1481_v20, %v1467_v27  ;;  %v1594_v18 = vadd.f32 %v1593_v16, %v1590_v31  ;;  %v1596_v8 = vstv %s6096_s23  ;;  %v1623_v41 = vmul.f32 %v5948_v24, %v1622_v5  ;;  %v4160_v20 = vld [vmem:[%s7906_s9 + $0x28] sm:$0xff]  ;;  %s6209_s23 = sld [smem:[#allocation5 + $0x184]] }
 0x47d   : > { %v1538_v62 = vmax.f32 %v1537_v33, 0.0  ;;  %v1567_v36 = vadd.f32 %v1566_v9, %v1564_v32  ;;  %v1620_v46 = vmul.f32 %v1619_v50, %v6015_v13  ;;  %v1540_v37 = vstv %s6103_s4  ;;  %v4159_v33 = vld [vmem:[%s7906_s9 + $0x20] sm:$0xff]  ;;  %4690 = vmatpush3.msra.mxu1 %v4160_v20  ;;  %s6211_s4 = sld [smem:[#allocation7 + $0x184]] }
 0x47e   : > { %v1497_v38 = vadd.f32 %v1496_v58, %v1482_v23  ;;  %v1609_v10 = vadd.f32 %v1608_v59, %v1605_v52  ;;  %v1526_v7 = vmul.f32 %v1525_v51, %v1523_v1  ;;  %v1553_v12 = vmax.f32 %v1552_v11, 0.0  ;;  %4691 = vmatprep.subr.mxu1 %v5050_v0  ;;  %v4232_v59 = vld [vmem:[%s7907_s22 + $0x38] sm:$0xff]  ;;  %v4231_v23 = vld [vmem:[%s7907_s22 + $0x30] sm:$0xff]  ;;  %s6231_s22 = sld [smem:[#allocation2 + $0x187]] }
 0x47f   : > { %v1582_v54 = vadd.f32 %v1581_v19, %v1579_v35  ;;  %v1555_v25 = vstv %s6109_s27  ;;  %v1597_v21 = vadd.f32 %v1596_v8, %v1594_v18  ;;  %v1611_v2 = vstv %s6114_s28  ;;  %4692 = vmatpush3.msra.mxu1 %v4159_v33  ;;  %v4230_v1 = vld [vmem:[%s7908_s20 + $0x18] sm:$0xff]  ;;  %s6213_s27 = sld [smem:[#allocation8 + $0x184]] }
 0x480   : > { %v1512_v53 = vadd.f32 %v1511_v3, %v1497_v38  ;;  %v1541_v9 = vmul.f32 %v1540_v37, %v1538_v62  ;;  %v1568_v13 = vmax.f32 %v1567_v36, 0.0  ;;  %v1624_v39 = vadd.f32 %v1623_v41, %v1620_v46  ;;  %4696 = vmatprep.subr.mxu1 %v5050_v0  ;;  %s6215_s28 = sld [smem:[#allocation2 + $0x185]] }
 0x481   : > { %v1570_v17 = vstv %s6121_s29  ;;  %v1626_v22 = vstv %s6128_s21  ;;  %v1556_v30 = vmul.f32 %v1555_v25, %v1553_v12  ;;  %v1583_v40 = vmax.f32 %v1582_v54, 0.0  ;;  %s6217_s29 = sld [smem:[#allocation5 + $0x185]] }
 0x482   : > { %v1527_v60 = vadd.f32 %v1526_v7, %v1512_v53  ;;  %v1612_v15 = vadd.f32 %v1611_v2, %v1609_v10  ;;  %v1585_v51 = vstv %s6134_s5  ;;  %v1571_v19 = vmul.f32 %v1570_v17, %v1568_v13  ;;  %s6219_s21 = sld [smem:[#allocation7 + $0x185]] }
 0x483   : > { %v1598_v49 = vmax.f32 %v1597_v21, 0.0  ;;  %v1627_v47 = vadd.f32 %v1626_v22, %v1624_v39  ;;  %v1600_v55 = vstv %s6142_s1  ;;  %v1586_v44 = vmul.f32 %v1585_v51, %v1583_v40  ;;  %s6221_s5 = sld [smem:[#allocation8 + $0x185]] }
 0x484   : > { %v1542_v26 = vadd.f32 %v1541_v9, %v1527_v60  ;;  %v1613_v34 = vmax.f32 %v1612_v15, 0.0  ;;  %v1615_v63 = vstv %s4224_s8  ;;  %v1630_v48 = vstv %s4228_s24  ;;  %s6223_s1 = sld [smem:[#allocation2 + $0x186]] }
 0x485   : > { %v1601_v4 = vmul.f32 %v1600_v55, %v1598_v49  ;;  %v1628_v42 = vmax.f32 %v1627_v47, 0.0  ;;  %s6225_s8 = sld [smem:[#allocation5 + $0x186]]  ;;  %v1812_v11 = vstv %s6177_s16  ;;  %v1827_v35 = vstv %s6185_s13 }
 0x486   : > { %v1557_v29 = vadd.f32 %v1556_v30, %v1542_v26  ;;  %v1616_v6 = vmul.f32 %v1615_v63, %v1613_v34  ;;  %s6227_s24 = sld [smem:[#allocation7 + $0x186]]  ;;  %v1806_v3 = vstv %s6173_s30  ;;  %v1809_v18 = vstv %s6175_s2 }
 0x487   : > { %v1631_v16 = vmul.f32 %v1630_v48, %v1628_v42  ;;  %s6229_s20 = sld [smem:[#allocation8 + $0x186]]  ;;  %v6248_v8 = vmul.f32 %v5948_v24, %v1812_v11  ;;  %v1816_v41 = vstv %s6179_s10  ;;  %v1842_v38 = vstv %s6193_s19 }
 0x488   : > { %v1572_v57 = vadd.f32 %v1571_v19, %v1557_v29  ;;  %7910 = sst [smem:[#allocation25_spill]] %s6219_s21  ;;  %v1820_v62 = vstv %s6181_s14  ;;  %v1824_v36 = vstv %s6183_s11  ;;  %v6257_v46 = vmul.f32 %v5948_v24, %v1827_v35 }
 0x489   : > { %7911 = sst [smem:[#allocation30_spill]] %s6221_s5  ;;  %v1857_v37 = vstv %s6201_s6  ;;  %v1831_v53 = vstv %s6187_s25  ;;  %v1835_v7 = vstv %s6189_s3  ;;  %v1839_v12 = vstv %s6191_s7 }
 0x48a   : > { %v1587_v45 = vadd.f32 %v1586_v44, %v1572_v57  ;;  %7912 = sst [smem:[#allocation31_spill]] %s6223_s1  ;;  %v1872_v54 = vstv %s6209_s23  ;;  %v1843_v25 = vmul.f32 %v5948_v24, %v1842_v38  ;;  %v1846_v21 = vstv %s6195_s26 }
 0x48b   : > { %s6233_s9 = sld [smem:[#allocation5 + $0x187]]  ;;  %v1850_v2 = vstv %s6197_s17  ;;  %v1887_v60 = vstv %s6217_s29  ;;  %v1854_v13 = vstv %s6199_s0  ;;  %v1858_v39 = vmul.f32 %v5948_v24, %v1857_v37 }
 0x48c   : > { %v1602_v61 = vadd.f32 %v1601_v4, %v1587_v45  ;;  %s6235_s21 = sld [smem:[#allocation7 + $0x187]]  ;;  %v1861_v17 = vstv %s6203_s15  ;;  %v1865_v22 = vstv %s6205_s12  ;;  %v1869_v26 = vstv %s6207_s18 }
 0x48d   : > { %7913 = sst [smem:[#allocation32_spill]] %s6229_s20  ;;  %v1873_v30 = vmul.f32 %v5948_v24, %v1872_v54  ;;  %v1876_v40 = vstv %s6211_s4  ;;  %v1902_v15 = vstv %s6225_s8  ;;  %v1880_v51 = vstv %s6213_s27 }
 0x48e   : > { %v1617_v31 = vadd.f32 %v1616_v6, %v1602_v61  ;;  %s6238_s5 = sld [smem:[#allocation8 + $0x187]]  ;;  %v1884_v29 = vstv %s6215_s28  ;;  %v1888_v19 = vmul.f32 %v5948_v24, %v1887_v60  ;;  %v1903_v34 = vmul.f32 %v5948_v24, %v1902_v15 }
 0x48f   : > { %s6241_s1 = sld [smem:[#allocation2 + $0x188]]  ;;  %v1906_v63 = vstv %s6227_s24  ;;  %v1914_v4 = vstv %s6231_s22 }
 0x490   : > { %v1632_v5 = vadd.f32 %v1631_v16, %v1617_v31  ;;  %s6244_s20 = sld [smem:[#allocation5 + $0x188]] }
 0x491   : > { %s6252_s16 = sld [smem:[#allocation7 + $0x188]]  ;;  %v1917_v49 = vstv %s6233_s9 }
 0x492   : > { %v1633_v27 = vsel %vm802_vm2, %v1632_v5, -inf  ;;  %s6260_s13 = sld [smem:[#allocation5 + $0x189]]  ;;  %v1918_v42 = vmul.f32 %v5948_v24, %v1917_v49  ;;  %v1921_v48 = vstv %s6235_s21 }
 0x493   : > { %1634 = vmax.xlane.f32.xlu1 %v1633_v27  ;;  %s6268_s2 = sld [smem:[#allocation8 + $0x188]] }
 0x494   : > { %s6274_s11 = sld [smem:[#allocation2 + $0x189]]  ;;  %v1925_v61 = vstv %s6238_s5 }
 0x495   : > { %s7914_s19 = sld [smem:[#allocation25_spill]]  ;;  %v1929_v16 = vstv %s6241_s1 }
 0x496   : > { %s7915_s7 = sld [smem:[#allocation30_spill]]  ;;  %v1932_v44 = vstv %s6244_s20 }
 0x497   : > { %s7916_s6 = sld [smem:[#allocation31_spill]]  ;;  %v1936_v27 = vstv %s6252_s16 }
 0x498   : > { %s6280_s23 = sld [smem:[#allocation7 + $0x189]]  ;;  %v1947_v6 = vstv %s6260_s13 }
 0x499   : > { %s7917_s29 = sld [smem:[#allocation32_spill]]  ;;  %v1940_v20 = vstv %s6268_s2  ;;  %v1948_v35 = vmul.f32 %v5948_v24, %v1947_v6 }
 0x49a   : > { %s6286_s17 = sld [smem:[#allocation2 + $0x18a]]  ;;  %v1944_v11 = vstv %s6274_s11 }
 0x49b   : > { %s6292_s0 = sld [smem:[#allocation5 + $0x18a]]  ;;  %v1891_v47 = vstv %s7914_s19 }
 0x49c   : > { %v1895_v55 = vstv %s7915_s7  ;;  %s6298_s15 = sld [smem:[#allocation5 + $0x18b]] }
 0x49d   : > { %v1899_v57 = vstv %s7916_s6  ;;  %s6304_s18 = sld [smem:[#allocation7 + $0x18a]] }
 0x49e   : > { %s6310_s9 = sld [smem:[#allocation2 + $0x18b]]  ;;  %v1951_v60 = vstv %s6280_s23 }
 0x49f   : > { %v1910_v45 = vstv %s7917_s29  ;;  %s6320_s20 = sld [smem:[#allocation7 + $0x18b]] }
 0x4a0   : > { %s6326_s22 = sld [smem:[#allocation5 + $0x18c]]  ;;  %v1959_v15 = vstv %s6286_s17 }
 0x4a1   : > { %s6332_s28 = sld [smem:[#allocation2 + $0x18c]] }
 0x4a2   : > { %s6339_s1 = sld [smem:[#allocation7 + $0x18c]] }
 0x4a3   : > { %s6348_s8 = sld [smem:[#allocation2 + $0x18d]] }
 0x4a4   : > { %s6352_s13 = sld [smem:[#allocation5 + $0x18d]]  ;;  %v1974_v49 = vstv %s6310_s9 }
 0x4a5   : > { %s6356_s10 = sld [smem:[#allocation2 + $0x18e]]  ;;  %v1981_v6 = vstv %s6320_s20 }
 0x4a6   : > { %s6362_s25 = sld [smem:[#allocation5 + $0x18e]] }
 0x4a7   : > { %s6371_s17 = sld [smem:[#allocation5 + $0x18f]] }
 0x4a8   : > { %s6383_s14 = sld [smem:[#allocation2 + $0x18f]] }
 0x4a9   : > { %s6393_s30 = sld [smem:[#allocation7 + $0x18d]] }
 0x4aa   : > { %s6400_s3 = sld [smem:[#allocation8 + $0x189]] }
 0x4ab   : > { %s6406_s12 = sld [smem:[#allocation8 + $0x18a]] }
 0x4ac   : > { %s6411_s4 = sld [smem:[#allocation7 + $0x18e]] }
 0x4ad   : > { %s6418_s27 = sld [smem:[#allocation8 + $0x18b]] }
 0x4ae   : > { %s6425_s21 = sld [smem:[#allocation7 + $0x18f]] }
 0x4af   : > { %s6431_s24 = sld [smem:[#allocation8 + $0x18c]] }
 0x4b0   : > { %s6439_s16 = sld [smem:[#allocation8 + $0x18d]] }
 0x4b1   : > { %s4298_s5 = sld [smem:[#allocation8 + $0x18e]] }
 0x4b2   : > { %s4302_s11 = sld [smem:[#allocation8 + $0x18f]] }
 0x4b3   : > { %s7919_s2 = sld [smem:[#allocation28_spill]] }
 0x4b4   : > { %s7920_s19 = sld [smem:[#allocation26_spill]] }
 0x4b5   : > { %s7921_s7 = sld [smem:[#allocation27_spill]] }
 0x4b6   : > { %s6470_s6 = sld [smem:[#allocation10]] }
 0x4b7   : > { %s6472_s23 = sld [smem:[#allocation2]] }
 0x4b8   : > { %s6474_s29 = sld [smem:[#allocation5]] }
 0x4b9   : > { %s6482_s9 = sld [smem:[#allocation5 + $0x1]] }
 0x4ba   : > { %s6484_s20 = sld [smem:[#allocation7 + $0x1]] }
 0x4bb   : > { %s6500_s26 = sld [smem:[#allocation7 + $0x3]] }
 0x51c   : > { %v1635_v32 = vpop.xlane.xlu1 %1634 }
 0x51d   : > { %v1636_v58 = vsub.f32 %v1632_v5, %v1635_v32  ;;  %v6316_v5 = vmul.f32 %v5948_v24, %v1932_v44 }
 0x51f   : > { %v1637_v52 = vmul.f32 1.442695, %v1636_v58 }
 0x521   : > { %4866 = vpow2.f32 %v1637_v52 }
 0x52e   : > { %v6158_v50 = vpop.eup %4866 }
 0x52f   : > { %4694 = vmatmul.mubr.msk.f32.vlgmr.msra.gmra.mxu1 %vm802_vm2, %v6158_v50 }
 0x530   : > { %4697 = vmatpush3.xpose.msk.msra.mxu1 %vm479_vm1, %v4232_v59  ;;  %4700 = vmatprep.mubr.msk.f32.mxu1 %vm5051_vm0, %v5050_v0 }
 0x531   : > { %4698 = vmatprep.subr.mxu1 %v5050_v0 }
 0x534   : > { %4699 = vmatpush3.xpose.msk.msra.mxu1 %vm479_vm1, %v4231_v23 }
 0x535   : > { %4717 = vmatprep.subr.mxu1 %v5050_v0 }
 0x537   : > { %4701 = vmatmul.mubr.msk.f32.vlgmr.msra.gmra.mxu1 %vm479_vm1, %v4230_v1 }
 0x538   : > { %4721 = vmatprep.mubr.msk.f32.mxu1 %vm5051_vm0, %v5050_v0 }
 0x5ef   : > { %v6262_v10 = vpop.f32.mrf.mxu1 }
 0x5f1   : > { %v4695_v9 = vpop.f32.mrf.mxu1 }
 0x5f2   : > { %v1962_v9 = vstv %s6292_s0  ;;  %s6476_s0 = sld [smem:[#allocation7]] }
 0x5f7   : > { %v6312_v31 = vpop.f32.mrf.mxu1 }
 0x5f8   : > { %v1810_v33 = vmul.f32 %v1809_v18, %v6312_v31  ;;  %v1825_v32 = vmul.f32 %v1824_v36, %v6312_v31  ;;  %v1840_v58 = vmul.f32 %v1839_v12, %v6312_v31  ;;  %v1855_v52 = vmul.f32 %v1854_v13, %v6312_v31 }
 0x5f9   : > { %v4702_v59 = vpop.f32.mrf.mxu1  ;;  %v1870_v23 = vmul.f32 %v1869_v26, %v6312_v31  ;;  %v1885_v1 = vmul.f32 %v1884_v29, %v6312_v31  ;;  %v1900_v54 = vmul.f32 %v1899_v57, %v6312_v31 }
 0x5fa   : > { %v1814_v18 = vadd.f32 %v6248_v8, %v1810_v33  ;;  %v1829_v38 = vadd.f32 %v6257_v46, %v1825_v32  ;;  %v1844_v36 = vadd.f32 %v1843_v25, %v1840_v58  ;;  %v1859_v37 = vadd.f32 %v1858_v39, %v1855_v52 }
 0x5fb   : > { %v1874_v12 = vadd.f32 %v1873_v30, %v1870_v23  ;;  %v1977_v46 = vstv %s6298_s15  ;;  %v1889_v39 = vadd.f32 %v1888_v19, %v1885_v1  ;;  %v1915_v30 = vmul.f32 %v1914_v4, %v6312_v31  ;;  %s6478_s15 = sld [smem:[#allocation8]] }
 0x5fc   : > { %v1817_v13 = vadd.f32 %v1816_v41, %v1814_v18  ;;  %v1832_v26 = vadd.f32 %v1831_v53, %v1829_v38  ;;  %v1847_v8 = vadd.f32 %v1846_v21, %v1844_v36  ;;  %v1862_v25 = vadd.f32 %v1861_v17, %v1859_v37 }
 0x5fd   : > { %v1963_v53 = vmul.f32 %v5948_v24, %v1962_v9  ;;  %v1966_v21 = vstv %s6304_s18  ;;  %v1877_v17 = vadd.f32 %v1876_v40, %v1874_v12  ;;  %v1904_v19 = vadd.f32 %v1903_v34, %v1900_v54  ;;  %s6480_s18 = sld [smem:[#allocation2 + $0x1]] }
 0x5fe   : > { %v1818_v41 = vmax.f32 %v1817_v13, 0.0  ;;  %v1833_v29 = vmax.f32 %v1832_v26, 0.0  ;;  %v1978_v57 = vmul.f32 %v5948_v24, %v1977_v46  ;;  %v1848_v4 = vmax.f32 %v1847_v8, 0.0 }
 0x5ff   : > { %v1992_v33 = vstv %s6326_s22  ;;  %v1863_v32 = vmax.f32 %v1862_v25, 0.0  ;;  %v1892_v58 = vadd.f32 %v1891_v47, %v1889_v39  ;;  %v1919_v52 = vadd.f32 %v1918_v42, %v1915_v30  ;;  %s6486_s22 = sld [smem:[#allocation8 + $0x1]] }
 0x600   : > { %v1821_v44 = vmul.f32 %v1820_v62, %v1818_v41  ;;  %v1989_v59 = vstv %s6332_s28  ;;  %v1836_v34 = vmul.f32 %v1835_v7, %v1833_v29  ;;  %v1930_v62 = vmul.f32 %v1929_v16, %v6312_v31  ;;  %s6488_s28 = sld [smem:[#allocation2 + $0x2]] }
 0x601   : > { %v1945_v23 = vmul.f32 %v1944_v11, %v6312_v31  ;;  %v1878_v1 = vmax.f32 %v1877_v17, 0.0  ;;  %v1907_v18 = vadd.f32 %v1906_v63, %v1904_v19  ;;  %v1993_v47 = vmul.f32 %v5948_v24, %v1992_v33 }
 0x602   : > { %v1822_v40 = vadd.f32 %v1821_v44, %v1806_v3  ;;  %v1996_v42 = vstv %s6339_s1  ;;  %v1851_v3 = vmul.f32 %v1850_v2, %v1848_v4  ;;  %v1934_v7 = vadd.f32 %v6316_v5, %v1930_v62  ;;  %s6490_s1 = sld [smem:[#allocation5 + $0x2]] }
 0x603   : > { %v1960_v16 = vmul.f32 %v1959_v15, %v6312_v31  ;;  %v1893_v11 = vmax.f32 %v1892_v58, 0.0  ;;  %v1922_v36 = vadd.f32 %v1921_v48, %v1919_v52  ;;  %v2004_v63 = vstv %s6348_s8  ;;  %s6492_s8 = sld [smem:[#allocation7 + $0x2]] }
 0x604   : > { %v1837_v38 = vadd.f32 %v1836_v34, %v1822_v40  ;;  %v2007_v37 = vstv %s6352_s13  ;;  %v1866_v54 = vmul.f32 %v1865_v22, %v1863_v32  ;;  %v1949_v9 = vadd.f32 %v1948_v35, %v1945_v23  ;;  %s6494_s13 = sld [smem:[#allocation8 + $0x2]] }
 0x605   : > { %v1975_v2 = vmul.f32 %v1974_v49, %v6312_v31  ;;  %v1881_v13 = vmul.f32 %v1880_v51, %v1878_v1  ;;  %v1908_v5 = vmax.f32 %v1907_v18, 0.0  ;;  %v2019_v26 = vstv %s6356_s10  ;;  %s6496_s10 = sld [smem:[#allocation2 + $0x3]] }
 0x606   : > { %v1852_v12 = vadd.f32 %v1851_v3, %v1837_v38  ;;  %v2022_v48 = vstv %s6362_s25  ;;  %v1937_v46 = vadd.f32 %v1936_v27, %v1934_v7  ;;  %v1964_v25 = vadd.f32 %v1963_v53, %v1960_v16  ;;  %s6498_s25 = sld [smem:[#allocation5 + $0x3]] }
 0x607   : > { %v1990_v22 = vmul.f32 %v1989_v59, %v6312_v31  ;;  %v1923_v35 = vmax.f32 %v1922_v36, 0.0  ;;  %v2005_v51 = vmul.f32 %v2004_v63, %v6312_v31  ;;  %v2008_v39 = vmul.f32 %v5948_v24, %v2007_v37 }
 0x608   : > { %v1867_v8 = vadd.f32 %v1866_v54, %v1852_v12  ;;  %v2037_v30 = vstv %s6371_s17  ;;  %v1896_v41 = vmul.f32 %v1895_v55, %v1893_v11  ;;  %v1952_v27 = vadd.f32 %v1951_v60, %v1949_v9  ;;  %s6502_s17 = sld [smem:[#allocation8 + $0x3]] }
 0x609   : > { %v1979_v29 = vadd.f32 %v1978_v57, %v1975_v2  ;;  %v1911_v53 = vmul.f32 %v1910_v45, %v1908_v5  ;;  %v2020_v17 = vmul.f32 %v2019_v26, %v6312_v31  ;;  %v2023_v19 = vmul.f32 %v5948_v24, %v2022_v48 }
 0x60a   : > { %v1882_v15 = vadd.f32 %v1881_v13, %v1867_v8  ;;  %v2034_v49 = vstv %s6383_s14  ;;  %v1938_v4 = vmax.f32 %v1937_v46, 0.0  ;;  %v1967_v55 = vadd.f32 %v1966_v21, %v1964_v25  ;;  %7922 = sst [smem:[#allocation33_spill]] %s6494_s13 }
 0x60b   : > { %v1994_v60 = vadd.f32 %v1993_v47, %v1990_v22  ;;  %v1926_v57 = vmul.f32 %v1925_v61, %v1923_v35  ;;  %v2009_v45 = vadd.f32 %v2008_v39, %v2005_v51  ;;  %v2011_v33 = vstv %s6393_s30  ;;  %s7923_s14 = sld [smem:[#allocation35_spill]] }
 0x60c   : > { %v1897_v44 = vadd.f32 %v1896_v41, %v1882_v15  ;;  %v2038_v32 = vmul.f32 %v5948_v24, %v2037_v30  ;;  %v1953_v52 = vmax.f32 %v1952_v27, 0.0  ;;  %v1982_v59 = vadd.f32 %v1981_v6, %v1979_v29  ;;  %v4234_v27 = vld [vmem:[%s7919_s2 + $0x38] sm:$0xff]  ;;  %v4233_v29 = vld [vmem:[%s7919_s2 + $0x30] sm:$0xff]  ;;  %s6504_s30 = sld [smem:[#allocation2 + $0x4]] }
 0x60d   : > { %v2035_v40 = vmul.f32 %v2034_v49, %v6312_v31  ;;  %v1955_v34 = vstv %s6400_s3  ;;  %v2024_v61 = vadd.f32 %v2023_v19, %v2020_v17  ;;  %v1941_v62 = vmul.f32 %v1940_v20, %v1938_v4  ;;  %4704 = vmatpush3.msra.mxu0 %v4234_v27  ;;  %v4307_v49 = vld [vmem:[%s7920_s19 + $0x48] sm:$0xff]  ;;  %v4306_v4 = vld [vmem:[%s7920_s19 + $0x40] sm:$0xff]  ;;  %s6506_s3 = sld [smem:[#allocation5 + $0x4]] }
 0x60e   : > { %v1912_v58 = vadd.f32 %v1911_v53, %v1897_v44  ;;  %v1968_v23 = vmax.f32 %v1967_v55, 0.0  ;;  %v1997_v1 = vadd.f32 %v1996_v42, %v1994_v60  ;;  %v1970_v18 = vstv %s6406_s12  ;;  %4705 = vmatprep.subr.mxu0 %v5050_v0  ;;  %v4305_v55 = vld [vmem:[%s7921_s7 + $0x20] sm:$0xff]  ;;  %s6508_s12 = sld [smem:[#allocation7 + $0x4]] }
 0x60f   : > { %v2012_v24 = vadd.f32 %v2011_v33, %v2009_v45  ;;  %v2026_v47 = vstv %s6411_s4  ;;  %v1956_v6 = vmul.f32 %v1955_v34, %v1953_v52  ;;  %v1983_v31 = vmax.f32 %v1982_v59, 0.0  ;;  %4706 = vmatpush3.msra.mxu0 %v4233_v29  ;;  %s6510_s4 = sld [smem:[#allocation8 + $0x4]] }
 0x610   : > { %v1927_v21 = vadd.f32 %v1926_v57, %v1912_v58  ;;  %v2039_v3 = vadd.f32 %v2038_v32, %v2035_v40  ;;  %v1985_v7 = vstv %s6418_s27  ;;  %v2041_v16 = vstv %s6425_s21  ;;  %4710 = vmatprep.subr.mxu0 %v5050_v0  ;;  %s6512_s27 = sld [smem:[#allocation2 + $0x5]] }
 0x611   : > { %v1971_v36 = vmul.f32 %v1970_v18, %v1968_v23  ;;  %v1998_v63 = vmax.f32 %v1997_v1, 0.0  ;;  %v2027_v37 = vadd.f32 %v2026_v47, %v2024_v61  ;;  %v2000_v20 = vstv %s6431_s24  ;;  %s6514_s21 = sld [smem:[#allocation5 + $0x5]]  ;;  %v6535_v60 = vld [vmem:[%s7923_s14 + $0x8] sm:$0xff] }
 0x612   : > { %v1942_v38 = vadd.f32 %v1941_v62, %v1927_v21  ;;  %v1986_v42 = vmul.f32 %v1985_v7, %v1983_v31  ;;  %v2013_v54 = vmax.f32 %v2012_v24, 0.0  ;;  %v2042_v9 = vadd.f32 %v2041_v16, %v2039_v3  ;;  %s6516_s24 = sld [smem:[#allocation7 + $0x5]] }
 0x613   : > { %v2015_v2 = vstv %s6439_s16  ;;  %v2001_v5 = vmul.f32 %v2000_v20, %v1998_v63  ;;  %v2028_v26 = vmax.f32 %v2027_v37, 0.0  ;;  %v2030_v48 = vstv %s4298_s5  ;;  %s6518_s16 = sld [smem:[#allocation8 + $0x5]] }
 0x614   : > { %v1957_v11 = vadd.f32 %v1956_v6, %v1942_v38  ;;  %v2016_v46 = vmul.f32 %v2015_v2, %v2013_v54  ;;  %v2043_v25 = vmax.f32 %v2042_v9, 0.0  ;;  %v2045_v22 = vstv %s4302_s11  ;;  %s6520_s5 = sld [smem:[#allocation2 + $0x6]] }
 0x615   : > { %v2031_v51 = vmul.f32 %v2030_v48, %v2028_v26  ;;  %s6522_s11 = sld [smem:[#allocation5 + $0x6]]  ;;  %v2247_v57 = vstv %s6474_s29  ;;  %v2262_v45 = vstv %s6482_s9  ;;  %v2241_v33 = vstv %s6470_s6 }
 0x616   : > { %v1972_v12 = vadd.f32 %v1971_v36, %v1957_v11  ;;  %v2046_v30 = vmul.f32 %v2045_v22, %v2043_v25  ;;  %7924 = sst [smem:[#allocation34_spill]] %s6512_s27  ;;  %v2244_v32 = vstv %s6472_s23  ;;  %v6548_v58 = vmul.f32 %v6535_v60, %v2247_v57 }
 0x617   : > { %s6524_s7 = sld [smem:[#allocation7 + $0x6]]  ;;  %v2251_v52 = vstv %s6476_s0  ;;  %v2277_v59 = vstv %s6490_s1  ;;  %v2255_v40 = vstv %s6478_s15  ;;  %v2259_v34 = vstv %s6480_s18 }
 0x618   : > { %v1987_v13 = vadd.f32 %v1986_v42, %v1972_v12  ;;  %7925 = sst [smem:[#allocation25_spill]] %s6516_s24  ;;  %v6557_v61 = vmul.f32 %v6535_v60, %v2262_v45  ;;  %v2292_v21 = vstv %s6498_s25  ;;  %v2266_v23 = vstv %s6484_s20 }
 0x619   : > { %s6526_s19 = sld [smem:[#allocation8 + $0x6]]  ;;  %v2270_v1 = vstv %s6486_s22  ;;  %v2274_v18 = vstv %s6488_s28  ;;  %v2307_v24 = vstv %s6506_s3  ;;  %v2278_v47 = vmul.f32 %v6535_v60, %v2277_v59 }
 0x61a   : > { %v2002_v8 = vadd.f32 %v2001_v5, %v1987_v13  ;;  %7926 = sst [smem:[#allocation30_spill]] %s6520_s5  ;;  %v2281_v38 = vstv %s6492_s8  ;;  %v2285_v6 = vstv %s6494_s13  ;;  %v2322_v31 = vstv %s6514_s21 }
 0x61b   : > { %s6528_s2 = sld [smem:[#allocation2 + $0x7]]  ;;  %v2289_v7 = vstv %s6496_s10  ;;  %v2293_v16 = vmul.f32 %v6535_v60, %v2292_v21  ;;  %v2296_v11 = vstv %s6500_s26  ;;  %v2300_v36 = vstv %s6502_s17 }
 0x61c   : > { %v2017_v35 = vadd.f32 %v2016_v46, %v2002_v8  ;;  %s6530_s27 = sld [smem:[#allocation5 + $0x7]]  ;;  %v2304_v63 = vstv %s6504_s30  ;;  %v2308_v37 = vmul.f32 %v6535_v60, %v2307_v24  ;;  %v2311_v20 = vstv %s6508_s12 }
 0x61d   : > { %7927 = sst [smem:[#allocation31_spill]] %s6524_s7  ;;  %v2337_v12 = vstv %s6522_s11  ;;  %v2315_v42 = vstv %s6510_s4  ;;  %v2323_v9 = vmul.f32 %v6535_v60, %v2322_v31  ;;  %v2330_v5 = vstv %s6518_s16 }
 0x61e   : > { %v2032_v39 = vadd.f32 %v2031_v51, %v2017_v35  ;;  %s6532_s24 = sld [smem:[#allocation7 + $0x7]]  ;;  %v2338_v8 = vmul.f32 %v6535_v60, %v2337_v12 }
 0x61f   : > { %s6538_s5 = sld [smem:[#allocation8 + $0x7]]  ;;  %v2345_v25 = vstv %s6526_s19 }
 0x620   : > { %v2047_v15 = vadd.f32 %v2046_v30, %v2032_v39  ;;  %s6541_s7 = sld [smem:[#allocation2 + $0x8]] }
 0x621   : > { %7928 = sst [smem:[#allocation32_spill]] %s6528_s2 }
 0x622   : > { %v2048_v41 = vsel %vm802_vm2, %v2047_v15, -inf  ;;  %s6544_s2 = sld [smem:[#allocation5 + $0x8]]  ;;  %v2352_v2 = vstv %s6530_s27 }
 0x623   : > { %2049 = vmax.xlane.f32.xlu1 %v2048_v41  ;;  %s6552_s29 = sld [smem:[#allocation7 + $0x8]]  ;;  %v2353_v35 = vmul.f32 %v6535_v60, %v2352_v2 }
 0x624   : > { %s6560_s9 = sld [smem:[#allocation5 + $0x9]]  ;;  %v2356_v51 = vstv %s6532_s24 }
 0x625   : > { %s6568_s23 = sld [smem:[#allocation8 + $0x8]]  ;;  %v2360_v39 = vstv %s6538_s5 }
 0x626   : > { %s7929_s18 = sld [smem:[#allocation34_spill]]  ;;  %v2364_v41 = vstv %s6541_s7 }
 0x627   : > { %s6574_s1 = sld [smem:[#allocation2 + $0x9]] }
 0x628   : > { %s7930_s25 = sld [smem:[#allocation25_spill]]  ;;  %v2367_v48 = vstv %s6544_s2 }
 0x629   : > { %s7931_s28 = sld [smem:[#allocation30_spill]]  ;;  %v6616_v27 = vmul.f32 %v6535_v60, %v2367_v48  ;;  %v2371_v29 = vstv %s6552_s29 }
 0x62a   : > { %s6580_s3 = sld [smem:[#allocation7 + $0x9]]  ;;  %v2382_v30 = vstv %s6560_s9 }
 0x62b   : > { %s7932_s14 = sld [smem:[#allocation31_spill]]  ;;  %v2383_v59 = vmul.f32 %v6535_v60, %v2382_v30 }
 0x62c   : > { %s7933_s21 = sld [smem:[#allocation32_spill]]  ;;  %v2319_v54 = vstv %s7929_s18 }
 0x62d   : > { %s6586_s13 = sld [smem:[#allocation2 + $0xa]] }
 0x62e   : > { %s6592_s10 = sld [smem:[#allocation5 + $0xa]]  ;;  %v2326_v13 = vstv %s7930_s25 }
 0x62f   : > { %v2334_v26 = vstv %s7931_s28  ;;  %s6598_s26 = sld [smem:[#allocation5 + $0xb]] }
 0x630   : > { %s6604_s30 = sld [smem:[#allocation7 + $0xa]] }
 0x631   : > { %v2341_v46 = vstv %s7932_s14  ;;  %s6610_s27 = sld [smem:[#allocation2 + $0xb]] }
 0x632   : > { %v2349_v22 = vstv %s7933_s21  ;;  %s6620_s2 = sld [smem:[#allocation7 + $0xb]] }
 0x633   : > { %s6626_s11 = sld [smem:[#allocation5 + $0xc]]  ;;  %v2394_v2 = vstv %s6586_s13 }
 0x634   : > { %s6632_s7 = sld [smem:[#allocation2 + $0xc]] }
 0x635   : > { %s6639_s9 = sld [smem:[#allocation7 + $0xc]] }
 0x636   : > { %s6648_s18 = sld [smem:[#allocation2 + $0xd]] }
 0x637   : > { %s6656_s0 = sld [smem:[#allocation2 + $0xe]]  ;;  %v2409_v48 = vstv %s6610_s27 }
 0x638   : > { %s6662_s20 = sld [smem:[#allocation5 + $0xe]] }
 0x639   : > { %s6671_s13 = sld [smem:[#allocation5 + $0xf]] }
 0x63a   : > { %s6683_s15 = sld [smem:[#allocation2 + $0xf]] }
 0x63b   : > { %s6693_s6 = sld [smem:[#allocation7 + $0xd]] }
 0x63c   : > { %s6700_s22 = sld [smem:[#allocation8 + $0x9]] }
 0x63d   : > { %s6706_s17 = sld [smem:[#allocation8 + $0xa]] }
 0x63e   : > { %s6711_s14 = sld [smem:[#allocation7 + $0xe]] }
 0x63f   : > { %s6718_s12 = sld [smem:[#allocation8 + $0xb]] }
 0x640   : > { %s6725_s4 = sld [smem:[#allocation7 + $0xf]] }
 0x641   : > { %s6731_s19 = sld [smem:[#allocation8 + $0xc]] }
 0x642   : > { %s6739_s24 = sld [smem:[#allocation8 + $0xd]] }
 0x643   : > { %s4368_s16 = sld [smem:[#allocation8 + $0xe]] }
 0x644   : > { %s4372_s5 = sld [smem:[#allocation8 + $0xf]] }
 0x645   : > { %s7935_s29 = sld [smem:[#allocation28_spill]] }
 0x646   : > { %s7937_s25 = sld [smem:[#allocation27_spill]] }
 0x647   : > { %s6770_s28 = sld [smem:[#allocation10 + $0x1]] }
 0x648   : > { %s6774_s21 = sld [smem:[#allocation5 + $0x80]] }
 0x649   : > { %s6782_s27 = sld [smem:[#allocation5 + $0x81]] }
 0x64a   : > { %s6800_s8 = sld [smem:[#allocation7 + $0x83]] }
 0x6ac   : > { %v2050_v53 = vpop.xlane.xlu1 %2049 }
 0x6ad   : > { %v2051_v17 = vsub.f32 %v2047_v15, %v2050_v53  ;;  %v2375_v53 = vstv %s6568_s23  ;;  %s7936_s23 = sld [smem:[#allocation26_spill]] }
 0x6af   : > { %v2052_v19 = vmul.f32 1.442695, %v2051_v17 }
 0x6b1   : > { %4868 = vpow2.f32 %v2052_v19 }
 0x6be   : > { %v6455_v44 = vpop.eup %4868 }
 0x6bf   : > { %4708 = vmatmul.mubr.msk.f32.vlgmr.msra.gmra.mxu0 %vm802_vm2, %v6455_v44 }
 0x6c0   : > { %4711 = vmatpush3.xpose.msk.msra.mxu0 %vm479_vm1, %v4307_v49  ;;  %4714 = vmatprep.mubr.msk.f32.mxu0 %vm5051_vm0, %v5050_v0 }
 0x6c1   : > { %4712 = vmatprep.subr.mxu0 %v5050_v0 }
 0x6c4   : > { %4713 = vmatpush3.xpose.msk.msra.mxu0 %vm479_vm1, %v4306_v4 }
 0x6c5   : > { %4731 = vmatprep.subr.mxu0 %v5050_v0 }
 0x6c7   : > { %4715 = vmatmul.mubr.msk.f32.vlgmr.msra.gmra.mxu0 %vm479_vm1, %v4305_v55 }
 0x6c8   : > { %4735 = vmatprep.mubr.msk.f32.mxu0 %vm5051_vm0, %v5050_v0 }
 0x77f   : > { %v6562_v62 = vpop.f32.mrf.mxu0 }
 0x781   : > { %v4709_v3 = vpop.f32.mrf.mxu0 }
 0x787   : > { %v6612_v15 = vpop.f32.mrf.mxu0 }
 0x788   : > { %v2245_v17 = vmul.f32 %v2244_v32, %v6612_v15  ;;  %v2260_v19 = vmul.f32 %v2259_v34, %v6612_v15  ;;  %v2275_v49 = vmul.f32 %v2274_v18, %v6612_v15  ;;  %v2290_v4 = vmul.f32 %v2289_v7, %v6612_v15 }
 0x789   : > { %v4716_v55 = vpop.f32.mrf.mxu0  ;;  %v2305_v57 = vmul.f32 %v2304_v63, %v6612_v15  ;;  %v2320_v45 = vmul.f32 %v2319_v54, %v6612_v15  ;;  %v2379_v32 = vstv %s6574_s1  ;;  %v2335_v3 = vmul.f32 %v2334_v26, %v6612_v15  ;;  %s6652_s1 = sld [smem:[#allocation5 + $0xd]] }
 0x78a   : > { %v2249_v34 = vadd.f32 %v6548_v58, %v2245_v17  ;;  %v2264_v21 = vadd.f32 %v6557_v61, %v2260_v19  ;;  %v2279_v18 = vadd.f32 %v2278_v47, %v2275_v49  ;;  %v2294_v24 = vadd.f32 %v2293_v16, %v2290_v4 }
 0x78b   : > { %v2309_v31 = vadd.f32 %v2308_v37, %v2305_v57  ;;  %v2386_v7 = vstv %s6580_s3  ;;  %v2397_v63 = vstv %s6592_s10  ;;  %v2412_v61 = vstv %s6598_s26  ;;  %s6772_s3 = sld [smem:[#allocation2 + $0x80]] }
 0x78c   : > { %v2252_v12 = vadd.f32 %v2251_v52, %v2249_v34  ;;  %v2267_v54 = vadd.f32 %v2266_v23, %v2264_v21  ;;  %v2282_v58 = vadd.f32 %v2281_v38, %v2279_v18  ;;  %v2297_v47 = vadd.f32 %v2296_v11, %v2294_v24  ;;  %s6776_s10 = sld [smem:[#allocation7 + $0x80]] }
 0x78d   : > { %v2324_v16 = vadd.f32 %v2323_v9, %v2320_v45  ;;  %v2350_v37 = vmul.f32 %v2349_v22, %v6612_v15  ;;  %v2398_v23 = vmul.f32 %v6535_v60, %v2397_v63  ;;  %v2401_v38 = vstv %s6604_s30  ;;  %s6778_s26 = sld [smem:[#allocation8 + $0x80]] }
 0x78e   : > { %v2253_v52 = vmax.f32 %v2252_v12, 0.0  ;;  %v2268_v26 = vmax.f32 %v2267_v54, 0.0  ;;  %v2312_v11 = vadd.f32 %v2311_v20, %v2309_v31  ;;  %v2339_v9 = vadd.f32 %v2338_v8, %v2335_v3  ;;  %s6780_s30 = sld [smem:[#allocation2 + $0x81]] }
 0x78f   : > { %v2413_v22 = vmul.f32 %v6535_v60, %v2412_v61  ;;  %v2283_v17 = vmax.f32 %v2282_v58, 0.0  ;;  %v2416_v19 = vstv %s6620_s2  ;;  %v2427_v49 = vstv %s6626_s11  ;;  %s6784_s2 = sld [smem:[#allocation7 + $0x81]] }
 0x790   : > { %v2256_v30 = vmul.f32 %v2255_v40, %v2253_v52  ;;  %v2298_v4 = vmax.f32 %v2297_v47, 0.0  ;;  %v2327_v55 = vadd.f32 %v2326_v13, %v2324_v16  ;;  %v2354_v57 = vadd.f32 %v2353_v35, %v2350_v37  ;;  %s6786_s11 = sld [smem:[#allocation8 + $0x81]] }
 0x791   : > { %v2424_v45 = vstv %s6632_s7  ;;  %v2271_v8 = vmul.f32 %v2270_v1, %v2268_v26  ;;  %v2365_v40 = vmul.f32 %v2364_v41, %v6612_v15  ;;  %v2380_v34 = vmul.f32 %v2379_v32, %v6612_v15  ;;  %s6788_s7 = sld [smem:[#allocation2 + $0x82]] }
 0x792   : > { %v2257_v20 = vadd.f32 %v2256_v30, %v2241_v33  ;;  %v2313_v21 = vmax.f32 %v2312_v11, 0.0  ;;  %v2342_v18 = vadd.f32 %v2341_v46, %v2339_v9  ;;  %v2428_v13 = vmul.f32 %v6535_v60, %v2427_v49 }
 0x793   : > { %v2431_v35 = vstv %s6639_s9  ;;  %v2286_v33 = vmul.f32 %v2285_v6, %v2283_v17  ;;  %v2369_v1 = vadd.f32 %v6616_v27, %v2365_v40  ;;  %v2395_v41 = vmul.f32 %v2394_v2, %v6612_v15  ;;  %s6790_s9 = sld [smem:[#allocation5 + $0x82]] }
 0x794   : > { %v2272_v24 = vadd.f32 %v2271_v8, %v2257_v20  ;;  %v2328_v32 = vmax.f32 %v2327_v55, 0.0  ;;  %v2357_v31 = vadd.f32 %v2356_v51, %v2354_v57  ;;  %v2439_v46 = vstv %s6648_s18  ;;  %s6792_s18 = sld [smem:[#allocation7 + $0x82]] }
 0x795   : > { %v2442_v3 = vstv %s6652_s1  ;;  %v2301_v12 = vmul.f32 %v2300_v36, %v2298_v4  ;;  %v2384_v54 = vadd.f32 %v2383_v59, %v2380_v34  ;;  %v2410_v6 = vmul.f32 %v2409_v48, %v6612_v15  ;;  %s6794_s1 = sld [smem:[#allocation8 + $0x82]] }
 0x796   : > { %v2287_v63 = vadd.f32 %v2286_v33, %v2272_v24  ;;  %v2316_v58 = vmul.f32 %v2315_v42, %v2313_v21  ;;  %v2343_v27 = vmax.f32 %v2342_v18, 0.0  ;;  %v2454_v61 = vstv %s6656_s0  ;;  %s6796_s0 = sld [smem:[#allocation2 + $0x83]] }
 0x797   : > { %v2457_v51 = vstv %s6662_s20  ;;  %v2372_v16 = vadd.f32 %v2371_v29, %v2369_v1  ;;  %v2399_v37 = vadd.f32 %v2398_v23, %v2395_v41  ;;  %v2425_v36 = vmul.f32 %v2424_v45, %v6612_v15  ;;  %s6798_s20 = sld [smem:[#allocation5 + $0x83]] }
 0x798   : > { %v2302_v47 = vadd.f32 %v2301_v12, %v2287_v63  ;;  %v2358_v59 = vmax.f32 %v2357_v31, 0.0  ;;  %v2440_v42 = vmul.f32 %v2439_v46, %v6612_v15  ;;  %v2443_v2 = vmul.f32 %v6535_v60, %v2442_v3 }
 0x799   : > { %v2472_v52 = vstv %s6671_s13  ;;  %v2331_v11 = vmul.f32 %v2330_v5, %v2328_v32  ;;  %v2387_v29 = vadd.f32 %v2386_v7, %v2384_v54  ;;  %v2414_v23 = vadd.f32 %v2413_v22, %v2410_v6  ;;  %s6802_s13 = sld [smem:[#allocation8 + $0x83]] }
 0x79a   : > { %v2317_v26 = vadd.f32 %v2316_v58, %v2302_v47  ;;  %v2346_v9 = vmul.f32 %v2345_v25, %v2343_v27  ;;  %v2455_v48 = vmul.f32 %v2454_v61, %v6612_v15  ;;  %v2458_v30 = vmul.f32 %v6535_v60, %v2457_v51 }
 0x79b   : > { %v2469_v17 = vstv %s6683_s15  ;;  %v2373_v4 = vmax.f32 %v2372_v16, 0.0  ;;  %v2402_v5 = vadd.f32 %v2401_v38, %v2399_v37  ;;  %v2429_v7 = vadd.f32 %v2428_v13, %v2425_v36  ;;  %7938 = sst [smem:[#allocation29_spill]] %s6794_s1 }
 0x79c   : > { %v2332_v49 = vadd.f32 %v2331_v11, %v2317_v26  ;;  %v2361_v22 = vmul.f32 %v2360_v39, %v2358_v59  ;;  %v2444_v25 = vadd.f32 %v2443_v2, %v2440_v42  ;;  %v2446_v55 = vstv %s6693_s6  ;;  %s6804_s15 = sld [smem:[#allocation2 + $0x84]] }
 0x79d   : > { %v2473_v57 = vmul.f32 %v6535_v60, %v2472_v52  ;;  %v2388_v20 = vmax.f32 %v2387_v29, 0.0  ;;  %v2417_v8 = vadd.f32 %v2416_v19, %v2414_v23  ;;  %v2470_v40 = vmul.f32 %v2469_v17, %v6612_v15  ;;  %s6806_s6 = sld [smem:[#allocation5 + $0x84]] }
 0x79e   : > { %v2347_v45 = vadd.f32 %v2346_v9, %v2332_v49  ;;  %v2390_v34 = vstv %s6700_s22  ;;  %v2459_v39 = vadd.f32 %v2458_v30, %v2455_v48  ;;  %v2376_v21 = vmul.f32 %v2375_v53, %v2373_v4  ;;  %v4309_v48 = vld [vmem:[%s7935_s29 + $0x48] sm:$0xff]  ;;  %v4308_v30 = vld [vmem:[%s7935_s29 + $0x40] sm:$0xff]  ;;  %s6808_s22 = sld [smem:[#allocation7 + $0x84]] }
 0x79f   : > { %v2403_v18 = vmax.f32 %v2402_v5, 0.0  ;;  %v2432_v13 = vadd.f32 %v2431_v35, %v2429_v7  ;;  %v2405_v24 = vstv %s6706_s17  ;;  %v2447_v33 = vadd.f32 %v2446_v55, %v2444_v25  ;;  %4718 = vmatpush3.msra.mxu1 %v4309_v48  ;;  %v4376_v5 = vld [vmem:[%s7936_s23 + $0x58] sm:$0xff]  ;;  %v4374_v25 = vld [vmem:[%s7937_s25 + $0x28] sm:$0xff]  ;;  %s6810_s17 = sld [smem:[#allocation8 + $0x84]] }
 0x7a0   : > { %v2362_v38 = vadd.f32 %v2361_v22, %v2347_v45  ;;  %v2461_v1 = vstv %s6711_s14  ;;  %v2391_v19 = vmul.f32 %v2390_v34, %v2388_v20  ;;  %v2418_v15 = vmax.f32 %v2417_v8, 0.0  ;;  %4719 = vmatprep.subr.mxu1 %v5050_v0  ;;  %v4375_v22 = vld [vmem:[%s7936_s23 + $0x50] sm:$0xff]  ;;  %s6812_s14 = sld [smem:[#allocation2 + $0x85]] }
 0x7a1   : > { %v2474_v32 = vadd.f32 %v2473_v57, %v2470_v40  ;;  %v2420_v31 = vstv %s6718_s12  ;;  %v2476_v46 = vstv %s6725_s4  ;;  %v2406_v63 = vmul.f32 %v2405_v24, %v2403_v18  ;;  %4720 = vmatpush3.msra.mxu1 %v4308_v30  ;;  %s6814_s12 = sld [smem:[#allocation5 + $0x85]] }
 0x7a2   : > { %v2377_v41 = vadd.f32 %v2376_v21, %v2362_v38  ;;  %v2433_v12 = vmax.f32 %v2432_v13, 0.0  ;;  %v2462_v54 = vadd.f32 %v2461_v1, %v2459_v39  ;;  %v2435_v53 = vstv %s6731_s19  ;;  %4724 = vmatprep.subr.mxu1 %v5050_v0  ;;  %s6816_s4 = sld [smem:[#allocation7 + $0x85]] }
 0x7a3   : > { %v2421_v35 = vmul.f32 %v2420_v31, %v2418_v15  ;;  %v2448_v58 = vmax.f32 %v2447_v33, 0.0  ;;  %v2477_v27 = vadd.f32 %v2476_v46, %v2474_v32  ;;  %v2450_v61 = vstv %s6739_s24  ;;  %s6818_s19 = sld [smem:[#allocation8 + $0x85]] }
 0x7a4   : > { %v2392_v3 = vadd.f32 %v2391_v19, %v2377_v41  ;;  %v2436_v47 = vmul.f32 %v2435_v53, %v2433_v12  ;;  %v2463_v16 = vmax.f32 %v2462_v54, 0.0  ;;  %v2465_v37 = vstv %s4368_s16  ;;  %s6820_s24 = sld [smem:[#allocation2 + $0x86]] }
 0x7a5   : > { %v2451_v59 = vmul.f32 %v2450_v61, %v2448_v58  ;;  %v2478_v42 = vmax.f32 %v2477_v27, 0.0  ;;  %v2480_v2 = vstv %s4372_s5  ;;  %s6822_s16 = sld [smem:[#allocation5 + $0x86]]  ;;  %v2662_v55 = vstv %s6774_s21 }
 0x7a6   : > { %v2407_v6 = vadd.f32 %v2406_v63, %v2392_v3  ;;  %v2466_v26 = vmul.f32 %v2465_v37, %v2463_v16  ;;  %s6824_s5 = sld [smem:[#allocation7 + $0x86]]  ;;  %v2677_v57 = vstv %s6782_s27  ;;  %v2656_v45 = vstv %s6770_s28 }
 0x7a7   : > { %v2481_v29 = vmul.f32 %v2480_v2, %v2478_v42  ;;  %s6826_s25 = sld [smem:[#allocation8 + $0x86]]  ;;  %v2659_v20 = vstv %s6772_s3  ;;  %v6845_v8 = vmul.f32 %v6535_v60, %v2662_v55  ;;  %v2666_v40 = vstv %s6776_s10 }
 0x7a8   : > { %v2422_v51 = vadd.f32 %v2421_v35, %v2407_v6  ;;  %7939 = sst [smem:[#allocation34_spill]] %s6816_s4  ;;  %v2692_v34 = vstv %s6790_s9  ;;  %v2670_v39 = vstv %s6778_s26  ;;  %v2674_v38 = vstv %s6780_s30 }
 0x7a9   : > { %7940 = sst [smem:[#allocation25_spill]] %s6818_s19  ;;  %v6854_v21 = vmul.f32 %v6535_v60, %v2677_v57  ;;  %v2707_v18 = vstv %s6798_s20  ;;  %v2681_v24 = vstv %s6784_s2  ;;  %v2685_v33 = vstv %s6786_s11 }
 0x7aa   : > { %v2437_v36 = vadd.f32 %v2436_v47, %v2422_v51  ;;  %7941 = sst [smem:[#allocation30_spill]] %s6820_s24  ;;  %v2689_v1 = vstv %s6788_s7  ;;  %v2722_v41 = vstv %s6806_s6  ;;  %v2693_v19 = vmul.f32 %v6535_v60, %v2692_v34 }
 0x7ab   : > { %s6828_s23 = sld [smem:[#allocation2 + $0x87]]  ;;  %v2696_v15 = vstv %s6792_s18  ;;  %v2700_v32 = vstv %s6794_s1  ;;  %v2737_v31 = vstv %s6814_s12  ;;  %v2704_v3 = vstv %s6796_s0 }
 0x7ac   : > { %v2452_v52 = vadd.f32 %v2451_v59, %v2437_v36  ;;  %s6830_s29 = sld [smem:[#allocation5 + $0x87]]  ;;  %v2708_v63 = vmul.f32 %v6535_v60, %v2707_v18  ;;  %v2711_v12 = vstv %s6800_s8  ;;  %v2715_v54 = vstv %s6802_s13 }
 0x7ad   : > { %7942 = sst [smem:[#allocation31_spill]] %s6826_s25  ;;  %v2719_v53 = vstv %s6804_s15  ;;  %v2723_v6 = vmul.f32 %v6535_v60, %v2722_v41  ;;  %v2726_v35 = vstv %s6808_s22  ;;  %v2752_v58 = vstv %s6822_s16 }
 0x7ae   : > { %v2467_v11 = vadd.f32 %v2466_v26, %v2452_v52  ;;  %s6832_s4 = sld [smem:[#allocation7 + $0x87]]  ;;  %v2730_v27 = vstv %s6810_s17  ;;  %v2734_v61 = vstv %s6812_s14  ;;  %v2738_v51 = vmul.f32 %v6535_v60, %v2737_v31 }
 0x7af   : > { %s6835_s19 = sld [smem:[#allocation8 + $0x87]]  ;;  %v2753_v42 = vmul.f32 %v6535_v60, %v2752_v58  ;;  %v2756_v2 = vstv %s6824_s5 }
 0x7b0   : > { %v2482_v23 = vadd.f32 %v2481_v29, %v2467_v11  ;;  %s6838_s24 = sld [smem:[#allocation2 + $0x88]] }
 0x7b1   : > { %s6841_s25 = sld [smem:[#allocation5 + $0x88]]  ;;  %v2764_v26 = vstv %s6828_s23 }
 0x7b2   : > { %v2483_v9 = vsel %vm802_vm2, %v2482_v23, -inf  ;;  %s6849_s21 = sld [smem:[#allocation7 + $0x88]]  ;;  %v2767_v47 = vstv %s6830_s29 }
 0x7b3   : > { %2484 = vmax.xlane.f32.xlu0 %v2483_v9  ;;  %s6857_s27 = sld [smem:[#allocation5 + $0x89]]  ;;  %v2768_v11 = vmul.f32 %v6535_v60, %v2767_v47 }
 0x7b4   : > { %s6865_s3 = sld [smem:[#allocation8 + $0x88]]  ;;  %v2771_v29 = vstv %s6832_s4 }
 0x7b5   : > { %s6871_s30 = sld [smem:[#allocation2 + $0x89]] }
 0x7b6   : > { %s7943_s9 = sld [smem:[#allocation34_spill]]  ;;  %v2779_v30 = vstv %s6838_s24 }
 0x7b7   : > { %s7944_s7 = sld [smem:[#allocation25_spill]]  ;;  %v2782_v59 = vstv %s6841_s25 }
 0x7b8   : > { %s7945_s20 = sld [smem:[#allocation30_spill]] }
 0x7b9   : > { %s6877_s6 = sld [smem:[#allocation7 + $0x89]]  ;;  %v2797_v9 = vstv %s6857_s27 }
 0x7ba   : > { %s7946_s12 = sld [smem:[#allocation31_spill]] }
 0x7bb   : > { %s6883_s1 = sld [smem:[#allocation2 + $0x8a]] }
 0x7bc   : > { %s6889_s0 = sld [smem:[#allocation5 + $0x8a]]  ;;  %v2741_v16 = vstv %s7943_s9 }
 0x7bd   : > { %v2745_v37 = vstv %s7944_s7  ;;  %s6895_s8 = sld [smem:[#allocation5 + $0x8b]] }
 0x7be   : > { %v2749_v36 = vstv %s7945_s20  ;;  %s6901_s15 = sld [smem:[#allocation7 + $0x8a]] }
 0x7bf   : > { %s6907_s29 = sld [smem:[#allocation2 + $0x8b]] }
 0x7c0   : > { %v2760_v52 = vstv %s7946_s12  ;;  %s6917_s25 = sld [smem:[#allocation7 + $0x8b]] }
 0x7c1   : > { %s6923_s23 = sld [smem:[#allocation5 + $0x8c]] }
 0x7c2   : > { %s6929_s14 = sld [smem:[#allocation2 + $0x8c]]  ;;  %v2812_v47 = vstv %s6889_s0 }
 0x7c3   : > { %s6936_s24 = sld [smem:[#allocation7 + $0x8c]] }
 0x7c4   : > { %s6945_s16 = sld [smem:[#allocation2 + $0x8d]] }
 0x7c5   : > { %s6949_s27 = sld [smem:[#allocation5 + $0x8d]] }
 0x7c6   : > { %s6953_s10 = sld [smem:[#allocation2 + $0x8e]] }
 0x7c7   : > { %s6959_s2 = sld [smem:[#allocation5 + $0x8e]] }
 0x7c8   : > { %s6980_s26 = sld [smem:[#allocation2 + $0x8f]] }
 0x7c9   : > { %s6990_s28 = sld [smem:[#allocation7 + $0x8d]] }
 0x7ca   : > { %s6997_s11 = sld [smem:[#allocation8 + $0x89]] }
 0x7cb   : > { %s7003_s13 = sld [smem:[#allocation8 + $0x8a]] }
 0x7cc   : > { %s7008_s22 = sld [smem:[#allocation7 + $0x8e]] }
 0x7cd   : > { %s7015_s17 = sld [smem:[#allocation8 + $0x8b]] }
 0x7ce   : > { %s7022_s4 = sld [smem:[#allocation7 + $0x8f]] }
 0x7cf   : > { %s7028_s5 = sld [smem:[#allocation8 + $0x8c]] }
 0x7d0   : > { %s7949_s9 = sld [smem:[#allocation26_spill]] }
 0x7d1   : > { %s7950_s7 = sld [smem:[#allocation27_spill]] }
 0x7d2   : > { %s7067_s20 = sld [smem:[#allocation10 + $0x2]] }
 0x7d3   : > { %s7071_s12 = sld [smem:[#allocation5 + $0x100]] }
 0x7d4   : > { %s7073_s0 = sld [smem:[#allocation7 + $0x100]] }
 0x7d5   : > { %s7097_s18 = sld [smem:[#allocation7 + $0x103]] }
 0x83c   : > { %v2485_v17 = vpop.xlane.xlu0 %2484 }
 0x83d   : > { %v2486_v49 = vsub.f32 %v2482_v23, %v2485_v17  ;;  %v2775_v23 = vstv %s6835_s19  ;;  %v6913_v17 = vmul.f32 %v6535_v60, %v2782_v59  ;;  %s4442_s19 = sld [smem:[#allocation8 + $0x8e]] }
 0x83f   : > { %v2487_v4 = vmul.f32 1.442695, %v2486_v49  ;;  %v2786_v49 = vstv %s6849_s21  ;;  %s7036_s21 = sld [smem:[#allocation8 + $0x8d]] }
 0x841   : > { %4870 = vpow2.f32 %v2487_v4  ;;  %v2790_v4 = vstv %s6865_s3  ;;  %s7948_s3 = sld [smem:[#allocation28_spill]] }
 0x84e   : > { %v6755_v7 = vpop.eup %4870 }
 0x84f   : > { %4722 = vmatmul.mubr.msk.f32.vlgmr.msra.gmra.mxu1 %vm802_vm2, %v6755_v7 }
 0x850   : > { %4725 = vmatpush3.xpose.msk.msra.mxu1 %vm479_vm1, %v4376_v5  ;;  %4728 = vmatprep.mubr.msk.f32.mxu1 %vm5051_vm0, %v5050_v0 }
 0x851   : > { %4726 = vmatprep.subr.mxu1 %v5050_v0 }
 0x854   : > { %4727 = vmatpush3.xpose.msk.msra.mxu1 %vm479_vm1, %v4375_v22 }
 0x855   : > { %4745 = vmatprep.subr.mxu1 %v5050_v0 }
 0x857   : > { %4729 = vmatmul.mubr.msk.f32.vlgmr.msra.gmra.mxu1 %vm479_vm1, %v4374_v25 }
 0x858   : > { %4749 = vmatprep.mubr.msk.f32.mxu1 %vm5051_vm0, %v5050_v0 }
 0x90f   : > { %v6859_v13 = vpop.f32.mrf.mxu1 }
 0x911   : > { %v4723_v46 = vpop.f32.mrf.mxu1 }
 0x917   : > { %v6909_v48 = vpop.f32.mrf.mxu1 }
 0x918   : > { %v2660_v5 = vmul.f32 %v2659_v20, %v6909_v48  ;;  %v2675_v22 = vmul.f32 %v2674_v38, %v6909_v48  ;;  %v2690_v25 = vmul.f32 %v2689_v1, %v6909_v48  ;;  %v2705_v55 = vmul.f32 %v2704_v3, %v6909_v48 }
 0x919   : > { %v4730_v57 = vpop.f32.mrf.mxu1  ;;  %v2720_v34 = vmul.f32 %v2719_v53, %v6909_v48  ;;  %v2735_v18 = vmul.f32 %v2734_v61, %v6909_v48  ;;  %v2794_v20 = vstv %s6871_s30  ;;  %v2798_v38 = vmul.f32 %v6535_v60, %v2797_v9  ;;  %s4446_s30 = sld [smem:[#allocation8 + $0x8f]] }
 0x91a   : > { %v2664_v1 = vadd.f32 %v6845_v8, %v2660_v5  ;;  %v2679_v41 = vadd.f32 %v6854_v21, %v2675_v22  ;;  %v2694_v31 = vadd.f32 %v2693_v19, %v2690_v25  ;;  %v2709_v46 = vadd.f32 %v2708_v63, %v2705_v55 }
 0x91b   : > { %v2724_v3 = vadd.f32 %v2723_v6, %v2720_v34  ;;  %v2750_v58 = vmul.f32 %v2749_v36, %v6909_v48  ;;  %v2801_v53 = vstv %s6877_s6  ;;  %v2827_v21 = vstv %s6895_s8  ;;  %s7069_s6 = sld [smem:[#allocation2 + $0x100]] }
 0x91c   : > { %v2667_v61 = vadd.f32 %v2666_v40, %v2664_v1  ;;  %v2682_v59 = vadd.f32 %v2681_v24, %v2679_v41  ;;  %v2697_v8 = vadd.f32 %v2696_v15, %v2694_v31  ;;  %v2712_v19 = vadd.f32 %v2711_v12, %v2709_v46  ;;  %s7075_s8 = sld [smem:[#allocation8 + $0x100]] }
 0x91d   : > { %v2739_v63 = vadd.f32 %v2738_v51, %v2735_v18  ;;  %v2765_v6 = vmul.f32 %v2764_v26, %v6909_v48  ;;  %v2809_v36 = vstv %s6883_s1  ;;  %v2813_v24 = vmul.f32 %v6535_v60, %v2812_v47  ;;  %s6968_s1 = sld [smem:[#allocation5 + $0x8f]] }
 0x91e   : > { %v2668_v40 = vmax.f32 %v2667_v61, 0.0  ;;  %v2683_v9 = vmax.f32 %v2682_v59, 0.0  ;;  %v2816_v15 = vstv %s6901_s15  ;;  %v2727_v12 = vadd.f32 %v2726_v35, %v2724_v3  ;;  %s7077_s15 = sld [smem:[#allocation2 + $0x101]] }
 0x91f   : > { %v2754_v51 = vadd.f32 %v2753_v42, %v2750_v58  ;;  %v2824_v5 = vstv %s6907_s29  ;;  %v2828_v26 = vmul.f32 %v6535_v60, %v2827_v21  ;;  %v2698_v25 = vmax.f32 %v2697_v8, 0.0  ;;  %s7079_s29 = sld [smem:[#allocation5 + $0x101]] }
 0x920   : > { %v2671_v22 = vmul.f32 %v2670_v39, %v2668_v40  ;;  %v2831_v55 = vstv %s6917_s25  ;;  %v2842_v57 = vstv %s6923_s23  ;;  %v2713_v34 = vmax.f32 %v2712_v19, 0.0  ;;  %s7081_s25 = sld [smem:[#allocation7 + $0x101]] }
 0x921   : > { %v2742_v18 = vadd.f32 %v2741_v16, %v2739_v63  ;;  %v2769_v1 = vadd.f32 %v2768_v11, %v2765_v6  ;;  %v2839_v41 = vstv %s6929_s14  ;;  %v2686_v42 = vmul.f32 %v2685_v33, %v2683_v9  ;;  %s7083_s23 = sld [smem:[#allocation8 + $0x101]] }
 0x922   : > { %v2672_v35 = vadd.f32 %v2671_v22, %v2656_v45  ;;  %v2780_v39 = vmul.f32 %v2779_v30, %v6909_v48  ;;  %v2795_v31 = vmul.f32 %v2794_v20, %v6909_v48  ;;  %v2728_v46 = vmax.f32 %v2727_v12, 0.0  ;;  %s7085_s14 = sld [smem:[#allocation2 + $0x102]] }
 0x923   : > { %v2757_v3 = vadd.f32 %v2756_v2, %v2754_v51  ;;  %v2843_v16 = vmul.f32 %v6535_v60, %v2842_v57  ;;  %v2846_v11 = vstv %s6936_s24  ;;  %v2701_v45 = vmul.f32 %v2700_v32, %v2698_v25  ;;  %s7087_s24 = sld [smem:[#allocation5 + $0x102]] }
 0x924   : > { %v2687_v58 = vadd.f32 %v2686_v42, %v2672_v35  ;;  %v2784_v33 = vadd.f32 %v6913_v17, %v2780_v39  ;;  %v2810_v30 = vmul.f32 %v2809_v36, %v6909_v48  ;;  %v2743_v20 = vmax.f32 %v2742_v18, 0.0 }
 0x925   : > { %v2772_v47 = vadd.f32 %v2771_v29, %v2769_v1  ;;  %v2854_v2 = vstv %s6945_s16  ;;  %v2857_v61 = vstv %s6949_s27  ;;  %v2716_v8 = vmul.f32 %v2715_v54, %v2713_v34  ;;  %s7089_s16 = sld [smem:[#allocation7 + $0x102]] }
 0x926   : > { %v2702_v59 = vadd.f32 %v2701_v45, %v2687_v58  ;;  %v2799_v21 = vadd.f32 %v2798_v38, %v2795_v31  ;;  %v2825_v32 = vmul.f32 %v2824_v5, %v6909_v48  ;;  %v2731_v19 = vmul.f32 %v2730_v27, %v2728_v46  ;;  %s7091_s27 = sld [smem:[#allocation8 + $0x102]] }
 0x927   : > { %v2758_v17 = vmax.f32 %v2757_v3, 0.0  ;;  %v2869_v63 = vstv %s6953_s10  ;;  %v2872_v29 = vstv %s6959_s2  ;;  %v2787_v36 = vadd.f32 %v2786_v49, %v2784_v33  ;;  %s7093_s10 = sld [smem:[#allocation2 + $0x103]] }
 0x928   : > { %v2717_v6 = vadd.f32 %v2716_v8, %v2702_v59  ;;  %v2814_v40 = vadd.f32 %v2813_v24, %v2810_v30  ;;  %v2840_v54 = vmul.f32 %v2839_v41, %v6909_v48  ;;  %v2773_v38 = vmax.f32 %v2772_v47, 0.0  ;;  %s7095_s2 = sld [smem:[#allocation5 + $0x103]] }
 0x929   : > { %v2855_v27 = vmul.f32 %v2854_v2, %v6909_v48  ;;  %v2858_v9 = vmul.f32 %v6535_v60, %v2857_v61  ;;  %v2887_v12 = vstv %s6968_s1  ;;  %v2746_v5 = vmul.f32 %v2745_v37, %v2743_v20  ;;  %s7099_s1 = sld [smem:[#allocation8 + $0x103]] }
 0x92a   : > { %v2732_v51 = vadd.f32 %v2731_v19, %v2717_v6  ;;  %v2802_v49 = vadd.f32 %v2801_v53, %v2799_v21  ;;  %v2829_v24 = vadd.f32 %v2828_v26, %v2825_v32  ;;  %v2761_v22 = vmul.f32 %v2760_v52, %v2758_v17 }
 0x92b   : > { %v2870_v25 = vmul.f32 %v2869_v63, %v6909_v48  ;;  %v2873_v57 = vmul.f32 %v6535_v60, %v2872_v29  ;;  %v2884_v34 = vstv %s6980_s26  ;;  %v2788_v1 = vmax.f32 %v2787_v36, 0.0  ;;  %s7101_s26 = sld [smem:[#allocation2 + $0x104]] }
 0x92c   : > { %v2747_v18 = vadd.f32 %v2746_v5, %v2732_v51  ;;  %v2817_v37 = vadd.f32 %v2816_v15, %v2814_v40  ;;  %v2844_v53 = vadd.f32 %v2843_v16, %v2840_v54  ;;  %v2776_v26 = vmul.f32 %v2775_v23, %v2773_v38  ;;  %7951 = sst [smem:[#allocation32_spill]] %s7091_s27 }
 0x92d   : > { %v2859_v52 = vadd.f32 %v2858_v9, %v2855_v27  ;;  %v2861_v41 = vstv %s6990_s28  ;;  %v2888_v35 = vmul.f32 %v6535_v60, %v2887_v12  ;;  %v2803_v39 = vmax.f32 %v2802_v49, 0.0  ;;  %s7103_s28 = sld [smem:[#allocation5 + $0x104]] }
 0x92e   : > { %v2762_v42 = vadd.f32 %v2761_v22, %v2747_v18  ;;  %v2832_v31 = vadd.f32 %v2831_v55, %v2829_v24  ;;  %v2885_v46 = vmul.f32 %v2884_v34, %v6909_v48  ;;  %v2805_v3 = vstv %s6997_s11  ;;  %v4377_v34 = vld [vmem:[%s7948_s3 + $0x50] sm:$0xff]  ;;  %s7105_s11 = sld [smem:[#allocation7 + $0x104]] }
 0x92f   : > { %v2874_v23 = vadd.f32 %v2873_v57, %v2870_v25  ;;  %v2791_v16 = vmul.f32 %v2790_v4, %v2788_v1  ;;  %v2818_v58 = vmax.f32 %v2817_v37, 0.0  ;;  %v2847_v45 = vadd.f32 %v2846_v11, %v2844_v53  ;;  %v4378_v57 = vld [vmem:[%s7948_s3 + $0x58] sm:$0xff]  ;;  %v4450_v53 = vld [vmem:[%s7949_s9 + $0x68] sm:$0xff]  ;;  %s7125_s3 = sld [smem:[#allocation2 + $0x107]] }
 0x930   : > { %v2777_v15 = vadd.f32 %v2776_v26, %v2762_v42  ;;  %v2820_v33 = vstv %s7003_s13  ;;  %v2862_v60 = vadd.f32 %v2861_v41, %v2859_v52  ;;  %v2876_v30 = vstv %s7008_s22  ;;  %4732 = vmatpush3.msra.mxu0 %v4378_v57  ;;  %v4449_v52 = vld [vmem:[%s7949_s9 + $0x60] sm:$0xff]  ;;  %v4448_v41 = vld [vmem:[%s7950_s7 + $0x30] sm:$0xff]  ;;  %s7107_s13 = sld [smem:[#allocation8 + $0x104]] }
 0x931   : > { %v2806_v55 = vmul.f32 %v2805_v3, %v2803_v39  ;;  %v2833_v48 = vmax.f32 %v2832_v31, 0.0  ;;  %v2889_v47 = vadd.f32 %v2888_v35, %v2885_v46  ;;  %v2835_v2 = vstv %s7015_s17  ;;  %4733 = vmatprep.subr.mxu0 %v5050_v0  ;;  %s7109_s22 = sld [smem:[#allocation2 + $0x105]] }
 0x932   : > { %v2792_v20 = vadd.f32 %v2791_v16, %v2777_v15  ;;  %v2891_v61 = vstv %s7022_s4  ;;  %v2821_v8 = vmul.f32 %v2820_v33, %v2818_v58  ;;  %v2848_v21 = vmax.f32 %v2847_v45, 0.0  ;;  %4734 = vmatpush3.msra.mxu0 %v4377_v34  ;;  %s7111_s17 = sld [smem:[#allocation5 + $0x105]] }
 0x933   : > { %v2877_v32 = vadd.f32 %v2876_v30, %v2874_v23  ;;  %v2850_v4 = vstv %s7028_s5  ;;  %v2836_v11 = vmul.f32 %v2835_v2, %v2833_v48  ;;  %v2863_v17 = vmax.f32 %v2862_v60, 0.0  ;;  %4738 = vmatprep.subr.mxu0 %v5050_v0  ;;  %s7113_s4 = sld [smem:[#allocation7 + $0x105]] }
 0x934   : > { %v2807_v59 = vadd.f32 %v2806_v55, %v2792_v20  ;;  %v2892_v63 = vadd.f32 %v2891_v61, %v2889_v47  ;;  %v2865_v29 = vstv %s7036_s21  ;;  %v2851_v36 = vmul.f32 %v2850_v4, %v2848_v21  ;;  %s7954_s5 = sld [smem:[#allocation35_spill]] }
 0x935   : > { %v2878_v40 = vmax.f32 %v2877_v32, 0.0  ;;  %v2880_v54 = vstv %s4442_s19  ;;  %v2866_v27 = vmul.f32 %v2865_v29, %v2863_v17  ;;  %v2895_v12 = vstv %s4446_s30  ;;  %s7115_s21 = sld [smem:[#allocation8 + $0x105]] }
 0x936   : > { %v2822_v19 = vadd.f32 %v2821_v8, %v2807_v59  ;;  %v2893_v9 = vmax.f32 %v2892_v63, 0.0  ;;  %s7117_s19 = sld [smem:[#allocation2 + $0x106]]  ;;  %v3077_v35 = vstv %s7071_s12  ;;  %v3092_v42 = vstv %s7079_s29 }
 0x937   : > { %v2881_v5 = vmul.f32 %v2880_v54, %v2878_v40  ;;  %7952 = sst [smem:[#allocation33_spill]] %s7109_s22  ;;  %v3071_v39 = vstv %s7067_s20  ;;  %v3074_v31 = vstv %s7069_s6  ;;  %v3081_v23 = vstv %s7073_s0 }
 0x938   : > { %v2837_v6 = vadd.f32 %v2836_v11, %v2822_v19  ;;  %v2896_v24 = vmul.f32 %v2895_v12, %v2893_v9  ;;  %s7119_s30 = sld [smem:[#allocation5 + $0x106]]  ;;  %v3107_v15 = vstv %s7087_s24  ;;  %v3085_v16 = vstv %s7075_s8 }
 0x939   : > { %7953 = sst [smem:[#allocation34_spill]] %s7113_s4  ;;  %v3089_v58 = vstv %s7077_s15  ;;  %v3122_v33 = vstv %s7095_s2  ;;  %v3096_v30 = vstv %s7081_s25  ;;  %v3100_v20 = vstv %s7083_s23 }
 0x93a   : > { %v2852_v38 = vadd.f32 %v2851_v36, %v2837_v6  ;;  %s7121_s7 = sld [smem:[#allocation7 + $0x106]]  ;;  %v7142_v46 = vld [vmem:[%s7954_s5 + $0x8] sm:$0xff]  ;;  %v3104_v55 = vstv %s7085_s14  ;;  %v3137_v48 = vstv %s7103_s28  ;;  %v3111_v2 = vstv %s7089_s16 }
 0x93b   : > { %7955 = sst [smem:[#allocation25_spill]] %s7115_s21  ;;  %v7145_v3 = vmul.f32 %v7142_v46, %v3077_v35  ;;  %v7154_v45 = vmul.f32 %v7142_v46, %v3092_v42  ;;  %v3108_v47 = vmul.f32 %v7142_v46, %v3107_v15  ;;  %v3115_v61 = vstv %s7091_s27 }
 0x93c   : > { %v2867_v51 = vadd.f32 %v2866_v27, %v2852_v38  ;;  %7956 = sst [smem:[#allocation30_spill]] %s7117_s19  ;;  %v3152_v59 = vstv %s7111_s17  ;;  %v3119_v21 = vstv %s7093_s10  ;;  %v3123_v32 = vmul.f32 %v7142_v46, %v3122_v33 }
 0x93d   : > { %s7123_s9 = sld [smem:[#allocation8 + $0x106]]  ;;  %v3126_v4 = vstv %s7097_s18  ;;  %v3130_v19 = vstv %s7099_s1  ;;  %v3134_v11 = vstv %s7101_s26  ;;  %v3138_v17 = vmul.f32 %v7142_v46, %v3137_v48 }
 0x93e   : > { %v2882_v49 = vadd.f32 %v2881_v5, %v2867_v51  ;;  %s7127_s22 = sld [smem:[#allocation5 + $0x107]]  ;;  %v3141_v63 = vstv %s7105_s11  ;;  %v3167_v29 = vstv %s7119_s30  ;;  %v3145_v6 = vstv %s7107_s13 }
 0x93f   : > { %s7129_s4 = sld [smem:[#allocation7 + $0x107]]  ;;  %v3153_v40 = vmul.f32 %v7142_v46, %v3152_v59  ;;  %v3168_v51 = vmul.f32 %v7142_v46, %v3167_v29 }
 0x940   : > { %v2897_v22 = vadd.f32 %v2896_v24, %v2882_v49  ;;  %s7132_s21 = sld [smem:[#allocation8 + $0x107]]  ;;  %v3171_v5 = vstv %s7121_s7  ;;  %v3179_v24 = vstv %s7125_s3 }
 0x941   : > { %s7135_s19 = sld [smem:[#allocation2 + $0x108]] }
 0x942   : > { %v2898_v25 = vsel %vm802_vm2, %v2897_v22, -inf  ;;  %s7149_s12 = sld [smem:[#allocation7 + $0x108]] }
 0x943   : > { %2899 = vmax.xlane.f32.xlu1 %v2898_v25  ;;  %7957 = sst [smem:[#allocation31_spill]] %s7123_s9 }
 0x944   : > { %s7138_s9 = sld [smem:[#allocation5 + $0x108]]  ;;  %v3182_v54 = vstv %s7127_s22 }
 0x945   : > { %s7157_s6 = sld [smem:[#allocation5 + $0x109]]  ;;  %v3186_v25 = vstv %s7129_s4 }
 0x946   : > { %s7165_s29 = sld [smem:[#allocation8 + $0x108]]  ;;  %v3190_v57 = vstv %s7132_s21 }
 0x947   : > { %s7958_s15 = sld [smem:[#allocation33_spill]] }
 0x948   : > { %s7171_s24 = sld [smem:[#allocation2 + $0x109]] }
 0x949   : > { %s7959_s2 = sld [smem:[#allocation34_spill]] }
 0x94a   : > { %s7960_s14 = sld [smem:[#allocation25_spill]]  ;;  %v3197_v12 = vstv %s7138_s9 }
 0x94b   : > { %s7961_s28 = sld [smem:[#allocation30_spill]]  ;;  %v3212_v34 = vstv %s7157_s6 }
 0x94c   : > { %s7177_s5 = sld [smem:[#allocation7 + $0x109]] }
 0x94d   : > { %s7962_s17 = sld [smem:[#allocation31_spill]]  ;;  %v3149_v36 = vstv %s7958_s15 }
 0x94e   : > { %s7183_s27 = sld [smem:[#allocation2 + $0x10a]] }
 0x94f   : > { %s7189_s10 = sld [smem:[#allocation5 + $0x10a]]  ;;  %v3156_v38 = vstv %s7959_s2 }
 0x950   : > { %v3160_v27 = vstv %s7960_s14  ;;  %s7195_s18 = sld [smem:[#allocation5 + $0x10b]] }
 0x951   : > { %v3164_v9 = vstv %s7961_s28  ;;  %s7201_s26 = sld [smem:[#allocation7 + $0x10a]]  ;;  %s7810_s28 = smov 8  }
 0x952   : > { %s7207_s22 = sld [smem:[#allocation2 + $0x10b]] }
 0x953   : > { %v3175_v49 = vstv %s7962_s17  ;;  %s7217_s9 = sld [smem:[#allocation7 + $0x10b]] }
 0x954   : > { %s7223_s3 = sld [smem:[#allocation5 + $0x10c]] }
 0x955   : > { %s7236_s30 = sld [smem:[#allocation7 + $0x10c]] }
 0x956   : > { %s7245_s6 = sld [smem:[#allocation2 + $0x10d]] }
 0x957   : > { %s7249_s15 = sld [smem:[#allocation5 + $0x10d]] }
 0x958   : > { %s7253_s0 = sld [smem:[#allocation2 + $0x10e]] }
 0x959   : > { %s7259_s25 = sld [smem:[#allocation5 + $0x10e]] }
 0x95a   : > { %s7280_s8 = sld [smem:[#allocation2 + $0x10f]] }
 0x95b   : > { %s7290_s7 = sld [smem:[#allocation7 + $0x10d]] }
 0x95c   : > { %s7297_s20 = sld [smem:[#allocation8 + $0x109]] }
 0x95d   : > { %s7303_s23 = sld [smem:[#allocation8 + $0x10a]] }
 0x95e   : > { %s7308_s1 = sld [smem:[#allocation7 + $0x10e]] }
 0x95f   : > { %s7315_s11 = sld [smem:[#allocation8 + $0x10b]] }
 0x960   : > { %s7322_s13 = sld [smem:[#allocation7 + $0x10f]] }
 0x961   : > { %s7328_s4 = sld [smem:[#allocation8 + $0x10c]] }
 0x962   : > { %s4516_s21 = sld [smem:[#allocation8 + $0x10e]] }
 0x963   : > { %s7965_s2 = sld [smem:[#allocation26_spill]] }
 0x964   : > { %s7966_s14 = sld [smem:[#allocation27_spill]] }
 0x965   : > { %s7378_s17 = sld [smem:[#allocation10 + $0x3]] }
 0x966   : > { %s7404_s16 = sld [smem:[#allocation2 + $0x183]] }
 0x9cc   : > { %v2900_v18 = vpop.xlane.xlu1 %2899 }
 0x9cd   : > { %v2901_v1 = vsub.f32 %v2897_v22, %v2900_v18  ;;  %v3183_v22 = vmul.f32 %v7142_v46, %v3182_v54 }
 0x9cf   : > { %v2902_v37 = vmul.f32 1.442695, %v2901_v1  ;;  %v3194_v1 = vstv %s7135_s19  ;;  %s7229_s19 = sld [smem:[#allocation2 + $0x10c]] }
 0x9d1   : > { %4872 = vpow2.f32 %v2902_v37  ;;  %v7213_v37 = vmul.f32 %v7142_v46, %v3197_v12 }
 0x9de   : > { %v7052_v26 = vpop.eup %4872 }
 0x9df   : > { %4736 = vmatmul.mubr.msk.f32.vlgmr.msra.gmra.mxu0 %vm802_vm2, %v7052_v26 }
 0x9e0   : > { %4739 = vmatpush3.xpose.msk.msra.mxu0 %vm479_vm1, %v4450_v53  ;;  %4742 = vmatprep.mubr.msk.f32.mxu0 %vm5051_vm0, %v5050_v0  ;;  %v3201_v53 = vstv %s7149_s12  ;;  %s7336_s12 = sld [smem:[#allocation8 + $0x10d]] }
 0x9e1   : > { %4740 = vmatprep.subr.mxu0 %v5050_v0 }
 0x9e4   : > { %4741 = vmatpush3.xpose.msk.msra.mxu0 %vm479_vm1, %v4449_v52  ;;  %v3205_v52 = vstv %s7165_s29  ;;  %s7964_s29 = sld [smem:[#allocation28_spill]] }
 0x9e5   : > { %4759 = vmatprep.subr.mxu0 %v5050_v0 }
 0x9e7   : > { %4743 = vmatmul.mubr.msk.f32.vlgmr.msra.gmra.mxu0 %vm479_vm1, %v4448_v41 }
 0x9e8   : > { %4763 = vmatprep.mubr.msk.f32.mxu0 %vm5051_vm0, %v5050_v0 }
 0xa9f   : > { %v7159_v60 = vpop.f32.mrf.mxu0 }
 0xaa1   : > { %v4737_v8 = vpop.f32.mrf.mxu0 }
 0xaa7   : > { %v7209_v18 = vpop.f32.mrf.mxu0 }
 0xaa8   : > { %v3075_v41 = vmul.f32 %v3074_v31, %v7209_v18  ;;  %v3090_v35 = vmul.f32 %v3089_v58, %v7209_v18  ;;  %v3105_v42 = vmul.f32 %v3104_v55, %v7209_v18  ;;  %v3120_v15 = vmul.f32 %v3119_v21, %v7209_v18 }
 0xaa9   : > { %v4744_v33 = vpop.f32.mrf.mxu0  ;;  %v3135_v48 = vmul.f32 %v3134_v11, %v7209_v18  ;;  %v3150_v59 = vmul.f32 %v3149_v36, %v7209_v18  ;;  %v3209_v31 = vstv %s7171_s24  ;;  %v3213_v58 = vmul.f32 %v7142_v46, %v3212_v34  ;;  %s4520_s24 = sld [smem:[#allocation8 + $0x10f]] }
 0xaaa   : > { %v3079_v55 = vadd.f32 %v7145_v3, %v3075_v41  ;;  %v3094_v8 = vadd.f32 %v7154_v45, %v3090_v35  ;;  %v3109_v21 = vadd.f32 %v3108_v47, %v3105_v42  ;;  %v3124_v29 = vadd.f32 %v3123_v32, %v3120_v15 }
 0xaab   : > { %v3139_v54 = vadd.f32 %v3138_v17, %v3135_v48  ;;  %v3165_v12 = vmul.f32 %v3164_v9, %v7209_v18  ;;  %v3216_v11 = vstv %s7177_s5  ;;  %v3227_v33 = vstv %s7189_s10  ;;  %s7809_s5 = smov 24   ;;  %s7380_s10 = sld [smem:[#allocation2 + $0x180]] }
 0xaac   : > { %v3082_v36 = vadd.f32 %v3081_v23, %v3079_v55  ;;  %v3097_v34 = vadd.f32 %v3096_v30, %v3094_v8  ;;  %v3112_v3 = vadd.f32 %v3111_v2, %v3109_v21  ;;  %v3242_v45 = vstv %s7195_s18  ;;  %s7382_s18 = sld [smem:[#allocation5 + $0x180]] }
 0xaad   : > { %v3127_v47 = vadd.f32 %v3126_v4, %v3124_v29  ;;  %v3154_v32 = vadd.f32 %v3153_v40, %v3150_v59  ;;  %v3180_v17 = vmul.f32 %v3179_v24, %v7209_v18  ;;  %v3224_v9 = vstv %s7183_s27  ;;  %s7268_s27 = sld [smem:[#allocation5 + $0x10f]] }
 0xaae   : > { %v3083_v23 = vmax.f32 %v3082_v36, 0.0  ;;  %v3098_v41 = vmax.f32 %v3097_v34, 0.0  ;;  %v3228_v30 = vmul.f32 %v7142_v46, %v3227_v33  ;;  %v3231_v2 = vstv %s7201_s26  ;;  %s7384_s26 = sld [smem:[#allocation7 + $0x180]] }
 0xaaf   : > { %v3142_v4 = vadd.f32 %v3141_v63, %v3139_v54  ;;  %v3169_v40 = vadd.f32 %v3168_v51, %v3165_v12  ;;  %v3239_v35 = vstv %s7207_s22  ;;  %v3243_v24 = vmul.f32 %v7142_v46, %v3242_v45  ;;  %s7386_s22 = sld [smem:[#allocation8 + $0x180]] }
 0xab0   : > { %v3086_v42 = vmul.f32 %v3085_v16, %v3083_v23  ;;  %v3113_v15 = vmax.f32 %v3112_v3, 0.0  ;;  %v3246_v48 = vstv %s7217_s9  ;;  %v3257_v59 = vstv %s7223_s3  ;;  %s7388_s9 = sld [smem:[#allocation2 + $0x181]] }
 0xab1   : > { %v3128_v55 = vmax.f32 %v3127_v47, 0.0  ;;  %v3157_v8 = vadd.f32 %v3156_v38, %v3154_v32  ;;  %v3184_v21 = vadd.f32 %v3183_v22, %v3180_v17  ;;  %v3254_v29 = vstv %s7229_s19  ;;  %s7390_s3 = sld [smem:[#allocation5 + $0x181]] }
 0xab2   : > { %v3087_v63 = vadd.f32 %v3086_v42, %v3071_v39  ;;  %v3101_v51 = vmul.f32 %v3100_v20, %v3098_v41  ;;  %v3195_v16 = vmul.f32 %v3194_v1, %v7209_v18  ;;  %v3210_v54 = vmul.f32 %v3209_v31, %v7209_v18  ;;  %s7392_s19 = sld [smem:[#allocation7 + $0x181]] }
 0xab3   : > { %v3143_v12 = vmax.f32 %v3142_v4, 0.0  ;;  %v3172_v33 = vadd.f32 %v3171_v5, %v3169_v40  ;;  %v3258_v38 = vmul.f32 %v7142_v46, %v3257_v59  ;;  %v3261_v22 = vstv %s7236_s30  ;;  %s7394_s30 = sld [smem:[#allocation8 + $0x181]] }
 0xab4   : > { %v3102_v36 = vadd.f32 %v3101_v51, %v3087_v63  ;;  %v3116_v39 = vmul.f32 %v3115_v61, %v3113_v15  ;;  %v3199_v20 = vadd.f32 %v7213_v37, %v3195_v16  ;;  %v3225_v1 = vmul.f32 %v3224_v9, %v7209_v18 }
 0xab5   : > { %v3158_v31 = vmax.f32 %v3157_v8, 0.0  ;;  %v3187_v34 = vadd.f32 %v3186_v25, %v3184_v21  ;;  %v3269_v5 = vstv %s7245_s6  ;;  %v3272_v3 = vstv %s7249_s15  ;;  %s7396_s6 = sld [smem:[#allocation2 + $0x182]] }
 0xab6   : > { %v3117_v45 = vadd.f32 %v3116_v39, %v3102_v36  ;;  %v3131_v47 = vmul.f32 %v3130_v19, %v3128_v55  ;;  %v3214_v32 = vadd.f32 %v3213_v58, %v3210_v54  ;;  %v3240_v61 = vmul.f32 %v3239_v35, %v7209_v18  ;;  %s7398_s15 = sld [smem:[#allocation5 + $0x182]] }
 0xab7   : > { %v3146_v17 = vmul.f32 %v3145_v6, %v3143_v12  ;;  %v3173_v37 = vmax.f32 %v3172_v33, 0.0  ;;  %v3284_v9 = vstv %s7253_s0  ;;  %v3287_v25 = vstv %s7259_s25  ;;  %s7400_s0 = sld [smem:[#allocation7 + $0x182]] }
 0xab8   : > { %v3132_v23 = vadd.f32 %v3131_v47, %v3117_v45  ;;  %v3202_v41 = vadd.f32 %v3201_v53, %v3199_v20  ;;  %v3229_v4 = vadd.f32 %v3228_v30, %v3225_v1  ;;  %v3255_v19 = vmul.f32 %v3254_v29, %v7209_v18  ;;  %s7402_s25 = sld [smem:[#allocation8 + $0x182]] }
 0xab9   : > { %v3188_v58 = vmax.f32 %v3187_v34, 0.0  ;;  %v3270_v6 = vmul.f32 %v3269_v5, %v7209_v18  ;;  %v3273_v40 = vmul.f32 %v7142_v46, %v3272_v3  ;;  %v3302_v35 = vstv %s7268_s27  ;;  %s7406_s27 = sld [smem:[#allocation5 + $0x183]] }
 0xaba   : > { %v3147_v42 = vadd.f32 %v3146_v17, %v3132_v23  ;;  %v3161_v15 = vmul.f32 %v3160_v27, %v3158_v31  ;;  %v3217_v53 = vadd.f32 %v3216_v11, %v3214_v32  ;;  %v3244_v30 = vadd.f32 %v3243_v24, %v3240_v61 }
 0xabb   : > { %v3176_v59 = vmul.f32 %v3175_v49, %v3173_v37  ;;  %v3285_v55 = vmul.f32 %v3284_v9, %v7209_v18  ;;  %v3288_v8 = vmul.f32 %v7142_v46, %v3287_v25  ;;  %v3299_v21 = vstv %s7280_s8  ;;  %s7408_s8 = sld [smem:[#allocation7 + $0x183]] }
 0xabc   : > { %v3162_v29 = vadd.f32 %v3161_v15, %v3147_v42  ;;  %v3203_v63 = vmax.f32 %v3202_v41, 0.0  ;;  %v3232_v27 = vadd.f32 %v3231_v2, %v3229_v4  ;;  %v3259_v11 = vadd.f32 %v3258_v38, %v3255_v19 }
 0xabd   : > { %v3191_v24 = vmul.f32 %v3190_v57, %v3188_v58  ;;  %v3274_v49 = vadd.f32 %v3273_v40, %v3270_v6  ;;  %v3276_v51 = vstv %s7290_s7  ;;  %v3303_v16 = vmul.f32 %v7142_v46, %v3302_v35  ;;  %s7410_s7 = sld [smem:[#allocation8 + $0x183]] }
 0xabe   : > { %v3177_v54 = vadd.f32 %v3176_v59, %v3162_v29  ;;  %v3218_v12 = vmax.f32 %v3217_v53, 0.0  ;;  %v3247_v33 = vadd.f32 %v3246_v48, %v3244_v30  ;;  %v3300_v36 = vmul.f32 %v3299_v21, %v7209_v18  ;;  %7967 = sst [smem:[#allocation29_spill]] %s7402_s25 }
 0xabf   : > { %v3220_v39 = vstv %s7297_s20  ;;  %v3289_v57 = vadd.f32 %v3288_v8, %v3285_v55  ;;  %v3206_v38 = vmul.f32 %v3205_v52, %v3203_v63  ;;  %v3233_v20 = vmax.f32 %v3232_v27, 0.0  ;;  %s7412_s20 = sld [smem:[#allocation2 + $0x184]] }
 0xac0   : > { %v3192_v2 = vadd.f32 %v3191_v24, %v3177_v54  ;;  %v3262_v1 = vadd.f32 %v3261_v22, %v3259_v11  ;;  %v3235_v31 = vstv %s7303_s23  ;;  %v3277_v34 = vadd.f32 %v3276_v51, %v3274_v49  ;;  %v4452_v49 = vld [vmem:[%s7964_s29 + $0x68] sm:$0xff]  ;;  %v4451_v51 = vld [vmem:[%s7964_s29 + $0x60] sm:$0xff]  ;;  %s7414_s23 = sld [smem:[#allocation5 + $0x184]] }
 0xac1   : > { %v3291_v5 = vstv %s7308_s1  ;;  %v3221_v48 = vmul.f32 %v3220_v39, %v3218_v12  ;;  %v3248_v18 = vmax.f32 %v3247_v33, 0.0  ;;  %v3304_v45 = vadd.f32 %v3303_v16, %v3300_v36  ;;  %4746 = vmatpush3.msra.mxu1 %v4452_v49  ;;  %v4524_v12 = vld [vmem:[%s7965_s2 + $0x78] sm:$0xff]  ;;  %s7416_s1 = sld [smem:[#allocation7 + $0x184]] }
 0xac2   : > { %v3207_v3 = vadd.f32 %v3206_v38, %v3192_v2  ;;  %v3250_v47 = vstv %s7315_s11  ;;  %v3306_v32 = vstv %s7322_s13  ;;  %v3236_v17 = vmul.f32 %v3235_v31, %v3233_v20  ;;  %4747 = vmatprep.subr.mxu1 %v5050_v0  ;;  %v4522_v2 = vld [vmem:[%s7966_s14 + $0x38] sm:$0xff]  ;;  %s7418_s11 = sld [smem:[#allocation8 + $0x184]] }
 0xac3   : > { %v3263_v37 = vmax.f32 %v3262_v1, 0.0  ;;  %v3292_v9 = vadd.f32 %v3291_v5, %v3289_v57  ;;  %v3265_v52 = vstv %s7328_s4  ;;  %v3251_v22 = vmul.f32 %v3250_v47, %v3248_v18  ;;  %4748 = vmatpush3.msra.mxu1 %v4451_v51  ;;  %v4523_v57 = vld [vmem:[%s7965_s2 + $0x70] sm:$0xff]  ;;  %s7420_s13 = sld [smem:[#allocation2 + $0x185]] }
 0xac4   : > { %v3222_v61 = vadd.f32 %v3221_v48, %v3207_v3  ;;  %v3278_v23 = vmax.f32 %v3277_v34, 0.0  ;;  %v3307_v41 = vadd.f32 %v3306_v32, %v3304_v45  ;;  %v3280_v4 = vstv %s7336_s12  ;;  %4752 = vmatprep.subr.mxu1 %v5050_v0  ;;  %s7422_s4 = sld [smem:[#allocation5 + $0x185]] }
 0xac5   : > { %v3266_v58 = vmul.f32 %v3265_v52, %v3263_v37  ;;  %v3293_v6 = vmax.f32 %v3292_v9, 0.0  ;;  %v3295_v40 = vstv %s4516_s21  ;;  %v3310_v53 = vstv %s4520_s24  ;;  %s7424_s12 = sld [smem:[#allocation7 + $0x185]] }
 0xac6   : > { %v3237_v25 = vadd.f32 %v3236_v17, %v3222_v61  ;;  %v3281_v42 = vmul.f32 %v3280_v4, %v3278_v23  ;;  %v3308_v15 = vmax.f32 %v3307_v41, 0.0  ;;  %v1224_v63 = vsel %vm802_vm2, %v5858_v43, 0.0  ;;  %s7426_s21 = sld [smem:[#allocation8 + $0x185]] }
 0xac7   : > { %v3296_v59 = vmul.f32 %v3295_v40, %v3293_v6  ;;  %v1639_v27 = vsel %vm802_vm2, %v6158_v50, 0.0  ;;  %v2054_v11 = vsel %vm802_vm2, %v6455_v44, 0.0  ;;  %v809_v24 = vsel %vm802_vm2, %v5561_v14, 0.0  ;;  %s7428_s24 = sld [smem:[#allocation2 + $0x186]] }
 0xac8   : > { %v3252_v19 = vadd.f32 %v3251_v22, %v3237_v25  ;;  %v3311_v8 = vmul.f32 %v3310_v53, %v3308_v15  ;;  %s7430_s2 = sld [smem:[#allocation5 + $0x186]]  ;;  %v3486_v1 = vstv %s7378_s17  ;;  %v3489_v31 = vstv %s7380_s10 }
 0xac9   : > { %s7432_s14 = sld [smem:[#allocation7 + $0x186]]  ;;  %v3496_v5 = vstv %s7384_s26  ;;  %v3522_v3 = vstv %s7398_s15  ;;  %v3500_v48 = vstv %s7386_s22  ;;  %v3504_v18 = vstv %s7388_s9 }
 0xaca   : > { %v3267_v35 = vadd.f32 %v3266_v58, %v3252_v19  ;;  %s7438_s29 = sld [smem:[#allocation5 + $0x187]]  ;;  %v3537_v47 = vstv %s7406_s27  ;;  %v3511_v61 = vstv %s7392_s19  ;;  %v3515_v17 = vstv %s7394_s30 }
 0xacb   : > { %7968 = sst [smem:[#allocation35_spill]] %s7424_s12  ;;  %v3519_v37 = vstv %s7396_s6  ;;  %v3552_v9 = vstv %s7414_s23  ;;  %v3523_v52 = vmul.f32 %v7142_v46, %v3522_v3  ;;  %v3526_v25 = vstv %s7400_s0  ;;  %s5055_s0 = smov [#allocation11]  }
 0xacc   : > { %v3282_v30 = vadd.f32 %v3281_v42, %v3267_v35  ;;  %7969 = sst [smem:[#allocation33_spill]] %s7426_s21  ;;  %v3530_v22 = vstv %s7402_s25  ;;  %v3567_v23 = vstv %s7422_s4  ;;  %v3534_v4 = vstv %s7404_s16 }
 0xacd   : > { %7970 = sst [smem:[#allocation34_spill]] %s7428_s24  ;;  %v3538_v19 = vmul.f32 %v7142_v46, %v3537_v47  ;;  %v3541_v58 = vstv %s7408_s8  ;;  %v3545_v6 = vstv %s7410_s7  ;;  %v3549_v40 = vstv %s7412_s20 }
 0xace   : > { %v3297_v55 = vadd.f32 %v3296_v59, %v3282_v30  ;;  %s7440_s12 = sld [smem:[#allocation7 + $0x187]]  ;;  %v3553_v35 = vmul.f32 %v7142_v46, %v3552_v9  ;;  %v3556_v42 = vstv %s7416_s1  ;;  %v3582_v15 = vstv %s7430_s2 }
 0xacf   : > { %s7443_s21 = sld [smem:[#allocation8 + $0x187]]  ;;  %v3560_v53 = vstv %s7418_s11  ;;  %v3564_v30 = vstv %s7420_s13  ;;  %v3568_v59 = vmul.f32 %v7142_v46, %v3567_v23 }
 0xad0   : > { %v3312_v21 = vadd.f32 %v3311_v8, %v3297_v55  ;;  %s7446_s24 = sld [smem:[#allocation2 + $0x188]]  ;;  %v3597_v55 = vstv %s7438_s29 }
 0xad1   : > { %s7473_s10 = sld [smem:[#allocation8 + $0x188]]  ;;  %v3598_v51 = vmul.f32 %v7142_v46, %v3597_v55 }
 0xad2   : > { %v3313_v29 = vsel %vm802_vm2, %v3312_v21, -inf  ;;  %s7479_s9 = sld [smem:[#allocation2 + $0x189]] }
 0xad3   : > { %3314 = vmax.xlane.f32.xlu0 %v3313_v29  ;;  %s7972_s15 = sld [smem:[#allocation35_spill]] }
 0xad4   : > { %s7973_s6 = sld [smem:[#allocation33_spill]] }
 0xad5   : > { %s7974_s27 = sld [smem:[#allocation34_spill]] }
 0xad6   : > { %s7485_s23 = sld [smem:[#allocation7 + $0x189]] }
 0xad7   : > { %1225 = vadd.xlane.f32.xlu0 %v1224_v63  ;;  %s7491_s25 = sld [smem:[#allocation2 + $0x18a]] }
 0xad8   : > { %s7497_s16 = sld [smem:[#allocation5 + $0x18a]] }
 0xad9   : > { %v3571_v8 = vstv %s7972_s15  ;;  %s7503_s8 = sld [smem:[#allocation5 + $0x18b]] }
 0xada   : > { %s7509_s20 = sld [smem:[#allocation7 + $0x18a]] }
 0xadb   : > { %1640 = vadd.xlane.f32.xlu0 %v1639_v27  ;;  %v3579_v29 = vstv %s7974_s27  ;;  %v3583_v27 = vmul.f32 %v7142_v46, %v3582_v15  ;;  %s7515_s29 = sld [smem:[#allocation2 + $0x18b]]  ;;  %s5054_s27 = smov 16  }
 0xadc   : > { %s7537_s13 = sld [smem:[#allocation2 + $0x18c]] }
 0xadd   : > { %s7553_s2 = sld [smem:[#allocation2 + $0x18d]] }
 0xade   : > { %v3642_v15 = vstv %s7497_s16  ;;  %s7561_s26 = sld [smem:[#allocation2 + $0x18e]] }
 0xadf   : > { %2055 = vadd.xlane.f32.xlu0 %v2054_v11  ;;  %v3586_v11 = vstv %s7432_s14  ;;  %s7567_s19 = sld [smem:[#allocation5 + $0x18e]] }
 0xae0   : > { %s7588_s22 = sld [smem:[#allocation2 + $0x18f]] }
 0xae1   : > { %s7598_s17 = sld [smem:[#allocation7 + $0x18d]] }
 0xae2   : > { %s7605_s30 = sld [smem:[#allocation8 + $0x189]] }
 0xae3   : > { %810 = vadd.xlane.f32.xlu0 %v809_v24  ;;  %s7611_s7 = sld [smem:[#allocation8 + $0x18a]] }
 0xae4   : > { %s7616_s1 = sld [smem:[#allocation7 + $0x18e]] }
 0xae5   : > { %s7623_s11 = sld [smem:[#allocation8 + $0x18b]] }
 0xae6   : > { %s7636_s14 = sld [smem:[#allocation8 + $0x18c]] }
 0xae7   : > { %s7978_s15 = sld [smem:[#allocation17_spill]] }
 0xae8   : > { %s7980_s16 = sld [smem:[#allocation20_spill]] }
 0xb5c   : > { %v3315_v43 = vpop.xlane.xlu0 %3314 }
 0xb5d   : > { %v3316_v50 = vsub.f32 %v3312_v21, %v3315_v43  ;;  %v3575_v21 = vstv %s7973_s6  ;;  %v3601_v43 = vstv %s7440_s12  ;;  %s7630_s12 = sld [smem:[#allocation7 + $0x18f]]  ;;  %s7979_s6 = smov 8  }
 0xb5f   : > { %v3317_v16 = vmul.f32 1.442695, %v3316_v50  ;;  %v3605_v50 = vstv %s7443_s21  ;;  %s4590_s21 = sld [smem:[#allocation8 + $0x18e]] }
 0xb60   : > { %v1226_v54 = vpop.xlane.xlu0 %1225 }
 0xb61   : > { %4874 = vpow2.f32 %v3317_v16 }
 0xb62   : > { %4876 = vrcp.f32 %v1226_v54 }
 0xb64   : > { %v7359_v44 = vpop.xlane.xlu0 %1640 }
 0xb68   : > { %v2056_v14 = vpop.xlane.xlu0 %2055 }
 0xb69   : > { %4878 = vrcp.f32 %v2056_v14  ;;  %v3609_v14 = vstv %s7446_s24  ;;  %s7544_s24 = sld [smem:[#allocation7 + $0x18c]] }
 0xb6e   : > { %v7362_v33 = vpop.eup %4874 }
 0xb6f   : > { %v4877_v36 = vpop.eup %4876  ;;  %4750 = vmatmul.mubr.msk.f32.vlgmr.msra.gmra.mxu1 %vm802_vm2, %v7362_v33 }
 0xb70   : > { %4753 = vmatpush3.xpose.msk.msra.mxu1 %vm479_vm1, %v4524_v12  ;;  %v1302_v39 = vmul.f32 %v4877_v36, %v5965_v56  ;;  %4756 = vmatprep.mubr.msk.f32.mxu1 %vm5051_vm0, %v5050_v0  ;;  %v3492_v56 = vstv %s7382_s18  ;;  %s7457_s18 = sld [smem:[#allocation7 + $0x188]] }
 0xb71   : > { %4754 = vmatprep.subr.mxu1 %v5050_v0  ;;  %v7453_v34 = vmul.f32 %v7142_v46, %v3492_v56 }
 0xb72   : > { %2134 = vrot.lane.b32.xlu0 %v1302_v39, %s7810_s28  ;;  %s7436_s28 = sld [smem:[#allocation2 + $0x187]]  ;;  %v3620_v39 = vstv %s7473_s10 }
 0xb73   : > { %s7977_s10 = sld [smem:[#allocation28_spill]] }
 0xb74   : > { %4755 = vmatpush3.xpose.msk.msra.mxu1 %vm479_vm1, %v4523_v57 }
 0xb76   : > { %v4879_v38 = vpop.eup %4878  ;;  %v3616_v36 = vstv %s7457_s18  ;;  %s7644_s18 = sld [smem:[#allocation8 + $0x18d]] }
 0xb77   : > { %4757 = vmatmul.mubr.msk.f32.vlgmr.msra.gmra.mxu1 %vm479_vm1, %v4522_v2  ;;  %v2132_v20 = vmul.f32 %v4879_v38, %v6562_v62  ;;  %v3507_v62 = vstv %s7390_s3  ;;  %s7465_s3 = sld [smem:[#allocation5 + $0x189]] }
 0xb78   : > { %v7462_v45 = vmul.f32 %v7142_v46, %v3507_v62  ;;  %v3594_v49 = vstv %s7436_s28  ;;  %s7531_s28 = sld [smem:[#allocation5 + $0x18c]] }
 0xb79   : > { %2142 = vrot.lane.b32.xlu0 %v2132_v20, %s7809_s5  ;;  %s7434_s5 = sld [smem:[#allocation8 + $0x186]] }
 0xb7d   : > { %v3627_v16 = vstv %s7465_s3  ;;  %s7557_s3 = sld [smem:[#allocation5 + $0x18d]] }
 0xb7f   : > { %7971 = sst [smem:[#allocation25_spill]] %s7434_s5 }
 0xb80   : > { %s7449_s5 = sld [smem:[#allocation5 + $0x188]] }
 0xb81   : > { %s7975_s4 = sld [smem:[#allocation25_spill]] }
 0xb86   : > { %v3612_v63 = vstv %s7449_s5  ;;  %s7525_s5 = sld [smem:[#allocation7 + $0x18b]] }
 0xb87   : > { %v3590_v24 = vstv %s7975_s4  ;;  %v7521_v12 = vmul.f32 %v7142_v46, %v3612_v63 }
 0xc2f   : > { %v7467_v32 = vpop.f32.mrf.mxu1 }
 0xc31   : > { %v4751_v41 = vpop.f32.mrf.mxu1 }
 0xc37   : > { %v7517_v54 = vpop.f32.mrf.mxu1 }
 0xc38   : > { %v3490_v57 = vmul.f32 %v3489_v31, %v7517_v54  ;;  %v3505_v2 = vmul.f32 %v3504_v18, %v7517_v54  ;;  %v3520_v38 = vmul.f32 %v3519_v37, %v7517_v54  ;;  %v3535_v20 = vmul.f32 %v3534_v4, %v7517_v54 }
 0xc39   : > { %v4758_v56 = vpop.f32.mrf.mxu1  ;;  %v3550_v62 = vmul.f32 %v3549_v40, %v7517_v54  ;;  %v3565_v3 = vmul.f32 %v3564_v30, %v7517_v54  ;;  %v3624_v31 = vstv %s7479_s9  ;;  %v3628_v18 = vmul.f32 %v7142_v46, %v3627_v16  ;;  %s4594_s9 = sld [smem:[#allocation8 + $0x18f]] }
 0xc3a   : > { %v3494_v47 = vadd.f32 %v7453_v34, %v3490_v57  ;;  %v3509_v37 = vadd.f32 %v7462_v45, %v3505_v2  ;;  %v3524_v9 = vadd.f32 %v3523_v52, %v3520_v38  ;;  %v3539_v23 = vadd.f32 %v3538_v19, %v3535_v20 }
 0xc3b   : > { %v3554_v41 = vadd.f32 %v3553_v35, %v3550_v62  ;;  %v3580_v4 = vmul.f32 %v3579_v29, %v7517_v54  ;;  %v3631_v40 = vstv %s7485_s23  ;;  %v3657_v45 = vstv %s7503_s8  ;;  %s442_s23 = sand.u32 1, %s7978_s15  }
 0xc3c   : > { %v3497_v30 = vadd.f32 %v3496_v5, %v3494_v47  ;;  %v3512_v55 = vadd.f32 %v3511_v61, %v3509_v37  ;;  %v3527_v34 = vadd.f32 %v3526_v25, %v3524_v9  ;;  %v3542_v52 = vadd.f32 %v3541_v58, %v3539_v23  ;;  %s4006_s4 = sshll.u32 %s442_s23, 4 }
 0xc3d   : > { %v3569_v19 = vadd.f32 %v3568_v59, %v3565_v3  ;;  %v3595_v35 = vmul.f32 %v3594_v49, %v7517_v54  ;;  %v3639_v29 = vstv %s7491_s25  ;;  %v3643_v61 = vmul.f32 %v7142_v46, %v3642_v15  ;;  %s7576_s25 = sld [smem:[#allocation5 + $0x18f]]  ;;  %s444_s8 = scalar_lea.vmem [#allocation11], %s4006_s4 }
 0xc3e   : > { %v3498_v5 = vmax.f32 %v3497_v30, 0.0  ;;  %v3513_v63 = vmax.f32 %v3512_v55, 0.0  ;;  %v3646_v25 = vstv %s7509_s20  ;;  %v3557_v58 = vadd.f32 %v3556_v42, %v3554_v41  ;;  %s7981_s20 = sld [smem:[#allocation23_spill]] }
 0xc3f   : > { %v3584_v59 = vadd.f32 %v3583_v27, %v3580_v4  ;;  %v3654_v16 = vstv %s7515_s29  ;;  %v3658_v49 = vmul.f32 %v7142_v46, %v3657_v45  ;;  %v3528_v2 = vmax.f32 %v3527_v34, 0.0  ;;  %s7982_s29 = smov 24  }
 0xc40   : > { %v3501_v57 = vmul.f32 %v3500_v48, %v3498_v5  ;;  %v3661_v38 = vstv %s7525_s5  ;;  %v3672_v20 = vstv %s7531_s28  ;;  %v3543_v56 = vmax.f32 %v3542_v52, 0.0  ;;  %s3844_s5 = sshll.u32 %s444_s8, 4  ;;  %s4605_s28 = sshll.u32 %s7980_s16, 8  ;;  %s7683_s5 = int_to_ptr.vmem [resolvable:$true] %s3844_s5 }
 0xc41   : > { %v3572_v62 = vadd.f32 %v3571_v8, %v3569_v19  ;;  %v3599_v3 = vadd.f32 %v3598_v51, %v3595_v35  ;;  %v3669_v47 = vstv %s7537_s13  ;;  %v3516_v27 = vmul.f32 %v3515_v17, %v3513_v63 }
 0xc42   : > { %v3502_v42 = vadd.f32 %v3501_v57, %v3486_v1  ;;  %v3610_v48 = vmul.f32 %v3609_v14, %v7517_v54  ;;  %v3625_v37 = vmul.f32 %v3624_v31, %v7517_v54  ;;  %v3558_v9 = vmax.f32 %v3557_v58, 0.0 }
 0xc43   : > { %v3587_v23 = vadd.f32 %v3586_v11, %v3584_v59  ;;  %v3673_v8 = vmul.f32 %v7142_v46, %v3672_v20  ;;  %v3676_v51 = vstv %s7544_s24  ;;  %v3531_v1 = vmul.f32 %v3530_v22, %v3528_v2 }
 0xc44   : > { %v3517_v41 = vadd.f32 %v3516_v27, %v3502_v42  ;;  %v3614_v17 = vadd.f32 %v7521_v12, %v3610_v48  ;;  %v3640_v14 = vmul.f32 %v3639_v29, %v7517_v54  ;;  %v3573_v31 = vmax.f32 %v3572_v62, 0.0  ;;  %p7984_p7 = scmp.ne.s32.totalorder %s7981_s20, 0 }
 0xc45   : > { %v3602_v4 = vadd.f32 %v3601_v43, %v3599_v3  ;;  %v3684_v11 = vstv %s7553_s2  ;;  %v3687_v15 = vstv %s7557_s3  ;;  %v3546_v55 = vmul.f32 %v3545_v6, %v3543_v56  ;;  %s7983_s2 = sld [smem:[#allocation45_spill]] }
 0xc46   : > { %v3532_v30 = vadd.f32 %v3531_v1, %v3517_v41  ;;  %v3629_v34 = vadd.f32 %v3628_v18, %v3625_v37  ;;  %v3655_v22 = vmul.f32 %v3654_v16, %v7517_v54  ;;  %v3561_v45 = vmul.f32 %v3560_v53, %v3558_v9 }
 0xc47   : > { %v3588_v12 = vmax.f32 %v3587_v23, 0.0  ;;  %v3699_v52 = vstv %s7561_s26  ;;  %v3702_v43 = vstv %s7567_s19  ;;  %v3617_v35 = vadd.f32 %v3616_v36, %v3614_v17  ;;  %s7695_s26 = scalar_lea.sflag [#allocation3], %s442_s23  ;;  %s4971_s19 = scalar_lea.vmem %s7683_s5, 256 }
 0xc48   : > { %v3547_v19 = vadd.f32 %v3546_v55, %v3532_v30  ;;  %v3644_v29 = vadd.f32 %v3643_v61, %v3640_v14  ;;  %v3670_v6 = vmul.f32 %v3669_v47, %v7517_v54  ;;  %v3603_v18 = vmax.f32 %v3602_v4, 0.0  ;;  %p4972_p9 = scmp.ne.s32.totalorder %s7683_s5, %s4971_s19 }
 0xc49   : > { %v3685_v53 = vmul.f32 %v3684_v11, %v7517_v54  ;;  %v3688_v5 = vmul.f32 %v7142_v46, %v3687_v15  ;;  %v3717_v63 = vstv %s7576_s25  ;;  %v3576_v59 = vmul.f32 %v3575_v21, %v3573_v31  ;;  %s4975_s25 = sshll.u32 %s5055_s0, 4  ;;  %s4976_s25 = int_to_ptr.vmem [resolvable:$false] %s4975_s25 }
 0xc4a   : > { %v3562_v58 = vadd.f32 %v3561_v45, %v3547_v19  ;;  %v3632_v36 = vadd.f32 %v3631_v40, %v3629_v34  ;;  %v3659_v61 = vadd.f32 %v3658_v49, %v3655_v22  ;;  %v3591_v16 = vmul.f32 %v3590_v24, %v3588_v12  ;;  %p4973_p8 = pnand %p4972_p9, %p7984_p7  ;;  %p4978_p6 = scmp.lt.s32.totalorder %s7683_s5, %s4976_s25 }
 0xc4b   : > { %v3700_v57 = vmul.f32 %v3699_v52, %v7517_v54  ;;  %v3703_v2 = vmul.f32 %v7142_v46, %v3702_v43  ;;  %v3714_v20 = vstv %s7588_s22  ;;  %v3618_v62 = vmax.f32 %v3617_v35, 0.0  ;;  %s7689_s3 = scalar_lea.hbm %s7983_s2, %s4605_s28  ;;  %s4977_s22 = scalar_lea.vmem %s4976_s25, 512 }
 0xc4c   : > { %v3577_v56 = vadd.f32 %v3576_v59, %v3562_v58  ;;  %v3647_v21 = vadd.f32 %v3646_v25, %v3644_v29  ;;  %v3674_v40 = vadd.f32 %v3673_v8, %v3670_v6  ;;  %v3606_v49 = vmul.f32 %v3605_v50, %v3603_v18  ;;  %p4974_p5 = pneg %p4973_p8  ;;  %p4979_p10 = scmp.lt.s32.totalorder %s4977_s22, %s4971_s19 }
 0xc4d   : > { %v3689_v24 = vadd.f32 %v3688_v5, %v3685_v53  ;;  %v3691_v3 = vstv %s7598_s17  ;;  %v3718_v47 = vmul.f32 %v7142_v46, %v3717_v63  ;;  %v3633_v27 = vmax.f32 %v3632_v36, 0.0 }
 0xc4e   : > { %v3592_v42 = vadd.f32 %v3591_v16, %v3577_v56  ;;  %v3662_v48 = vadd.f32 %v3661_v38, %v3659_v61  ;;  %v3715_v37 = vmul.f32 %v3714_v20, %v7517_v54  ;;  %v3635_v9 = vstv %s7605_s30  ;;  %v4526_v20 = vld [vmem:[%s7977_s10 + $0x78] sm:$0xff]  ;;  %v4525_v56 = vld [vmem:[%s7977_s10 + $0x70] sm:$0xff]  ;;  %p4980_p11 = por %p4979_p10, %p4978_p6 }
 0xc4f   : > { %v3704_v50 = vadd.f32 %v3703_v2, %v3700_v57  ;;  %v3621_v23 = vmul.f32 %v3620_v39, %v3618_v62  ;;  %v3648_v8 = vmax.f32 %v3647_v21, 0.0  ;;  %v3677_v41 = vadd.f32 %v3676_v51, %v3674_v40  ;;  %4760 = vmatpush3.msra.mxu0 %v4526_v20 }
 0xc50   : > { %v3607_v25 = vadd.f32 %v3606_v49, %v3592_v42  ;;  %v3650_v1 = vstv %s7611_s7  ;;  %v3692_v46 = vadd.f32 %v3691_v3, %v3689_v24  ;;  %v3706_v17 = vstv %s7616_s1  ;;  %4761 = vmatprep.subr.mxu0 %v5050_v0  ;;  %p4981_p13 = pnand %p4980_p11, %p4974_p5 }
 0xc51   : > { %v3636_v38 = vmul.f32 %v3635_v9, %v3633_v27  ;;  %v3663_v54 = vmax.f32 %v3662_v48, 0.0  ;;  %v3719_v31 = vadd.f32 %v3718_v47, %v3715_v37  ;;  %v3665_v4 = vstv %s7623_s11  ;;  %4762 = vmatpush3.msra.mxu0 %v4525_v56  ;;  %v811_v37 = vpop.xlane.xlu0 %810 }
 0xc52   : > { %v3622_v14 = vadd.f32 %v3621_v23, %v3607_v25  ;;  %v3721_v11 = vstv %s7630_s12  ;;  %v3651_v30 = vmul.f32 %v3650_v1, %v3648_v8  ;;  %v3678_v55 = vmax.f32 %v3677_v41, 0.0 }
 0xc53   : > { %v3707_v34 = vadd.f32 %v3706_v17, %v3704_v50  ;;  %v3680_v39 = vstv %s7636_s14  ;;  %v3666_v51 = vmul.f32 %v3665_v4, %v3663_v54  ;;  %v3693_v45 = vmax.f32 %v3692_v46, 0.0 }
 0xc54   : > { %v3637_v15 = vadd.f32 %v3636_v38, %v3622_v14  ;;  %v3722_v12 = vadd.f32 %v3721_v11, %v3719_v31  ;;  %v3695_v52 = vstv %s7644_s18  ;;  %v3681_v19 = vmul.f32 %v3680_v39, %v3678_v55 }
 0xc55   : > { %v3708_v35 = vmax.f32 %v3707_v34, 0.0  ;;  %v3710_v29 = vstv %s4590_s21  ;;  %v3696_v18 = vmul.f32 %v3695_v52, %v3693_v45  ;;  %v3725_v5 = vstv %s4594_s9  ;;  %v2135_v25 = vpop.permute.xlu0 %2134 }
 0xc56   : > { %v3652_v22 = vadd.f32 %v3651_v30, %v3637_v15  ;;  %v3723_v53 = vmax.f32 %v3722_v12, 0.0  ;;  %v2904_v57 = vsel %vm802_vm2, %v7052_v26, 0.0  ;;  %v3319_v2 = vsel %vm802_vm2, %v7362_v33, 0.0 }
 0xc57   : > { %v3711_v58 = vmul.f32 %v3710_v29, %v3708_v35  ;;  %v2489_v33 = vsel %vm802_vm2, %v6755_v7, 0.0 }
 0xc58   : > { %v3667_v43 = vadd.f32 %v3666_v51, %v3652_v22  ;;  %v3726_v36 = vmul.f32 %v3725_v5, %v3723_v53 }
 0xc5a   : > { %v3682_v6 = vadd.f32 %v3681_v19, %v3667_v43 }
 0xc5c   : > { %v3697_v63 = vadd.f32 %v3696_v18, %v3682_v6 }
 0xc5e   : > { %v3712_v59 = vadd.f32 %v3711_v58, %v3697_v63 }
 0xc60   : > { %v3727_v61 = vadd.f32 %v3726_v36, %v3712_v59 }
 0xc62   : > { %v3728_v16 = vsel %vm802_vm2, %v3727_v61, -inf }
 0xc63   : > { %3729 = vmax.xlane.f32.xlu1 %v3728_v16 }
 0xc67   : > { %2905 = vadd.xlane.f32.xlu1 %v2904_v57 }
 0xc6b   : > { %3320 = vadd.xlane.f32.xlu1 %v3319_v2 }
 0xcec   : > { %v3730_v62 = vpop.xlane.xlu1 %3729 }
 0xced   : > { %v3731_v21 = vsub.f32 %v3727_v61, %v3730_v62 }
 0xcef   : > { %v3732_v40 = vmul.f32 1.442695, %v3731_v21 }
 0xcf0   : > { %v2906_v24 = vpop.xlane.xlu1 %2905 }
 0xcf1   : > { %4880 = vpow2.f32 %v3732_v40 }
 0xcf2   : > { %4882 = vrcp.f32 %v2906_v24 }
 0xcf3   : > { %4884 = vrcp.f32 %v7359_v44 }
 0xcf4   : > { %v3321_v0 = vpop.xlane.xlu1 %3320 }
 0xcf5   : > { %4886 = vrcp.f32 %v3321_v0 }
 0xcf6   : > { %4888 = vrcp.f32 %v811_v37 }
 0xcfe   : > { %v4881_v49 = vpop.eup %4880 }
 0xcff   : > { %4764 = vmatmul.mubr.msk.f32.vlgmr.msra.gmra.mxu0 %vm802_vm2, %v4881_v49  ;;  %v3734_v26 = vsel %vm802_vm2, %v4881_v49, 0.0  ;;  %v4883_v3 = vpop.eup %4882 }
 0xd00   : > { %3735 = vadd.xlane.f32.xlu1 %v3734_v26  ;;  %v2982_v47 = vmul.f32 %v4883_v3, %v7159_v60  ;;  %v4885_v42 = vpop.eup %4884 }
 0xd01   : > { %v1717_v27 = vmul.f32 %v4885_v42, %v6262_v10 }
 0xd02   : > { %v4887_v48 = vpop.eup %4886 }
 0xd03   : > { %v3397_v7 = vmul.f32 %v4887_v48, %v7467_v32  ;;  %v4889_v50 = vpop.eup %4888  ;;  %v2143_v32 = vpop.permute.xlu0 %2142 }
 0xd04   : > { %2490 = vadd.xlane.f32.xlu1 %v2489_v33  ;;  %v887_v23 = vmul.f32 %v4889_v50, %v5665_v28 }
 0xd06   : > { %v2145_v10 = vsel %vm479_vm1, %v887_v23, %v2135_v25 }
 0xd15   : > { %3814 = vrot.lane.b32.xlu1 %v2982_v47, %s7979_s6 }
 0xd19   : > { %2138 = vrot.lane.b32.xlu1 %v1717_v27, %s5054_s27 }
 0xd1d   : > { %3818 = vrot.lane.b32.xlu1 %v3397_v7, %s5054_s27 }
 0xd89   : > { %v3736_v44 = vpop.xlane.xlu1 %3735 }
 0xd8d   : > { %v2491_v9 = vpop.xlane.xlu1 %2490 }
 0xd8e   : > { %4890 = vrcp.f32 %v2491_v9 }
 0xd8f   : > { %4892 = vrcp.f32 %v3736_v44 }
 0xd91   : > { %v3815_v60 = vpop.permute.xlu1 %3814 }
 0xd95   : > { %v2139_v8 = vpop.permute.xlu1 %2138 }
 0xd96   : > { %v2146_v41 = vsel %vm802_vm2, %v2145_v10, %v2139_v8 }
 0xd97   : > { %v2148_v1 = vsel %vm2147_vm3, %v2146_v41, %v2143_v32 }
 0xd98   : > { %2150 = vst.msk [vmem:[%s444_s8] sm:$0xff] %vm2149_vm4, %v2148_v1 }
 0xd99   : > { %v3819_v4 = vpop.permute.xlu1 %3818 }
 0xd9b   : > { %v4891_v46 = vpop.eup %4890 }
 0xd9c   : > { %v2567_v17 = vmul.f32 %v4891_v46, %v6859_v13  ;;  %v4893_v28 = vpop.eup %4892 }
 0xd9e   : > { %v3825_v14 = vsel %vm479_vm1, %v2567_v17, %v3815_v60 }
 0xd9f   : > { %v3826_v13 = vsel %vm802_vm2, %v3825_v14, %v3819_v4 }
 0xdbf   : > { %v3806_v38 = vpop.f32.mrf.mxu0 }
 0xdc0   : > { %v3812_v54 = vmul.f32 %v4893_v28, %v3806_v38 }
 0xdc1   : > { %v4765_v31 = vpop.f32.mrf.mxu0 }
 0xdc2   : > { %3822 = vrot.lane.b32.xlu1 %v3812_v54, %s7982_s29 }
 0xe34   : > { %v3823_v11 = vpop.permute.xlu1 %3822 }
 0xe35   : > { %v3827_v15 = vsel %vm2147_vm3, %v3826_v13, %v3823_v11 }
 0xe36   : > { %4596 = vst.msk [vmem:[%s444_s8 + $0x8] sm:$0xff] %vm2149_vm4, %v3827_v15 }
 0xe37   : > { %4984 = shalt.err (!%p4981_p13)
}
 0xe38   : > { %s4985_s17 = scalar_lea.hbm %s7689_s3, 256  ;;  %s4989_s1 = scalar_lea.hbm %s7983_s2, 512 }
 0xe39   : > { %p4986_p1 = scmp.ne.s32.totalorder %s7689_s3, %s4985_s17  ;;  %p4990_p3 = scmp.lt.s32.totalorder %s7689_s3, %s7983_s2 }
 0xe3a   : > { %p4991_p12 = scmp.lt.s32.totalorder %s4989_s1, %s4985_s17 }
 0xe3b   : > { %p4987_p0 = pnand %p4986_p1, %p7984_p7 }
 0xe3c   : > { %p4992_p4 = por %p4991_p12, %p4990_p3 }
 0xe3d   : > { %p4988_p2 = pneg %p4987_p0 }
 0xe3f   : > { %p4993_p9 = pnand %p4992_p4, %p4988_p2 }
 0xe41   : > { %4996 = shalt.err (!%p4993_p9)
}
 0xe42   : > { %s5056_s14 = smov 128  }
 0xe43   : > { %4786 = dma.vmem_to_hbm [thread:$0]  (%p7984_p7), %s7683_s5, 256, %s7689_s3, %s7695_s26, %s5056_s14, %s5056_s14, %s7979_s6  }
 0xe44 PF: > { %s7985_s18 = sld [smem:[#allocation19_spill]] }
 0xe45   : > { %s7986_s21 = sld [smem:[#allocation16_spill]] }
 0xe46   : > { %s7987_s9 = sld [smem:[#allocation24_spill]] }
 0xe4a   : > { %p4818_p8 = scmp.ge.s32.totalorder %s7985_s18, 2 }
 0xe4b   : > { %s3859_s10 = sand.u32 1, %s7986_s21  }
 0xe4c   : > { %p7988_p5 = scmp.ne.s32.totalorder %s7987_s9, 0  ;;  %s3860_s15 = scalar_lea.sflag [#allocation3], %s3859_s10 }
 0xe4e   : > { %p4805_p6 = pnand %p4818_p8, %p7988_p5 }
 0xe50   : > { %p4806_p10 = pneg %p4805_p6 }
 0xe52   : > { %5026 = dma.done.wait (%p4806_p10), %s3860_s15, 256  }
 0xe53   : > { %5028 = vsyncadd (%p4806_p10), %s3860_s15, 4294967040  ;;  %s7989_s12 = sld [smem:[#allocation21_spill]] }
 0xe54   : > { %s7990_s30 = sld [smem:[#allocation17_spill]] }
 0xe55   : > { %s7991_s10 = sld [smem:[#allocation18_spill]] }
 0xe56   : > { %s7992_s11 = sld [smem:[#allocation22_spill]] }
 0xe59   : > { %p22_p11 = scmp.ge.s32.totalorder %s7989_s12, 4  }
 0xe5b   :  { %24 = sbr.rel (!%p22_p11) target bundleno = 17 (0x11), region = 144 }
 0xe60   :  { %3865 = vsyncpa [#allocation3], 1 }
 0xe61   :  { %3867 = vsyncpa [#allocation3 + $0x1], 1 }
 0xe62   :  { %3868 = vsyncpa [#allocation4], 1 }
 0xe63   :  { %3870 = vsyncpa [#allocation4 + $0x1], 1 }
 0xe64   :  { %3871 = vsyncpa [#allocation6], 1 }
 0xe65   :  { %3872 = vsyncpa [#allocation9], 1 }

</bundles_post_ra>
